<compile_context>
chip_gen: v5e
topology: v5e:2x2
jax: 0.10.0
libtpu: 0.0.40
codegen_flags: <defaults>
</compile_context>

<pallas_src>
import jax
import jax.numpy as jnp
import numpy as np
from jax.experimental import pallas as pl
from jax.experimental.pallas import tpu as pltpu

PARAMS = {"nz": 100, "img_size": (1, 28, 28)}
LEAKY_SLOPE = 0.2
BN_EPS = 0.8
NZ_PAD = 128          # 100 -> 128 (lane-aligned K for the first matmul)
HIDDEN = (128, 256, 512, 1024)
OUT_REAL = int(np.prod(PARAMS["img_size"]))            # 784
OUT_PAD = ((OUT_REAL + 127) // 128) * 128              # 896 = 7*128


# ----------------------------------------------------------------------------
# Fused kernel: all 5 layers in one body, everything resident in VMEM.
# ----------------------------------------------------------------------------
def _generator_kernel(z_ref, w1_ref, b1_ref,
                      w2_ref, g2_ref, be2_ref,
                      w3_ref, g3_ref, be3_ref,
                      w4_ref, g4_ref, be4_ref,
                      w5_ref, b5_ref, o_ref):
    def leaky(y):                                  # f32 VPU math
        return jnp.where(y >= 0.0, y, LEAKY_SLOPE * y)

    def bf16_dot(h, w_ref):
        # bf16 x bf16 MXU matmul, f32 accumulation.  Weights live in VMEM as
        # bf16 (half the HBM bytes that dominate this kernel at small batch).
        return jnp.dot(h.astype(jnp.bfloat16), w_ref[...],
                       preferred_element_type=jnp.float32)

    def bn_fc(h, w_ref, g_ref, be_ref):
        # Linear WITHOUT bias: the bias cancels exactly under BN mean
        # subtraction, so its add + DMA are dead work.
        y = bf16_dot(h, w_ref)
        mean = jnp.mean(y, axis=0, keepdims=True)
        diff = y - mean
        var = jnp.mean(diff * diff, axis=0, keepdims=True)      # biased var
        scale = g_ref[...] * jax.lax.rsqrt(var + BN_EPS)         # fold gamma
        return leaky(diff * scale + be_ref[...])

    # Layer 1: Linear(100->128) (K zero-padded to 128) + LeakyReLU
    h = leaky(bf16_dot(z_ref[...], w1_ref) + b1_ref[...])
    # Layers 2-4: Linear + BatchNorm1d(eps=0.8, training stats) + LeakyReLU
    h = bn_fc(h, w2_ref, g2_ref, be2_ref)
    h = bn_fc(h, w3_ref, g3_ref, be3_ref)
    h = bn_fc(h, w4_ref, g4_ref, be4_ref)
    # Layer 5: Linear(1024->784, N zero-padded to 896) + Tanh
    o_ref[...] = jnp.tanh(bf16_dot(h, w5_ref) + b5_ref[...])


def generator_forward(z, kparams, img_size):
    """z:(B, nz) float32 -> (B, 1, 28, 28) float32 (NCHW, like torch .view)."""
    B, nz = z.shape
    assert B >= 2, "BatchNorm1d training-mode statistics need batch >= 2"
    z_pad = jnp.pad(z, ((0, 0), (0, NZ_PAD - nz)))

    args = (z_pad,
            kparams["w1"], kparams["b1"],
            kparams["w2"], kparams["g2"], kparams["be2"],
            kparams["w3"], kparams["g3"], kparams["be3"],
            kparams["w4"], kparams["g4"], kparams["be4"],
            kparams["w5"], kparams["b5"])

    # Whole-array VMEM residency, no grid -> no pipeline -> single-buffered.
    vmem_spec = pl.BlockSpec(memory_space=pltpu.MemorySpace.VMEM)

    # Advisory cost estimate (real, unpadded matmul dims; actual arg bytes).
    real_dims = [(nz, HIDDEN[0]), (HIDDEN[0], HIDDEN[1]),
                 (HIDDEN[1], HIDDEN[2]), (HIDDEN[2], HIDDEN[3]),
                 (HIDDEN[3], OUT_REAL)]
    flops = 2 * B * sum(ci * co for ci, co in real_dims)
    transcendentals = B * OUT_REAL + sum(HIDDEN[1:])   # tanh + rsqrt
    bytes_accessed = (sum(int(np.prod(a.shape)) * a.dtype.itemsize for a in args)
                      + B * OUT_PAD * 4)

    out = pl.pallas_call(
        _generator_kernel,
        out_shape=jax.ShapeDtypeStruct((B, OUT_PAD), jnp.float32),
        in_specs=[vmem_spec] * len(args),
        out_specs=vmem_spec,
        compiler_params=pltpu.CompilerParams(
            vmem_limit_bytes=32 * 1024 * 1024),
        cost_estimate=pl.CostEstimate(flops=flops,
                                      transcendentals=transcendentals,
                                      bytes_accessed=bytes_accessed),
    )(*args)

    return out[:, :OUT_REAL].reshape(B, *img_size)


# ----------------------------------------------------------------------------
# Parameter construction (deterministic, PyTorch-default-style init) and a
# one-time transform into the padded / bf16 kernel layout.
# ----------------------------------------------------------------------------
def init_generator_params(key, nz, img_size):
    dims = [nz, *HIDDEN, int(np.prod(img_size))]
    normalized = [False, True, True, True, False]
    layers = []
    for li in range(len(dims) - 1):
        cin, cout = dims[li], dims[li + 1]
        key, kw, kb = jax.random.split(key, 3)
        bound = 1.0 / np.sqrt(cin)
        w = jax.random.uniform(kw, (cin, cout), jnp.float32, -bound, bound)
        b = jax.random.uniform(kb, (1, cout), jnp.float32, -bound, bound)
        gamma = jnp.ones((1, cout), jnp.float32)   # BN weight (torch default)
        beta = jnp.zeros((1, cout), jnp.float32)   # BN bias   (torch default)
        layers.append(dict(w=w, b=b, gamma=gamma, beta=beta,
                           normalize=normalized[li]))
    return layers


def prepare_kernel_params(layers, nz):
    """One-time padding / pruning / bf16 cast of torch-style params."""
    p1, p2, p3, p4, p5 = layers
    bf16 = jnp.bfloat16
    return dict(
        w1=jnp.pad(p1["w"], ((0, NZ_PAD - nz), (0, 0))).astype(bf16),  # (128,128)
        b1=p1["b"],                                                    # (1,128) f32
        w2=p2["w"].astype(bf16), g2=p2["gamma"], be2=p2["beta"],       # bias dropped
        w3=p3["w"].astype(bf16), g3=p3["gamma"], be3=p3["beta"],
        w4=p4["w"].astype(bf16), g4=p4["gamma"], be4=p4["beta"],
        w5=jnp.pad(p5["w"], ((0, 0), (0, OUT_PAD - OUT_REAL))).astype(bf16),
        b5=jnp.pad(p5["b"], ((0, 0), (0, OUT_PAD - OUT_REAL))),        # (1,896) f32
    )


# ----------------------------------------------------------------------------
# References.
#   * generator_reference       : torch-faithful f32 math (semantic check,
#                                 loose tolerance because kernel uses bf16 weights).
#   * generator_reference_bf16  : same math graph as the kernel in pure JAX
#                                 (tight tolerance: validates the kernel itself).
# ----------------------------------------------------------------------------
def generator_reference(z, layers, img_size):
    h = z
    n = len(layers)
    for li, p in enumerate(layers):
        y = h @ p["w"] + p["b"]
        if p["normalize"]:
            mean = jnp.mean(y, axis=0, keepdims=True)
            var = jnp.mean((y - mean) ** 2, axis=0, keepdims=True)
            y = (y - mean) / jnp.sqrt(var + BN_EPS) * p["gamma"] + p["beta"]
        y = jnp.tanh(y) if li == n - 1 else jnp.where(y >= 0.0, y, LEAKY_SLOPE * y)
        h = y
    return h.reshape(z.shape[0], *img_size)


def generator_reference_bf16(z, kparams, nz, img_size):
    def dot16(h, w):
        return jnp.dot(h.astype(jnp.bfloat16), w,
                       preferred_element_type=jnp.float32)

    def leaky(y):
        return jnp.where(y >= 0.0, y, LEAKY_SLOPE * y)

    z_pad = jnp.pad(z, ((0, 0), (0, NZ_PAD - nz)))
    h = leaky(dot16(z_pad, kparams["w1"]) + kparams["b1"])
    for wk, gk, bk in (("w2", "g2", "be2"), ("w3", "g3", "be3"),
                       ("w4", "g4", "be4")):
        y = dot16(h, kparams[wk])
        mean = jnp.mean(y, axis=0, keepdims=True)
        diff = y - mean
        var = jnp.mean(diff * diff, axis=0, keepdims=True)
        h = leaky(diff * (kparams[gk] * jax.lax.rsqrt(var + BN_EPS)) + kparams[bk])
    y = jnp.tanh(dot16(h, kparams["w5"]) + kparams["b5"])
    return y[:, :OUT_REAL].reshape(z.shape[0], *img_size)


if __name__ == "__main__":
    key = jax.random.PRNGKey(0)
    key, kz, kp = jax.random.split(key, 3)

    B = 64  # small but sublane-aligned; one weight read amortized over B rows
    nz = PARAMS["nz"]
    img_size = PARAMS["img_size"]

    z = jax.random.normal(kz, (B, nz), jnp.float32)
    layers = init_generator_params(kp, nz, img_size)
    kparams = prepare_kernel_params(layers, nz)

    img = jax.block_until_ready(generator_forward(z, kparams, img_size))
    assert img.shape == (B, *img_size), img.shape

    # Tight check against the bf16-matched pure-JAX graph (kernel correctness).
    ref16 = jax.block_until_ready(
        generator_reference_bf16(z, kparams, nz, img_size))
    np.testing.assert_allclose(np.asarray(img), np.asarray(ref16),
                               rtol=5e-3, atol=5e-3)

    # Loose check against the torch-faithful f32 reference (semantics; slack
    # accounts for the bf16 weight quantization).
    ref32 = jax.block_until_ready(generator_reference(z, layers, img_size))
    np.testing.assert_allclose(np.asarray(img), np.asarray(ref32),
                               rtol=6e-2, atol=6e-2)

    print("KERNEL_OK")
</pallas_src>

<mosaic_0001>
module attributes {stable_mosaic.version = 11 : i64} {
  func.func @_generator_kernel(%arg0: memref<64x128xf32, #tpu.memory_space<vmem>>, %arg1: memref<128x128xbf16, #tpu.memory_space<vmem>>, %arg2: memref<1x128xf32, #tpu.memory_space<vmem>>, %arg3: memref<128x256xbf16, #tpu.memory_space<vmem>>, %arg4: memref<1x256xf32, #tpu.memory_space<vmem>>, %arg5: memref<1x256xf32, #tpu.memory_space<vmem>>, %arg6: memref<256x512xbf16, #tpu.memory_space<vmem>>, %arg7: memref<1x512xf32, #tpu.memory_space<vmem>>, %arg8: memref<1x512xf32, #tpu.memory_space<vmem>>, %arg9: memref<512x1024xbf16, #tpu.memory_space<vmem>>, %arg10: memref<1x1024xf32, #tpu.memory_space<vmem>>, %arg11: memref<1x1024xf32, #tpu.memory_space<vmem>>, %arg12: memref<1024x896xbf16, #tpu.memory_space<vmem>>, %arg13: memref<1x896xf32, #tpu.memory_space<vmem>>, %arg14: memref<64x896xf32, #tpu.memory_space<vmem>>) attributes {dimension_semantics = [], scalar_prefetch = 0 : i64, scratch_operands = 0 : i64, tpu.core_type = #tpu.core_type<tc>} {
    %c0 = arith.constant 0 : index
    %c0_0 = arith.constant 0 : index
    %0 = vector.load %arg0[%c0, %c0_0] : memref<64x128xf32, #tpu.memory_space<vmem>>, vector<64x128xf32>
    %1 = arith.truncf %0 : vector<64x128xf32> to vector<64x128xbf16>
    %c0_1 = arith.constant 0 : index
    %c0_2 = arith.constant 0 : index
    %2 = vector.load %arg1[%c0_1, %c0_2] : memref<128x128xbf16, #tpu.memory_space<vmem>>, vector<128x128xbf16>
    %cst = arith.constant dense<0.000000e+00> : vector<64x128xf32>
    %3 = tpu.matmul %1, %2, %cst {dimension_numbers = #tpu.dot_dimension_numbers<[1], [0], [0], [1], [0, 0, 1, 1], [], []>} : vector<64x128xbf16>, vector<128x128xbf16>, vector<64x128xf32> -> vector<64x128xf32>
    %c0_3 = arith.constant 0 : index
    %c0_4 = arith.constant 0 : index
    %4 = vector.load %arg2[%c0_3, %c0_4] : memref<1x128xf32, #tpu.memory_space<vmem>>, vector<1x128xf32>
    %5 = vector.broadcast %4 : vector<1x128xf32> to vector<64x128xf32>
    %6 = arith.addf %3, %5 : vector<64x128xf32>
    %cst_5 = arith.constant 0.000000e+00 : f32
    %7 = vector.broadcast %cst_5 : f32 to vector<64x128xf32>
    %8 = arith.cmpf oge, %6, %7 : vector<64x128xf32>
    %cst_6 = arith.constant 2.000000e-01 : f32
    %9 = vector.broadcast %cst_6 : f32 to vector<64x128xf32>
    %10 = arith.mulf %9, %6 : vector<64x128xf32>
    %11 = arith.select %8, %6, %10 : vector<64x128xi1>, vector<64x128xf32>
    %12 = arith.truncf %11 : vector<64x128xf32> to vector<64x128xbf16>
    %c0_7 = arith.constant 0 : index
    %c0_8 = arith.constant 0 : index
    %13 = vector.load %arg3[%c0_7, %c0_8] : memref<128x256xbf16, #tpu.memory_space<vmem>>, vector<128x256xbf16>
    %cst_9 = arith.constant dense<0.000000e+00> : vector<64x256xf32>
    %14 = tpu.matmul %12, %13, %cst_9 {dimension_numbers = #tpu.dot_dimension_numbers<[1], [0], [0], [1], [0, 0, 1, 1], [], []>} : vector<64x128xbf16>, vector<128x256xbf16>, vector<64x256xf32> -> vector<64x256xf32>
    %cst_10 = arith.constant dense<0.000000e+00> : vector<256xf32>
    %15 = vector.multi_reduction <add>, %14, %cst_10 [0] : vector<64x256xf32> to vector<256xf32>
    %16 = vector.shape_cast %15 : vector<256xf32> to vector<1x256xf32>
    %cst_11 = arith.constant 6.400000e+01 : f32
    %17 = vector.broadcast %cst_11 : f32 to vector<1x256xf32>
    %18 = arith.divf %16, %17 : vector<1x256xf32>
    %19 = vector.broadcast %18 : vector<1x256xf32> to vector<64x256xf32>
    %20 = arith.subf %14, %19 : vector<64x256xf32>
    %21 = arith.mulf %20, %20 : vector<64x256xf32>
    %cst_12 = arith.constant dense<0.000000e+00> : vector<256xf32>
    %22 = vector.multi_reduction <add>, %21, %cst_12 [0] : vector<64x256xf32> to vector<256xf32>
    %23 = vector.shape_cast %22 : vector<256xf32> to vector<1x256xf32>
    %cst_13 = arith.constant 6.400000e+01 : f32
    %24 = vector.broadcast %cst_13 : f32 to vector<1x256xf32>
    %25 = arith.divf %23, %24 : vector<1x256xf32>
    %c0_14 = arith.constant 0 : index
    %c0_15 = arith.constant 0 : index
    %26 = vector.load %arg4[%c0_14, %c0_15] : memref<1x256xf32, #tpu.memory_space<vmem>>, vector<1x256xf32>
    %cst_16 = arith.constant 8.000000e-01 : f32
    %27 = vector.broadcast %cst_16 : f32 to vector<1x256xf32>
    %28 = arith.addf %25, %27 : vector<1x256xf32>
    %29 = math.rsqrt %28 : vector<1x256xf32>
    %30 = arith.mulf %26, %29 : vector<1x256xf32>
    %31 = vector.broadcast %30 : vector<1x256xf32> to vector<64x256xf32>
    %32 = arith.mulf %20, %31 : vector<64x256xf32>
    %c0_17 = arith.constant 0 : index
    %c0_18 = arith.constant 0 : index
    %33 = vector.load %arg5[%c0_17, %c0_18] : memref<1x256xf32, #tpu.memory_space<vmem>>, vector<1x256xf32>
    %34 = vector.broadcast %33 : vector<1x256xf32> to vector<64x256xf32>
    %35 = arith.addf %32, %34 : vector<64x256xf32>
    %cst_19 = arith.constant 0.000000e+00 : f32
    %36 = vector.broadcast %cst_19 : f32 to vector<64x256xf32>
    %37 = arith.cmpf oge, %35, %36 : vector<64x256xf32>
    %cst_20 = arith.constant 2.000000e-01 : f32
    %38 = vector.broadcast %cst_20 : f32 to vector<64x256xf32>
    %39 = arith.mulf %38, %35 : vector<64x256xf32>
    %40 = arith.select %37, %35, %39 : vector<64x256xi1>, vector<64x256xf32>
    %41 = arith.truncf %40 : vector<64x256xf32> to vector<64x256xbf16>
    %c0_21 = arith.constant 0 : index
    %c0_22 = arith.constant 0 : index
    %42 = vector.load %arg6[%c0_21, %c0_22] : memref<256x512xbf16, #tpu.memory_space<vmem>>, vector<256x512xbf16>
    %cst_23 = arith.constant dense<0.000000e+00> : vector<64x512xf32>
    %43 = tpu.matmul %41, %42, %cst_23 {dimension_numbers = #tpu.dot_dimension_numbers<[1], [0], [0], [1], [0, 0, 1, 1], [], []>} : vector<64x256xbf16>, vector<256x512xbf16>, vector<64x512xf32> -> vector<64x512xf32>
    %cst_24 = arith.constant dense<0.000000e+00> : vector<512xf32>
    %44 = vector.multi_reduction <add>, %43, %cst_24 [0] : vector<64x512xf32> to vector<512xf32>
    %45 = vector.shape_cast %44 : vector<512xf32> to vector<1x512xf32>
    %cst_25 = arith.constant 6.400000e+01 : f32
    %46 = vector.broadcast %cst_25 : f32 to vector<1x512xf32>
    %47 = arith.divf %45, %46 : vector<1x512xf32>
    %48 = vector.broadcast %47 : vector<1x512xf32> to vector<64x512xf32>
    %49 = arith.subf %43, %48 : vector<64x512xf32>
    %50 = arith.mulf %49, %49 : vector<64x512xf32>
    %cst_26 = arith.constant dense<0.000000e+00> : vector<512xf32>
    %51 = vector.multi_reduction <add>, %50, %cst_26 [0] : vector<64x512xf32> to vector<512xf32>
    %52 = vector.shape_cast %51 : vector<512xf32> to vector<1x512xf32>
    %cst_27 = arith.constant 6.400000e+01 : f32
    %53 = vector.broadcast %cst_27 : f32 to vector<1x512xf32>
    %54 = arith.divf %52, %53 : vector<1x512xf32>
    %c0_28 = arith.constant 0 : index
    %c0_29 = arith.constant 0 : index
    %55 = vector.load %arg7[%c0_28, %c0_29] : memref<1x512xf32, #tpu.memory_space<vmem>>, vector<1x512xf32>
    %cst_30 = arith.constant 8.000000e-01 : f32
    %56 = vector.broadcast %cst_30 : f32 to vector<1x512xf32>
    %57 = arith.addf %54, %56 : vector<1x512xf32>
    %58 = math.rsqrt %57 : vector<1x512xf32>
    %59 = arith.mulf %55, %58 : vector<1x512xf32>
    %60 = vector.broadcast %59 : vector<1x512xf32> to vector<64x512xf32>
    %61 = arith.mulf %49, %60 : vector<64x512xf32>
    %c0_31 = arith.constant 0 : index
    %c0_32 = arith.constant 0 : index
    %62 = vector.load %arg8[%c0_31, %c0_32] : memref<1x512xf32, #tpu.memory_space<vmem>>, vector<1x512xf32>
    %63 = vector.broadcast %62 : vector<1x512xf32> to vector<64x512xf32>
    %64 = arith.addf %61, %63 : vector<64x512xf32>
    %cst_33 = arith.constant 0.000000e+00 : f32
    %65 = vector.broadcast %cst_33 : f32 to vector<64x512xf32>
    %66 = arith.cmpf oge, %64, %65 : vector<64x512xf32>
    %cst_34 = arith.constant 2.000000e-01 : f32
    %67 = vector.broadcast %cst_34 : f32 to vector<64x512xf32>
    %68 = arith.mulf %67, %64 : vector<64x512xf32>
    %69 = arith.select %66, %64, %68 : vector<64x512xi1>, vector<64x512xf32>
    %70 = arith.truncf %69 : vector<64x512xf32> to vector<64x512xbf16>
    %c0_35 = arith.constant 0 : index
    %c0_36 = arith.constant 0 : index
    %71 = vector.load %arg9[%c0_35, %c0_36] : memref<512x1024xbf16, #tpu.memory_space<vmem>>, vector<512x1024xbf16>
    %cst_37 = arith.constant dense<0.000000e+00> : vector<64x1024xf32>
    %72 = tpu.matmul %70, %71, %cst_37 {dimension_numbers = #tpu.dot_dimension_numbers<[1], [0], [0], [1], [0, 0, 1, 1], [], []>} : vector<64x512xbf16>, vector<512x1024xbf16>, vector<64x1024xf32> -> vector<64x1024xf32>
    %cst_38 = arith.constant dense<0.000000e+00> : vector<1024xf32>
    %73 = vector.multi_reduction <add>, %72, %cst_38 [0] : vector<64x1024xf32> to vector<1024xf32>
    %74 = vector.shape_cast %73 : vector<1024xf32> to vector<1x1024xf32>
    %cst_39 = arith.constant 6.400000e+01 : f32
    %75 = vector.broadcast %cst_39 : f32 to vector<1x1024xf32>
    %76 = arith.divf %74, %75 : vector<1x1024xf32>
    %77 = vector.broadcast %76 : vector<1x1024xf32> to vector<64x1024xf32>
    %78 = arith.subf %72, %77 : vector<64x1024xf32>
    %79 = arith.mulf %78, %78 : vector<64x1024xf32>
    %cst_40 = arith.constant dense<0.000000e+00> : vector<1024xf32>
    %80 = vector.multi_reduction <add>, %79, %cst_40 [0] : vector<64x1024xf32> to vector<1024xf32>
    %81 = vector.shape_cast %80 : vector<1024xf32> to vector<1x1024xf32>
    %cst_41 = arith.constant 6.400000e+01 : f32
    %82 = vector.broadcast %cst_41 : f32 to vector<1x1024xf32>
    %83 = arith.divf %81, %82 : vector<1x1024xf32>
    %c0_42 = arith.constant 0 : index
    %c0_43 = arith.constant 0 : index
    %84 = vector.load %arg10[%c0_42, %c0_43] : memref<1x1024xf32, #tpu.memory_space<vmem>>, vector<1x1024xf32>
    %cst_44 = arith.constant 8.000000e-01 : f32
    %85 = vector.broadcast %cst_44 : f32 to vector<1x1024xf32>
    %86 = arith.addf %83, %85 : vector<1x1024xf32>
    %87 = math.rsqrt %86 : vector<1x1024xf32>
    %88 = arith.mulf %84, %87 : vector<1x1024xf32>
    %89 = vector.broadcast %88 : vector<1x1024xf32> to vector<64x1024xf32>
    %90 = arith.mulf %78, %89 : vector<64x1024xf32>
    %c0_45 = arith.constant 0 : index
    %c0_46 = arith.constant 0 : index
    %91 = vector.load %arg11[%c0_45, %c0_46] : memref<1x1024xf32, #tpu.memory_space<vmem>>, vector<1x1024xf32>
    %92 = vector.broadcast %91 : vector<1x1024xf32> to vector<64x1024xf32>
    %93 = arith.addf %90, %92 : vector<64x1024xf32>
    %cst_47 = arith.constant 0.000000e+00 : f32
    %94 = vector.broadcast %cst_47 : f32 to vector<64x1024xf32>
    %95 = arith.cmpf oge, %93, %94 : vector<64x1024xf32>
    %cst_48 = arith.constant 2.000000e-01 : f32
    %96 = vector.broadcast %cst_48 : f32 to vector<64x1024xf32>
    %97 = arith.mulf %96, %93 : vector<64x1024xf32>
    %98 = arith.select %95, %93, %97 : vector<64x1024xi1>, vector<64x1024xf32>
    %99 = arith.truncf %98 : vector<64x1024xf32> to vector<64x1024xbf16>
    %c0_49 = arith.constant 0 : index
    %c0_50 = arith.constant 0 : index
    %100 = vector.load %arg12[%c0_49, %c0_50] : memref<1024x896xbf16, #tpu.memory_space<vmem>>, vector<1024x896xbf16>
    %cst_51 = arith.constant dense<0.000000e+00> : vector<64x896xf32>
    %101 = tpu.matmul %99, %100, %cst_51 {dimension_numbers = #tpu.dot_dimension_numbers<[1], [0], [0], [1], [0, 0, 1, 1], [], []>} : vector<64x1024xbf16>, vector<1024x896xbf16>, vector<64x896xf32> -> vector<64x896xf32>
    %c0_52 = arith.constant 0 : index
    %c0_53 = arith.constant 0 : index
    %102 = vector.load %arg13[%c0_52, %c0_53] : memref<1x896xf32, #tpu.memory_space<vmem>>, vector<1x896xf32>
    %103 = vector.broadcast %102 : vector<1x896xf32> to vector<64x896xf32>
    %104 = arith.addf %101, %103 : vector<64x896xf32>
    %105 = math.tanh %104 : vector<64x896xf32>
    %c0_54 = arith.constant 0 : index
    %c0_55 = arith.constant 0 : index
    %106 = vector.load %arg14[%c0_54, %c0_55] : memref<64x896xf32, #tpu.memory_space<vmem>>, vector<64x896xf32>
    tpu.vector_store %arg14[%c0_54, %c0_55], %105 {strides = array<i32>} : memref<64x896xf32, #tpu.memory_space<vmem>>, vector<64x896xf32>,
    return
  }
}

</mosaic_0001>

<bundles_post_ra>
// kernel: tpu_custom_call.1
= control target key start
LH: loop header
LB: loop body
LE: loop exit
PB: predicated region body
PF: predicated region fallthrough
CT: control target
= control target key end

     0   :  { %19 = vsyncpa [#allocation3], 0  ;;  %s17288_s0 = inlined_call_operand.hbm [shape: f32[64,128], index: 0, kind: input, shape index: {}]   ;;  %s17289_s1 = inlined_call_operand.hbm [shape: bf16[128,128], index: 1, kind: input, shape index: {}]   ;;  %s17290_s2 = inlined_call_operand.hbm [shape: f32[1,128], index: 2, kind: input, shape index: {}]   ;;  %s17291_s3 = inlined_call_operand.hbm [shape: bf16[128,256], index: 3, kind: input, shape index: {}]   ;;  %s17292_s4 = inlined_call_operand.hbm [shape: f32[1,256], index: 4, kind: input, shape index: {}]   ;;  %s17293_s5 = inlined_call_operand.hbm [shape: f32[1,256], index: 5, kind: input, shape index: {}]   ;;  %s17294_s6 = inlined_call_operand.hbm [shape: bf16[256,512], index: 6, kind: input, shape index: {}]   ;;  %s17295_s7 = inlined_call_operand.hbm [shape: f32[1,512], index: 7, kind: input, shape index: {}]   ;;  %s17296_s8 = inlined_call_operand.hbm [shape: f32[1,512], index: 8, kind: input, shape index: {}]   ;;  %s17297_s9 = inlined_call_operand.hbm [shape: bf16[512,1024], index: 9, kind: input, shape index: {}]   ;;  %s17298_s10 = inlined_call_operand.hbm [shape: f32[1,1024], index: 10, kind: input, shape index: {}]   ;;  %s17299_s11 = inlined_call_operand.hbm [shape: f32[1,1024], index: 11, kind: input, shape index: {}]   ;;  %s17300_s12 = inlined_call_operand.hbm [shape: bf16[1024,896], index: 12, kind: input, shape index: {}]   ;;  %s17301_s13 = inlined_call_operand.hbm [shape: f32[1,896], index: 13, kind: input, shape index: {}]   ;;  %s17302_s14 = inlined_call_operand.hbm [shape: f32[64,896], index: 14, kind: output, shape index: {}]  }
   0x1   :  { %20 = vsyncpa [#allocation6], 0 }
   0x2   :  { %21 = vsyncpa [#allocation9], 0 }
   0x3   :  { %22 = vsyncpa [#allocation12], 0 }
   0x4   :  { %23 = vsyncpa [#allocation15], 0 }
   0x5   :  { %24 = vsyncpa [#allocation18], 0 }
   0x6   :  { %25 = vsyncpa [#allocation21], 0 }
   0x7   :  { %26 = vsyncpa [#allocation24], 0  ;;  %s45_s15 = sshll.u32 %s17289_s1, 4  ;;  %s46_s15 = int_to_ptr.hbm [resolvable:$true] %s45_s15 }
   0x8   :  { %27 = vsyncpa [#allocation4], 0  ;;  %s14261_s16 = smov [#allocation5]   ;;  %s14262_s18 = smov 64  }
   0x9   :  { %s47_s17 = sshll.u32 %s14261_s16, 4  ;;  %s14263_s19 = smov 4   ;;  %s48_s17 = int_to_ptr.vmem [resolvable:$true] %s47_s17 }
   0xa   :  { %53 = dma.hbm_to_vmem [thread:$0]  %s46_s15, 1024, %s48_s17, [#allocation6], %s14262_s18, %s14262_s18, %s14263_s19  }
   0xb   :  { %s69_s22 = sshll.u32 %s17291_s3, 4  ;;  %s14264_s23 = smov [#allocation8]   ;;  %s70_s22 = int_to_ptr.hbm [resolvable:$true] %s69_s22 }
   0xc   :  { %s71_s24 = sshll.u32 %s14264_s23, 4  ;;  %s94_s27 = sshll.u32 %s17293_s5, 4  ;;  %s72_s24 = int_to_ptr.vmem [resolvable:$true] %s71_s24  ;;  %s95_s27 = int_to_ptr.hbm [resolvable:$true] %s94_s27 }
   0xd   :  { %s14265_s1 = smov 128   ;;  %s14266_s28 = smov 8  }
   0xe   :  { %77 = dma.hbm_to_vmem [thread:$0]  %s70_s22, 2048, %s72_s24, [#allocation9], %s14265_s1, %s14265_s1, %s14266_s28  }
   0xf   :  { %s118_s15 = sshll.u32 %s17295_s7, 4  ;;  %s14267_s3 = smov [#allocation11]   ;;  %s119_s15 = int_to_ptr.hbm [resolvable:$true] %s118_s15 }
  0x10   :  { %s96_s16 = sshll.u32 %s14267_s3, 4  ;;  %s14268_s17 = smov [#allocation14]   ;;  %s97_s16 = int_to_ptr.vmem [resolvable:$true] %s96_s16 }
  0x11   :  { %99 = dma.hbm_to_vmem [thread:$0]  %s95_s27, 32, %s97_s16, [#allocation12]  }
  0x12   :  { %s120_s18 = sshll.u32 %s14268_s17, 4  ;;  %s139_s20 = sshll.u32 %s17297_s9, 4  ;;  %s121_s18 = int_to_ptr.vmem [resolvable:$true] %s120_s18  ;;  %s140_s20 = int_to_ptr.hbm [resolvable:$true] %s139_s20 }
  0x13   :  { %123 = dma.hbm_to_vmem [thread:$0]  %s119_s15, 64, %s121_s18, [#allocation15]  }
  0x14   :  { %s14269_s21 = smov [#allocation17]   ;;  %s164_s7 = sshll.u32 %s17299_s11, 4  ;;  %s165_s7 = int_to_ptr.hbm [resolvable:$true] %s164_s7 }
  0x15   :  { %s141_s22 = sshll.u32 %s14269_s21, 4  ;;  %s14270_s25 = smov 512   ;;  %s142_s22 = int_to_ptr.vmem [resolvable:$true] %s141_s22 }
  0x16   :  { %s14271_s26 = smov 32   ;;  %s14272_s27 = smov [#allocation20]  }
  0x17   :  { %147 = dma.hbm_to_vmem [thread:$0]  %s140_s20, 32768, %s142_s22, [#allocation18], %s14270_s25, %s14270_s25, %s14271_s26  }
  0x18   :  { %s166_s29 = sshll.u32 %s14272_s27, 4  ;;  %s32_s9 = sshll.u32 %s17288_s0, 4  ;;  %s167_s29 = int_to_ptr.vmem [resolvable:$true] %s166_s29  ;;  %s33_s9 = int_to_ptr.hbm [resolvable:$true] %s32_s9 }
  0x19   :  { %169 = dma.hbm_to_vmem [thread:$0]  %s165_s7, 128, %s167_s29, [#allocation21]  }
  0x1a   :  { %s59_s17 = sshll.u32 %s17290_s2, 4  ;;  %s14273_s18 = smov [#allocation2]   ;;  %s60_s17 = int_to_ptr.hbm [resolvable:$true] %s59_s17 }
  0x1b   :  { %s34_s5 = sshll.u32 %s14273_s18, 4  ;;  %s14274_s11 = smov [#allocation7]   ;;  %s35_s5 = int_to_ptr.vmem [resolvable:$true] %s34_s5 }
  0x1c   :  { %40 = dma.hbm_to_vmem [thread:$0]  %s33_s9, 1024, %s35_s5, [#allocation3], %s14265_s1, %s14265_s1, %s14266_s28  }
  0x1d   :  { %s61_s19 = sshll.u32 %s14274_s11, 4  ;;  %s83_s0 = sshll.u32 %s17292_s4, 4  ;;  %s62_s19 = int_to_ptr.vmem [resolvable:$true] %s61_s19  ;;  %s84_s0 = int_to_ptr.hbm [resolvable:$true] %s83_s0 }
  0x1e   :  { %64 = dma.hbm_to_vmem [thread:$0]  %s60_s17, 16, %s62_s19, [#allocation6]  }
  0x1f   :  { %s104_s2 = sshll.u32 %s17294_s6, 4  ;;  %s14275_s24 = smov [#allocation10]   ;;  %s105_s2 = int_to_ptr.hbm [resolvable:$true] %s104_s2 }
  0x20   :  { %s85_s7 = sshll.u32 %s14275_s24, 4  ;;  %s14276_s25 = smov [#allocation13]   ;;  %s86_s7 = int_to_ptr.vmem [resolvable:$true] %s85_s7 }
  0x21   :  { %88 = dma.hbm_to_vmem [thread:$0]  %s84_s0, 32, %s86_s7, [#allocation9]  }
  0x22   :  { %s106_s1 = sshll.u32 %s14276_s25, 4  ;;  %s14277_s28 = smov 256   ;;  %s107_s1 = int_to_ptr.vmem [resolvable:$true] %s106_s1 }
  0x23   :  { %s14278_s26 = smov 16   ;;  %s129_s29 = sshll.u32 %s17296_s8, 4  ;;  %s130_s29 = int_to_ptr.hbm [resolvable:$true] %s129_s29 }
  0x24   :  { %112 = dma.hbm_to_vmem [thread:$0]  %s105_s2, 8192, %s107_s1, [#allocation12], %s14277_s28, %s14277_s28, %s14278_s26  }
  0x25   :  { %s14279_s30 = smov [#allocation16]   ;;  %s153_s15 = sshll.u32 %s17298_s10, 4  ;;  %s154_s15 = int_to_ptr.hbm [resolvable:$true] %s153_s15 }
  0x26   :  { %s131_s3 = sshll.u32 %s14279_s30, 4  ;;  %s14280_s16 = smov [#allocation19]   ;;  %s132_s3 = int_to_ptr.vmem [resolvable:$true] %s131_s3 }
  0x27   :  { %134 = dma.hbm_to_vmem [thread:$0]  %s130_s29, 64, %s132_s3, [#allocation15]  }
  0x28   :  { %s155_s17 = sshll.u32 %s14280_s16, 4  ;;  %s174_s11 = sshll.u32 %s17300_s12, 4  ;;  %s156_s17 = int_to_ptr.vmem [resolvable:$true] %s155_s17  ;;  %s175_s11 = int_to_ptr.hbm [resolvable:$true] %s174_s11 }
  0x29   :  { %158 = dma.hbm_to_vmem [thread:$0]  %s154_s15, 128, %s156_s17, [#allocation18]  }
  0x2a   :  { %s14281_s8 = smov [#allocation22]   ;;  %s188_s0 = sshll.u32 %s17301_s13, 4  ;;  %s189_s0 = int_to_ptr.hbm [resolvable:$true] %s188_s0 }
  0x2b   :  { %s176_s19 = sshll.u32 %s14281_s8, 4  ;;  %s14282_s22 = smov 448   ;;  %s177_s19 = int_to_ptr.vmem [resolvable:$true] %s176_s19 }
  0x2c   :  { %s14283_s10 = smov 28   ;;  %s14284_s23 = smov [#allocation23]  }
  0x2d   :  { %182 = dma.hbm_to_vmem [thread:$0]  %s175_s11, 57344, %s177_s19, [#allocation21], %s14282_s22, %s14282_s22, %s14283_s10  }
  0x2e   :  { %s190_s2 = sshll.u32 %s14284_s23, 4  ;;  %s191_s2 = int_to_ptr.vmem [resolvable:$true] %s190_s2 }
  0x2f   :  { %193 = dma.hbm_to_vmem [thread:$0]  %s189_s0, 112, %s191_s2, [#allocation24]  }
  0x30   :  { %14243 = dma.done.wait [#allocation3], 1024  }
  0x31   :  { %14244 = vsyncadd [#allocation3], 4294966272 }
  0x32   :  { %14245 = dma.done.wait [#allocation6], 1040  }
  0x33   :  { %14246 = vsyncadd [#allocation6], 4294966256 }
  0x34   :  { %14247 = dma.done.wait [#allocation9], 2080  }
  0x35   :  { %14248 = vsyncadd [#allocation9], 4294965216 }
  0x36   :  { %14249 = dma.done.wait [#allocation12], 8224  }
  0x37   :  { %14250 = vsyncadd [#allocation12], 4294959072 }
  0x38   :  { %14251 = dma.done.wait [#allocation15], 128  }
  0x39   :  { %14252 = vsyncadd [#allocation15], 4294967168 }
  0x3a   :  { %14253 = dma.done.wait [#allocation18], 32896  }
  0x3b   :  { %14254 = vsyncadd [#allocation18], 4294934400 }
  0x3c   :  { %14255 = dma.done.wait [#allocation21], 57472  }
  0x3d   :  { %14256 = vsyncadd [#allocation21], 4294909824 }
  0x3e   :  { %14257 = dma.done.wait [#allocation24], 112  }
  0x3f   :  { %14258 = vsyncadd [#allocation24], 4294967184  ;;  %v12900_v0 = vld [vmem:[#allocation5 + $0x38] sm:$0xff]  ;;  %v12899_v1 = vld [vmem:[#allocation5 + $0x30] sm:$0xff]  ;;  %vm662_vm14 = vcmask 1040384   ;;  %s14286_s12 = smov [#allocation25]  }
  0x40   :  { %330 = vmatpush.bf16.msra.mxu0 %v12900_v0  ;;  %13685 = vmatpush.bf16.msra.mxu3 %v12900_v0  ;;  %v12898_v2 = vld [vmem:[#allocation5 + $0x28] sm:$0xff]  ;;  %v12897_v3 = vld [vmem:[#allocation5 + $0x20] sm:$0xff]  ;;  %v12896_v4 = vld [vmem:[#allocation5 + $0x18] sm:$0xff]  ;;  %s9703_s13 = sshll.u32 %s14286_s12, 4  ;;  %s9705_s25 = sshll.u32 %s17302_s14, 4  ;;  %s9704_s13 = int_to_ptr.vmem [resolvable:$true] %s9703_s13  ;;  %s9706_s25 = int_to_ptr.hbm [resolvable:$true] %s9705_s25 }
  0x41   :  { %v12895_v5 = vld [vmem:[#allocation5 + $0x10] sm:$0xff]  ;;  %v12916_v7 = vld [vmem:[#allocation8 + $0x74] sm:$0xf0]  ;;  %v9817_v9 = vld [vmem:[#allocation8 + $0x78] sm:$0xf0]  ;;  %s14287_s1 = smov 896  }
  0x42   :  { %v9815_v6 = vld [vmem:[#allocation8 + $0x70] sm:$0xf]  ;;  %v12915_v8 = vld [vmem:[#allocation8 + $0x74] sm:$0xf]  ;;  %v9807_v12 = vld [vmem:[#allocation8 + $0x60] sm:$0xf] }
  0x43   :  { %v9816_v10 = vor.u32 %v12916_v7, %v9815_v6  ;;  %v9820_v11 = vor.u32 %v12915_v8, %v9817_v9  ;;  %v12914_v13 = vld [vmem:[#allocation8 + $0x64] sm:$0xf0]  ;;  %v12913_v14 = vld [vmem:[#allocation8 + $0x64] sm:$0xf]  ;;  %v9809_v15 = vld [vmem:[#allocation8 + $0x68] sm:$0xf0] }
  0x44   :  { %331 = vmatpush.bf16.msra.mxu0 %v12899_v1  ;;  %13686 = vmatpush.bf16.msra.mxu3 %v12899_v1  ;;  %v12894_v16 = vld [vmem:[#allocation5 + $0x8] sm:$0xff]  ;;  %v9808_v17 = vor.u32 %v12914_v13, %v9807_v12  ;;  %v9812_v18 = vor.u32 %v12913_v14, %v9809_v15  ;;  %v9799_v19 = vld [vmem:[#allocation8 + $0x50] sm:$0xf]  ;;  %v12912_v20 = vld [vmem:[#allocation8 + $0x54] sm:$0xf0]  ;;  %s14288_s28 = smov 56  }
  0x45   :  { %483 = vmatpush.bf16.msra.mxu1 %v9816_v10  ;;  %512 = vmatpush.bf16.msra.mxu2 %v9820_v11  ;;  %v12911_v21 = vld [vmem:[#allocation8 + $0x54] sm:$0xf]  ;;  %v9801_v22 = vld [vmem:[#allocation8 + $0x58] sm:$0xf0]  ;;  %v251_v25 = vld [vmem:[#allocation2 + $0x8] sm:$0xff]  ;;  %v9800_v26 = vor.u32 %v12912_v20, %v9799_v19 }
  0x46   :  { %v12893_v23 = vld [vmem:[#allocation5] sm:$0xff]  ;;  %v9804_v27 = vor.u32 %v12911_v21, %v9801_v22  ;;  %v255_v29 = vld [vmem:[#allocation2 + $0x28] sm:$0xff]  ;;  %v252_v38 = vld [vmem:[#allocation2 + $0x10] sm:$0xff] }
  0x47   :  { %v250_v24 = vld [vmem:[#allocation2] sm:$0xff]  ;;  %v12910_v31 = vld [vmem:[#allocation8 + $0x44] sm:$0xf0]  ;;  %v9793_v33 = vld [vmem:[#allocation8 + $0x48] sm:$0xf0] }
  0x48   :  { %332 = vmatpush.bf16.msra.mxu0 %v12898_v2  ;;  %13687 = vmatpush.bf16.msra.mxu3 %v12898_v2  ;;  %v254_v28 = vld [vmem:[#allocation2 + $0x20] sm:$0xff]  ;;  %v258_v34 = vpack.c.bf16 %v251_v25, %v250_v24  ;;  %v253_v39 = vld [vmem:[#allocation2 + $0x18] sm:$0xff]  ;;  %v256_v40 = vld [vmem:[#allocation2 + $0x30] sm:$0xff] }
  0x49   :  { %484 = vmatpush.bf16.msra.mxu1 %v9808_v17  ;;  %513 = vmatpush.bf16.msra.mxu2 %v9812_v18  ;;  %v9791_v30 = vld [vmem:[#allocation8 + $0x40] sm:$0xf]  ;;  %v12909_v32 = vld [vmem:[#allocation8 + $0x44] sm:$0xf]  ;;  %v260_v35 = vpack.c.bf16 %v255_v29, %v254_v28  ;;  %v257_v41 = vld [vmem:[#allocation2 + $0x38] sm:$0xff]  ;;  %v259_v42 = vpack.c.bf16 %v253_v39, %v252_v38 }
  0x4a   :  { %v9792_v36 = vor.u32 %v12910_v31, %v9791_v30  ;;  %v9796_v37 = vor.u32 %v12909_v32, %v9793_v33  ;;  %v261_v43 = vpack.c.bf16 %v257_v41, %v256_v40  ;;  %v9783_v44 = vld [vmem:[#allocation8 + $0x30] sm:$0xf]  ;;  %v12908_v45 = vld [vmem:[#allocation8 + $0x34] sm:$0xf0]  ;;  %v12907_v46 = vld [vmem:[#allocation8 + $0x34] sm:$0xf] }
  0x4b   :  { %v9784_v47 = vor.u32 %v12908_v45, %v9783_v44  ;;  %v9785_v48 = vld [vmem:[#allocation8 + $0x38] sm:$0xf0]  ;;  %v9775_v50 = vld [vmem:[#allocation8 + $0x20] sm:$0xf]  ;;  %v12906_v51 = vld [vmem:[#allocation8 + $0x24] sm:$0xf0] }
  0x4c   :  { %333 = vmatpush.bf16.msra.mxu0 %v12897_v3  ;;  %13688 = vmatpush.bf16.msra.mxu3 %v12897_v3  ;;  %v9788_v49 = vor.u32 %v12907_v46, %v9785_v48  ;;  %v12905_v52 = vld [vmem:[#allocation8 + $0x24] sm:$0xf]  ;;  %v9776_v53 = vor.u32 %v12906_v51, %v9775_v50  ;;  %v9777_v54 = vld [vmem:[#allocation8 + $0x28] sm:$0xf0]  ;;  %v9767_v56 = vld [vmem:[#allocation8 + $0x10] sm:$0xf] }
  0x4d   :  { %485 = vmatpush.bf16.msra.mxu1 %v9800_v26  ;;  %514 = vmatpush.bf16.msra.mxu2 %v9804_v27  ;;  %v9780_v55 = vor.u32 %v12905_v52, %v9777_v54  ;;  %v12904_v57 = vld [vmem:[#allocation8 + $0x14] sm:$0xf0]  ;;  %v12903_v58 = vld [vmem:[#allocation8 + $0x14] sm:$0xf]  ;;  %v9769_v60 = vld [vmem:[#allocation8 + $0x18] sm:$0xf0] }
  0x4e   :  { %v9768_v59 = vor.u32 %v12904_v57, %v9767_v56  ;;  %v9772_v61 = vor.u32 %v12903_v58, %v9769_v60  ;;  %v9759_v62 = vld [vmem:[#allocation8] sm:$0xf]  ;;  %v12902_v63 = vld [vmem:[#allocation8 + $0x4] sm:$0xf0]  ;;  %v12901_v0 = vld [vmem:[#allocation8 + $0x4] sm:$0xf] }
  0x4f   :  { %v9760_v1 = vor.u32 %v12902_v63, %v9759_v62  ;;  %v9761_v2 = vld [vmem:[#allocation8 + $0x8] sm:$0xf0]  ;;  %v14285_v52 = vmov 64.0  }
  0x50   :  { %334 = vmatpush.bf16.msra.mxu0 %v12896_v4  ;;  %13689 = vmatpush.bf16.msra.mxu3 %v12896_v4  ;;  %v9764_v3 = vor.u32 %v12901_v0, %v9761_v2  ;;  %13738 = vrcp.f32 %v14285_v52 }
  0x51   :  { %486 = vmatpush.bf16.msra.mxu1 %v9792_v36  ;;  %515 = vmatpush.bf16.msra.mxu2 %v9796_v37 }
  0x54   :  { %335 = vmatpush.bf16.msra.mxu0 %v12895_v5  ;;  %13690 = vmatpush.bf16.msra.mxu3 %v12895_v5  ;;  %v13737_v5 = vld [vmem:[#allocation7] ss:$0 sm:$0xff] }
  0x55   :  { %487 = vmatpush.bf16.msra.mxu1 %v9784_v47  ;;  %516 = vmatpush.bf16.msra.mxu2 %v9788_v49 }
  0x56   :  { %v13739_v57 = vpop.eup %13738 }
  0x57   :  { %vm572_vm8 = vweird.f32 %v13739_v57 }
  0x58   :  { %336 = vmatpush.bf16.msra.mxu0 %v12894_v16  ;;  %13691 = vmatpush.bf16.msra.mxu3 %v12894_v16 }
  0x59   :  { %488 = vmatpush.bf16.msra.mxu1 %v9776_v53  ;;  %517 = vmatpush.bf16.msra.mxu2 %v9780_v55 }
  0x5c   :  { %337 = vmatpush.bf16.msra.mxu0 %v12893_v23  ;;  %13692 = vmatpush.bf16.msra.mxu3 %v12893_v23 }
  0x5d   :  { %489 = vmatpush.bf16.msra.mxu1 %v9768_v59  ;;  %518 = vmatpush.bf16.msra.mxu2 %v9772_v61  ;;  %v568_v61 = vmul.f32 64.0, %v13739_v57 }
  0x5f   :  { %338 = vmatmul.bf16.vlgmr.msra.gmra.mxu0 %v258_v34  ;;  %348 = vmatmul.bf16.vlgmr.msra.gmra.mxu3 %v260_v35 }
  0x61   :  { %490 = vmatpush.bf16.msra.mxu1 %v9760_v1  ;;  %519 = vmatpush.bf16.msra.mxu2 %v9764_v3 }
  0x6f   :  { %343 = vmatmul.bf16.gmra.mxu0 %v259_v42  ;;  %353 = vmatmul.bf16.gmra.mxu3 %v261_v43 }
  0xdc   :  { %v339_v4 = vpop.f32.mrf.mxu0 }
  0xdd   :  { %v340_v6 = vadd.f32 %v13737_v5, %v339_v4  ;;  %v569_v4 = vsub.f32 1.0, %v568_v61  ;;  %v12977_v61 = vld [vmem:[#allocation13 + $0x1e4] sm:$0xf] }
  0xdf   :  { %v367_v8 = vmul.f32 0.2, %v340_v6  ;;  %vm359_vm0 = vcmp.ge.f32.partialorder %v340_v6, 0.0 }
  0xe1   :  { %v375_v11 = vsel %vm359_vm0, %v340_v6, %v367_v8 }
  0xe2   :  { %v349_v15 = vpop.f32.mrf.mxu3 }
  0xe3   :  { %v350_v25 = vadd.f32 %v13737_v5, %v349_v15 }
  0xe4   :  { %v341_v7 = vpop.f32.mrf.mxu0 }
  0xe5   :  { %v342_v9 = vadd.f32 %v13737_v5, %v341_v7  ;;  %v371_v28 = vmul.f32 0.2, %v350_v25  ;;  %vm363_vm4 = vcmp.ge.f32.partialorder %v350_v25, 0.0 }
  0xe7   :  { %v368_v10 = vmul.f32 0.2, %v342_v9  ;;  %vm360_vm1 = vcmp.ge.f32.partialorder %v342_v9, 0.0  ;;  %v379_v30 = vsel %vm363_vm4, %v350_v25, %v371_v28 }
  0xe9   :  { %v376_v12 = vsel %vm360_vm1, %v342_v9, %v368_v10  ;;  %v570_v9 = vmul.f32 %v13739_v57, %v569_v4  ;;  %v9937_v4 = vld [vmem:[#allocation13 + $0xf0] sm:$0xf0] }
  0xea   :  { %v383_v13 = vpack.c.bf16 %v376_v12, %v375_v11  ;;  %v351_v21 = vpop.f32.mrf.mxu3 }
  0xeb   :  { %v352_v26 = vadd.f32 %v13737_v5, %v351_v21  ;;  %v571_v15 = vadd.f32 %v13739_v57, %v570_v9 }
  0xec   :  { %v344_v14 = vpop.f32.mrf.mxu0  ;;  %491 = vmatmul.bf16.vlgmr.msra.gmra.mxu1 %v383_v13  ;;  %520 = vmatmul.bf16.vlgmr.msra.gmra.mxu2 %v383_v13 }
  0xed   :  { %v345_v16 = vadd.f32 %v13737_v5, %v344_v14  ;;  %v372_v29 = vmul.f32 0.2, %v352_v26  ;;  %vm364_vm5 = vcmp.ge.f32.partialorder %v352_v26, 0.0 }
  0xef   :  { %v369_v18 = vmul.f32 0.2, %v345_v16  ;;  %vm361_vm2 = vcmp.ge.f32.partialorder %v345_v16, 0.0  ;;  %v380_v31 = vsel %vm364_vm5, %v352_v26, %v372_v29 }
  0xf0   :  { %v385_v32 = vpack.c.bf16 %v380_v31, %v379_v30 }
  0xf1   :  { %v377_v22 = vsel %vm361_vm2, %v345_v16, %v369_v18 }
  0xf2   :  { %v354_v27 = vpop.f32.mrf.mxu3 }
  0xf3   :  { %v355_v34 = vadd.f32 %v13737_v5, %v354_v27 }
  0xf4   :  { %v346_v17 = vpop.f32.mrf.mxu0 }
  0xf5   :  { %v347_v19 = vadd.f32 %v13737_v5, %v346_v17  ;;  %v373_v36 = vmul.f32 0.2, %v355_v34  ;;  %vm365_vm6 = vcmp.ge.f32.partialorder %v355_v34, 0.0 }
  0xf7   :  { %v370_v20 = vmul.f32 0.2, %v347_v19  ;;  %vm362_vm3 = vcmp.ge.f32.partialorder %v347_v19, 0.0  ;;  %v381_v38 = vsel %vm365_vm6, %v355_v34, %v373_v36 }
  0xf9   :  { %v378_v23 = vsel %vm362_vm3, %v347_v19, %v370_v20  ;;  %v14436_v20 = vsel %vm572_vm8, %v13739_v57, %v571_v15 }
  0xfa   :  { %v384_v24 = vpack.c.bf16 %v378_v23, %v377_v22  ;;  %v356_v33 = vpop.f32.mrf.mxu3  ;;  %17385 = vst [vmem:[#allocation35_spill] sm:$0xff] %v14436_v20 }
  0xfb   :  { %v357_v35 = vadd.f32 %v13737_v5, %v356_v33 }
  0xfc   :  { %496 = vmatmul.bf16.gmra.mxu1 %v384_v24  ;;  %525 = vmatmul.bf16.gmra.mxu2 %v384_v24 }
  0xfd   :  { %v374_v37 = vmul.f32 0.2, %v357_v35  ;;  %vm366_vm7 = vcmp.ge.f32.partialorder %v357_v35, 0.0 }
  0xff   :  { %v382_v39 = vsel %vm366_vm7, %v357_v35, %v374_v37 }
 0x100   :  { %v386_v40 = vpack.c.bf16 %v382_v39, %v381_v38 }
 0x10c   :  { %501 = vmatmul.bf16.gmra.mxu1 %v385_v32  ;;  %530 = vmatmul.bf16.gmra.mxu2 %v385_v32 }
 0x11c   :  { %506 = vmatmul.bf16.gmra.mxu1 %v386_v40  ;;  %535 = vmatmul.bf16.gmra.mxu2 %v386_v40 }
 0x169   :  { %v492_v41 = vpop.f32.mrf.mxu1 }
 0x16f   :  { %v14412_v42 = vpop.f32.mrf.mxu2 }
 0x171   :  { %v494_v43 = vpop.f32.mrf.mxu1 }
 0x172   :  { %v541_v53 = vadd.f32 %v494_v43, %v492_v41 }
 0x177   :  { %v14414_v44 = vpop.f32.mrf.mxu2 }
 0x178   :  { %v554_v59 = vadd.f32 %v14414_v44, %v14412_v42 }
 0x179   :  { %v497_v45 = vpop.f32.mrf.mxu1 }
 0x17a   :  { %v542_v55 = vadd.f32 %v541_v53, %v497_v45 }
 0x17f   :  { %v14416_v46 = vpop.f32.mrf.mxu2 }
 0x180   :  { %v555_v62 = vadd.f32 %v554_v59, %v14416_v46 }
 0x181   :  { %v499_v47 = vpop.f32.mrf.mxu1 }
 0x182   :  { %v543_v58 = vadd.f32 %v542_v55, %v499_v47 }
 0x187   :  { %v14418_v48 = vpop.f32.mrf.mxu2 }
 0x188   :  { %v556_v1 = vadd.f32 %v555_v62, %v14418_v48  ;;  %v10065_v62 = vld [vmem:[#allocation13 + $0x1f0] sm:$0xf0] }
 0x189   :  { %v502_v49 = vpop.f32.mrf.mxu1 }
 0x18a   :  { %v544_v60 = vadd.f32 %v543_v58, %v502_v49 }
 0x18f   :  { %v14420_v50 = vpop.f32.mrf.mxu2 }
 0x190   :  { %v557_v5 = vadd.f32 %v556_v1, %v14420_v50 }
 0x191   :  { %v504_v51 = vpop.f32.mrf.mxu1 }
 0x192   :  { %v545_v63 = vadd.f32 %v544_v60, %v504_v51 }
 0x197   :  { %v14422_v54 = vpop.f32.mrf.mxu2 }
 0x198   :  { %v558_v7 = vadd.f32 %v557_v5, %v14422_v54  ;;  %v9935_v5 = vld [vmem:[#allocation13 + $0xe0] sm:$0xf] }
 0x199   :  { %v507_v56 = vpop.f32.mrf.mxu1 }
 0x19a   :  { %v546_v2 = vadd.f32 %v545_v63, %v507_v56  ;;  %v12945_v63 = vld [vmem:[#allocation13 + $0xe4] sm:$0xf] }
 0x19f   :  { %v14427_v0 = vpop.f32.mrf.mxu2 }
 0x1a0   :  { %v559_v10 = vadd.f32 %v558_v7, %v14427_v0 }
 0x1a1   :  { %v509_v3 = vpop.f32.mrf.mxu1 }
 0x1a2   :  { %v547_v6 = vadd.f32 %v546_v2, %v509_v3 }
 0x1a4   :  { %v548_v8 = vrot.slane %v547_v6, 4 }
 0x1a6   :  { %v549_v11 = vadd.f32 %v548_v8, %v547_v6  ;;  %v12947_v6 = vld [vmem:[#allocation13 + $0xec] sm:$0xf0]  ;;  %v9940_v8 = vor.u32 %v12945_v63, %v9937_v4 }
 0x1a7   :  { %v14433_v12 = vpop.f32.mrf.mxu2  ;;  %v9936_v9 = vor.u32 %v12947_v6, %v9935_v5  ;;  %v12965_v5 = vld [vmem:[#allocation13 + $0x184] sm:$0xf]  ;;  %v10017_v6 = vld [vmem:[#allocation13 + $0x190] sm:$0xf0] }
 0x1a8   :  { %v550_v13 = vrot.slane %v549_v11, 2  ;;  %v560_v14 = vadd.f32 %v559_v10, %v14433_v12  ;;  %v10063_v10 = vld [vmem:[#allocation13 + $0x1e0] sm:$0xf]  ;;  %1207 = vmatpush.bf16.msrb.mxu1 %v9940_v8  ;;  %v9889_v8 = vld [vmem:[#allocation13 + $0x90] sm:$0xf0] }
 0x1a9   :  { %1149 = vmatpush.bf16.msrb.mxu3 %v9936_v9  ;;  %v9887_v9 = vld [vmem:[#allocation13 + $0x80] sm:$0xf] }
 0x1aa   :  { %v551_v16 = vadd.f32 %v550_v13, %v549_v11  ;;  %v561_v17 = vrot.slane %v560_v14, 4  ;;  %v12979_v11 = vld [vmem:[#allocation13 + $0x1ec] sm:$0xf0] }
 0x1ab   :  { %v10064_v13 = vor.u32 %v12979_v11, %v10063_v10 }
 0x1ac   :  { %v552_v18 = vrot.slane %v551_v16, 1  ;;  %v562_v19 = vadd.f32 %v561_v17, %v560_v14  ;;  %v12973_v17 = vld [vmem:[#allocation13 + $0x1c4] sm:$0xf] }
 0x1ad   :  { %1178 = vmatpush.bf16.msrb.mxu0 %v10064_v13 }
 0x1ae   :  { %v553_v21 = vadd.f32 %v552_v18, %v551_v16  ;;  %v563_v22 = vrot.slane %v562_v19, 2  ;;  %v10049_v18 = vld [vmem:[#allocation13 + $0x1d0] sm:$0xf0] }
 0x1b0   :  { %v574_v23 = vmul.f32 %v14436_v20, %v553_v21  ;;  %v564_v27 = vadd.f32 %v563_v22, %v562_v19  ;;  %v10052_v21 = vor.u32 %v12973_v17, %v10049_v18  ;;  %v12941_v22 = vld [vmem:[#allocation13 + $0xc4] sm:$0xf]  ;;  %v12967_v17 = vld [vmem:[#allocation13 + $0x18c] sm:$0xf0] }
 0x1b2   :  { %v14439_v24 = vsub.f32 %v492_v41, %v574_v23  ;;  %v14441_v25 = vsub.f32 %v494_v43, %v574_v23  ;;  %v14443_v26 = vsub.f32 %v497_v45, %v574_v23  ;;  %v14445_v28 = vsub.f32 %v499_v47, %v574_v23 }
 0x1b3   :  { %v14451_v31 = vsub.f32 %v502_v49, %v574_v23  ;;  %v565_v34 = vrot.slane %v564_v27, 1  ;;  %v14455_v35 = vsub.f32 %v504_v51, %v574_v23  ;;  %v14459_v39 = vsub.f32 %v507_v56, %v574_v23 }
 0x1b4   :  { %v592_v29 = vmul.f32 %v14439_v24, %v14439_v24  ;;  %v594_v30 = vmul.f32 %v14441_v25, %v14441_v25  ;;  %v596_v32 = vmul.f32 %v14443_v26, %v14443_v26  ;;  %v598_v36 = vmul.f32 %v14445_v28, %v14445_v28 }
 0x1b5   :  { %v566_v38 = vadd.f32 %v565_v34, %v564_v27  ;;  %v600_v40 = vmul.f32 %v14451_v31, %v14451_v31  ;;  %v14464_v45 = vsub.f32 %v509_v3, %v574_v23  ;;  %v602_v47 = vmul.f32 %v14455_v35, %v14455_v35  ;;  %v9921_v23 = vld [vmem:[#allocation13 + $0xd0] sm:$0xf0]  ;;  %v10047_v34 = vld [vmem:[#allocation13 + $0x1c0] sm:$0xf] }
 0x1b6   :  { %v608_v33 = vadd.f32 %v594_v30, %v592_v29  ;;  %v604_v56 = vmul.f32 %v14459_v39, %v14459_v39  ;;  %v10068_v3 = vor.u32 %v12977_v61, %v10065_v62  ;;  %v9924_v30 = vor.u32 %v12941_v22, %v9921_v23  ;;  %v10031_v61 = vld [vmem:[#allocation13 + $0x1a0] sm:$0xf]  ;;  %v12971_v62 = vld [vmem:[#allocation13 + $0x1ac] sm:$0xf0]  ;;  %v12961_v22 = vld [vmem:[#allocation13 + $0x164] sm:$0xf] }
 0x1b7   :  { %v575_v43 = vmul.f32 %v14436_v20, %v566_v38  ;;  %v10001_v23 = vld [vmem:[#allocation13 + $0x170] sm:$0xf0] }
 0x1b8   :  { %v609_v37 = vadd.f32 %v608_v33, %v596_v32  ;;  %1236 = vmatpush.bf16.msrb.mxu2 %v10068_v3  ;;  %v9919_v32 = vld [vmem:[#allocation13 + $0xc0] sm:$0xf]  ;;  %v12943_v33 = vld [vmem:[#allocation13 + $0xcc] sm:$0xf0]  ;;  %1208 = vmatpush.bf16.msrb.mxu1 %v9924_v30  ;;  %v9873_v30 = vld [vmem:[#allocation13 + $0x70] sm:$0xf0] }
 0x1b9   :  { %v14469_v51 = vsub.f32 %v14412_v42, %v575_v43  ;;  %v14472_v52 = vsub.f32 %v14414_v44, %v575_v43  ;;  %v14475_v53 = vsub.f32 %v14416_v46, %v575_v43  ;;  %v14478_v55 = vsub.f32 %v14418_v48, %v575_v43 }
 0x1ba   :  { %v610_v41 = vadd.f32 %v609_v37, %v598_v36  ;;  %v606_v44 = vmul.f32 %v14464_v45, %v14464_v45  ;;  %v14489_v46 = vsub.f32 %v14420_v50, %v575_v43  ;;  %v14494_v1 = vsub.f32 %v14422_v54, %v575_v43  ;;  %v12975_v37 = vld [vmem:[#allocation13 + $0x1cc] sm:$0xf0] }
 0x1bb   :  { %v593_v58 = vmul.f32 %v14469_v51, %v14469_v51  ;;  %v595_v42 = vmul.f32 %v14472_v52, %v14472_v52  ;;  %v597_v48 = vmul.f32 %v14475_v53, %v14475_v53  ;;  %v599_v2 = vmul.f32 %v14478_v55, %v14478_v55 }
 0x1bc   :  { %v611_v49 = vadd.f32 %v610_v41, %v600_v40  ;;  %v14499_v15 = vsub.f32 %v14427_v0, %v575_v43  ;;  %v601_v54 = vmul.f32 %v14489_v46, %v14489_v46  ;;  %v14504_v19 = vsub.f32 %v14433_v12, %v575_v43  ;;  %1237 = vmatpush.bf16.msrb.mxu2 %v10052_v21  ;;  %v12969_v41 = vld [vmem:[#allocation13 + $0x1a4] sm:$0xf]  ;;  %v10033_v43 = vld [vmem:[#allocation13 + $0x1b0] sm:$0xf0] }
 0x1bd   :  { %v621_v60 = vadd.f32 %v595_v42, %v593_v58  ;;  %v603_v0 = vmul.f32 %v14494_v1, %v14494_v1  ;;  %v9920_v36 = vor.u32 %v12943_v33, %v9919_v32  ;;  %v9903_v58 = vld [vmem:[#allocation13 + $0xa0] sm:$0xf] }
 0x1be   :  { %v612_v57 = vadd.f32 %v611_v49, %v602_v47  ;;  %v605_v12 = vmul.f32 %v14499_v15, %v14499_v15  ;;  %v10048_v47 = vor.u32 %v12975_v37, %v10047_v34  ;;  %v10036_v49 = vor.u32 %v12969_v41, %v10033_v43  ;;  %v9871_v32 = vld [vmem:[#allocation13 + $0x60] sm:$0xf]  ;;  %v12931_v37 = vld [vmem:[#allocation13 + $0x6c] sm:$0xf0]  ;;  %v12957_v43 = vld [vmem:[#allocation13 + $0x144] sm:$0xf] }
 0x1bf   :  { %v622_v50 = vadd.f32 %v621_v60, %v597_v48  ;;  %1150 = vmatpush.bf16.msrb.mxu3 %v9920_v36  ;;  %v12939_v60 = vld [vmem:[#allocation13 + $0xac] sm:$0xf0] }
 0x1c0   :  { %v613_v59 = vadd.f32 %v612_v57, %v604_v56  ;;  %v12937_v56 = vld [vmem:[#allocation13 + $0xa4] sm:$0xf]  ;;  %v9905_v57 = vld [vmem:[#allocation13 + $0xb0] sm:$0xf0]  ;;  %1179 = vmatpush.bf16.msrb.mxu0 %v10048_v47  ;;  %1238 = vmatpush.bf16.msrb.mxu2 %v10036_v49  ;;  %v9904_v63 = vor.u32 %v12939_v60, %v9903_v58 }
 0x1c1   :  { %v623_v16 = vadd.f32 %v622_v50, %v599_v2  ;;  %v9908_v48 = vor.u32 %v12937_v56, %v9905_v57  ;;  %v10032_v2 = vor.u32 %v12971_v62, %v10031_v61  ;;  %v12933_v50 = vld [vmem:[#allocation13 + $0x84] sm:$0xf]  ;;  %v9985_v47 = vld [vmem:[#allocation13 + $0x150] sm:$0xf0]  ;;  %v9983_v61 = vld [vmem:[#allocation13 + $0x140] sm:$0xf] }
 0x1c2   :  { %v614_v7 = vadd.f32 %v613_v59, %v606_v44  ;;  %v607_v44 = vmul.f32 %v14504_v19, %v14504_v19  ;;  %v9892_v13 = vor.u32 %v12933_v50, %v9889_v8  ;;  %v12925_v49 = vld [vmem:[#allocation13 + $0x44] sm:$0xf]  ;;  %v9988_v57 = vor.u32 %v12957_v43, %v9985_v47  ;;  %v9857_v58 = vld [vmem:[#allocation13 + $0x50] sm:$0xf0]  ;;  %v12959_v62 = vld [vmem:[#allocation13 + $0x14c] sm:$0xf0] }
 0x1c3   :  { %v624_v29 = vadd.f32 %v623_v16, %v601_v54  ;;  %1209 = vmatpush.bf16.msrb.mxu1 %v9908_v48  ;;  %1151 = vmatpush.bf16.msrb.mxu3 %v9904_v63  ;;  %v10015_v54 = vld [vmem:[#allocation13 + $0x180] sm:$0xf]  ;;  %v9860_v48 = vor.u32 %v12925_v49, %v9857_v58  ;;  %v9984_v63 = vor.u32 %v12959_v62, %v9983_v61  ;;  %v12948_v43 = vld [vmem:[#allocation13 + $0xf4] sm:$0xf0]  ;;  %v12978_v47 = vld [vmem:[#allocation13 + $0x1ec] sm:$0xf] }
 0x1c4   :  { %v615_v14 = vrot.slane %v614_v7, 4  ;;  %1180 = vmatpush.bf16.msrb.mxu0 %v10032_v2  ;;  %v9839_v50 = vld [vmem:[#allocation13 + $0x20] sm:$0xf]  ;;  %v12980_v58 = vld [vmem:[#allocation13 + $0x1f4] sm:$0xf0] }
 0x1c5   :  { %v625_v40 = vadd.f32 %v624_v29, %v603_v0  ;;  %v10004_v0 = vor.u32 %v12961_v22, %v10001_v23  ;;  %v12929_v29 = vld [vmem:[#allocation13 + $0x64] sm:$0xf]  ;;  %v9823_v22 = vld [vmem:[#allocation13] sm:$0xf]  ;;  %v9927_v61 = vld [vmem:[#allocation13 + $0xc8] sm:$0xf] }
 0x1c6   :  { %v616_v27 = vadd.f32 %v615_v14, %v614_v7  ;;  %v10020_v7 = vor.u32 %v12965_v5, %v10017_v6  ;;  %v12935_v14 = vld [vmem:[#allocation13 + $0x8c] sm:$0xf0]  ;;  %v9876_v36 = vor.u32 %v12929_v29, %v9873_v30  ;;  %v12921_v6 = vld [vmem:[#allocation13 + $0x24] sm:$0xf]  ;;  %v9951_v29 = vld [vmem:[#allocation13 + $0x100] sm:$0xf] }
 0x1c7   :  { %v626_v59 = vadd.f32 %v625_v40, %v605_v12  ;;  %v9888_v16 = vor.u32 %v12935_v14, %v9887_v9  ;;  %1210 = vmatpush.bf16.msrb.mxu1 %v9892_v13  ;;  %v9999_v12 = vld [vmem:[#allocation13 + $0x160] sm:$0xf]  ;;  %v12963_v40 = vld [vmem:[#allocation13 + $0x16c] sm:$0xf0] }
 0x1c8   :  { %v617_v38 = vrot.slane %v616_v27, 2  ;;  %1239 = vmatpush.bf16.msrb.mxu2 %v10020_v7  ;;  %v10000_v56 = vor.u32 %v12963_v40, %v9999_v12  ;;  %v9841_v7 = vld [vmem:[#allocation13 + $0x30] sm:$0xf0]  ;;  %v9967_v13 = vld [vmem:[#allocation13 + $0x120] sm:$0xf] }
 0x1c9   :  { %v627_v4 = vadd.f32 %v626_v59, %v607_v44  ;;  %1152 = vmatpush.bf16.msrb.mxu3 %v9888_v16  ;;  %v12927_v44 = vld [vmem:[#allocation13 + $0x4c] sm:$0xf0] }
 0x1ca   :  { %v618_v42 = vadd.f32 %v617_v38, %v616_v27  ;;  %v10016_v27 = vor.u32 %v12967_v17, %v10015_v54  ;;  %v9872_v38 = vor.u32 %v12931_v37, %v9871_v32  ;;  %v12955_v14 = vld [vmem:[#allocation13 + $0x12c] sm:$0xf0]  ;;  %v12949_v17 = vld [vmem:[#allocation13 + $0x104] sm:$0xf]  ;;  %v9825_v37 = vld [vmem:[#allocation13 + $0x10] sm:$0xf0] }
 0x1cb   :  { %v628_v11 = vrot.slane %v627_v4, 4  ;;  %1211 = vmatpush.bf16.msrb.mxu1 %v9876_v36  ;;  %v12917_v36 = vld [vmem:[#allocation13 + $0x4] sm:$0xf] }
 0x1cc   :  { %v619_v3 = vrot.slane %v618_v42, 1  ;;  %1181 = vmatpush.bf16.msrb.mxu0 %v10016_v27  ;;  %1240 = vmatpush.bf16.msrb.mxu2 %v10004_v0  ;;  %v12919_v0 = vld [vmem:[#allocation13 + $0xc] sm:$0xf0]  ;;  %v9828_v12 = vor.u32 %v12917_v36, %v9825_v37  ;;  %v9911_v36 = vld [vmem:[#allocation13 + $0xa8] sm:$0xf] }
 0x1cd   :  { %v629_v21 = vadd.f32 %v628_v11, %v627_v4  ;;  %1153 = vmatpush.bf16.msrb.mxu3 %v9872_v38  ;;  %v9969_v4 = vld [vmem:[#allocation13 + $0x130] sm:$0xf0]  ;;  %v12923_v11 = vld [vmem:[#allocation13 + $0x2c] sm:$0xf0]  ;;  %v9824_v32 = vor.u32 %v12919_v0, %v9823_v22  ;;  %v687_v22 = vld [vmem:[#allocation11] sm:$0x3] }
 0x1ce   :  { %v620_v10 = vadd.f32 %v619_v3, %v618_v42  ;;  %v9855_v42 = vld [vmem:[#allocation13 + $0x40] sm:$0xf]  ;;  %v12953_v3 = vld [vmem:[#allocation13 + $0x124] sm:$0xf]  ;;  %v9840_v16 = vor.u32 %v12923_v11, %v9839_v50  ;;  %v12976_v50 = vld [vmem:[#allocation13 + $0x1d4] sm:$0xf0] }
 0x1cf   :  { %v630_v34 = vrot.slane %v629_v21, 2  ;;  %v9856_v60 = vor.u32 %v12927_v44, %v9855_v42  ;;  %1212 = vmatpush.bf16.msrb.mxu1 %v9860_v48  ;;  %v9972_v5 = vor.u32 %v12953_v3, %v9969_v4  ;;  %v12946_v48 = vld [vmem:[#allocation13 + $0xec] sm:$0xf]  ;;  %v10057_v4 = vld [vmem:[#allocation13 + $0x1d8] sm:$0xf0] }
 0x1d0   :  { %v634_v18 = vmul.f32 %v620_v10, %v14436_v20  ;;  %1182 = vmatpush.bf16.msrb.mxu0 %v10000_v56  ;;  %1241 = vmatpush.bf16.msrb.mxu2 %v9988_v57  ;;  %v9844_v10 = vor.u32 %v12921_v6, %v9841_v7  ;;  %v10073_v56 = vld [vmem:[#allocation13 + $0x1f8] sm:$0xf0]  ;;  %v10071_v57 = vld [vmem:[#allocation13 + $0x1e8] sm:$0xf]  ;;  %v12974_v3 = vld [vmem:[#allocation13 + $0x1cc] sm:$0xf] }
 0x1d1   :  { %v631_v41 = vadd.f32 %v630_v34, %v629_v21  ;;  %1154 = vmatpush.bf16.msrb.mxu3 %v9856_v60  ;;  %v9968_v21 = vor.u32 %v12955_v14, %v9967_v13  ;;  %v12951_v34 = vld [vmem:[#allocation13 + $0x10c] sm:$0xf0]  ;;  %v10076_v44 = vor.u32 %v12978_v47, %v10073_v56  ;;  %v9945_v60 = vld [vmem:[#allocation13 + $0xf8] sm:$0xf0]  ;;  %v10060_v6 = vor.u32 %v12974_v3, %v10057_v4  ;;  %v10055_v7 = vld [vmem:[#allocation13 + $0x1c8] sm:$0xf] }
 0x1d2   :  { %v14513_v33 = vadd.f32 0.8, %v634_v18  ;;  %v9953_v18 = vld [vmem:[#allocation13 + $0x110] sm:$0xf0]  ;;  %v9952_v38 = vor.u32 %v12951_v34, %v9951_v29  ;;  %v12942_v11 = vld [vmem:[#allocation13 + $0xcc] sm:$0xf] }
 0x1d3   :  { %v632_v59 = vrot.slane %v631_v41, 1  ;;  %1213 = vmatpush.bf16.msrb.mxu1 %v9844_v10  ;;  %v9956_v27 = vor.u32 %v12949_v17, %v9953_v18  ;;  %v10056_v10 = vor.u32 %v12976_v50, %v10055_v7  ;;  %v9929_v13 = vld [vmem:[#allocation13 + $0xd8] sm:$0xf0]  ;;  %v12940_v37 = vld [vmem:[#allocation13 + $0xb4] sm:$0xf0] }
 0x1d4   :  { %13740 = vrsqrt.f32 %v14513_v33  ;;  %1183 = vmatpush.bf16.msrb.mxu0 %v9984_v63  ;;  %1242 = vmatpush.bf16.msrb.mxu2 %v9972_v5  ;;  %v9948_v63 = vor.u32 %v12946_v48, %v9945_v60  ;;  %v9932_v14 = vor.u32 %v12942_v11, %v9929_v13  ;;  %vm645_vm13 = vweird.f32 %v14513_v33  ;;  %v636_v0 = vld [vmem:[#allocation10] sm:$0x3] }
 0x1d5   :  { %v633_v2 = vadd.f32 %v632_v59, %v631_v41  ;;  %1155 = vmatpush.bf16.msrb.mxu3 %v9840_v16  ;;  %v9943_v41 = vld [vmem:[#allocation13 + $0xe8] sm:$0xf]  ;;  %v10072_v59 = vor.u32 %v12980_v58, %v10071_v57  ;;  %v9913_v56 = vld [vmem:[#allocation13 + $0xb8] sm:$0xf0] }
 0x1d6   :  { %v9944_v49 = vor.u32 %v12948_v43, %v9943_v41  ;;  %v10039_v41 = vld [vmem:[#allocation13 + $0x1a8] sm:$0xf]  ;;  %v12972_v43 = vld [vmem:[#allocation13 + $0x1b4] sm:$0xf0] }
 0x1d7   :  { %v635_v9 = vmul.f32 %v633_v2, %v14436_v20  ;;  %1214 = vmatpush.bf16.msrb.mxu1 %v9828_v12  ;;  %v12944_v2 = vld [vmem:[#allocation13 + $0xd4] sm:$0xf0]  ;;  %v10040_v47 = vor.u32 %v12972_v43, %v10039_v41  ;;  %v9895_v57 = vld [vmem:[#allocation13 + $0x88] sm:$0xf]  ;;  %v10009_v41 = vld [vmem:[#allocation13 + $0x178] sm:$0xf0] }
 0x1d8   :  { %1184 = vmatpush.bf16.msrb.mxu0 %v9968_v21  ;;  %1243 = vmatpush.bf16.msrb.mxu2 %v9956_v27  ;;  %v9928_v5 = vor.u32 %v12944_v2, %v9927_v61  ;;  %v10007_v43 = vld [vmem:[#allocation13 + $0x168] sm:$0xf] }
 0x1d9   :  { %v14521_v23 = vadd.f32 0.8, %v635_v9  ;;  %1156 = vmatpush.bf16.msrb.mxu3 %v9824_v32  ;;  %v14531_v32 = vperm.slane %v687_v22, 0 }
 0x1da   :  { %v14516_v8 = vpop.eup %13740 }
 0x1db   :  { %v640_v54 = vmul.f32 %v14516_v8, %v14513_v33  ;;  %13742 = vrsqrt.f32 %v14521_v23  ;;  %1323 = vmatpush.bf16.msra.mxu1 %v9948_v63  ;;  %vm646_vm10 = vweird.f32 %v14516_v8  ;;  %vm655_vm11 = vweird.f32 %v14521_v23 }
 0x1dc   :  { %1185 = vmatpush.bf16.msrb.mxu0 %v9952_v38  ;;  %1352 = vmatpush.bf16.msra.mxu2 %v10076_v44  ;;  %vm647_vm15 = vmor %vm645_vm13, %vm646_vm10  ;;  %v12970_v38 = vld [vmem:[#allocation13 + $0x1ac] sm:$0xf] }
 0x1dd   :  { %v641_v30 = vmul.f32 %v14516_v8, %v640_v54  ;;  %1265 = vmatpush.bf16.msra.mxu3 %v9944_v49  ;;  %v12938_v49 = vld [vmem:[#allocation13 + $0xac] sm:$0xf] }
 0x1de   :  { %v9916_v44 = vor.u32 %v12938_v49, %v9913_v56  ;;  %v12964_v49 = vld [vmem:[#allocation13 + $0x174] sm:$0xf0] }
 0x1df   :  { %v642_v40 = vmul.f32 0.5, %v641_v30  ;;  %1324 = vmatpush.bf16.msra.mxu1 %v9932_v14 }
 0x1e0   :  { %1294 = vmatpush.bf16.msra.mxu0 %v10072_v59  ;;  %1353 = vmatpush.bf16.msra.mxu2 %v10060_v6  ;;  %v12936_v59 = vld [vmem:[#allocation13 + $0x94] sm:$0xf0] }
 0x1e1   :  { %v13743_v42 = vpop.eup %13742  ;;  %v643_v54 = vsub.f32 1.5, %v642_v40  ;;  %1266 = vmatpush.bf16.msra.mxu3 %v9928_v5  ;;  %v10041_v40 = vld [vmem:[#allocation13 + $0x1b8] sm:$0xf0]  ;;  %v9896_v48 = vor.u32 %v12936_v59, %v9895_v57  ;;  %v12930_v57 = vld [vmem:[#allocation13 + $0x6c] sm:$0xf] }
 0x1e2   :  { %v650_v62 = vmul.f32 %v13743_v42, %v14521_v23  ;;  %vm656_vm9 = vweird.f32 %v13743_v42  ;;  %v9912_v23 = vor.u32 %v12940_v37, %v9911_v36  ;;  %v10044_v33 = vor.u32 %v12970_v38, %v10041_v40  ;;  %v9879_v36 = vld [vmem:[#allocation13 + $0x68] sm:$0xf]  ;;  %v12932_v37 = vld [vmem:[#allocation13 + $0x74] sm:$0xf0]  ;;  %v12962_v40 = vld [vmem:[#allocation13 + $0x16c] sm:$0xf] }
 0x1e3   :  { %v644_v18 = vmul.f32 %v14516_v8, %v643_v54  ;;  %vm657_vm12 = vmor %vm655_vm11, %vm656_vm9  ;;  %1325 = vmatpush.bf16.msra.mxu1 %v9916_v44  ;;  %v10023_v54 = vld [vmem:[#allocation13 + $0x188] sm:$0xf]  ;;  %v9881_v44 = vld [vmem:[#allocation13 + $0x78] sm:$0xf0] }
 0x1e4   :  { %v651_v9 = vmul.f32 %v13743_v42, %v650_v62  ;;  %1295 = vmatpush.bf16.msra.mxu0 %v10056_v10  ;;  %1354 = vmatpush.bf16.msra.mxu2 %v10044_v33  ;;  %v10025_v10 = vld [vmem:[#allocation13 + $0x198] sm:$0xf0]  ;;  %v9863_v59 = vld [vmem:[#allocation13 + $0x48] sm:$0xf] }
 0x1e5   :  { %v648_v30 = vsel %vm647_vm15, %v14516_v8, %v644_v18  ;;  %1267 = vmatpush.bf16.msra.mxu3 %v9912_v23 }
 0x1e6   :  { %v652_v16 = vmul.f32 0.5, %v651_v9  ;;  %v12966_v9 = vld [vmem:[#allocation13 + $0x18c] sm:$0xf] }
 0x1e8   :  { %v653_v17 = vsub.f32 1.5, %v652_v16  ;;  %1296 = vmatpush.bf16.msra.mxu0 %v10040_v47  ;;  %v9880_v47 = vor.u32 %v12932_v37, %v9879_v36 }
 0x1e9   :  { %1268 = vmatpush.bf16.msra.mxu3 %v9896_v48  ;;  %v10012_v48 = vor.u32 %v12962_v40, %v10009_v41 }
 0x1ea   :  { %v654_v21 = vmul.f32 %v13743_v42, %v653_v17 }
 0x1ec   :  { %v658_v27 = vsel %vm657_vm12, %v13743_v42, %v654_v21  ;;  %v14538_v42 = vperm.slane %v687_v22, 1  ;;  %v12968_v21 = vld [vmem:[#allocation13 + $0x194] sm:$0xf0]  ;;  %v12934_v22 = vld [vmem:[#allocation13 + $0x8c] sm:$0xf] }
 0x1ed   :  { %v661_v29 = vrot.slane %v658_v27, 7  ;;  %v9897_v27 = vld [vmem:[#allocation13 + $0x98] sm:$0xf0]  ;;  %1269 = vmatpush.bf16.msra.mxu3 %v9880_v47  ;;  %v12918_v47 = vld [vmem:[#allocation13 + $0xc] sm:$0xf] }
 0x1ef   :  { %v663_v34 = vsel %vm662_vm14, %v648_v30, %v661_v29  ;;  %v10028_v29 = vor.u32 %v12966_v9, %v10025_v10  ;;  %v10024_v30 = vor.u32 %v12968_v21, %v10023_v54  ;;  %v9977_v21 = vld [vmem:[#allocation13 + $0x138] sm:$0xf0] }
 0x1f0   :  { %v665_v12 = vmul.f32 %v663_v34, %v636_v0  ;;  %v9900_v34 = vor.u32 %v12934_v22, %v9897_v27  ;;  %v12956_v22 = vld [vmem:[#allocation13 + $0x134] sm:$0xf0] }
 0x1f1   :  { %1355 = vmatpush.bf16.msra.mxu2 %v10028_v29  ;;  %1297 = vmatpush.bf16.msra.mxu0 %v10024_v30  ;;  %v9849_v30 = vld [vmem:[#allocation13 + $0x38] sm:$0xf0] }
 0x1f2   :  { %v14534_v58 = vperm.slane %v665_v12, 0  ;;  %v14536_v8 = vperm.slane %v665_v12, 1  ;;  %1326 = vmatpush.bf16.msra.mxu1 %v9900_v34 }
 0x1f4   :  { %v671_v60 = vmul.f32 %v14534_v58, %v14439_v24  ;;  %v673_v61 = vmul.f32 %v14534_v58, %v14441_v25  ;;  %v672_v62 = vmul.f32 %v14536_v8, %v14469_v51  ;;  %v674_v63 = vmul.f32 %v14536_v8, %v14472_v52 }
 0x1f5   :  { %v676_v24 = vmul.f32 %v14536_v8, %v14475_v53  ;;  %v678_v51 = vmul.f32 %v14536_v8, %v14478_v55  ;;  %v675_v14 = vmul.f32 %v14534_v58, %v14443_v26  ;;  %v677_v53 = vmul.f32 %v14534_v58, %v14445_v28  ;;  %1356 = vmatpush.bf16.msra.mxu2 %v10012_v48 }
 0x1f6   :  { %v693_v2 = vadd.f32 %v14531_v32, %v671_v60  ;;  %v695_v3 = vadd.f32 %v14531_v32, %v673_v61  ;;  %v694_v4 = vadd.f32 %v14538_v42, %v672_v62  ;;  %v696_v5 = vadd.f32 %v14538_v42, %v674_v63  ;;  %v12928_v61 = vld [vmem:[#allocation13 + $0x54] sm:$0xf0]  ;;  %v12958_v62 = vld [vmem:[#allocation13 + $0x14c] sm:$0xf]  ;;  %v9993_v63 = vld [vmem:[#allocation13 + $0x158] sm:$0xf0] }
 0x1f7   :  { %v698_v17 = vadd.f32 %v14538_v42, %v676_v24  ;;  %v700_v18 = vadd.f32 %v14538_v42, %v678_v51  ;;  %v697_v38 = vadd.f32 %v14531_v32, %v675_v14  ;;  %v699_v12 = vadd.f32 %v14531_v32, %v677_v53  ;;  %v12960_v51 = vld [vmem:[#allocation13 + $0x154] sm:$0xf0] }
 0x1f8   :  { %vm709_vm0 = vcmp.ge.f32.partialorder %v693_v2, 0.0  ;;  %vm711_vm1 = vcmp.ge.f32.partialorder %v695_v3, 0.0  ;;  %v725_v25 = vmul.f32 0.2, %v693_v2  ;;  %v727_v6 = vmul.f32 0.2, %v695_v3 }
 0x1f9   :  { %vm710_vm2 = vcmp.ge.f32.partialorder %v694_v4, 0.0  ;;  %vm712_vm3 = vcmp.ge.f32.partialorder %v696_v5, 0.0  ;;  %v726_v52 = vmul.f32 0.2, %v694_v4  ;;  %v728_v50 = vmul.f32 0.2, %v696_v5 }
 0x1fa   :  { %v741_v7 = vsel %vm709_vm0, %v693_v2, %v725_v25  ;;  %v743_v11 = vsel %vm711_vm1, %v695_v3, %v727_v6  ;;  %vm714_vm4 = vcmp.ge.f32.partialorder %v698_v17, 0.0  ;;  %vm716_vm5 = vcmp.ge.f32.partialorder %v700_v18, 0.0  ;;  %v12926_v6 = vld [vmem:[#allocation13 + $0x4c] sm:$0xf] }
 0x1fb   :  { %v742_v13 = vsel %vm710_vm2, %v694_v4, %v726_v52  ;;  %v14560_v16 = vpack.c.bf16 %v743_v11, %v741_v7  ;;  %v744_v55 = vsel %vm712_vm3, %v696_v5, %v728_v50  ;;  %v730_v26 = vmul.f32 0.2, %v698_v17  ;;  %v9991_v5 = vld [vmem:[#allocation13 + $0x148] sm:$0xf]  ;;  %v9865_v52 = vld [vmem:[#allocation13 + $0x58] sm:$0xf0] }
 0x1fc   :  { %v14564_v0 = vpack.c.bf16 %v744_v55, %v742_v13  ;;  %v732_v28 = vmul.f32 0.2, %v700_v18  ;;  %v10008_v60 = vor.u32 %v12964_v49, %v10007_v43  ;;  %vm713_vm6 = vcmp.ge.f32.partialorder %v697_v38, 0.0  ;;  %v9847_v55 = vld [vmem:[#allocation13 + $0x28] sm:$0xf] }
 0x1fd   :  { %1157 = vmatmul.bf16.vlgmr.msrb.gmra.mxu3 %v14560_v16  ;;  %1215 = vmatmul.bf16.vlgmr.msrb.gmra.mxu1 %v14560_v16  ;;  %v746_v23 = vsel %vm714_vm4, %v698_v17, %v730_v26  ;;  %vm715_vm7 = vcmp.ge.f32.partialorder %v699_v12, 0.0  ;;  %v729_v2 = vmul.f32 0.2, %v697_v38  ;;  %v731_v3 = vmul.f32 0.2, %v699_v12 }
 0x1fe   :  { %1186 = vmatmul.bf16.vlgmr.msrb.gmra.mxu0 %v14564_v0  ;;  %1244 = vmatmul.bf16.vlgmr.msrb.gmra.mxu2 %v14564_v0  ;;  %v748_v33 = vsel %vm716_vm5, %v700_v18, %v732_v28  ;;  %v9884_v4 = vor.u32 %v12930_v57, %v9881_v44  ;;  %v9864_v24 = vor.u32 %v12928_v61, %v9863_v59  ;;  %v12924_v17 = vld [vmem:[#allocation13 + $0x34] sm:$0xf0]  ;;  %v12922_v28 = vld [vmem:[#allocation13 + $0x2c] sm:$0xf]  ;;  %v9959_v43 = vld [vmem:[#allocation13 + $0x108] sm:$0xf] }
 0x1ff   :  { %v14573_v56 = vpack.c.bf16 %v748_v33, %v746_v23  ;;  %1298 = vmatpush.bf16.msra.mxu0 %v10008_v60  ;;  %v9996_v25 = vor.u32 %v12958_v62, %v9993_v63  ;;  %v9992_v7 = vor.u32 %v12960_v51, %v9991_v5  ;;  %v9868_v50 = vor.u32 %v12926_v6, %v9865_v52  ;;  %v9961_v23 = vld [vmem:[#allocation13 + $0x118] sm:$0xf0]  ;;  %v12952_v33 = vld [vmem:[#allocation13 + $0x114] sm:$0xf0] }
 0x200   :  { %1327 = vmatpush.bf16.msra.mxu1 %v9884_v4  ;;  %1270 = vmatpush.bf16.msra.mxu3 %v9864_v24  ;;  %v745_v9 = vsel %vm713_vm6, %v697_v38, %v729_v2  ;;  %v747_v10 = vsel %vm715_vm7, %v699_v12, %v731_v3  ;;  %v679_v13 = vmul.f32 %v14534_v58, %v14451_v31  ;;  %v12954_v31 = vld [vmem:[#allocation13 + $0x12c] sm:$0xf]  ;;  %v12920_v38 = vld [vmem:[#allocation13 + $0x14] sm:$0xf0]  ;;  %v9833_v57 = vld [vmem:[#allocation13 + $0x18] sm:$0xf0] }
 0x201   :  { %1357 = vmatpush.bf16.msra.mxu2 %v9996_v25  ;;  %v14577_v11 = vpack.c.bf16 %v747_v10, %v745_v9  ;;  %v681_v14 = vmul.f32 %v14534_v58, %v14455_v35  ;;  %v680_v53 = vmul.f32 %v14536_v8, %v14489_v46  ;;  %v682_v54 = vmul.f32 %v14536_v8, %v14494_v1  ;;  %v9975_v35 = vld [vmem:[#allocation13 + $0x128] sm:$0xf]  ;;  %v12950_v12 = vld [vmem:[#allocation13 + $0x10c] sm:$0xf] }
 0x202   :  { %v9848_v18 = vor.u32 %v12924_v17, %v9847_v55  ;;  %v701_v27 = vadd.f32 %v14531_v32, %v679_v13  ;;  %v9980_v26 = vor.u32 %v12954_v31, %v9977_v21  ;;  %v9976_v46 = vor.u32 %v12956_v22, %v9975_v35  ;;  %v9831_v1 = vld [vmem:[#allocation13 + $0x8] sm:$0xf] }
 0x203   :  { %1299 = vmatpush.bf16.msra.mxu0 %v9992_v7  ;;  %v703_v29 = vadd.f32 %v14531_v32, %v681_v14  ;;  %v702_v34 = vadd.f32 %v14538_v42, %v680_v53  ;;  %v704_v36 = vadd.f32 %v14538_v42, %v682_v54  ;;  %v9852_v37 = vor.u32 %v12922_v28, %v9849_v30 }
 0x204   :  { %1328 = vmatpush.bf16.msra.mxu1 %v9868_v50  ;;  %1271 = vmatpush.bf16.msra.mxu3 %v9848_v18  ;;  %v9832_v40 = vor.u32 %v12920_v38, %v9831_v1  ;;  %v9964_v41 = vor.u32 %v12950_v12, %v9961_v23  ;;  %v9960_v49 = vor.u32 %v12952_v33, %v9959_v43  ;;  %v733_v44 = vmul.f32 0.2, %v701_v27 }
 0x205   :  { %1358 = vmatpush.bf16.msra.mxu2 %v9980_v26  ;;  %v735_v59 = vmul.f32 0.2, %v703_v29  ;;  %v9836_v48 = vor.u32 %v12918_v47, %v9833_v57  ;;  %vm717_vm8 = vcmp.ge.f32.partialorder %v701_v27, 0.0  ;;  %vm719_vm9 = vcmp.ge.f32.partialorder %v703_v29, 0.0 }
 0x206   :  { %v734_v60 = vmul.f32 0.2, %v702_v34  ;;  %v736_v61 = vmul.f32 0.2, %v704_v36  ;;  %vm718_vm10 = vcmp.ge.f32.partialorder %v702_v34, 0.0  ;;  %vm720_vm11 = vcmp.ge.f32.partialorder %v704_v36, 0.0 }
 0x207   :  { %1300 = vmatpush.bf16.msra.mxu0 %v9976_v46  ;;  %v749_v62 = vsel %vm717_vm8, %v701_v27, %v733_v44  ;;  %v751_v63 = vsel %vm719_vm9, %v703_v29, %v735_v59  ;;  %v683_v24 = vmul.f32 %v14534_v58, %v14459_v39  ;;  %v685_v25 = vmul.f32 %v14534_v58, %v14464_v45 }
 0x208   :  { %1329 = vmatpush.bf16.msra.mxu1 %v9852_v37  ;;  %1272 = vmatpush.bf16.msra.mxu3 %v9832_v40  ;;  %v750_v2 = vsel %vm718_vm10, %v702_v34, %v734_v60  ;;  %v752_v3 = vsel %vm720_vm11, %v704_v36, %v736_v61  ;;  %v761_v4 = vpack.c.bf16 %v751_v63, %v749_v62 }
 0x209   :  { %1359 = vmatpush.bf16.msra.mxu2 %v9964_v41  ;;  %v762_v5 = vpack.c.bf16 %v752_v3, %v750_v2  ;;  %v686_v51 = vmul.f32 %v14536_v8, %v14504_v19  ;;  %v684_v6 = vmul.f32 %v14536_v8, %v14499_v15  ;;  %v705_v52 = vadd.f32 %v14531_v32, %v683_v24 }
 0x20a   :  { %v707_v7 = vadd.f32 %v14531_v32, %v685_v25 }
 0x20b   :  { %1301 = vmatpush.bf16.msra.mxu0 %v9960_v49  ;;  %v708_v50 = vadd.f32 %v14538_v42, %v686_v51  ;;  %v706_v39 = vadd.f32 %v14538_v42, %v684_v6  ;;  %v737_v9 = vmul.f32 0.2, %v705_v52  ;;  %vm721_vm12 = vcmp.ge.f32.partialorder %v705_v52, 0.0 }
 0x20c   :  { %1330 = vmatpush.bf16.msra.mxu1 %v9836_v48  ;;  %v739_v45 = vmul.f32 0.2, %v707_v7  ;;  %vm723_vm13 = vcmp.ge.f32.partialorder %v707_v7, 0.0 }
 0x20d   :  { %1162 = vmatmul.bf16.gmra.mxu3 %v14577_v11  ;;  %1220 = vmatmul.bf16.gmra.mxu1 %v14577_v11  ;;  %v740_v58 = vmul.f32 0.2, %v708_v50  ;;  %v738_v19 = vmul.f32 0.2, %v706_v39  ;;  %vm722_vm15 = vcmp.ge.f32.partialorder %v706_v39, 0.0  ;;  %vm724_vm0 = vcmp.ge.f32.partialorder %v708_v50, 0.0 }
 0x20e   :  { %1191 = vmatmul.bf16.gmra.mxu0 %v14573_v56  ;;  %1249 = vmatmul.bf16.gmra.mxu2 %v14573_v56  ;;  %v753_v10 = vsel %vm721_vm12, %v705_v52, %v737_v9  ;;  %v755_v15 = vsel %vm723_vm13, %v707_v7, %v739_v45  ;;  %vm1610_vm13 = vcmask 1042434  }
 0x20f   :  { %v754_v8 = vsel %vm722_vm15, %v706_v39, %v738_v19  ;;  %v756_v13 = vsel %vm724_vm0, %v708_v50, %v740_v58  ;;  %v763_v14 = vpack.c.bf16 %v755_v15, %v753_v10  ;;  %vm1612_vm15 = vcmask 1041408  }
 0x210   :  { %v764_v53 = vpack.c.bf16 %v756_v13, %v754_v8 }
 0x21d   :  { %1167 = vmatmul.bf16.gmra.mxu3 %v761_v4  ;;  %1225 = vmatmul.bf16.gmra.mxu1 %v761_v4 }
 0x21e   :  { %1196 = vmatmul.bf16.gmra.mxu0 %v762_v5  ;;  %1254 = vmatmul.bf16.gmra.mxu2 %v762_v5 }
 0x22d   :  { %1172 = vmatmul.bf16.gmra.mxu3 %v763_v14  ;;  %1230 = vmatmul.bf16.gmra.mxu1 %v763_v14 }
 0x22e   :  { %1201 = vmatmul.bf16.gmra.mxu0 %v764_v53  ;;  %1259 = vmatmul.bf16.gmra.mxu2 %v764_v53 }
 0x23d   :  { %1273 = vmatmul.bf16.vlgmr.msra.gmra.mxu3 %v14560_v16  ;;  %1331 = vmatmul.bf16.vlgmr.msra.gmra.mxu1 %v14560_v16 }
 0x23e   :  { %1302 = vmatmul.bf16.vlgmr.msra.gmra.mxu0 %v14564_v0  ;;  %1360 = vmatmul.bf16.vlgmr.msra.gmra.mxu2 %v14564_v0 }
 0x24d   :  { %1278 = vmatmul.bf16.gmra.mxu3 %v14577_v11  ;;  %1336 = vmatmul.bf16.gmra.mxu1 %v14577_v11 }
 0x24e   :  { %1307 = vmatmul.bf16.gmra.mxu0 %v14573_v56  ;;  %1365 = vmatmul.bf16.gmra.mxu2 %v14573_v56 }
 0x25d   :  { %1283 = vmatmul.bf16.gmra.mxu3 %v761_v4  ;;  %1341 = vmatmul.bf16.gmra.mxu1 %v761_v4 }
 0x25e   :  { %1312 = vmatmul.bf16.gmra.mxu0 %v762_v5  ;;  %1370 = vmatmul.bf16.gmra.mxu2 %v762_v5 }
 0x26d   :  { %1288 = vmatmul.bf16.gmra.mxu3 %v763_v14  ;;  %1346 = vmatmul.bf16.gmra.mxu1 %v763_v14 }
 0x26e   :  { %1317 = vmatmul.bf16.gmra.mxu0 %v764_v53  ;;  %1375 = vmatmul.bf16.gmra.mxu2 %v764_v53 }
 0x27a   :  { %v1216_v32 = vpop.f32.mrf.mxu1 }
 0x27b   :  { %v1187_v42 = vpop.f32.mrf.mxu0 }
 0x280   :  { %v1158_v16 = vpop.f32.mrf.mxu3 }
 0x281   :  { %v14615_v0 = vadd.f32 %v1187_v42, %v1158_v16  ;;  %v1245_v54 = vpop.f32.mrf.mxu2 }
 0x282   :  { %v14617_v55 = vadd.f32 %v1245_v54, %v1216_v32  ;;  %v1218_v11 = vpop.f32.mrf.mxu1 }
 0x283   :  { %v1189_v17 = vpop.f32.mrf.mxu0 }
 0x288   :  { %v1160_v31 = vpop.f32.mrf.mxu3 }
 0x289   :  { %v1247_v56 = vpop.f32.mrf.mxu2  ;;  %v14619_v35 = vadd.f32 %v1189_v17, %v1160_v31 }
 0x28a   :  { %v1221_v18 = vpop.f32.mrf.mxu1  ;;  %v14621_v22 = vadd.f32 %v1247_v56, %v1218_v11 }
 0x28b   :  { %v1192_v21 = vpop.f32.mrf.mxu0  ;;  %v1381_v29 = vadd.f32 %v14619_v35, %v14615_v0 }
 0x28c   :  { %v1394_v28 = vadd.f32 %v14621_v22, %v14617_v55 }
 0x290   :  { %v1163_v27 = vpop.f32.mrf.mxu3 }
 0x291   :  { %v14625_v26 = vadd.f32 %v1192_v21, %v1163_v27  ;;  %v1250_v46 = vpop.f32.mrf.mxu2 }
 0x292   :  { %v14629_v30 = vadd.f32 %v1250_v46, %v1221_v18  ;;  %v1223_v1 = vpop.f32.mrf.mxu1 }
 0x293   :  { %v1382_v34 = vadd.f32 %v1381_v29, %v14625_v26  ;;  %v1194_v36 = vpop.f32.mrf.mxu0 }
 0x294   :  { %v1395_v37 = vadd.f32 %v1394_v28, %v14629_v30 }
 0x298   :  { %v1165_v38 = vpop.f32.mrf.mxu3 }
 0x299   :  { %v1252_v12 = vpop.f32.mrf.mxu2  ;;  %v14633_v41 = vadd.f32 %v1194_v36, %v1165_v38 }
 0x29a   :  { %v1226_v23 = vpop.f32.mrf.mxu1  ;;  %v14635_v43 = vadd.f32 %v1252_v12, %v1223_v1 }
 0x29b   :  { %v1197_v40 = vpop.f32.mrf.mxu0  ;;  %v1383_v47 = vadd.f32 %v1382_v34, %v14633_v41 }
 0x29c   :  { %v1396_v44 = vadd.f32 %v1395_v37, %v14635_v43 }
 0x2a0   :  { %v1168_v33 = vpop.f32.mrf.mxu3 }
 0x2a1   :  { %v1198_v49 = vadd.f32 %v1197_v40, %v1168_v33  ;;  %v1255_v57 = vpop.f32.mrf.mxu2 }
 0x2a2   :  { %v1256_v59 = vadd.f32 %v1255_v57, %v1226_v23  ;;  %v1228_v48 = vpop.f32.mrf.mxu1 }
 0x2a3   :  { %v1384_v60 = vadd.f32 %v1383_v47, %v1198_v49  ;;  %v1199_v61 = vpop.f32.mrf.mxu0 }
 0x2a4   :  { %v1397_v62 = vadd.f32 %v1396_v44, %v1256_v59 }
 0x2a8   :  { %v1170_v63 = vpop.f32.mrf.mxu3 }
 0x2a9   :  { %v1257_v2 = vpop.f32.mrf.mxu2  ;;  %v14639_v5 = vadd.f32 %v1199_v61, %v1170_v63 }
 0x2aa   :  { %v1231_v3 = vpop.f32.mrf.mxu1  ;;  %v14641_v24 = vadd.f32 %v1257_v2, %v1228_v48 }
 0x2ab   :  { %v1202_v4 = vpop.f32.mrf.mxu0  ;;  %v1385_v51 = vadd.f32 %v1384_v60, %v14639_v5 }
 0x2ac   :  { %v1398_v7 = vadd.f32 %v1397_v62, %v14641_v24 }
 0x2b0   :  { %v1173_v25 = vpop.f32.mrf.mxu3 }
 0x2b1   :  { %v1203_v6 = vadd.f32 %v1202_v4, %v1173_v25  ;;  %v1260_v52 = vpop.f32.mrf.mxu2 }
 0x2b2   :  { %v1261_v50 = vadd.f32 %v1260_v52, %v1231_v3  ;;  %v1233_v39 = vpop.f32.mrf.mxu1 }
 0x2b3   :  { %v1386_v9 = vadd.f32 %v1385_v51, %v1203_v6  ;;  %v1204_v45 = vpop.f32.mrf.mxu0 }
 0x2b4   :  { %v1399_v58 = vadd.f32 %v1398_v7, %v1261_v50 }
 0x2b8   :  { %v1175_v19 = vpop.f32.mrf.mxu3 }
 0x2b9   :  { %v14645_v10 = vadd.f32 %v1204_v45, %v1175_v19  ;;  %v1262_v15 = vpop.f32.mrf.mxu2 }
 0x2ba   :  { %v14647_v8 = vadd.f32 %v1262_v15, %v1233_v39  ;;  %v14649_v13 = vpop.f32.mrf.mxu1 }
 0x2bb   :  { %v1387_v14 = vadd.f32 %v1386_v9, %v14645_v10  ;;  %v14652_v53 = vpop.f32.mrf.mxu0 }
 0x2bc   :  { %v1400_v32 = vadd.f32 %v1399_v58, %v14647_v8 }
 0x2bd   :  { %v1388_v42 = vrot.slane %v1387_v14, 4 }
 0x2be   :  { %v1401_v16 = vrot.slane %v1400_v32, 4 }
 0x2bf   :  { %v1389_v54 = vadd.f32 %v1388_v42, %v1387_v14 }
 0x2c0   :  { %v1402_v11 = vadd.f32 %v1401_v16, %v1400_v32  ;;  %v1274_v17 = vpop.f32.mrf.mxu3 }
 0x2c1   :  { %v1390_v31 = vrot.slane %v1389_v54, 2  ;;  %v1361_v56 = vpop.f32.mrf.mxu2 }
 0x2c2   :  { %v1403_v18 = vrot.slane %v1402_v11, 2  ;;  %v1334_v21 = vpop.f32.mrf.mxu1 }
 0x2c3   :  { %v1391_v27 = vadd.f32 %v1390_v31, %v1389_v54  ;;  %v1305_v29 = vpop.f32.mrf.mxu0 }
 0x2c4   :  { %v1404_v46 = vadd.f32 %v1403_v18, %v1402_v11 }
 0x2c5   :  { %v1392_v28 = vrot.slane %v1391_v27, 1 }
 0x2c6   :  { %v1405_v1 = vrot.slane %v1404_v46, 1 }
 0x2c7   :  { %v1393_v34 = vadd.f32 %v1392_v28, %v1391_v27 }
 0x2c8   :  { %v1406_v36 = vadd.f32 %v1405_v1, %v1404_v46  ;;  %v1276_v37 = vpop.f32.mrf.mxu3  ;;  %v14729_v46 = vadd.f32 %v1361_v56, %v14649_v13 }
 0x2c9   :  { %v14656_v38 = vmul.f32 %v1393_v34, %v14436_v20  ;;  %v1363_v12 = vpop.f32.mrf.mxu2  ;;  %v14719_v31 = vadd.f32 %v1305_v29, %v1276_v37 }
 0x2ca   :  { %v1337_v23 = vpop.f32.mrf.mxu1  ;;  %v14671_v57 = vmul.f32 %v1406_v36, %v14436_v20  ;;  %v14723_v27 = vadd.f32 %v1363_v12, %v1334_v21 }
 0x2cb   :  { %v14660_v40 = vsub.f32 %v14615_v0, %v14656_v38  ;;  %v14664_v33 = vsub.f32 %v14619_v35, %v14656_v38  ;;  %v14668_v47 = vsub.f32 %v14625_v26, %v14656_v38  ;;  %v1308_v44 = vpop.f32.mrf.mxu0  ;;  %v14674_v48 = vsub.f32 %v1198_v49, %v14656_v38 }
 0x2cc   :  { %v14677_v60 = vsub.f32 %v1203_v6, %v14656_v38  ;;  %v14685_v26 = vsub.f32 %v14617_v55, %v14671_v57  ;;  %v14689_v62 = vsub.f32 %v14629_v30, %v14671_v57  ;;  %v14692_v49 = vsub.f32 %v1256_v59, %v14671_v57 }
 0x2cd   :  { %v1469_v0 = vmul.f32 %v14660_v40, %v14660_v40  ;;  %v1473_v35 = vmul.f32 %v14664_v33, %v14664_v33  ;;  %v14695_v63 = vsub.f32 %v1261_v50, %v14671_v57  ;;  %v14699_v55 = vsub.f32 %v14621_v22, %v14671_v57 }
 0x2ce   :  { %v1470_v30 = vmul.f32 %v14685_v26, %v14685_v26  ;;  %v14707_v19 = vsub.f32 %v14635_v43, %v14671_v57  ;;  %v1478_v15 = vmul.f32 %v14689_v62, %v14689_v62  ;;  %v14713_v22 = vsub.f32 %v14633_v41, %v14656_v38 }
 0x2cf   :  { %v1501_v61 = vadd.f32 %v1473_v35, %v1469_v0  ;;  %v1474_v59 = vmul.f32 %v14699_v55, %v14699_v55  ;;  %v1477_v14 = vmul.f32 %v14668_v47, %v14668_v47  ;;  %v14726_v41 = vadd.f32 %v14652_v53, %v1274_v17 }
 0x2d0   :  { %v1279_v2 = vpop.f32.mrf.mxu3  ;;  %v1482_v11 = vmul.f32 %v14707_v19, %v14707_v19  ;;  %v1481_v43 = vmul.f32 %v14713_v22, %v14713_v22  ;;  %v14735_v34 = vsub.f32 %v14641_v24, %v14671_v57  ;;  %v1486_v29 = vmul.f32 %v14692_v49, %v14692_v49 }
 0x2d1   :  { %v1366_v3 = vpop.f32.mrf.mxu2  ;;  %v1514_v9 = vadd.f32 %v1474_v59, %v1470_v30  ;;  %v1502_v54 = vadd.f32 %v1501_v61, %v1477_v14  ;;  %v14731_v28 = vadd.f32 %v1308_v44, %v1279_v2  ;;  %v14743_v53 = vsub.f32 %v14639_v5, %v14656_v38 }
 0x2d2   :  { %v1339_v4 = vpop.f32.mrf.mxu1  ;;  %v14739_v36 = vadd.f32 %v1366_v3, %v1337_v23  ;;  %v1407_v13 = vadd.f32 %v14719_v31, %v14726_v41  ;;  %v1485_v24 = vmul.f32 %v14674_v48, %v14674_v48  ;;  %v1420_v12 = vadd.f32 %v14723_v27, %v14729_v46 }
 0x2d3   :  { %v1310_v25 = vpop.f32.mrf.mxu0  ;;  %v1515_v32 = vadd.f32 %v1514_v9, %v1478_v15  ;;  %v1503_v1 = vadd.f32 %v1502_v54, %v1481_v43  ;;  %v1490_v2 = vmul.f32 %v14735_v34, %v14735_v34 }
 0x2d4   :  { %v1408_v0 = vadd.f32 %v1407_v13, %v14731_v28  ;;  %v1421_v3 = vadd.f32 %v1420_v12, %v14739_v36 }
 0x2d5   :  { %v1516_v18 = vadd.f32 %v1515_v32, %v1482_v11  ;;  %v1504_v61 = vadd.f32 %v1503_v1, %v1485_v24 }
 0x2d7   :  { %v1517_v37 = vadd.f32 %v1516_v18, %v1486_v29 }
 0x2d8   :  { %v1281_v51 = vpop.f32.mrf.mxu3 }
 0x2d9   :  { %v1368_v6 = vpop.f32.mrf.mxu2  ;;  %v14747_v17 = vadd.f32 %v1310_v25, %v1281_v51 }
 0x2da   :  { %v1342_v7 = vpop.f32.mrf.mxu1  ;;  %v14753_v23 = vadd.f32 %v1368_v6, %v1339_v4  ;;  %v1489_v4 = vmul.f32 %v14743_v53, %v14743_v53  ;;  %v1518_v6 = vadd.f32 %v1517_v37, %v1490_v2 }
 0x2db   :  { %v1313_v52 = vpop.f32.mrf.mxu0  ;;  %v1409_v51 = vadd.f32 %v1408_v0, %v14747_v17 }
 0x2e0   :  { %v1284_v50 = vpop.f32.mrf.mxu3 }
 0x2e1   :  { %v1371_v39 = vpop.f32.mrf.mxu2  ;;  %v14756_v5 = vadd.f32 %v1313_v52, %v1284_v50  ;;  %v1422_v52 = vadd.f32 %v1421_v3, %v14753_v23  ;;  %v14773_v50 = vsub.f32 %v14647_v8, %v14671_v57  ;;  %v1493_v8 = vmul.f32 %v14677_v60, %v14677_v60 }
 0x2e2   :  { %v1344_v58 = vpop.f32.mrf.mxu1  ;;  %v14761_v25 = vadd.f32 %v1371_v39, %v1342_v7  ;;  %v1505_v39 = vadd.f32 %v1504_v61, %v1489_v4 }
 0x2e3   :  { %v1315_v45 = vpop.f32.mrf.mxu0  ;;  %v1410_v9 = vadd.f32 %v1409_v51, %v14756_v5 }
 0x2e4   :  { %v1423_v15 = vadd.f32 %v1422_v52, %v14761_v25  ;;  %v1506_v29 = vadd.f32 %v1505_v39, %v1493_v8 }
 0x2e8   :  { %v1286_v42 = vpop.f32.mrf.mxu3 }
 0x2e9   :  { %v1373_v16 = vpop.f32.mrf.mxu2  ;;  %v14764_v30 = vadd.f32 %v1315_v45, %v1286_v42  ;;  %v1494_v45 = vmul.f32 %v14695_v63, %v14695_v63 }
 0x2ea   :  { %v1347_v56 = vpop.f32.mrf.mxu1  ;;  %v14769_v59 = vadd.f32 %v1373_v16, %v1344_v58  ;;  %v14786_v58 = vsub.f32 %v14645_v10, %v14656_v38 }
 0x2eb   :  { %v1318_v21 = vpop.f32.mrf.mxu0  ;;  %v1411_v32 = vadd.f32 %v1410_v9, %v14764_v30  ;;  %v1519_v57 = vadd.f32 %v1518_v6, %v1494_v45 }
 0x2ec   :  { %v1424_v42 = vadd.f32 %v1423_v15, %v14769_v59 }
 0x2f0   :  { %v1289_v44 = vpop.f32.mrf.mxu3 }
 0x2f1   :  { %v1376_v35 = vpop.f32.mrf.mxu2  ;;  %v14776_v7 = vadd.f32 %v1318_v21, %v1289_v44  ;;  %v1498_v21 = vmul.f32 %v14773_v50, %v14773_v50 }
 0x2f2   :  { %v14781_v14 = vadd.f32 %v1376_v35, %v1347_v56  ;;  %v1349_v43 = vpop.f32.mrf.mxu1  ;;  %v1497_v56 = vmul.f32 %v14786_v58, %v14786_v58 }
 0x2f3   :  { %v1320_v16 = vpop.f32.mrf.mxu0  ;;  %v1412_v11 = vadd.f32 %v1411_v32, %v14776_v7  ;;  %v1520_v24 = vadd.f32 %v1519_v57, %v1498_v21 }
 0x2f4   :  { %v1425_v10 = vadd.f32 %v1424_v42, %v14781_v14  ;;  %v1507_v44 = vadd.f32 %v1506_v29, %v1497_v56 }
 0x2f5   :  { %v1521_v61 = vrot.slane %v1520_v24, 4 }
 0x2f6   :  { %v1508_v51 = vrot.slane %v1507_v44, 4 }
 0x2f7   :  { %v1522_v52 = vadd.f32 %v1521_v61, %v1520_v24 }
 0x2f8   :  { %v1291_v54 = vpop.f32.mrf.mxu3  ;;  %v1509_v45 = vadd.f32 %v1508_v51, %v1507_v44 }
 0x2f9   :  { %v1321_v18 = vadd.f32 %v1320_v16, %v1291_v54  ;;  %v1378_v1 = vpop.f32.mrf.mxu2  ;;  %v1523_v8 = vrot.slane %v1522_v52, 2 }
 0x2fa   :  { %v14795_v38 = vadd.f32 %v1378_v1, %v1349_v43  ;;  %v1510_v16 = vrot.slane %v1509_v45, 2 }
 0x2fb   :  { %v1413_v13 = vadd.f32 %v1412_v11, %v1321_v18  ;;  %v1524_v29 = vadd.f32 %v1523_v8, %v1522_v52 }
 0x2fc   :  { %v1426_v37 = vadd.f32 %v1425_v10, %v14795_v38 }
 0x2fd   :  { %v1414_v12 = vrot.slane %v1413_v13, 4 }
 0x2fe   :  { %v1427_v0 = vrot.slane %v1426_v37, 4 }
 0x2ff   :  { %v1415_v35 = vadd.f32 %v1414_v12, %v1413_v13  ;;  %v1525_v12 = vrot.slane %v1524_v29, 1 }
 0x300   :  { %v1428_v2 = vadd.f32 %v1427_v0, %v1426_v37 }
 0x301   :  { %v1416_v3 = vrot.slane %v1415_v35, 2 }
 0x302   :  { %v1429_v4 = vrot.slane %v1428_v2, 2 }
 0x303   :  { %v1417_v6 = vadd.f32 %v1416_v3, %v1415_v35 }
 0x304   :  { %v1430_v9 = vadd.f32 %v1429_v4, %v1428_v2  ;;  %v1526_v4 = vadd.f32 %v1525_v12, %v1524_v29 }
 0x305   :  { %v1418_v39 = vrot.slane %v1417_v6, 1 }
 0x306   :  { %v1431_v15 = vrot.slane %v1430_v9, 1 }
 0x307   :  { %v1419_v32 = vadd.f32 %v1418_v39, %v1417_v6 }
 0x308   :  { %v1432_v57 = vadd.f32 %v1431_v15, %v1430_v9 }
 0x309   :  { %v1435_v42 = vmul.f32 %v1419_v32, %v14436_v20 }
 0x30a   :  { %v1436_v1 = vmul.f32 %v1432_v57, %v14436_v20 }
 0x30b   :  { %v14802_v54 = vsub.f32 %v14726_v41, %v1435_v42  ;;  %v14805_v11 = vsub.f32 %v14719_v31, %v1435_v42  ;;  %v14808_v43 = vsub.f32 %v14731_v28, %v1435_v42  ;;  %v14812_v21 = vsub.f32 %v14747_v17, %v1435_v42 }
 0x30c   :  { %v1511_v41 = vadd.f32 %v1510_v16, %v1509_v45  ;;  %v14819_v56 = vsub.f32 %v14756_v5, %v1435_v42  ;;  %v14824_v24 = vsub.f32 %v14729_v46, %v1436_v1  ;;  %v14827_v17 = vsub.f32 %v14723_v27, %v1436_v1 }
 0x30d   :  { %v1471_v10 = vmul.f32 %v14802_v54, %v14802_v54  ;;  %v1475_v13 = vmul.f32 %v14805_v11, %v14805_v11  ;;  %v1479_v31 = vmul.f32 %v14808_v43, %v14808_v43  ;;  %v14830_v37 = vsub.f32 %v14739_v36, %v1436_v1 }
 0x30e   :  { %v14833_v44 = vsub.f32 %v14764_v30, %v1435_v42  ;;  %v1483_v5 = vmul.f32 %v14812_v21, %v14812_v21  ;;  %v14838_v35 = vsub.f32 %v14753_v23, %v1436_v1  ;;  %v1472_v46 = vmul.f32 %v14824_v24, %v14824_v24 }
 0x30f   :  { %v1527_v28 = vadd.f32 %v1475_v13, %v1471_v10  ;;  %v1476_v27 = vmul.f32 %v14827_v17, %v14827_v17  ;;  %v1512_v61 = vrot.slane %v1511_v41, 1  ;;  %v14845_v36 = vsub.f32 %v14776_v7, %v1435_v42 }
 0x310   :  { %v1487_v30 = vmul.f32 %v14819_v56, %v14819_v56  ;;  %v14850_v3 = vsub.f32 %v14761_v25, %v1436_v1  ;;  %v1480_v23 = vmul.f32 %v14830_v37, %v14830_v37  ;;  %v14854_v6 = vsub.f32 %v1321_v18, %v1435_v42 }
 0x311   :  { %v1528_v0 = vadd.f32 %v1527_v28, %v1479_v31  ;;  %v1540_v51 = vadd.f32 %v1476_v27, %v1472_v46  ;;  %v1491_v52 = vmul.f32 %v14833_v44, %v14833_v44  ;;  %v14859_v7 = vsub.f32 %v14769_v59, %v1436_v1 }
 0x312   :  { %v1484_v39 = vmul.f32 %v14838_v35, %v14838_v35  ;;  %v1513_v25 = vadd.f32 %v1512_v61, %v1511_v41  ;;  %v1495_v15 = vmul.f32 %v14845_v36, %v14845_v36  ;;  %v14866_v8 = vsub.f32 %v14781_v14, %v1436_v1 }
 0x313   :  { %v1529_v2 = vadd.f32 %v1528_v0, %v1483_v5  ;;  %v1541_v45 = vadd.f32 %v1540_v51, %v1480_v23  ;;  %v1488_v18 = vmul.f32 %v14850_v3, %v14850_v3  ;;  %v1554_v42 = vmul.f32 %v1526_v4, %v14436_v20  ;;  %v13041_v23 = vld [vmem:[#allocation17 + $0x1dc] sm:$0xf0] }
 0x314   :  { %v1499_v59 = vmul.f32 %v14854_v6, %v14854_v6  ;;  %v14874_v29 = vsub.f32 %v14795_v38, %v1436_v1  ;;  %v1492_v10 = vmul.f32 %v14859_v7, %v14859_v7  ;;  %v1553_v14 = vmul.f32 %v1513_v25, %v14436_v20  ;;  %v11071_v51 = vld [vmem:[#allocation17 + $0x7c0] sm:$0xf] }
 0x315   :  { %v1530_v9 = vadd.f32 %v1529_v2, %v1487_v30  ;;  %v1542_v57 = vadd.f32 %v1541_v45, %v1484_v39  ;;  %v1496_v31 = vmul.f32 %v14866_v8, %v14866_v8  ;;  %v14881_v12 = vadd.f32 0.8, %v1554_v42  ;;  %v10303_v2 = vld [vmem:[#allocation17 + $0x1c0] sm:$0xf] }
 0x316   :  { %v1500_v0 = vmul.f32 %v14874_v29, %v14874_v29  ;;  %v14885_v38 = vadd.f32 0.8, %v1553_v14  ;;  %v13233_v39 = vld [vmem:[#allocation17 + $0x7dc] sm:$0xf0] }
 0x317   :  { %v1531_v32 = vadd.f32 %v1530_v9, %v1491_v52  ;;  %v1543_v13 = vadd.f32 %v1542_v57, %v1488_v18  ;;  %13744 = vrsqrt.f32 %v14881_v12  ;;  %v10304_v9 = vor.u32 %v13041_v23, %v10303_v2  ;;  %v10559_v45 = vld [vmem:[#allocation17 + $0x3c0] sm:$0xf] }
 0x318   :  { %13746 = vrsqrt.f32 %v14885_v38  ;;  %v11072_v25 = vor.u32 %v13233_v39, %v11071_v51  ;;  %v13169_v18 = vld [vmem:[#allocation17 + $0x5dc] sm:$0xf0]  ;;  %vm1578_vm2 = vweird.f32 %v14881_v12  ;;  %vm1568_vm9 = vweird.f32 %v14885_v38 }
 0x319   :  { %v1532_v16 = vadd.f32 %v1531_v32, %v1495_v15  ;;  %v1544_v28 = vadd.f32 %v1543_v13, %v1492_v10  ;;  %v13105_v15 = vld [vmem:[#allocation17 + $0x3dc] sm:$0xf0]  ;;  %3347 = vmatpush.bf16.msrb.mxu3 %v10304_v9 }
 0x31a   :  { %v10815_v32 = vld [vmem:[#allocation17 + $0x5c0] sm:$0xf]  ;;  %3434 = vmatpush.bf16.msrb.mxu2 %v11072_v25 }
 0x31b   :  { %v1533_v41 = vadd.f32 %v1532_v16, %v1499_v59  ;;  %v1545_v46 = vadd.f32 %v1544_v28, %v1496_v31  ;;  %v10560_v59 = vor.u32 %v13105_v15, %v10559_v45  ;;  %v10271_v10 = vld [vmem:[#allocation17 + $0x180] sm:$0xf]  ;;  %v10816_v14 = vor.u32 %v13169_v18, %v10815_v32 }
 0x31c   :  { %v13033_v13 = vld [vmem:[#allocation17 + $0x19c] sm:$0xf0] }
 0x31d   :  { %v1534_v5 = vrot.slane %v1533_v41, 4  ;;  %v1546_v27 = vadd.f32 %v1545_v46, %v1500_v0  ;;  %v14889_v16 = vpop.eup %13744  ;;  %3376 = vmatpush.bf16.msrb.mxu0 %v10560_v59  ;;  %v13225_v0 = vld [vmem:[#allocation17 + $0x79c] sm:$0xf0]  ;;  %3405 = vmatpush.bf16.msrb.mxu1 %v10816_v14 }
 0x31e   :  { %v10527_v46 = vld [vmem:[#allocation17 + $0x380] sm:$0xf]  ;;  %v14891_v23 = vpop.eup %13746  ;;  %v1573_v51 = vmul.f32 %v14889_v16, %v14881_v12  ;;  %vm1579_vm1 = vweird.f32 %v14889_v16 }
 0x31f   :  { %v1535_v1 = vadd.f32 %v1534_v5, %v1533_v41  ;;  %v1547_v30 = vrot.slane %v1546_v27, 4  ;;  %v11039_v41 = vld [vmem:[#allocation17 + $0x780] sm:$0xf]  ;;  %v10272_v5 = vor.u32 %v13033_v13, %v10271_v10  ;;  %v1563_v59 = vmul.f32 %v14891_v23, %v14885_v38  ;;  %vm14925_vm4 = vmor %vm1578_vm2, %vm1579_vm1 }
 0x320   :  { %v13161_v2 = vld [vmem:[#allocation17 + $0x59c] sm:$0xf0]  ;;  %vm1569_vm7 = vweird.f32 %v14891_v23 }
 0x321   :  { %v1536_v61 = vrot.slane %v1535_v1, 2  ;;  %v1548_v52 = vadd.f32 %v1547_v30, %v1546_v27  ;;  %v11040_v27 = vor.u32 %v13225_v0, %v11039_v41  ;;  %v10783_v30 = vld [vmem:[#allocation17 + $0x580] sm:$0xf]  ;;  %3348 = vmatpush.bf16.msrb.mxu3 %v10272_v5  ;;  %v1574_v41 = vmul.f32 %v14889_v16, %v1573_v51  ;;  %vm14950_vm10 = vmor %vm1568_vm9, %vm1569_vm7 }
 0x322   :  { %v13025_v45 = vld [vmem:[#allocation17 + $0x15c] sm:$0xf0] }
 0x323   :  { %v1537_v4 = vadd.f32 %v1536_v61, %v1535_v1  ;;  %v1549_v42 = vrot.slane %v1548_v52, 2  ;;  %v13097_v1 = vld [vmem:[#allocation17 + $0x39c] sm:$0xf0]  ;;  %3435 = vmatpush.bf16.msrb.mxu2 %v11040_v27 }
 0x324   :  { %v10528_v61 = vor.u32 %v13097_v1, %v10527_v46  ;;  %v11007_v25 = vld [vmem:[#allocation17 + $0x740] sm:$0xf] }
 0x325   :  { %v1538_v57 = vrot.slane %v1537_v4, 1  ;;  %v1550_v28 = vadd.f32 %v1549_v42, %v1548_v52  ;;  %v10239_v52 = vld [vmem:[#allocation17 + $0x140] sm:$0xf] }
 0x326   :  { %3377 = vmatpush.bf16.msrb.mxu0 %v10528_v61  ;;  %v10240_v18 = vor.u32 %v13025_v45, %v10239_v52  ;;  %v10495_v42 = vld [vmem:[#allocation17 + $0x340] sm:$0xf] }
 0x327   :  { %v1539_v31 = vadd.f32 %v1538_v57, %v1537_v4  ;;  %v1551_v39 = vrot.slane %v1550_v28, 1  ;;  %v10784_v4 = vor.u32 %v13161_v2, %v10783_v30  ;;  %v13217_v57 = vld [vmem:[#allocation17 + $0x75c] sm:$0xf0]  ;;  %v1564_v30 = vmul.f32 %v14891_v23, %v1563_v59 }
 0x328   :  { %v11008_v10 = vor.u32 %v13217_v57, %v11007_v25  ;;  %v13089_v13 = vld [vmem:[#allocation17 + $0x35c] sm:$0xf0]  ;;  %3349 = vmatpush.bf16.msrb.mxu3 %v10240_v18 }
 0x329   :  { %v1555_v9 = vmul.f32 %v1539_v31, %v14436_v20  ;;  %v1552_v32 = vadd.f32 %v1551_v39, %v1550_v28  ;;  %3406 = vmatpush.bf16.msrb.mxu1 %v10784_v4  ;;  %v10751_v14 = vld [vmem:[#allocation17 + $0x540] sm:$0xf]  ;;  %v10496_v28 = vor.u32 %v13089_v13, %v10495_v42  ;;  %v1575_v4 = vmul.f32 0.5, %v1574_v41 }
 0x32a   :  { %v13153_v5 = vld [vmem:[#allocation17 + $0x55c] sm:$0xf0]  ;;  %3436 = vmatpush.bf16.msrb.mxu2 %v11008_v10 }
 0x32b   :  { %v14896_v15 = vadd.f32 0.8, %v1555_v9  ;;  %v1556_v31 = vmul.f32 %v1552_v32, %v14436_v20  ;;  %v10207_v0 = vld [vmem:[#allocation17 + $0x100] sm:$0xf]  ;;  %v10752_v27 = vor.u32 %v13153_v5, %v10751_v14  ;;  %3378 = vmatpush.bf16.msrb.mxu0 %v10496_v28 }
 0x32c   :  { %v13017_v1 = vld [vmem:[#allocation17 + $0x11c] sm:$0xf0] }
 0x32d   :  { %13748 = vrsqrt.f32 %v14896_v15  ;;  %v14903_v46 = vadd.f32 0.8, %v1556_v31  ;;  %v10975_v61 = vld [vmem:[#allocation17 + $0x700] sm:$0xf]  ;;  %v10208_v2 = vor.u32 %v13017_v1, %v10207_v0  ;;  %3407 = vmatpush.bf16.msrb.mxu1 %v10752_v27  ;;  %vm1588_vm5 = vweird.f32 %v14896_v15 }
 0x32e   :  { %v13209_v9 = vld [vmem:[#allocation17 + $0x71c] sm:$0xf0] }
 0x32f   :  { %v10463_v51 = vld [vmem:[#allocation17 + $0x300] sm:$0xf]  ;;  %13750 = vrsqrt.f32 %v14903_v46  ;;  %v10976_v52 = vor.u32 %v13209_v9, %v10975_v61  ;;  %3350 = vmatpush.bf16.msrb.mxu3 %v10208_v2  ;;  %v14911_v61 = vmul.f32 0.5, %v1564_v30  ;;  %v1576_v2 = vsub.f32 1.5, %v1575_v4 }
 0x330   :  { %v13081_v39 = vld [vmem:[#allocation17 + $0x31c] sm:$0xf0]  ;;  %vm1598_vm11 = vweird.f32 %v14903_v46 }
 0x331   :  { %v10464_v45 = vor.u32 %v13081_v39, %v10463_v51  ;;  %v10719_v25 = vld [vmem:[#allocation17 + $0x500] sm:$0xf]  ;;  %3437 = vmatpush.bf16.msrb.mxu2 %v10976_v52 }
 0x332   :  { %v13145_v32 = vld [vmem:[#allocation17 + $0x51c] sm:$0xf0] }
 0x333   :  { %v10175_v18 = vld [vmem:[#allocation17 + $0xc0] sm:$0xf]  ;;  %v10720_v42 = vor.u32 %v13145_v32, %v10719_v25  ;;  %v14907_v13 = vpop.eup %13748  ;;  %3379 = vmatpush.bf16.msrb.mxu0 %v10464_v45 }
 0x334   :  { %v13009_v57 = vld [vmem:[#allocation17 + $0xdc] sm:$0xf0]  ;;  %v1583_v41 = vmul.f32 %v14907_v13, %v14896_v15  ;;  %vm1589_vm3 = vweird.f32 %v14907_v13 }
 0x335   :  { %v10943_v10 = vld [vmem:[#allocation17 + $0x6c0] sm:$0xf]  ;;  %v10176_v59 = vor.u32 %v13009_v57, %v10175_v18  ;;  %3408 = vmatpush.bf16.msrb.mxu1 %v10720_v42  ;;  %v14914_v32 = vpop.eup %13750  ;;  %vm14934_vm6 = vmor %vm1588_vm5, %vm1589_vm3 }
 0x336   :  { %v13201_v14 = vld [vmem:[#allocation17 + $0x6dc] sm:$0xf0]  ;;  %v1584_v51 = vmul.f32 %v14907_v13, %v1583_v41  ;;  %v1593_v4 = vmul.f32 %v14914_v32, %v14903_v46  ;;  %vm1599_vm8 = vweird.f32 %v14914_v32 }
 0x337   :  { %v10431_v31 = vld [vmem:[#allocation17 + $0x2c0] sm:$0xf]  ;;  %v10944_v28 = vor.u32 %v13201_v14, %v10943_v10  ;;  %3351 = vmatpush.bf16.msrb.mxu3 %v10176_v59  ;;  %vm1600_vm12 = vmor %vm1598_vm11, %vm1599_vm8 }
 0x338   :  { %v13073_v5 = vld [vmem:[#allocation17 + $0x2dc] sm:$0xf0]  ;;  %v1585_v30 = vmul.f32 0.5, %v1584_v51 }
 0x339   :  { %v10432_v0 = vor.u32 %v13073_v5, %v10431_v31  ;;  %v10687_v1 = vld [vmem:[#allocation17 + $0x4c0] sm:$0xf]  ;;  %3438 = vmatpush.bf16.msrb.mxu2 %v10944_v28  ;;  %v1566_v31 = vsub.f32 1.5, %v14911_v61  ;;  %v1577_v5 = vmul.f32 %v14889_v16, %v1576_v2 }
 0x33a   :  { %v13137_v27 = vld [vmem:[#allocation17 + $0x4dc] sm:$0xf0] }
 0x33b   :  { %v10688_v9 = vor.u32 %v13137_v27, %v10687_v1  ;;  %v10143_v39 = vld [vmem:[#allocation17 + $0x80] sm:$0xf]  ;;  %3380 = vmatpush.bf16.msrb.mxu0 %v10432_v0  ;;  %v1586_v0 = vsub.f32 1.5, %v1585_v30  ;;  %v1594_v27 = vmul.f32 %v14914_v32, %v1593_v4  ;;  %v1581_v15 = vsel %vm14925_vm4, %v14889_v16, %v1577_v5 }
 0x33c   :  { %v13001_v52 = vld [vmem:[#allocation17 + $0x9c] sm:$0xf0] }
 0x33d   :  { %v10911_v25 = vld [vmem:[#allocation17 + $0x680] sm:$0xf]  ;;  %v10144_v45 = vor.u32 %v13001_v52, %v10143_v39  ;;  %3409 = vmatpush.bf16.msrb.mxu1 %v10688_v9 }
 0x33e   :  { %v13193_v18 = vld [vmem:[#allocation17 + $0x69c] sm:$0xf0] }
 0x33f   :  { %v10399_v57 = vld [vmem:[#allocation17 + $0x280] sm:$0xf]  ;;  %v10912_v42 = vor.u32 %v13193_v18, %v10911_v25  ;;  %3352 = vmatpush.bf16.msrb.mxu3 %v10144_v45  ;;  %v1595_v45 = vmul.f32 0.5, %v1594_v27 }
 0x340   :  { %v13065_v10 = vld [vmem:[#allocation17 + $0x29c] sm:$0xf0] }
 0x341   :  { %v10111_v59 = vld [vmem:[#allocation17 + $0x40] sm:$0xf]  ;;  %v10400_v41 = vor.u32 %v13065_v10, %v10399_v57  ;;  %3439 = vmatpush.bf16.msrb.mxu2 %v10912_v42  ;;  %v1587_v57 = vmul.f32 %v14907_v13, %v1586_v0  ;;  %v10305_v10 = vld [vmem:[#allocation17 + $0x1e0] sm:$0xf0] }
 0x342   :  { %v12993_v14 = vld [vmem:[#allocation17 + $0x5c] sm:$0xf0] }
 0x343   :  { %v10655_v28 = vld [vmem:[#allocation17 + $0x480] sm:$0xf]  ;;  %v10112_v51 = vor.u32 %v12993_v14, %v10111_v59  ;;  %3381 = vmatpush.bf16.msrb.mxu0 %v10400_v41  ;;  %v1596_v41 = vsub.f32 1.5, %v1595_v45  ;;  %v13229_v45 = vld [vmem:[#allocation17 + $0x7c4] sm:$0xf] }
 0x344   :  { %v13129_v1 = vld [vmem:[#allocation17 + $0x49c] sm:$0xf0] }
 0x345   :  { %v10656_v61 = vor.u32 %v13129_v1, %v10655_v28  ;;  %v10879_v39 = vld [vmem:[#allocation17 + $0x640] sm:$0xf]  ;;  %v1591_v1 = vsel %vm14934_vm6, %v14907_v13, %v1587_v57  ;;  %3353 = vmatpush.bf16.msrb.mxu3 %v10112_v51  ;;  %v1606_v13 = vrot.slane %v1581_v15, 7  ;;  %v1597_v51 = vmul.f32 %v14914_v32, %v1596_v41  ;;  %v13037_v57 = vld [vmem:[#allocation17 + $0x1c4] sm:$0xf] }
 0x346   :  { %v13185_v2 = vld [vmem:[#allocation17 + $0x65c] sm:$0xf0]  ;;  %v13101_v15 = vld [vmem:[#allocation17 + $0x3c4] sm:$0xf] }
 0x347   :  { %v10880_v9 = vor.u32 %v13185_v2, %v10879_v39  ;;  %v10367_v52 = vld [vmem:[#allocation17 + $0x240] sm:$0xf]  ;;  %3410 = vmatpush.bf16.msrb.mxu1 %v10656_v61  ;;  %v10273_v41 = vld [vmem:[#allocation17 + $0x1a0] sm:$0xf0] }
 0x348   :  { %v13057_v25 = vld [vmem:[#allocation17 + $0x25c] sm:$0xf0]  ;;  %v13093_v61 = vld [vmem:[#allocation17 + $0x384] sm:$0xf] }
 0x349   :  { %v10079_v18 = vld [vmem:[#allocation17] sm:$0xf]  ;;  %v10368_v30 = vor.u32 %v13057_v25, %v10367_v52  ;;  %v1567_v52 = vmul.f32 %v14891_v23, %v1566_v31  ;;  %3440 = vmatpush.bf16.msrb.mxu2 %v10880_v9  ;;  %v1607_v31 = vrot.slane %v1591_v1, 6  ;;  %v1557_v9 = vld [vmem:[#allocation14] sm:$0xf] }
 0x34a   :  { %v12985_v4 = vld [vmem:[#allocation17 + $0x1c] sm:$0xf0]  ;;  %v13029_v1 = vld [vmem:[#allocation17 + $0x184] sm:$0xf] }
 0x34b   :  { %v10623_v59 = vld [vmem:[#allocation17 + $0x440] sm:$0xf]  ;;  %v10080_v0 = vor.u32 %v12985_v4, %v10079_v18  ;;  %3382 = vmatpush.bf16.msrb.mxu0 %v10368_v30  ;;  %v1601_v18 = vsel %vm1600_vm12, %v14914_v32, %v1597_v51  ;;  %v1571_v46 = vsel %vm14950_vm10, %v14891_v23, %v1567_v52  ;;  %v10308_v4 = vor.u32 %v13037_v57, %v10305_v10  ;;  %v10561_v32 = vld [vmem:[#allocation17 + $0x3e0] sm:$0xf0] }
 0x34c   :  { %v13121_v42 = vld [vmem:[#allocation17 + $0x45c] sm:$0xf0]  ;;  %v1608_v30 = vrot.slane %v1601_v18, 5  ;;  %v10276_v23 = vor.u32 %v13029_v1, %v10273_v41  ;;  %v13221_v52 = vld [vmem:[#allocation17 + $0x784] sm:$0xf] }
 0x34d   :  { %v10847_v14 = vld [vmem:[#allocation17 + $0x600] sm:$0xf]  ;;  %v10624_v27 = vor.u32 %v13121_v42, %v10623_v59  ;;  %3354 = vmatpush.bf16.msrb.mxu3 %v10080_v0  ;;  %v11073_v59 = vld [vmem:[#allocation17 + $0x7e0] sm:$0xf0]  ;;  %v1609_v42 = vsel %vm662_vm14, %v1571_v46, %v1606_v13 }
 0x34e   :  { %v13177_v28 = vld [vmem:[#allocation17 + $0x61c] sm:$0xf0]  ;;  %v1611_v0 = vsel %vm1610_vm13, %v1607_v31, %v1608_v30  ;;  %v10529_v13 = vld [vmem:[#allocation17 + $0x3a0] sm:$0xf0] }
 0x34f   :  { %v10335_v39 = vld [vmem:[#allocation17 + $0x200] sm:$0xf]  ;;  %v10848_v16 = vor.u32 %v13177_v28, %v10847_v14  ;;  %3411 = vmatpush.bf16.msrb.mxu1 %v10624_v27  ;;  %v1657_v14 = vld [vmem:[#allocation16] sm:$0xf]  ;;  %v11076_v28 = vor.u32 %v13229_v45, %v11073_v59  ;;  %v10564_v27 = vor.u32 %v13101_v15, %v10561_v32  ;;  %v10532_v18 = vor.u32 %v13093_v61, %v10529_v13 }
 0x350   :  { %v13049_v2 = vld [vmem:[#allocation17 + $0x21c] sm:$0xf0]  ;;  %v14967_v57 = vperm.slane %v1657_v14, 1  ;;  %v1662_v10 = vperm.slane %v1657_v14, 3 }
 0x351   :  { %v10591_v5 = vld [vmem:[#allocation17 + $0x400] sm:$0xf]  ;;  %v10336_v25 = vor.u32 %v13049_v2, %v10335_v39  ;;  %3441 = vmatpush.bf16.msrb.mxu2 %v10848_v16  ;;  %3463 = vmatpush.bf16.msra.mxu3 %v10308_v4  ;;  %v13165_v39 = vld [vmem:[#allocation17 + $0x5c4] sm:$0xf]  ;;  %v1613_v16 = vsel %vm1612_vm15, %v1609_v42, %v1611_v0  ;;  %v14975_v4 = vperm.slane %v1657_v14, 2 }
 0x352   :  { %v13113_v12 = vld [vmem:[#allocation17 + $0x41c] sm:$0xf0]  ;;  %v10817_v2 = vld [vmem:[#allocation17 + $0x5e0] sm:$0xf0]  ;;  %v1615_v51 = vmul.f32 %v1613_v16, %v1557_v9 }
 0x353   :  { %v10592_v38 = vor.u32 %v13113_v12, %v10591_v5  ;;  %3383 = vmatpush.bf16.msrb.mxu0 %v10336_v25  ;;  %v10820_v5 = vor.u32 %v13165_v39, %v10817_v2  ;;  %v11041_v12 = vld [vmem:[#allocation17 + $0x7a0] sm:$0xf0] }
 0x354   :  { %v11044_v25 = vor.u32 %v13221_v52, %v11041_v12  ;;  %v1620_v31 = vperm.slane %v1615_v51, 3  ;;  %v14969_v45 = vperm.slane %v1615_v51, 0  ;;  %v14971_v46 = vperm.slane %v1615_v51, 1 }
 0x355   :  { %3412 = vmatpush.bf16.msrb.mxu1 %v10592_v38  ;;  %3550 = vmatpush.bf16.msra.mxu2 %v11076_v28  ;;  %v14965_v38 = vperm.slane %v1657_v14, 0  ;;  %v14973_v30 = vperm.slane %v1615_v51, 2 }
 0x356   :  { %3464 = vmatpush.bf16.msra.mxu3 %v10276_v23  ;;  %v1628_v9 = vmul.f32 %v1620_v31, %v14824_v24  ;;  %v1632_v59 = vmul.f32 %v1620_v31, %v14827_v17  ;;  %v1636_v15 = vmul.f32 %v1620_v31, %v14830_v37  ;;  %v1640_v42 = vmul.f32 %v1620_v31, %v14838_v35 }
 0x357   :  { %3492 = vmatpush.bf16.msra.mxu0 %v10564_v27  ;;  %v1644_v28 = vmul.f32 %v1620_v31, %v14850_v3  ;;  %v1648_v32 = vmul.f32 %v1620_v31, %v14859_v7  ;;  %v1652_v1 = vmul.f32 %v1620_v31, %v14866_v8  ;;  %v1656_v41 = vmul.f32 %v1620_v31, %v14874_v29 }
 0x358   :  { %v1670_v14 = vadd.f32 %v1662_v10, %v1628_v9  ;;  %v1674_v0 = vadd.f32 %v1662_v10, %v1632_v59  ;;  %v1678_v27 = vadd.f32 %v1662_v10, %v1636_v15  ;;  %v1682_v23 = vadd.f32 %v1662_v10, %v1640_v42 }
 0x359   :  { %3521 = vmatpush.bf16.msra.mxu1 %v10820_v5  ;;  %3551 = vmatpush.bf16.msra.mxu2 %v11044_v25  ;;  %v1686_v24 = vadd.f32 %v1662_v10, %v1644_v28  ;;  %v1690_v39 = vadd.f32 %v1662_v10, %v1648_v32  ;;  %v1694_v17 = vadd.f32 %v1662_v10, %v1652_v1 }
 0x35a   :  { %v1698_v2 = vadd.f32 %v1662_v10, %v1656_v41  ;;  %vm1702_vm0 = vcmp.ge.f32.partialorder %v1670_v14, 0.0  ;;  %vm1706_vm1 = vcmp.ge.f32.partialorder %v1674_v0, 0.0  ;;  %vm1710_vm2 = vcmp.ge.f32.partialorder %v1678_v27, 0.0 }
 0x35b   :  { %3493 = vmatpush.bf16.msra.mxu0 %v10532_v18  ;;  %vm1714_vm3 = vcmp.ge.f32.partialorder %v1682_v23, 0.0  ;;  %vm1718_vm4 = vcmp.ge.f32.partialorder %v1686_v24, 0.0  ;;  %vm1722_vm5 = vcmp.ge.f32.partialorder %v1690_v39, 0.0  ;;  %vm1726_vm6 = vcmp.ge.f32.partialorder %v1694_v17, 0.0 }
 0x35c   :  { %vm1730_vm7 = vcmp.ge.f32.partialorder %v1698_v2, 0.0  ;;  %v1734_v37 = vmul.f32 0.2, %v1670_v14  ;;  %v1738_v35 = vmul.f32 0.2, %v1674_v0  ;;  %v1625_v7 = vmul.f32 %v14969_v45, %v14660_v40 }
 0x35d   :  { %v1742_v3 = vmul.f32 0.2, %v1678_v27  ;;  %v1746_v8 = vmul.f32 0.2, %v1682_v23  ;;  %v1750_v29 = vmul.f32 0.2, %v1686_v24  ;;  %v1629_v16 = vmul.f32 %v14969_v45, %v14664_v33 }
 0x35e   :  { %v1754_v52 = vmul.f32 0.2, %v1690_v39  ;;  %v1758_v5 = vmul.f32 0.2, %v1694_v17  ;;  %v1762_v12 = vmul.f32 0.2, %v1698_v2  ;;  %v1766_v61 = vsel %vm1702_vm0, %v1670_v14, %v1734_v37 }
 0x35f   :  { %v1770_v13 = vsel %vm1706_vm1, %v1674_v0, %v1738_v35  ;;  %v1774_v51 = vsel %vm1710_vm2, %v1678_v27, %v1742_v3  ;;  %v1778_v25 = vsel %vm1714_vm3, %v1682_v23, %v1746_v8  ;;  %v1782_v18 = vsel %vm1718_vm4, %v1686_v24, %v1750_v29 }
 0x360   :  { %v1786_v40 = vsel %vm1722_vm5, %v1690_v39, %v1754_v52  ;;  %v1790_v31 = vsel %vm1726_vm6, %v1694_v17, %v1758_v5  ;;  %v1794_v10 = vsel %vm1730_vm7, %v1698_v2, %v1762_v12  ;;  %v14997_v9 = vpack.c.bf16 %v1778_v25, %v1774_v51  ;;  %v10785_v51 = vld [vmem:[#allocation17 + $0x5a0] sm:$0xf0] }
 0x361   :  { %v14999_v33 = vpack.c.bf16 %v1786_v40, %v1782_v18  ;;  %v15001_v59 = vpack.c.bf16 %v1794_v10, %v1790_v31  ;;  %v1667_v15 = vadd.f32 %v14965_v38, %v1625_v7  ;;  %v1671_v42 = vadd.f32 %v14965_v38, %v1629_v16  ;;  %v13021_v16 = vld [vmem:[#allocation17 + $0x144] sm:$0xf] }
 0x362   :  { %v1626_v28 = vmul.f32 %v14971_v46, %v14685_v26  ;;  %v1630_v32 = vmul.f32 %v14971_v46, %v14699_v55  ;;  %v1627_v1 = vmul.f32 %v14973_v30, %v14802_v54  ;;  %v1631_v41 = vmul.f32 %v14973_v30, %v14805_v11  ;;  %v13213_v31 = vld [vmem:[#allocation17 + $0x744] sm:$0xf] }
 0x363   :  { %v15013_v14 = vpack.c.bf16 %v1770_v13, %v1766_v61  ;;  %vm1699_vm8 = vcmp.ge.f32.partialorder %v1667_v15, 0.0  ;;  %vm1703_vm9 = vcmp.ge.f32.partialorder %v1671_v42, 0.0  ;;  %v1731_v0 = vmul.f32 0.2, %v1667_v15  ;;  %v13157_v13 = vld [vmem:[#allocation17 + $0x584] sm:$0xf] }
 0x364   :  { %v1735_v27 = vmul.f32 0.2, %v1671_v42  ;;  %v1668_v23 = vadd.f32 %v14967_v57, %v1626_v28  ;;  %v1672_v24 = vadd.f32 %v14967_v57, %v1630_v32  ;;  %v1669_v26 = vadd.f32 %v14975_v4, %v1627_v1  ;;  %v11009_v10 = vld [vmem:[#allocation17 + $0x760] sm:$0xf0] }
 0x365   :  { %v1673_v55 = vadd.f32 %v14975_v4, %v1631_v41  ;;  %3442 = vmatmul.bf16.vlgmr.msrb.gmra.mxu2 %v15013_v14  ;;  %v1763_v54 = vsel %vm1699_vm8, %v1667_v15, %v1731_v0  ;;  %v1633_v11 = vmul.f32 %v14969_v45, %v14668_v47  ;;  %v1637_v17 = vmul.f32 %v14969_v45, %v14713_v22  ;;  %v10241_v47 = vld [vmem:[#allocation17 + $0x160] sm:$0xf0] }
 0x366   :  { %v1767_v39 = vsel %vm1703_vm9, %v1671_v42, %v1735_v27  ;;  %vm1700_vm10 = vcmp.ge.f32.partialorder %v1668_v23, 0.0  ;;  %vm1704_vm11 = vcmp.ge.f32.partialorder %v1672_v24, 0.0  ;;  %v1732_v37 = vmul.f32 0.2, %v1668_v23  ;;  %v13085_v15 = vld [vmem:[#allocation17 + $0x344] sm:$0xf] }
 0x367   :  { %v15024_v2 = vpack.c.bf16 %v1767_v39, %v1763_v54  ;;  %v1736_v35 = vmul.f32 0.2, %v1672_v24  ;;  %vm1701_vm12 = vcmp.ge.f32.partialorder %v1669_v26, 0.0  ;;  %vm1705_vm0 = vcmp.ge.f32.partialorder %v1673_v55, 0.0  ;;  %v10497_v32 = vld [vmem:[#allocation17 + $0x360] sm:$0xf0] }
 0x368   :  { %v1733_v3 = vmul.f32 0.2, %v1669_v26  ;;  %v1764_v7 = vsel %vm1700_vm10, %v1668_v23, %v1732_v37  ;;  %v1737_v8 = vmul.f32 0.2, %v1673_v55  ;;  %v1675_v12 = vadd.f32 %v14965_v38, %v1633_v11  ;;  %v13013_v1 = vld [vmem:[#allocation17 + $0x104] sm:$0xf] }
 0x369   :  { %3355 = vmatmul.bf16.vlgmr.msrb.gmra.mxu3 %v15024_v2  ;;  %v1768_v29 = vsel %vm1704_vm11, %v1672_v24, %v1736_v35  ;;  %v1634_v61 = vmul.f32 %v14971_v46, %v14689_v62  ;;  %v1679_v18 = vadd.f32 %v14965_v38, %v1637_v17  ;;  %v1638_v40 = vmul.f32 %v14971_v46, %v14707_v19  ;;  %v10209_v41 = vld [vmem:[#allocation17 + $0x120] sm:$0xf0] }
 0x36a   :  { %v1765_v52 = vsel %vm1701_vm12, %v1669_v26, %v1733_v3  ;;  %v15027_v5 = vpack.c.bf16 %v1768_v29, %v1764_v7  ;;  %v1769_v22 = vsel %vm1705_vm0, %v1673_v55, %v1737_v8  ;;  %v1635_v42 = vmul.f32 %v14973_v30, %v14808_v43  ;;  %v13149_v0 = vld [vmem:[#allocation17 + $0x544] sm:$0xf] }
 0x36b   :  { %v15032_v25 = vpack.c.bf16 %v1769_v22, %v1765_v52  ;;  %v1639_v62 = vmul.f32 %v14973_v30, %v14812_v21  ;;  %v10244_v28 = vor.u32 %v13021_v16, %v10241_v47  ;;  %v10753_v27 = vld [vmem:[#allocation17 + $0x560] sm:$0xf0]  ;;  %vm1707_vm1 = vcmp.ge.f32.partialorder %v1675_v12, 0.0 }
 0x36c   :  { %3384 = vmatmul.bf16.vlgmr.msrb.gmra.mxu0 %v15027_v5  ;;  %v13205_v19 = vld [vmem:[#allocation17 + $0x704] sm:$0xf]  ;;  %v1739_v23 = vmul.f32 0.2, %v1675_v12  ;;  %v1676_v24 = vadd.f32 %v14967_v57, %v1634_v61  ;;  %v1743_v55 = vmul.f32 0.2, %v1679_v18  ;;  %v1680_v43 = vadd.f32 %v14967_v57, %v1638_v40 }
 0x36d   :  { %3413 = vmatmul.bf16.vlgmr.msrb.gmra.mxu1 %v15032_v25  ;;  %3465 = vmatpush.bf16.msra.mxu3 %v10244_v28  ;;  %v10977_v26 = vld [vmem:[#allocation17 + $0x720] sm:$0xf0]  ;;  %v10788_v54 = vor.u32 %v13157_v13, %v10785_v51  ;;  %v11012_v21 = vor.u32 %v13213_v31, %v11009_v10  ;;  %vm1711_vm2 = vcmp.ge.f32.partialorder %v1679_v18, 0.0  ;;  %v1677_v17 = vadd.f32 %v14975_v4, %v1635_v42 }
 0x36e   :  { %v13077_v39 = vld [vmem:[#allocation17 + $0x304] sm:$0xf]  ;;  %v1681_v37 = vadd.f32 %v14975_v4, %v1639_v62  ;;  %v10500_v35 = vor.u32 %v13085_v15, %v10497_v32  ;;  %v10212_v3 = vor.u32 %v13013_v1, %v10209_v41  ;;  %v1740_v7 = vmul.f32 0.2, %v1676_v24 }
 0x36f   :  { %v10465_v11 = vld [vmem:[#allocation17 + $0x320] sm:$0xf0]  ;;  %3522 = vmatpush.bf16.msra.mxu1 %v10788_v54  ;;  %3552 = vmatpush.bf16.msra.mxu2 %v11012_v21  ;;  %v10756_v8 = vor.u32 %v13149_v0, %v10753_v27  ;;  %v10980_v29 = vor.u32 %v13205_v19, %v10977_v26  ;;  %v1771_v16 = vsel %vm1707_vm1, %v1675_v12, %v1739_v23  ;;  %v1744_v22 = vmul.f32 0.2, %v1680_v43 }
 0x370   :  { %3494 = vmatpush.bf16.msra.mxu0 %v10500_v35  ;;  %v10468_v52 = vor.u32 %v13077_v39, %v10465_v11  ;;  %v1775_v47 = vsel %vm1711_vm2, %v1679_v18, %v1743_v55  ;;  %v13005_v61 = vld [vmem:[#allocation17 + $0xc4] sm:$0xf]  ;;  %vm1708_vm3 = vcmp.ge.f32.partialorder %v1676_v24, 0.0  ;;  %vm1712_vm4 = vcmp.ge.f32.partialorder %v1680_v43, 0.0 }
 0x371   :  { %3466 = vmatpush.bf16.msra.mxu3 %v10212_v3  ;;  %v10177_v13 = vld [vmem:[#allocation17 + $0xe0] sm:$0xf0]  ;;  %v1741_v51 = vmul.f32 0.2, %v1677_v17  ;;  %v1745_v40 = vmul.f32 0.2, %v1681_v37  ;;  %v15049_v31 = vpack.c.bf16 %v1775_v47, %v1771_v16  ;;  %v1641_v12 = vmul.f32 %v14969_v45, %v14674_v48 }
 0x372   :  { %vm1709_vm5 = vcmp.ge.f32.partialorder %v1677_v17, 0.0  ;;  %vm1713_vm6 = vcmp.ge.f32.partialorder %v1681_v37, 0.0  ;;  %v1645_v18 = vmul.f32 %v14969_v45, %v14743_v53  ;;  %v10180_v10 = vor.u32 %v13005_v61, %v10177_v13  ;;  %v13141_v62 = vld [vmem:[#allocation17 + $0x504] sm:$0xf] }
 0x373   :  { %3523 = vmatpush.bf16.msra.mxu1 %v10756_v8  ;;  %3553 = vmatpush.bf16.msra.mxu2 %v10980_v29  ;;  %v1772_v15 = vsel %vm1708_vm3, %v1676_v24, %v1740_v7  ;;  %v1776_v42 = vsel %vm1712_vm4, %v1680_v43, %v1744_v22  ;;  %v10721_v28 = vld [vmem:[#allocation17 + $0x520] sm:$0xf0]  ;;  %v1773_v32 = vsel %vm1709_vm5, %v1677_v17, %v1741_v51 }
 0x374   :  { %3495 = vmatpush.bf16.msra.mxu0 %v10468_v52  ;;  %v1777_v1 = vsel %vm1713_vm6, %v1681_v37, %v1745_v40  ;;  %v1642_v41 = vmul.f32 %v14971_v46, %v14692_v49  ;;  %v1646_v0 = vmul.f32 %v14971_v46, %v14735_v34  ;;  %v13197_v27 = vld [vmem:[#allocation17 + $0x6c4] sm:$0xf]  ;;  %v1643_v53 = vmul.f32 %v14973_v30, %v14819_v56 }
 0x375   :  { %3447 = vmatmul.bf16.gmra.mxu2 %v14997_v9  ;;  %v10945_v48 = vld [vmem:[#allocation17 + $0x6e0] sm:$0xf0]  ;;  %v1647_v23 = vmul.f32 %v14973_v30, %v14833_v44  ;;  %3467 = vmatpush.bf16.msra.mxu3 %v10180_v10  ;;  %v15064_v43 = vpack.c.bf16 %v1776_v42, %v1772_v15  ;;  %v1683_v49 = vadd.f32 %v14965_v38, %v1641_v12 }
 0x376   :  { %v13069_v19 = vld [vmem:[#allocation17 + $0x2c4] sm:$0xf]  ;;  %v1687_v54 = vadd.f32 %v14965_v38, %v1645_v18  ;;  %v15068_v11 = vpack.c.bf16 %v1777_v1, %v1773_v32  ;;  %v10724_v17 = vor.u32 %v13141_v62, %v10721_v28  ;;  %v10948_v56 = vor.u32 %v13197_v27, %v10945_v48 }
 0x377   :  { %v10433_v24 = vld [vmem:[#allocation17 + $0x2e0] sm:$0xf0]  ;;  %v1684_v3 = vadd.f32 %v14967_v57, %v1642_v41  ;;  %v1688_v7 = vadd.f32 %v14967_v57, %v1646_v0  ;;  %v1685_v52 = vadd.f32 %v14975_v4, %v1643_v53  ;;  %v1689_v16 = vadd.f32 %v14975_v4, %v1647_v23 }
 0x378   :  { %v12997_v26 = vld [vmem:[#allocation17 + $0x84] sm:$0xf]  ;;  %v10436_v8 = vor.u32 %v13069_v19, %v10433_v24  ;;  %3554 = vmatpush.bf16.msra.mxu2 %v10948_v56  ;;  %v1747_v13 = vmul.f32 0.2, %v1683_v49  ;;  %v1751_v51 = vmul.f32 0.2, %v1687_v54  ;;  %3524 = vmatpush.bf16.msra.mxu1 %v10724_v17  ;;  %v1649_v24 = vmul.f32 %v14969_v45, %v14677_v60 }
 0x379   :  { %3360 = vmatmul.bf16.gmra.mxu3 %v15049_v31  ;;  %v10145_v55 = vld [vmem:[#allocation17 + $0xa0] sm:$0xf0]  ;;  %vm1715_vm7 = vcmp.ge.f32.partialorder %v1683_v49, 0.0  ;;  %vm1719_vm8 = vcmp.ge.f32.partialorder %v1687_v54, 0.0  ;;  %vm1716_vm9 = vcmp.ge.f32.partialorder %v1684_v3, 0.0  ;;  %vm1720_vm10 = vcmp.ge.f32.partialorder %v1688_v7, 0.0 }
 0x37a   :  { %v13133_v34 = vld [vmem:[#allocation17 + $0x4c4] sm:$0xf]  ;;  %v10148_v29 = vor.u32 %v12997_v26, %v10145_v55  ;;  %3496 = vmatpush.bf16.msra.mxu0 %v10436_v8  ;;  %v1748_v15 = vmul.f32 0.2, %v1684_v3  ;;  %v1752_v62 = vmul.f32 0.2, %v1688_v7  ;;  %v1779_v32 = vsel %vm1715_vm7, %v1683_v49, %v1747_v13 }
 0x37b   :  { %v13189_v21 = vld [vmem:[#allocation17 + $0x684] sm:$0xf]  ;;  %vm1717_vm11 = vcmp.ge.f32.partialorder %v1685_v52, 0.0  ;;  %vm1721_vm12 = vcmp.ge.f32.partialorder %v1689_v16, 0.0  ;;  %v1749_v28 = vmul.f32 0.2, %v1685_v52  ;;  %v1783_v1 = vsel %vm1719_vm8, %v1687_v54, %v1751_v51 }
 0x37c   :  { %v10913_v39 = vld [vmem:[#allocation17 + $0x6a0] sm:$0xf0]  ;;  %3389 = vmatmul.bf16.gmra.mxu0 %v15064_v43  ;;  %3468 = vmatpush.bf16.msra.mxu3 %v10148_v29  ;;  %v1753_v41 = vmul.f32 0.2, %v1689_v16  ;;  %v1653_v26 = vmul.f32 %v14969_v45, %v14786_v58  ;;  %v1780_v17 = vsel %vm1716_vm9, %v1684_v3, %v1748_v15  ;;  %v1784_v56 = vsel %vm1720_vm10, %v1688_v7, %v1752_v62  ;;  %v11079_v62 = vld [vmem:[#allocation17 + $0x7c8] sm:$0xf] }
 0x37d   :  { %v10689_v37 = vld [vmem:[#allocation17 + $0x4e0] sm:$0xf0]  ;;  %3418 = vmatmul.bf16.gmra.mxu1 %v15068_v11  ;;  %v10916_v47 = vor.u32 %v13189_v21, %v10913_v39  ;;  %v1781_v60 = vsel %vm1717_vm11, %v1685_v52, %v1749_v28  ;;  %v15090_v51 = vpack.c.bf16 %v1784_v56, %v1780_v17  ;;  %v13106_v28 = vld [vmem:[#allocation17 + $0x3e4] sm:$0xf0] }
 0x37e   :  { %v13061_v35 = vld [vmem:[#allocation17 + $0x284] sm:$0xf]  ;;  %v10692_v40 = vor.u32 %v13133_v34, %v10689_v37  ;;  %v15081_v34 = vpack.c.bf16 %v1783_v1, %v1779_v32  ;;  %v1785_v58 = vsel %vm1721_vm12, %v1689_v16, %v1753_v41  ;;  %v1695_v3 = vadd.f32 %v14965_v38, %v1653_v26  ;;  %v10279_v41 = vld [vmem:[#allocation17 + $0x188] sm:$0xf] }
 0x37f   :  { %v10401_v44 = vld [vmem:[#allocation17 + $0x2a0] sm:$0xf0]  ;;  %3555 = vmatpush.bf16.msra.mxu2 %v10916_v47  ;;  %v15092_v52 = vpack.c.bf16 %v1785_v58, %v1781_v60  ;;  %v13226_v26 = vld [vmem:[#allocation17 + $0x7a4] sm:$0xf0] }
 0x380   :  { %v12989_v22 = vld [vmem:[#allocation17 + $0x44] sm:$0xf]  ;;  %v10404_v12 = vor.u32 %v13061_v35, %v10401_v44  ;;  %3525 = vmatpush.bf16.msra.mxu1 %v10692_v40  ;;  %v1650_v40 = vmul.f32 %v14971_v46, %v14695_v63  ;;  %vm1727_vm1 = vcmp.ge.f32.partialorder %v1695_v3, 0.0  ;;  %v1759_v15 = vmul.f32 0.2, %v1695_v3 }
 0x381   :  { %v10113_v61 = vld [vmem:[#allocation17 + $0x60] sm:$0xf0]  ;;  %v10311_v63 = vld [vmem:[#allocation17 + $0x1c8] sm:$0xf] }
 0x382   :  { %v13125_v18 = vld [vmem:[#allocation17 + $0x484] sm:$0xf]  ;;  %v10116_v42 = vor.u32 %v12989_v22, %v10113_v61  ;;  %3497 = vmatpush.bf16.msra.mxu0 %v10404_v12  ;;  %v1691_v61 = vadd.f32 %v14965_v38, %v1649_v24  ;;  %v1654_v12 = vmul.f32 %v14971_v46, %v14773_v50  ;;  %v1651_v38 = vmul.f32 %v14973_v30, %v14845_v36  ;;  %v13234_v46 = vld [vmem:[#allocation17 + $0x7e4] sm:$0xf0] }
 0x383   :  { %v10657_v10 = vld [vmem:[#allocation17 + $0x4a0] sm:$0xf0]  ;;  %v10567_v36 = vld [vmem:[#allocation17 + $0x3c8] sm:$0xf]  ;;  %v11080_v32 = vor.u32 %v13234_v46, %v11079_v62  ;;  %v1791_v17 = vsel %vm1727_vm1, %v1695_v3, %v1759_v15 }
 0x384   :  { %v10660_v0 = vor.u32 %v13125_v18, %v10657_v10  ;;  %v13181_v27 = vld [vmem:[#allocation17 + $0x644] sm:$0xf]  ;;  %3469 = vmatpush.bf16.msra.mxu3 %v10116_v42  ;;  %v1655_v18 = vmul.f32 %v14973_v30, %v14854_v6  ;;  %vm1723_vm0 = vcmp.ge.f32.partialorder %v1691_v61, 0.0  ;;  %v1755_v10 = vmul.f32 0.2, %v1691_v61 }
 0x385   :  { %v10881_v48 = vld [vmem:[#allocation17 + $0x660] sm:$0xf0]  ;;  %3452 = vmatmul.bf16.gmra.mxu2 %v14999_v33  ;;  %v13042_v42 = vld [vmem:[#allocation17 + $0x1e4] sm:$0xf0]  ;;  %v1692_v6 = vadd.f32 %v14967_v57, %v1650_v40  ;;  %v1696_v30 = vadd.f32 %v14967_v57, %v1654_v12  ;;  %v10568_v1 = vor.u32 %v13106_v28, %v10567_v36 }
 0x386   :  { %v13053_v19 = vld [vmem:[#allocation17 + $0x244] sm:$0xf]  ;;  %3526 = vmatpush.bf16.msra.mxu1 %v10660_v0  ;;  %v10884_v37 = vor.u32 %v13181_v27, %v10881_v48  ;;  %v10312_v50 = vor.u32 %v13042_v42, %v10311_v63  ;;  %v13034_v0 = vld [vmem:[#allocation17 + $0x1a4] sm:$0xf0]  ;;  %v1693_v48 = vadd.f32 %v14975_v4, %v1651_v38 }
 0x387   :  { %v10369_v53 = vld [vmem:[#allocation17 + $0x260] sm:$0xf0]  ;;  %v10823_v27 = vld [vmem:[#allocation17 + $0x5c8] sm:$0xf]  ;;  %v1756_v56 = vmul.f32 0.2, %v1692_v6 }
 0x388   :  { %v12981_v23 = vld [vmem:[#allocation17 + $0x4] sm:$0xf]  ;;  %v10372_v35 = vor.u32 %v13053_v19, %v10369_v53  ;;  %3556 = vmatpush.bf16.msra.mxu2 %v10884_v37  ;;  %v1697_v19 = vadd.f32 %v14975_v4, %v1655_v18  ;;  %v10280_v53 = vor.u32 %v13034_v0, %v10279_v41  ;;  %v11047_v24 = vld [vmem:[#allocation17 + $0x788] sm:$0xf]  ;;  %v1760_v37 = vmul.f32 0.2, %v1696_v30 }
 0x389   :  { %v10081_v55 = vld [vmem:[#allocation17 + $0x20] sm:$0xf0]  ;;  %3365 = vmatmul.bf16.gmra.mxu3 %v15081_v34  ;;  %v13098_v57 = vld [vmem:[#allocation17 + $0x3a4] sm:$0xf0]  ;;  %vm1724_vm2 = vcmp.ge.f32.partialorder %v1692_v6, 0.0  ;;  %vm1728_vm3 = vcmp.ge.f32.partialorder %v1696_v30, 0.0 }
 0x38a   :  { %v13117_v49 = vld [vmem:[#allocation17 + $0x444] sm:$0xf]  ;;  %v10084_v45 = vor.u32 %v12981_v23, %v10081_v55  ;;  %3498 = vmatpush.bf16.msra.mxu0 %v10372_v35  ;;  %v13170_v23 = vld [vmem:[#allocation17 + $0x5e4] sm:$0xf0]  ;;  %v1757_v4 = vmul.f32 0.2, %v1693_v48  ;;  %v1792_v60 = vsel %vm1728_vm3, %v1696_v30, %v1760_v37 }
 0x38b   :  { %v10625_v54 = vld [vmem:[#allocation17 + $0x460] sm:$0xf0]  ;;  %v10824_v55 = vor.u32 %v13170_v23, %v10823_v27  ;;  %v1761_v35 = vmul.f32 0.2, %v1697_v19  ;;  %vm1725_vm4 = vcmp.ge.f32.partialorder %v1693_v48, 0.0  ;;  %vm1729_vm5 = vcmp.ge.f32.partialorder %v1697_v19, 0.0 }
 0x38c   :  { %v13173_v21 = vld [vmem:[#allocation17 + $0x604] sm:$0xf]  ;;  %v10628_v29 = vor.u32 %v13117_v49, %v10625_v54  ;;  %3470 = vmatpush.bf16.msra.mxu3 %v10084_v45  ;;  %3394 = vmatmul.bf16.gmra.mxu0 %v15090_v51  ;;  %v11048_v49 = vor.u32 %v13226_v26, %v11047_v24  ;;  %v10535_v54 = vld [vmem:[#allocation17 + $0x388] sm:$0xf]  ;;  %v1789_v58 = vsel %vm1725_vm4, %v1693_v48, %v1757_v4 }
 0x38d   :  { %v10849_v39 = vld [vmem:[#allocation17 + $0x620] sm:$0xf0]  ;;  %3423 = vmatmul.bf16.gmra.mxu1 %v15092_v52  ;;  %v1793_v45 = vsel %vm1729_vm5, %v1697_v19, %v1761_v35  ;;  %v10791_v3 = vld [vmem:[#allocation17 + $0x588] sm:$0xf] }
 0x38e   :  { %v13045_v44 = vld [vmem:[#allocation17 + $0x204] sm:$0xf]  ;;  %v10852_v7 = vor.u32 %v13173_v21, %v10849_v39  ;;  %3527 = vmatpush.bf16.msra.mxu1 %v10628_v29  ;;  %v10536_v21 = vor.u32 %v13098_v57, %v10535_v54  ;;  %v1787_v39 = vsel %vm1723_vm0, %v1691_v61, %v1755_v10  ;;  %v13026_v61 = vld [vmem:[#allocation17 + $0x164] sm:$0xf0] }
 0x38f   :  { %v10337_v8 = vld [vmem:[#allocation17 + $0x220] sm:$0xf0]  ;;  %v13218_v40 = vld [vmem:[#allocation17 + $0x764] sm:$0xf0] }
 0x390   :  { %v13109_v47 = vld [vmem:[#allocation17 + $0x404] sm:$0xf]  ;;  %v10340_v13 = vor.u32 %v13045_v44, %v10337_v8  ;;  %3557 = vmatpush.bf16.msra.mxu2 %v10852_v7  ;;  %3579 = vmatpush.bf16.msrb.mxu3 %v10312_v50  ;;  %v15111_v44 = vpack.c.bf16 %v1791_v17, %v1787_v39  ;;  %v1788_v8 = vsel %vm1724_vm2, %v1692_v6, %v1756_v56  ;;  %v10503_v18 = vld [vmem:[#allocation17 + $0x348] sm:$0xf] }
 0x391   :  { %v10593_v22 = vld [vmem:[#allocation17 + $0x420] sm:$0xf0]  ;;  %v15114_v29 = vpack.c.bf16 %v1792_v60, %v1788_v8  ;;  %v13090_v10 = vld [vmem:[#allocation17 + $0x364] sm:$0xf0] }
 0x392   :  { %v10596_v16 = vor.u32 %v13109_v47, %v10593_v22  ;;  %3499 = vmatpush.bf16.msra.mxu0 %v10340_v13  ;;  %v15116_v47 = vpack.c.bf16 %v1793_v45, %v1789_v58  ;;  %v10247_v22 = vld [vmem:[#allocation17 + $0x148] sm:$0xf]  ;;  %v10504_v63 = vor.u32 %v13090_v10, %v10503_v18 }
 0x393   :  { %v10248_v7 = vor.u32 %v13026_v61, %v10247_v22  ;;  %v13162_v13 = vld [vmem:[#allocation17 + $0x5a4] sm:$0xf0] }
 0x394   :  { %3528 = vmatpush.bf16.msra.mxu1 %v10596_v16  ;;  %3666 = vmatpush.bf16.msrb.mxu2 %v11080_v32  ;;  %v11015_v16 = vld [vmem:[#allocation17 + $0x748] sm:$0xf]  ;;  %v10792_v12 = vor.u32 %v13162_v13, %v10791_v3 }
 0x395   :  { %3457 = vmatmul.bf16.gmra.mxu2 %v15001_v59  ;;  %3580 = vmatpush.bf16.msrb.mxu3 %v10280_v53  ;;  %v11016_v38 = vor.u32 %v13218_v40, %v11015_v16  ;;  %v10215_v15 = vld [vmem:[#allocation17 + $0x108] sm:$0xf] }
 0x396   :  { %3608 = vmatpush.bf16.msrb.mxu0 %v10568_v1  ;;  %v13018_v42 = vld [vmem:[#allocation17 + $0x124] sm:$0xf0] }
 0x397   :  { %v10759_v62 = vld [vmem:[#allocation17 + $0x548] sm:$0xf]  ;;  %v10216_v46 = vor.u32 %v13018_v42, %v10215_v15 }
 0x398   :  { %3637 = vmatpush.bf16.msrb.mxu1 %v10824_v55  ;;  %3667 = vmatpush.bf16.msrb.mxu2 %v11048_v49  ;;  %v13154_v50 = vld [vmem:[#allocation17 + $0x564] sm:$0xf0] }
 0x399   :  { %3370 = vmatmul.bf16.gmra.mxu3 %v15111_v44  ;;  %v10760_v36 = vor.u32 %v13154_v50, %v10759_v62  ;;  %v10983_v28 = vld [vmem:[#allocation17 + $0x708] sm:$0xf] }
 0x39a   :  { %3609 = vmatpush.bf16.msrb.mxu0 %v10536_v21  ;;  %3581 = vmatpush.bf16.msrb.mxu3 %v10248_v7  ;;  %v13210_v6 = vld [vmem:[#allocation17 + $0x724] sm:$0xf0] }
 0x39b   :  { %v10471_v30 = vld [vmem:[#allocation17 + $0x308] sm:$0xf]  ;;  %v10984_v32 = vor.u32 %v13210_v6, %v10983_v28 }
 0x39c   :  { %3399 = vmatmul.bf16.gmra.mxu0 %v15114_v29  ;;  %3638 = vmatpush.bf16.msrb.mxu1 %v10792_v12  ;;  %v13082_v1 = vld [vmem:[#allocation17 + $0x324] sm:$0xf0] }
 0x39d   :  { %3428 = vmatmul.bf16.gmra.mxu1 %v15116_v47  ;;  %3668 = vmatpush.bf16.msrb.mxu2 %v11016_v38  ;;  %v10472_v41 = vor.u32 %v13082_v1, %v10471_v30  ;;  %v10183_v0 = vld [vmem:[#allocation17 + $0xc8] sm:$0xf] }
 0x39e   :  { %3610 = vmatpush.bf16.msrb.mxu0 %v10504_v63  ;;  %3582 = vmatpush.bf16.msrb.mxu3 %v10216_v46  ;;  %v13010_v27 = vld [vmem:[#allocation17 + $0xe4] sm:$0xf0] }
 0x39f   :  { %v10727_v48 = vld [vmem:[#allocation17 + $0x508] sm:$0xf]  ;;  %v10184_v19 = vor.u32 %v13010_v27, %v10183_v0 }
 0x3a0   :  { %3639 = vmatpush.bf16.msrb.mxu1 %v10760_v36  ;;  %v13146_v53 = vld [vmem:[#allocation17 + $0x524] sm:$0xf0] }
 0x3a1   :  { %3669 = vmatpush.bf16.msrb.mxu2 %v10984_v32  ;;  %v10951_v23 = vld [vmem:[#allocation17 + $0x6c8] sm:$0xf]  ;;  %v10728_v26 = vor.u32 %v13146_v53, %v10727_v48  ;;  %v13038_v53 = vld [vmem:[#allocation17 + $0x1cc] sm:$0xf] }
 0x3a2   :  { %3611 = vmatpush.bf16.msrb.mxu0 %v10472_v41  ;;  %v13202_v24 = vld [vmem:[#allocation17 + $0x6e4] sm:$0xf0]  ;;  %3583 = vmatpush.bf16.msrb.mxu3 %v10184_v19 }
 0x3a3   :  { %v10952_v55 = vor.u32 %v13202_v24, %v10951_v23  ;;  %v10439_v49 = vld [vmem:[#allocation17 + $0x2c8] sm:$0xf]  ;;  %v10313_v23 = vld [vmem:[#allocation17 + $0x1e8] sm:$0xf0] }
 0x3a4   :  { %v13074_v54 = vld [vmem:[#allocation17 + $0x2e4] sm:$0xf0]  ;;  %3640 = vmatpush.bf16.msrb.mxu1 %v10728_v26  ;;  %v10316_v24 = vor.u32 %v13038_v53, %v10313_v23  ;;  %v13230_v26 = vld [vmem:[#allocation17 + $0x7cc] sm:$0xf] }
 0x3a5   :  { %3558 = vmatmul.bf16.vlgmr.msra.gmra.mxu2 %v15013_v14  ;;  %v10151_v57 = vld [vmem:[#allocation17 + $0x88] sm:$0xf]  ;;  %v10440_v21 = vor.u32 %v13074_v54, %v10439_v49  ;;  %v13102_v54 = vld [vmem:[#allocation17 + $0x3cc] sm:$0xf] }
 0x3a6   :  { %v13002_v39 = vld [vmem:[#allocation17 + $0xa4] sm:$0xf0]  ;;  %3670 = vmatpush.bf16.msrb.mxu2 %v10952_v55  ;;  %v11081_v55 = vld [vmem:[#allocation17 + $0x7e8] sm:$0xf0] }
 0x3a7   :  { %v10695_v17 = vld [vmem:[#allocation17 + $0x4c8] sm:$0xf]  ;;  %v10152_v37 = vor.u32 %v13002_v39, %v10151_v57  ;;  %3612 = vmatpush.bf16.msrb.mxu0 %v10440_v21  ;;  %v11084_v49 = vor.u32 %v13230_v26, %v11081_v55  ;;  %v10569_v57 = vld [vmem:[#allocation17 + $0x3e8] sm:$0xf0] }
 0x3a8   :  { %v13138_v56 = vld [vmem:[#allocation17 + $0x4e4] sm:$0xf0]  ;;  %v13030_v21 = vld [vmem:[#allocation17 + $0x18c] sm:$0xf]  ;;  %v10572_v39 = vor.u32 %v13102_v54, %v10569_v57 }
 0x3a9   :  { %3471 = vmatmul.bf16.vlgmr.msra.gmra.mxu3 %v15024_v2  ;;  %v10696_v4 = vor.u32 %v13138_v56, %v10695_v17  ;;  %v10919_v35 = vld [vmem:[#allocation17 + $0x688] sm:$0xf]  ;;  %v10281_v17 = vld [vmem:[#allocation17 + $0x1a8] sm:$0xf0] }
 0x3aa   :  { %v13194_v8 = vld [vmem:[#allocation17 + $0x6a4] sm:$0xf0]  ;;  %3584 = vmatpush.bf16.msrb.mxu3 %v10152_v37  ;;  %v13166_v56 = vld [vmem:[#allocation17 + $0x5cc] sm:$0xf] }
 0x3ab   :  { %v10407_v60 = vld [vmem:[#allocation17 + $0x288] sm:$0xf]  ;;  %v10920_v58 = vor.u32 %v13194_v8, %v10919_v35  ;;  %3641 = vmatpush.bf16.msrb.mxu1 %v10696_v4  ;;  %v10825_v37 = vld [vmem:[#allocation17 + $0x5e8] sm:$0xf0]  ;;  %v10284_v4 = vor.u32 %v13030_v21, %v10281_v17 }
 0x3ac   :  { %3500 = vmatmul.bf16.vlgmr.msra.gmra.mxu0 %v15027_v5  ;;  %v13066_v45 = vld [vmem:[#allocation17 + $0x2a4] sm:$0xf0]  ;;  %v10828_v35 = vor.u32 %v13166_v56, %v10825_v37  ;;  %v13222_v8 = vld [vmem:[#allocation17 + $0x78c] sm:$0xf] }
 0x3ad   :  { %3529 = vmatmul.bf16.vlgmr.msra.gmra.mxu1 %v15032_v25  ;;  %v10408_v22 = vor.u32 %v13066_v45, %v10407_v60  ;;  %3671 = vmatpush.bf16.msrb.mxu2 %v10920_v58  ;;  %v10119_v61 = vld [vmem:[#allocation17 + $0x48] sm:$0xf]  ;;  %v11049_v60 = vld [vmem:[#allocation17 + $0x7a8] sm:$0xf0] }
 0x3ae   :  { %v12994_v3 = vld [vmem:[#allocation17 + $0x64] sm:$0xf0]  ;;  %v13094_v58 = vld [vmem:[#allocation17 + $0x38c] sm:$0xf]  ;;  %v11052_v45 = vor.u32 %v13222_v8, %v11049_v60 }
 0x3af   :  { %3613 = vmatpush.bf16.msrb.mxu0 %v10408_v22  ;;  %v10663_v7 = vld [vmem:[#allocation17 + $0x488] sm:$0xf]  ;;  %v10120_v13 = vor.u32 %v12994_v3, %v10119_v61  ;;  %v10537_v22 = vld [vmem:[#allocation17 + $0x3a8] sm:$0xf0] }
 0x3b0   :  { %v13130_v16 = vld [vmem:[#allocation17 + $0x4a4] sm:$0xf0]  ;;  %v10540_v61 = vor.u32 %v13094_v58, %v10537_v22  ;;  %v13022_v3 = vld [vmem:[#allocation17 + $0x14c] sm:$0xf] }
 0x3b1   :  { %v10887_v40 = vld [vmem:[#allocation17 + $0x648] sm:$0xf]  ;;  %v10664_v38 = vor.u32 %v13130_v16, %v10663_v7  ;;  %3585 = vmatpush.bf16.msrb.mxu3 %v10120_v13  ;;  %v10249_v7 = vld [vmem:[#allocation17 + $0x168] sm:$0xf0] }
 0x3b2   :  { %v13186_v12 = vld [vmem:[#allocation17 + $0x664] sm:$0xf0]  ;;  %v13158_v13 = vld [vmem:[#allocation17 + $0x58c] sm:$0xf]  ;;  %v10252_v16 = vor.u32 %v13022_v3, %v10249_v7 }
 0x3b3   :  { %v10888_v18 = vor.u32 %v13186_v12, %v10887_v40  ;;  %v10375_v10 = vld [vmem:[#allocation17 + $0x248] sm:$0xf]  ;;  %3642 = vmatpush.bf16.msrb.mxu1 %v10664_v38  ;;  %v10793_v40 = vld [vmem:[#allocation17 + $0x5a8] sm:$0xf0] }
 0x3b4   :  { %v13058_v15 = vld [vmem:[#allocation17 + $0x264] sm:$0xf0]  ;;  %v10796_v12 = vor.u32 %v13158_v13, %v10793_v40  ;;  %v13214_v38 = vld [vmem:[#allocation17 + $0x74c] sm:$0xf] }
 0x3b5   :  { %3563 = vmatmul.bf16.gmra.mxu2 %v14997_v9  ;;  %v10087_v63 = vld [vmem:[#allocation17 + $0x8] sm:$0xf]  ;;  %v10376_v42 = vor.u32 %v13058_v15, %v10375_v10  ;;  %v13086_v10 = vld [vmem:[#allocation17 + $0x34c] sm:$0xf] }
 0x3b6   :  { %v12986_v62 = vld [vmem:[#allocation17 + $0x24] sm:$0xf0]  ;;  %3672 = vmatpush.bf16.msrb.mxu2 %v10888_v18  ;;  %v11017_v18 = vld [vmem:[#allocation17 + $0x768] sm:$0xf0] }
 0x3b7   :  { %v10631_v50 = vld [vmem:[#allocation17 + $0x448] sm:$0xf]  ;;  %v10088_v36 = vor.u32 %v12986_v62, %v10087_v63  ;;  %3614 = vmatpush.bf16.msrb.mxu0 %v10376_v42  ;;  %v11020_v15 = vor.u32 %v13214_v38, %v11017_v18  ;;  %v10505_v63 = vld [vmem:[#allocation17 + $0x368] sm:$0xf0] }
 0x3b8   :  { %v13122_v46 = vld [vmem:[#allocation17 + $0x464] sm:$0xf0]  ;;  %v13014_v42 = vld [vmem:[#allocation17 + $0x10c] sm:$0xf] }
 0x3b9   :  { %3476 = vmatmul.bf16.gmra.mxu3 %v15049_v31  ;;  %v10632_v28 = vor.u32 %v13122_v46, %v10631_v50  ;;  %v10855_v6 = vld [vmem:[#allocation17 + $0x608] sm:$0xf]  ;;  %v10217_v62 = vld [vmem:[#allocation17 + $0x128] sm:$0xf0]  ;;  %v10508_v50 = vor.u32 %v13086_v10, %v10505_v63 }
 0x3ba   :  { %v13178_v30 = vld [vmem:[#allocation17 + $0x624] sm:$0xf0]  ;;  %3586 = vmatpush.bf16.msrb.mxu3 %v10088_v36  ;;  %v10220_v46 = vor.u32 %v13014_v42, %v10217_v62  ;;  %v13150_v36 = vld [vmem:[#allocation17 + $0x54c] sm:$0xf] }
 0x3bb   :  { %v10856_v32 = vor.u32 %v13178_v30, %v10855_v6  ;;  %3643 = vmatpush.bf16.msrb.mxu1 %v10632_v28  ;;  %v10343_v1 = vld [vmem:[#allocation17 + $0x208] sm:$0xf]  ;;  %v10761_v28 = vld [vmem:[#allocation17 + $0x568] sm:$0xf0] }
 0x3bc   :  { %3505 = vmatmul.bf16.gmra.mxu0 %v15064_v43  ;;  %v13050_v41 = vld [vmem:[#allocation17 + $0x224] sm:$0xf0]  ;;  %v10764_v6 = vor.u32 %v13150_v36, %v10761_v28  ;;  %v10473_v53 = vld [vmem:[#allocation17 + $0x328] sm:$0xf0] }
 0x3bd   :  { %3534 = vmatmul.bf16.gmra.mxu1 %v15068_v11  ;;  %3673 = vmatpush.bf16.msrb.mxu2 %v10856_v32  ;;  %v10599_v0 = vld [vmem:[#allocation17 + $0x408] sm:$0xf]  ;;  %v10344_v27 = vor.u32 %v13050_v41, %v10343_v1  ;;  %v13206_v41 = vld [vmem:[#allocation17 + $0x70c] sm:$0xf] }
 0x3be   :  { %v13114_v48 = vld [vmem:[#allocation17 + $0x424] sm:$0xf0]  ;;  %3695 = vmatpush.bf16.msra.mxu3 %v10316_v24  ;;  %v13006_v26 = vld [vmem:[#allocation17 + $0xcc] sm:$0xf] }
 0x3bf   :  { %v10600_v19 = vor.u32 %v13114_v48, %v10599_v0  ;;  %3615 = vmatpush.bf16.msrb.mxu0 %v10344_v27  ;;  %v10985_v0 = vld [vmem:[#allocation17 + $0x728] sm:$0xf0] }
 0x3c0   :  { %v13078_v27 = vld [vmem:[#allocation17 + $0x30c] sm:$0xf] }
 0x3c1   :  { %3644 = vmatpush.bf16.msrb.mxu1 %v10600_v19  ;;  %3782 = vmatpush.bf16.msra.mxu2 %v11084_v49  ;;  %v10988_v19 = vor.u32 %v13206_v41, %v10985_v0  ;;  %v10476_v24 = vor.u32 %v13078_v27, %v10473_v53  ;;  %v10185_v55 = vld [vmem:[#allocation17 + $0xe8] sm:$0xf0] }
 0x3c2   :  { %3696 = vmatpush.bf16.msra.mxu3 %v10284_v4  ;;  %v13142_v49 = vld [vmem:[#allocation17 + $0x50c] sm:$0xf]  ;;  %v10188_v57 = vor.u32 %v13006_v26, %v10185_v55 }
 0x3c3   :  { %3724 = vmatpush.bf16.msra.mxu0 %v10572_v39  ;;  %v10729_v21 = vld [vmem:[#allocation17 + $0x528] sm:$0xf0] }
 0x3c4   :  { %v10732_v17 = vor.u32 %v13142_v49, %v10729_v21  ;;  %v10953_v8 = vld [vmem:[#allocation17 + $0x6e8] sm:$0xf0] }
 0x3c5   :  { %3568 = vmatmul.bf16.gmra.mxu2 %v14999_v33  ;;  %3753 = vmatpush.bf16.msra.mxu1 %v10828_v35  ;;  %v13198_v35 = vld [vmem:[#allocation17 + $0x6cc] sm:$0xf] }
 0x3c6   :  { %3783 = vmatpush.bf16.msra.mxu2 %v11052_v45  ;;  %3697 = vmatpush.bf16.msra.mxu3 %v10252_v16  ;;  %v13070_v60 = vld [vmem:[#allocation17 + $0x2cc] sm:$0xf]  ;;  %v10956_v45 = vor.u32 %v13198_v35, %v10953_v8 }
 0x3c7   :  { %3725 = vmatpush.bf16.msra.mxu0 %v10540_v61  ;;  %v10441_v22 = vld [vmem:[#allocation17 + $0x2e8] sm:$0xf0] }
 0x3c8   :  { %v12998_v61 = vld [vmem:[#allocation17 + $0x8c] sm:$0xf]  ;;  %v10444_v13 = vor.u32 %v13070_v60, %v10441_v22 }
 0x3c9   :  { %3481 = vmatmul.bf16.gmra.mxu3 %v15081_v34  ;;  %3754 = vmatpush.bf16.msra.mxu1 %v10796_v12  ;;  %v10153_v3 = vld [vmem:[#allocation17 + $0xa8] sm:$0xf0] }
 0x3ca   :  { %3784 = vmatpush.bf16.msra.mxu2 %v11020_v15  ;;  %3698 = vmatpush.bf16.msra.mxu3 %v10220_v46  ;;  %v10156_v16 = vor.u32 %v12998_v61, %v10153_v3  ;;  %v13134_v40 = vld [vmem:[#allocation17 + $0x4cc] sm:$0xf] }
 0x3cb   :  { %3726 = vmatpush.bf16.msra.mxu0 %v10508_v50  ;;  %v10697_v12 = vld [vmem:[#allocation17 + $0x4e8] sm:$0xf0] }
 0x3cc   :  { %3510 = vmatmul.bf16.gmra.mxu0 %v15090_v51  ;;  %v10700_v38 = vor.u32 %v13134_v40, %v10697_v12  ;;  %v13190_v50 = vld [vmem:[#allocation17 + $0x68c] sm:$0xf] }
 0x3cd   :  { %3539 = vmatmul.bf16.gmra.mxu1 %v15092_v52  ;;  %v10921_v46 = vld [vmem:[#allocation17 + $0x6a8] sm:$0xf0] }
 0x3ce   :  { %3755 = vmatpush.bf16.msra.mxu1 %v10764_v6  ;;  %3785 = vmatpush.bf16.msra.mxu2 %v10988_v19  ;;  %v13062_v36 = vld [vmem:[#allocation17 + $0x28c] sm:$0xf]  ;;  %v10924_v6 = vor.u32 %v13190_v50, %v10921_v46 }
 0x3cf   :  { %3727 = vmatpush.bf16.msra.mxu0 %v10476_v24  ;;  %3699 = vmatpush.bf16.msra.mxu3 %v10188_v57  ;;  %v12990_v41 = vld [vmem:[#allocation17 + $0x4c] sm:$0xf] }
 0x3d0   :  { %v10121_v0 = vld [vmem:[#allocation17 + $0x68] sm:$0xf0] }
 0x3d1   :  { %v13126_v27 = vld [vmem:[#allocation17 + $0x48c] sm:$0xf]  ;;  %v10124_v19 = vor.u32 %v12990_v41, %v10121_v0 }
 0x3d2   :  { %3756 = vmatpush.bf16.msra.mxu1 %v10732_v17  ;;  %3786 = vmatpush.bf16.msra.mxu2 %v10956_v45  ;;  %v10665_v53 = vld [vmem:[#allocation17 + $0x4a8] sm:$0xf0] }
 0x3d3   :  { %3728 = vmatpush.bf16.msra.mxu0 %v10444_v13  ;;  %3700 = vmatpush.bf16.msra.mxu3 %v10156_v16  ;;  %v10668_v24 = vor.u32 %v13126_v27, %v10665_v53  ;;  %v13182_v57 = vld [vmem:[#allocation17 + $0x64c] sm:$0xf] }
 0x3d4   :  { %v10889_v21 = vld [vmem:[#allocation17 + $0x668] sm:$0xf0] }
 0x3d5   :  { %3573 = vmatmul.bf16.gmra.mxu2 %v15001_v59  ;;  %v12982_v35 = vld [vmem:[#allocation17 + $0xc] sm:$0xf] }
 0x3d6   :  { %3757 = vmatpush.bf16.msra.mxu1 %v10700_v38  ;;  %3787 = vmatpush.bf16.msra.mxu2 %v10924_v6  ;;  %v10089_v8 = vld [vmem:[#allocation17 + $0x28] sm:$0xf0] }
 0x3d7   :  { %3701 = vmatpush.bf16.msra.mxu3 %v10124_v19  ;;  %v10092_v45 = vor.u32 %v12982_v35, %v10089_v8  ;;  %v13118_v22 = vld [vmem:[#allocation17 + $0x44c] sm:$0xf] }
 0x3d8   :  { %v10633_v61 = vld [vmem:[#allocation17 + $0x468] sm:$0xf0] }
 0x3d9   :  { %3486 = vmatmul.bf16.gmra.mxu3 %v15111_v44  ;;  %v10636_v3 = vor.u32 %v13118_v22, %v10633_v61  ;;  %v10345_v8 = vld [vmem:[#allocation17 + $0x228] sm:$0xf0] }
 0x3da   :  { %3758 = vmatpush.bf16.msra.mxu1 %v10668_v24 }
 0x3db   :  { %3702 = vmatpush.bf16.msra.mxu3 %v10092_v45 }
 0x3dc   :  { %3515 = vmatmul.bf16.gmra.mxu0 %v15114_v29 }
 0x3dd   :  { %3544 = vmatmul.bf16.gmra.mxu1 %v15116_v47 }
 0x3de   :  { %3759 = vmatpush.bf16.msra.mxu1 %v10636_v3 }
 0x3e5   :  { %3674 = vmatmul.bf16.vlgmr.msrb.gmra.mxu2 %v15013_v14 }
 0x3e8   :  { %v3443_v30 = vpop.f32.mrf.mxu2 }
 0x3e9   :  { %3587 = vmatmul.bf16.vlgmr.msrb.gmra.mxu3 %v15024_v2  ;;  %v3385_v32 = vpop.f32.mrf.mxu0 }
 0x3ea   :  { %v3414_v1 = vpop.f32.mrf.mxu1 }
 0x3ec   :  { %v3356_v48 = vpop.f32.mrf.mxu3  ;;  %3616 = vmatmul.bf16.vlgmr.msrb.gmra.mxu0 %v15027_v5 }
 0x3ed   :  { %v3386_v23 = vadd.f32 %v3385_v32, %v3356_v48  ;;  %3645 = vmatmul.bf16.vlgmr.msrb.gmra.mxu1 %v15032_v25 }
 0x3ef   :  { %v3415_v54 = vadd.f32 %v3414_v1, %v3386_v23 }
 0x3f0   :  { %v3445_v39 = vpop.f32.mrf.mxu2 }
 0x3f1   :  { %v15140_v56 = vadd.f32 %v3443_v30, %v3415_v54  ;;  %v3387_v37 = vpop.f32.mrf.mxu0  ;;  %v10409_v30 = vld [vmem:[#allocation17 + $0x2a8] sm:$0xf0] }
 0x3f2   :  { %v3416_v4 = vpop.f32.mrf.mxu1  ;;  %v10412_v1 = vor.u32 %v13062_v36, %v10409_v30 }
 0x3f4   :  { %v3358_v58 = vpop.f32.mrf.mxu3  ;;  %3729 = vmatpush.bf16.msra.mxu0 %v10412_v1 }
 0x3f5   :  { %v3388_v7 = vadd.f32 %v3387_v37, %v3358_v58  ;;  %3679 = vmatmul.bf16.gmra.mxu2 %v14997_v9  ;;  %v10892_v37 = vor.u32 %v13182_v57, %v10889_v21 }
 0x3f7   :  { %v3417_v18 = vadd.f32 %v3416_v4, %v3388_v7  ;;  %v10377_v4 = vld [vmem:[#allocation17 + $0x268] sm:$0xf0]  ;;  %3788 = vmatpush.bf16.msra.mxu2 %v10892_v37 }
 0x3f8   :  { %v3448_v10 = vpop.f32.mrf.mxu2  ;;  %v13046_v37 = vld [vmem:[#allocation17 + $0x20c] sm:$0xf] }
 0x3f9   :  { %v15143_v15 = vadd.f32 %v3445_v39, %v3417_v18  ;;  %3592 = vmatmul.bf16.gmra.mxu3 %v15049_v31  ;;  %v3390_v63 = vpop.f32.mrf.mxu0  ;;  %v13054_v39 = vld [vmem:[#allocation17 + $0x24c] sm:$0xf]  ;;  %v10348_v45 = vor.u32 %v13046_v37, %v10345_v8 }
 0x3fa   :  { %v3419_v62 = vpop.f32.mrf.mxu1  ;;  %v10380_v58 = vor.u32 %v13054_v39, %v10377_v4  ;;  %v13174_v39 = vld [vmem:[#allocation17 + $0x60c] sm:$0xf] }
 0x3fb   :  { %v4275_v42 = vadd.f32 %v15143_v15, %v15140_v56 }
 0x3fc   :  { %v3361_v28 = vpop.f32.mrf.mxu3  ;;  %3621 = vmatmul.bf16.gmra.mxu0 %v15064_v43 }
 0x3fd   :  { %v3391_v32 = vadd.f32 %v3390_v63, %v3361_v28  ;;  %3650 = vmatmul.bf16.gmra.mxu1 %v15068_v11  ;;  %3730 = vmatpush.bf16.msra.mxu0 %v10380_v58  ;;  %v10601_v58 = vld [vmem:[#allocation17 + $0x428] sm:$0xf0] }
 0x3ff   :  { %v3420_v48 = vadd.f32 %v3419_v62, %v3391_v32 }
 0x400   :  { %v3450_v23 = vpop.f32.mrf.mxu2 }
 0x401   :  { %v15150_v26 = vadd.f32 %v3448_v10, %v3420_v48  ;;  %v3392_v55 = vpop.f32.mrf.mxu0  ;;  %3731 = vmatpush.bf16.msra.mxu0 %v10348_v45 }
 0x402   :  { %v3421_v54 = vpop.f32.mrf.mxu1 }
 0x403   :  { %v4276_v49 = vadd.f32 %v4275_v42, %v15150_v26 }
 0x404   :  { %v3363_v17 = vpop.f32.mrf.mxu3 }
 0x405   :  { %v3393_v60 = vadd.f32 %v3392_v55, %v3363_v17  ;;  %3684 = vmatmul.bf16.gmra.mxu2 %v14999_v33  ;;  %v10857_v17 = vld [vmem:[#allocation17 + $0x628] sm:$0xf0] }
 0x406   :  { %v10860_v35 = vor.u32 %v13174_v39, %v10857_v17 }
 0x407   :  { %v3422_v7 = vadd.f32 %v3421_v54, %v3393_v60  ;;  %v13110_v60 = vld [vmem:[#allocation17 + $0x40c] sm:$0xf] }
 0x408   :  { %v3453_v13 = vpop.f32.mrf.mxu2  ;;  %v10604_v22 = vor.u32 %v13110_v60, %v10601_v58  ;;  %3789 = vmatpush.bf16.msra.mxu2 %v10860_v35 }
 0x409   :  { %v15154_v16 = vadd.f32 %v3450_v23, %v3422_v7  ;;  %3597 = vmatmul.bf16.gmra.mxu3 %v15081_v34  ;;  %v3395_v40 = vpop.f32.mrf.mxu0 }
 0x40a   :  { %v3424_v38 = vpop.f32.mrf.mxu1  ;;  %3760 = vmatpush.bf16.msra.mxu1 %v10604_v22 }
 0x40b   :  { %v4277_v12 = vadd.f32 %v4276_v49, %v15154_v16 }
 0x40c   :  { %v3366_v18 = vpop.f32.mrf.mxu3  ;;  %3626 = vmatmul.bf16.gmra.mxu0 %v15090_v51 }
 0x40d   :  { %v3396_v10 = vadd.f32 %v3395_v40, %v3366_v18  ;;  %3655 = vmatmul.bf16.gmra.mxu1 %v15092_v52 }
 0x40f   :  { %v3425_v63 = vadd.f32 %v3424_v38, %v3396_v10 }
 0x410   :  { %v3455_v62 = vpop.f32.mrf.mxu2 }
 0x411   :  { %v15160_v42 = vadd.f32 %v3453_v13, %v3425_v63  ;;  %v3397_v50 = vpop.f32.mrf.mxu0 }
 0x412   :  { %v3426_v36 = vpop.f32.mrf.mxu1 }
 0x413   :  { %v4278_v46 = vadd.f32 %v4277_v12, %v15160_v42 }
 0x414   :  { %v3368_v28 = vpop.f32.mrf.mxu3 }
 0x415   :  { %v3398_v6 = vadd.f32 %v3397_v50, %v3368_v28  ;;  %3689 = vmatmul.bf16.gmra.mxu2 %v15001_v59 }
 0x417   :  { %v3427_v30 = vadd.f32 %v3426_v36, %v3398_v6 }
 0x418   :  { %v3458_v27 = vpop.f32.mrf.mxu2 }
 0x419   :  { %v15164_v32 = vadd.f32 %v3455_v62, %v3427_v30  ;;  %3602 = vmatmul.bf16.gmra.mxu3 %v15111_v44  ;;  %v3400_v1 = vpop.f32.mrf.mxu0 }
 0x41a   :  { %v3429_v0 = vpop.f32.mrf.mxu1 }
 0x41b   :  { %v4279_v41 = vadd.f32 %v4278_v46, %v15164_v32 }
 0x41c   :  { %v3371_v48 = vpop.f32.mrf.mxu3  ;;  %3631 = vmatmul.bf16.gmra.mxu0 %v15114_v29 }
 0x41d   :  { %v3401_v19 = vadd.f32 %v3400_v1, %v3371_v48  ;;  %3660 = vmatmul.bf16.gmra.mxu1 %v15116_v47 }
 0x41f   :  { %v3430_v53 = vadd.f32 %v3429_v0, %v3401_v19 }
 0x420   :  { %v3460_v21 = vpop.f32.mrf.mxu2 }
 0x421   :  { %v3459_v23 = vadd.f32 %v3458_v27, %v3430_v53  ;;  %v3402_v24 = vpop.f32.mrf.mxu0 }
 0x422   :  { %v3431_v49 = vpop.f32.mrf.mxu1 }
 0x423   :  { %v4280_v55 = vadd.f32 %v4279_v41, %v3459_v23 }
 0x424   :  { %v3373_v54 = vpop.f32.mrf.mxu3 }
 0x425   :  { %v3403_v57 = vadd.f32 %v3402_v24, %v3373_v54  ;;  %3790 = vmatmul.bf16.vlgmr.msra.gmra.mxu2 %v15013_v14 }
 0x427   :  { %v3432_v4 = vadd.f32 %v3431_v49, %v3403_v57 }
 0x428   :  { %v3559_v18 = vpop.f32.mrf.mxu2 }
 0x429   :  { %v3461_v61 = vadd.f32 %v3460_v21, %v3432_v4  ;;  %3703 = vmatmul.bf16.vlgmr.msra.gmra.mxu3 %v15024_v2  ;;  %v3501_v3 = vpop.f32.mrf.mxu0 }
 0x42a   :  { %v3530_v13 = vpop.f32.mrf.mxu1 }
 0x42b   :  { %v4281_v7 = vadd.f32 %v4280_v55, %v3461_v61 }
 0x42c   :  { %3732 = vmatmul.bf16.vlgmr.msra.gmra.mxu0 %v15027_v5  ;;  %v3472_v38 = vpop.f32.mrf.mxu3 }
 0x42d   :  { %v4282_v40 = vrot.slane %v4281_v7, 4  ;;  %3761 = vmatmul.bf16.vlgmr.msra.gmra.mxu1 %v15032_v25  ;;  %v3502_v10 = vadd.f32 %v3501_v3, %v3472_v38  ;;  %v10319_v3 = vld [vmem:[#allocation17 + $0x1d0] sm:$0xf] }
 0x42f   :  { %v4283_v12 = vadd.f32 %v4282_v40, %v4281_v7  ;;  %v3531_v62 = vadd.f32 %v3530_v13, %v3502_v10  ;;  %v13043_v7 = vld [vmem:[#allocation17 + $0x1ec] sm:$0xf0] }
 0x430   :  { %v3561_v41 = vpop.f32.mrf.mxu2  ;;  %v11087_v13 = vld [vmem:[#allocation17 + $0x7d0] sm:$0xf]  ;;  %v10320_v38 = vor.u32 %v13043_v7, %v10319_v3 }
 0x431   :  { %v4284_v63 = vrot.slane %v4283_v12, 2  ;;  %v3503_v50 = vpop.f32.mrf.mxu0  ;;  %v15174_v28 = vadd.f32 %v3559_v18, %v3531_v62  ;;  %v13235_v18 = vld [vmem:[#allocation17 + $0x7ec] sm:$0xf0] }
 0x432   :  { %v3532_v36 = vpop.f32.mrf.mxu1  ;;  %v10575_v10 = vld [vmem:[#allocation17 + $0x3d0] sm:$0xf]  ;;  %3811 = vmatpush.bf16.msrb.mxu3 %v10320_v38 }
 0x433   :  { %v4285_v46 = vadd.f32 %v4284_v63, %v4283_v12  ;;  %v13107_v63 = vld [vmem:[#allocation17 + $0x3ec] sm:$0xf0] }
 0x434   :  { %v3474_v1 = vpop.f32.mrf.mxu3  ;;  %v11023_v3 = vld [vmem:[#allocation17 + $0x750] sm:$0xf] }
 0x435   :  { %v4286_v6 = vrot.slane %v4285_v46, 1  ;;  %v3504_v0 = vadd.f32 %v3503_v50, %v3474_v1  ;;  %3795 = vmatmul.bf16.gmra.mxu2 %v14997_v9  ;;  %v11088_v50 = vor.u32 %v13235_v18, %v11087_v13  ;;  %v13219_v7 = vld [vmem:[#allocation17 + $0x76c] sm:$0xf0] }
 0x436   :  { %v10511_v13 = vld [vmem:[#allocation17 + $0x350] sm:$0xf] }
 0x437   :  { %v4287_v30 = vadd.f32 %v4286_v6, %v4285_v46  ;;  %v3533_v48 = vadd.f32 %v3532_v36, %v3504_v0  ;;  %v10576_v46 = vor.u32 %v13107_v63, %v10575_v10  ;;  %v10831_v36 = vld [vmem:[#allocation17 + $0x5d0] sm:$0xf]  ;;  %3898 = vmatpush.bf16.msrb.mxu2 %v11088_v50  ;;  %v11024_v10 = vor.u32 %v13219_v7, %v11023_v3 }
 0x438   :  { %v13171_v6 = vld [vmem:[#allocation17 + $0x5ec] sm:$0xf0] }
 0x439   :  { %v4379_v27 = vmul.f32 %v4287_v30, %v14436_v20  ;;  %3708 = vmatmul.bf16.gmra.mxu3 %v15049_v31  ;;  %v3506_v19 = vpop.f32.mrf.mxu0  ;;  %v10832_v1 = vor.u32 %v13171_v6, %v10831_v36  ;;  %3840 = vmatpush.bf16.msrb.mxu0 %v10576_v46  ;;  %v13035_v0 = vld [vmem:[#allocation17 + $0x1ac] sm:$0xf0] }
 0x43a   :  { %v3535_v54 = vpop.f32.mrf.mxu1  ;;  %v10223_v50 = vld [vmem:[#allocation17 + $0x110] sm:$0xf] }
 0x43b   :  { %v15179_v53 = vsub.f32 %v15140_v56, %v4379_v27  ;;  %v15182_v24 = vsub.f32 %v15143_v15, %v4379_v27  ;;  %v15185_v55 = vsub.f32 %v15150_v26, %v4379_v27  ;;  %v15188_v49 = vsub.f32 %v15154_v16, %v4379_v27  ;;  %3869 = vmatpush.bf16.msrb.mxu1 %v10832_v1  ;;  %v13019_v46 = vld [vmem:[#allocation17 + $0x12c] sm:$0xf0] }
 0x43c   :  { %v15191_v57 = vsub.f32 %v15160_v42, %v4379_v27  ;;  %v15194_v21 = vsub.f32 %v15164_v32, %v4379_v27  ;;  %v15196_v39 = vsub.f32 %v3459_v23, %v4379_v27  ;;  %v15198_v56 = vsub.f32 %v3461_v61, %v4379_v27  ;;  %3737 = vmatmul.bf16.gmra.mxu0 %v15064_v43  ;;  %v3477_v32 = vpop.f32.mrf.mxu3  ;;  %v3564_v23 = vpop.f32.mrf.mxu2  ;;  %v11055_v27 = vld [vmem:[#allocation17 + $0x790] sm:$0xf] }
 0x43d   :  { %17392 = vst [vmem:[#allocation36_spill] sm:$0xff] %v15179_v53  ;;  %v4451_v15 = vmul.f32 %v15179_v53, %v15179_v53  ;;  %v4459_v26 = vmul.f32 %v15182_v24, %v15182_v24  ;;  %3766 = vmatmul.bf16.gmra.mxu1 %v15068_v11  ;;  %v15209_v42 = vadd.f32 %v3561_v41, %v3533_v48  ;;  %v10287_v41 = vld [vmem:[#allocation17 + $0x190] sm:$0xf] }
 0x43e   :  { %17393 = vst [vmem:[#allocation37_spill] sm:$0xff] %v15182_v24  ;;  %v3507_v17 = vadd.f32 %v3506_v19, %v3477_v32  ;;  %v10288_v19 = vor.u32 %v13035_v0, %v10287_v41  ;;  %v10767_v36 = vld [vmem:[#allocation17 + $0x550] sm:$0xf]  ;;  %v13200_v24 = vld [vmem:[#allocation17 + $0x6dc] sm:$0xf] }
 0x43f   :  { %17394 = vst [vmem:[#allocation38_spill] sm:$0xff] %v15185_v55  ;;  %v15207_v16 = vadd.f32 %v4459_v26, %v4451_v15  ;;  %v4288_v37 = vadd.f32 %v15209_v42, %v15174_v28  ;;  %v10543_v15 = vld [vmem:[#allocation17 + $0x390] sm:$0xf] }
 0x440   :  { %17395 = vst [vmem:[#allocation39_spill] sm:$0xff] %v15188_v49  ;;  %v3536_v4 = vadd.f32 %v3535_v54, %v3507_v17  ;;  %v13227_v54 = vld [vmem:[#allocation17 + $0x7ac] sm:$0xf0]  ;;  %3812 = vmatpush.bf16.msrb.mxu3 %v10288_v19 }
 0x441   :  { %17396 = vst [vmem:[#allocation40_spill] sm:$0xff] %v15191_v57  ;;  %v3508_v35 = vpop.f32.mrf.mxu0  ;;  %v13099_v26 = vld [vmem:[#allocation17 + $0x3ac] sm:$0xf0]  ;;  %v11056_v17 = vor.u32 %v13227_v54, %v11055_v27  ;;  %v10224_v27 = vor.u32 %v13019_v46, %v10223_v50 }
 0x442   :  { %17397 = vst [vmem:[#allocation41_spill] sm:$0xff] %v15194_v21  ;;  %v3537_v8 = vpop.f32.mrf.mxu1  ;;  %v15213_v60 = vadd.f32 %v3564_v23, %v3536_v4  ;;  %v10255_v4 = vld [vmem:[#allocation17 + $0x150] sm:$0xf] }
 0x443   :  { %17398 = vst [vmem:[#allocation42_spill] sm:$0xff] %v15196_v39  ;;  %3899 = vmatpush.bf16.msrb.mxu2 %v11056_v17  ;;  %v10991_v1 = vld [vmem:[#allocation17 + $0x710] sm:$0xf] }
 0x444   :  { %17399 = vst [vmem:[#allocation43_spill] sm:$0xff] %v15198_v56  ;;  %v4289_v58 = vadd.f32 %v4288_v37, %v15213_v60  ;;  %v3479_v45 = vpop.f32.mrf.mxu3  ;;  %v3566_v22 = vpop.f32.mrf.mxu2  ;;  %v10544_v37 = vor.u32 %v13099_v26, %v10543_v15  ;;  %v13211_v41 = vld [vmem:[#allocation17 + $0x72c] sm:$0xf0] }
 0x445   :  { %v3509_v61 = vadd.f32 %v3508_v35, %v3479_v45  ;;  %3800 = vmatmul.bf16.gmra.mxu2 %v14999_v33  ;;  %v13027_v35 = vld [vmem:[#allocation17 + $0x16c] sm:$0xf0] }
 0x446   :  { %3841 = vmatpush.bf16.msrb.mxu0 %v10544_v37  ;;  %v10479_v54 = vld [vmem:[#allocation17 + $0x310] sm:$0xf] }
 0x447   :  { %v3538_v40 = vadd.f32 %v3537_v8, %v3509_v61  ;;  %v10799_v8 = vld [vmem:[#allocation17 + $0x590] sm:$0xf]  ;;  %3900 = vmatpush.bf16.msrb.mxu2 %v11024_v10 }
 0x448   :  { %v13163_v61 = vld [vmem:[#allocation17 + $0x5ac] sm:$0xf0] }
 0x449   :  { %3713 = vmatmul.bf16.gmra.mxu3 %v15081_v34  ;;  %v3511_v12 = vpop.f32.mrf.mxu0  ;;  %v15217_v30 = vadd.f32 %v3566_v22, %v3538_v40  ;;  %v10256_v22 = vor.u32 %v13027_v35, %v10255_v4  ;;  %v13091_v40 = vld [vmem:[#allocation17 + $0x36c] sm:$0xf0]  ;;  %v4467_v35 = vmul.f32 %v15185_v55, %v15185_v55  ;;  %v13196_v55 = vld [vmem:[#allocation17 + $0x6b4] sm:$0xf0] }
 0x44a   :  { %v3540_v62 = vpop.f32.mrf.mxu1  ;;  %v10512_v63 = vor.u32 %v13091_v40, %v10511_v13  ;;  %v13083_v15 = vld [vmem:[#allocation17 + $0x32c] sm:$0xf0] }
 0x44b   :  { %v4290_v48 = vadd.f32 %v4289_v58, %v15217_v30  ;;  %v10800_v58 = vor.u32 %v13163_v61, %v10799_v8  ;;  %3813 = vmatpush.bf16.msrb.mxu3 %v10256_v22  ;;  %v10480_v26 = vor.u32 %v13083_v15, %v10479_v54  ;;  %v13011_v17 = vld [vmem:[#allocation17 + $0xec] sm:$0xf0]  ;;  %v4516_v40 = vadd.f32 %v15207_v16, %v4467_v35 }
 0x44c   :  { %3742 = vmatmul.bf16.gmra.mxu0 %v15090_v51  ;;  %v3482_v32 = vpop.f32.mrf.mxu3  ;;  %v3569_v23 = vpop.f32.mrf.mxu2  ;;  %v10735_v37 = vld [vmem:[#allocation17 + $0x510] sm:$0xf] }
 0x44d   :  { %3771 = vmatmul.bf16.gmra.mxu1 %v15092_v52  ;;  %v3512_v45 = vadd.f32 %v3511_v12, %v3482_v32  ;;  %v13155_v12 = vld [vmem:[#allocation17 + $0x56c] sm:$0xf0]  ;;  %3842 = vmatpush.bf16.msrb.mxu0 %v10512_v63 }
 0x44e   :  { %3870 = vmatpush.bf16.msrb.mxu1 %v10800_v58  ;;  %v10768_v19 = vor.u32 %v13155_v12, %v10767_v36  ;;  %v10191_v32 = vld [vmem:[#allocation17 + $0xd0] sm:$0xf] }
 0x44f   :  { %v3541_v38 = vadd.f32 %v3540_v62, %v3512_v45  ;;  %v10992_v62 = vor.u32 %v13211_v41, %v10991_v1  ;;  %v13147_v8 = vld [vmem:[#allocation17 + $0x52c] sm:$0xf0]  ;;  %3814 = vmatpush.bf16.msrb.mxu3 %v10224_v27 }
 0x450   :  { %v13203_v45 = vld [vmem:[#allocation17 + $0x6ec] sm:$0xf0]  ;;  %v10736_v3 = vor.u32 %v13147_v8, %v10735_v37 }
 0x451   :  { %v3513_v18 = vpop.f32.mrf.mxu0  ;;  %v15223_v0 = vadd.f32 %v3569_v23, %v3541_v38  ;;  %v10959_v23 = vld [vmem:[#allocation17 + $0x6d0] sm:$0xf]  ;;  %v10192_v38 = vor.u32 %v13011_v17, %v10191_v32  ;;  %3901 = vmatpush.bf16.msrb.mxu2 %v10992_v62  ;;  %3843 = vmatpush.bf16.msrb.mxu0 %v10480_v26 }
 0x452   :  { %v3542_v6 = vpop.f32.mrf.mxu1  ;;  %3871 = vmatpush.bf16.msrb.mxu1 %v10768_v19  ;;  %v10447_v58 = vld [vmem:[#allocation17 + $0x2d0] sm:$0xf]  ;;  %v4475_v19 = vmul.f32 %v15188_v49, %v15188_v49 }
 0x453   :  { %v4291_v4 = vadd.f32 %v4290_v48, %v15223_v0  ;;  %v13075_v7 = vld [vmem:[#allocation17 + $0x2ec] sm:$0xf0]  ;;  %v10960_v48 = vor.u32 %v13203_v45, %v10959_v23  ;;  %3815 = vmatpush.bf16.msrb.mxu3 %v10192_v38 }
 0x454   :  { %v3484_v22 = vpop.f32.mrf.mxu3  ;;  %v3571_v61 = vpop.f32.mrf.mxu2  ;;  %v10703_v10 = vld [vmem:[#allocation17 + $0x4d0] sm:$0xf]  ;;  %v10448_v50 = vor.u32 %v13075_v7, %v10447_v58  ;;  %v4517_v26 = vadd.f32 %v4516_v40, %v4475_v19 }
 0x455   :  { %v3514_v13 = vadd.f32 %v3513_v18, %v3484_v22  ;;  %v13139_v63 = vld [vmem:[#allocation17 + $0x4ec] sm:$0xf0]  ;;  %3805 = vmatmul.bf16.gmra.mxu2 %v15001_v59 }
 0x456   :  { %v10159_v46 = vld [vmem:[#allocation17 + $0x90] sm:$0xf]  ;;  %3872 = vmatpush.bf16.msrb.mxu1 %v10736_v3  ;;  %v10704_v27 = vor.u32 %v13139_v63, %v10703_v10  ;;  %3902 = vmatpush.bf16.msrb.mxu2 %v10960_v48 }
 0x457   :  { %v13003_v36 = vld [vmem:[#allocation17 + $0xac] sm:$0xf0]  ;;  %v3543_v12 = vadd.f32 %v3542_v6, %v3514_v13  ;;  %3844 = vmatpush.bf16.msrb.mxu0 %v10448_v50 }
 0x458   :  { %v10927_v1 = vld [vmem:[#allocation17 + $0x690] sm:$0xf]  ;;  %v10160_v6 = vor.u32 %v13003_v36, %v10159_v46 }
 0x459   :  { %v3516_v41 = vpop.f32.mrf.mxu0  ;;  %v13195_v54 = vld [vmem:[#allocation17 + $0x6ac] sm:$0xf0]  ;;  %3718 = vmatmul.bf16.gmra.mxu3 %v15111_v44  ;;  %v15232_v62 = vadd.f32 %v3571_v61, %v3543_v12  ;;  %v4483_v61 = vmul.f32 %v15191_v57, %v15191_v57  ;;  %v10097_v57 = vld [vmem:[#allocation17 + $0x30] sm:$0xf0] }
 0x45a   :  { %v3545_v18 = vpop.f32.mrf.mxu1  ;;  %v10415_v15 = vld [vmem:[#allocation17 + $0x290] sm:$0xf]  ;;  %v10928_v35 = vor.u32 %v13195_v54, %v10927_v1  ;;  %3873 = vmatpush.bf16.msrb.mxu1 %v10704_v27  ;;  %3816 = vmatpush.bf16.msrb.mxu3 %v10160_v6 }
 0x45b   :  { %v13067_v16 = vld [vmem:[#allocation17 + $0x2ac] sm:$0xf0]  ;;  %v4292_v37 = vadd.f32 %v4291_v4, %v15232_v62  ;;  %v4518_v63 = vadd.f32 %v4517_v26, %v4483_v61 }
 0x45c   :  { %3747 = vmatmul.bf16.gmra.mxu0 %v15114_v29  ;;  %v10671_v32 = vld [vmem:[#allocation17 + $0x490] sm:$0xf]  ;;  %v10416_v8 = vor.u32 %v13067_v16, %v10415_v15  ;;  %v3487_v3 = vpop.f32.mrf.mxu3  ;;  %v3574_v58 = vpop.f32.mrf.mxu2  ;;  %3903 = vmatpush.bf16.msrb.mxu2 %v10928_v35  ;;  %v4491_v15 = vmul.f32 %v15194_v21, %v15194_v21 }
 0x45d   :  { %v13131_v17 = vld [vmem:[#allocation17 + $0x4ac] sm:$0xf0]  ;;  %v3517_v10 = vadd.f32 %v3516_v41, %v3487_v3  ;;  %3776 = vmatmul.bf16.gmra.mxu1 %v15116_v47 }
 0x45e   :  { %v10127_v23 = vld [vmem:[#allocation17 + $0x50] sm:$0xf]  ;;  %v10672_v38 = vor.u32 %v13131_v17, %v10671_v32  ;;  %3845 = vmatpush.bf16.msrb.mxu0 %v10416_v8  ;;  %v4519_v26 = vadd.f32 %v4518_v63, %v4491_v15  ;;  %v4499_v8 = vmul.f32 %v15196_v39, %v15196_v39  ;;  %v4507_v63 = vmul.f32 %v15198_v56, %v15198_v56  ;;  %v10161_v56 = vld [vmem:[#allocation17 + $0xb0] sm:$0xf0] }
 0x45f   :  { %v12995_v45 = vld [vmem:[#allocation17 + $0x6c] sm:$0xf0]  ;;  %v3546_v46 = vadd.f32 %v3545_v18, %v3517_v10  ;;  %v13135_v39 = vld [vmem:[#allocation17 + $0x4d4] sm:$0xf] }
 0x460   :  { %v10895_v22 = vld [vmem:[#allocation17 + $0x650] sm:$0xf]  ;;  %v10128_v4 = vor.u32 %v12995_v45, %v10127_v23  ;;  %3874 = vmatpush.bf16.msrb.mxu1 %v10672_v38  ;;  %v4520_v38 = vadd.f32 %v4519_v26, %v4499_v8 }
 0x461   :  { %v13187_v7 = vld [vmem:[#allocation17 + $0x66c] sm:$0xf0]  ;;  %v3518_v12 = vpop.f32.mrf.mxu0  ;;  %v15242_v41 = vadd.f32 %v3574_v58, %v3546_v46 }
 0x462   :  { %v10383_v13 = vld [vmem:[#allocation17 + $0x250] sm:$0xf]  ;;  %v10896_v36 = vor.u32 %v13187_v7, %v10895_v22  ;;  %v3547_v16 = vpop.f32.mrf.mxu1  ;;  %3817 = vmatpush.bf16.msrb.mxu3 %v10128_v4 }
 0x463   :  { %v13059_v40 = vld [vmem:[#allocation17 + $0x26c] sm:$0xf0]  ;;  %v4293_v32 = vadd.f32 %v4292_v37, %v15242_v41 }
 0x464   :  { %v10639_v48 = vld [vmem:[#allocation17 + $0x450] sm:$0xf]  ;;  %v10384_v1 = vor.u32 %v13059_v40, %v10383_v13  ;;  %3904 = vmatpush.bf16.msrb.mxu2 %v10896_v36  ;;  %v3489_v23 = vpop.f32.mrf.mxu3  ;;  %v3576_v45 = vpop.f32.mrf.mxu2 }
 0x465   :  { %v13123_v50 = vld [vmem:[#allocation17 + $0x46c] sm:$0xf0]  ;;  %v3519_v7 = vadd.f32 %v3518_v12, %v3489_v23 }
 0x466   :  { %v10095_v19 = vld [vmem:[#allocation17 + $0x10] sm:$0xf]  ;;  %v10640_v27 = vor.u32 %v13123_v50, %v10639_v48  ;;  %3846 = vmatpush.bf16.msrb.mxu0 %v10384_v1  ;;  %v4521_v50 = vadd.f32 %v4520_v38, %v4507_v63 }
 0x467   :  { %v12987_v54 = vld [vmem:[#allocation17 + $0x2c] sm:$0xf0]  ;;  %v3548_v37 = vadd.f32 %v3547_v16, %v3519_v7 }
 0x468   :  { %v10096_v6 = vor.u32 %v12987_v54, %v10095_v19  ;;  %v10863_v18 = vld [vmem:[#allocation17 + $0x610] sm:$0xf]  ;;  %3875 = vmatpush.bf16.msrb.mxu1 %v10640_v27  ;;  %v4522_v54 = vrot.slane %v4521_v50, 4 }
 0x469   :  { %v13179_v17 = vld [vmem:[#allocation17 + $0x62c] sm:$0xf0]  ;;  %v3617_v10 = vpop.f32.mrf.mxu0  ;;  %v3577_v48 = vadd.f32 %v3576_v45, %v3548_v37 }
 0x46a   :  { %v10351_v35 = vld [vmem:[#allocation17 + $0x210] sm:$0xf]  ;;  %v10864_v22 = vor.u32 %v13179_v17, %v10863_v18  ;;  %3818 = vmatpush.bf16.msrb.mxu3 %v10096_v6  ;;  %v3646_v4 = vpop.f32.mrf.mxu1  ;;  %v4523_v17 = vadd.f32 %v4522_v54, %v4521_v50 }
 0x46b   :  { %v13051_v61 = vld [vmem:[#allocation17 + $0x22c] sm:$0xf0]  ;;  %v4294_v46 = vadd.f32 %v4293_v32, %v3577_v48 }
 0x46c   :  { %v10607_v3 = vld [vmem:[#allocation17 + $0x410] sm:$0xf]  ;;  %v10352_v13 = vor.u32 %v13051_v61, %v10351_v35  ;;  %3905 = vmatpush.bf16.msrb.mxu2 %v10864_v22  ;;  %v3588_v36 = vpop.f32.mrf.mxu3  ;;  %v3675_v12 = vpop.f32.mrf.mxu2  ;;  %v4524_v22 = vrot.slane %v4523_v17, 2 }
 0x46d   :  { %v13115_v58 = vld [vmem:[#allocation17 + $0x42c] sm:$0xf0]  ;;  %3819 = vmatmul.bf16.vlgmr.msrb.gmra.mxu3 %v15024_v2  ;;  %v4295_v1 = vrot.slane %v4294_v46, 4  ;;  %v3618_v19 = vadd.f32 %v3617_v10, %v3588_v36 }
 0x46e   :  { %v10608_v40 = vor.u32 %v13115_v58, %v10607_v3  ;;  %3847 = vmatpush.bf16.msrb.mxu0 %v10352_v13  ;;  %v4525_v38 = vadd.f32 %v4524_v22, %v4523_v17 }
 0x46f   :  { %3906 = vmatmul.bf16.vlgmr.msrb.gmra.mxu2 %v15013_v14  ;;  %v4296_v15 = vadd.f32 %v4295_v1, %v4294_v46  ;;  %v3647_v16 = vadd.f32 %v3646_v4, %v3618_v19 }
 0x470   :  { %3876 = vmatpush.bf16.msrb.mxu1 %v10608_v40  ;;  %v4526_v1 = vrot.slane %v4525_v38, 1 }
 0x471   :  { %3848 = vmatmul.bf16.vlgmr.msrb.gmra.mxu0 %v15027_v5  ;;  %v3619_v27 = vpop.f32.mrf.mxu0  ;;  %v4297_v6 = vrot.slane %v4296_v15, 2  ;;  %v15253_v18 = vadd.f32 %v3675_v12, %v3647_v16 }
 0x472   :  { %v3648_v26 = vpop.f32.mrf.mxu1 }
 0x473   :  { %3877 = vmatmul.bf16.vlgmr.msrb.gmra.mxu1 %v15032_v25  ;;  %v4298_v35 = vadd.f32 %v4297_v6, %v4296_v15 }
 0x474   :  { %v3590_v8 = vpop.f32.mrf.mxu3  ;;  %v3677_v23 = vpop.f32.mrf.mxu2 }
 0x475   :  { %v4299_v45 = vrot.slane %v4298_v35, 1  ;;  %v3620_v32 = vadd.f32 %v3619_v27, %v3590_v8 }
 0x477   :  { %v4300_v61 = vadd.f32 %v4299_v45, %v4298_v35  ;;  %v3649_v3 = vadd.f32 %v3648_v26, %v3620_v32  ;;  %v4527_v26 = vadd.f32 %v4526_v1, %v4525_v38  ;;  %v10321_v38 = vld [vmem:[#allocation17 + $0x1f0] sm:$0xf0] }
 0x479   :  { %v3622_v58 = vpop.f32.mrf.mxu0  ;;  %v4380_v13 = vmul.f32 %v4300_v61, %v14436_v20  ;;  %v15256_v40 = vadd.f32 %v3677_v23, %v3649_v3  ;;  %v4619_v3 = vmul.f32 %v4527_v26, %v14436_v20  ;;  %v10833_v26 = vld [vmem:[#allocation17 + $0x5f0] sm:$0xf0] }
 0x47a   :  { %v3651_v7 = vpop.f32.mrf.mxu1 }
 0x47b   :  { %v15262_v37 = vsub.f32 %v15174_v28, %v4380_v13  ;;  %v15265_v10 = vsub.f32 %v15209_v42, %v4380_v13  ;;  %v15268_v63 = vsub.f32 %v15213_v60, %v4380_v13  ;;  %v15271_v4 = vsub.f32 %v15217_v30, %v4380_v13 }
 0x47c   :  { %v15274_v50 = vsub.f32 %v15223_v0, %v4380_v13  ;;  %v15277_v46 = vsub.f32 %v15232_v62, %v4380_v13  ;;  %v15280_v36 = vsub.f32 %v15242_v41, %v4380_v13  ;;  %v15282_v28 = vsub.f32 %v3577_v48, %v4380_v13  ;;  %v3593_v12 = vpop.f32.mrf.mxu3  ;;  %v3680_v42 = vpop.f32.mrf.mxu2  ;;  %v13039_v13 = vld [vmem:[#allocation17 + $0x1d4] sm:$0xf] }
 0x47d   :  { %3824 = vmatmul.bf16.gmra.mxu3 %v15049_v31  ;;  %17400 = vst [vmem:[#allocation44_spill] sm:$0xff] %v15262_v37  ;;  %v4452_v60 = vmul.f32 %v15262_v37, %v15262_v37  ;;  %v4460_v30 = vmul.f32 %v15265_v10, %v15265_v10  ;;  %v4468_v0 = vmul.f32 %v15268_v63, %v15268_v63 }
 0x47e   :  { %17401 = vst [vmem:[#allocation45_spill] sm:$0xff] %v15265_v10  ;;  %v4301_v41 = vadd.f32 %v15256_v40, %v15253_v18  ;;  %v3623_v48 = vadd.f32 %v3622_v58, %v3593_v12  ;;  %v4476_v15 = vmul.f32 %v15271_v4, %v15271_v4  ;;  %v4484_v6 = vmul.f32 %v15274_v50, %v15274_v50  ;;  %v13231_v12 = vld [vmem:[#allocation17 + $0x7d4] sm:$0xf] }
 0x47f   :  { %3911 = vmatmul.bf16.gmra.mxu2 %v14997_v9  ;;  %17402 = vst [vmem:[#allocation46_spill] sm:$0xff] %v15268_v63  ;;  %v4528_v62 = vadd.f32 %v4460_v30, %v4452_v60  ;;  %v4492_v45 = vmul.f32 %v15277_v46, %v15277_v46  ;;  %v4500_v58 = vmul.f32 %v15280_v36, %v15280_v36  ;;  %v13140_v63 = vld [vmem:[#allocation17 + $0x4f4] sm:$0xf0] }
 0x480   :  { %17403 = vst [vmem:[#allocation47_spill] sm:$0xff] %v15271_v4  ;;  %v3652_v27 = vadd.f32 %v3651_v7, %v3623_v48  ;;  %v4508_v30 = vmul.f32 %v15282_v28, %v15282_v28  ;;  %v10324_v1 = vor.u32 %v13039_v13, %v10321_v38  ;;  %v10577_v48 = vld [vmem:[#allocation17 + $0x3f0] sm:$0xf0] }
 0x481   :  { %3853 = vmatmul.bf16.gmra.mxu0 %v15064_v43  ;;  %17404 = vst [vmem:[#allocation48_spill] sm:$0xff] %v15274_v50  ;;  %v3624_v19 = vpop.f32.mrf.mxu0  ;;  %v4529_v16 = vadd.f32 %v4528_v62, %v4468_v0  ;;  %v11089_v0 = vld [vmem:[#allocation17 + $0x7f0] sm:$0xf0] }
 0x482   :  { %17405 = vst [vmem:[#allocation49_spill] sm:$0xff] %v15277_v46  ;;  %v3653_v54 = vpop.f32.mrf.mxu1  ;;  %v15297_v35 = vadd.f32 %v3680_v42, %v3652_v27  ;;  %v13103_v62 = vld [vmem:[#allocation17 + $0x3d4] sm:$0xf]  ;;  %3927 = vmatpush.bf16.msra.mxu3 %v10324_v1 }
 0x483   :  { %17406 = vst [vmem:[#allocation50_spill] sm:$0xff] %v15280_v36  ;;  %3882 = vmatmul.bf16.gmra.mxu1 %v15068_v11  ;;  %v4530_v17 = vadd.f32 %v4529_v16, %v4476_v15  ;;  %v11092_v15 = vor.u32 %v13231_v12, %v11089_v0  ;;  %v10580_v16 = vor.u32 %v13103_v62, %v10577_v48  ;;  %v13167_v27 = vld [vmem:[#allocation17 + $0x5d4] sm:$0xf] }
 0x484   :  { %17407 = vst [vmem:[#allocation51_spill] sm:$0xff] %v15282_v28  ;;  %v3595_v8 = vpop.f32.mrf.mxu3  ;;  %v3682_v23 = vpop.f32.mrf.mxu2  ;;  %v4302_v22 = vadd.f32 %v4301_v41, %v15297_v35  ;;  %v13095_v13 = vld [vmem:[#allocation17 + $0x394] sm:$0xf] }
 0x485   :  { %v4531_v32 = vadd.f32 %v4530_v17, %v4484_v6  ;;  %v3625_v61 = vadd.f32 %v3624_v19, %v3595_v8  ;;  %v15310_v17 = vadd.f32 0.8, %v4619_v3  ;;  %4014 = vmatpush.bf16.msra.mxu2 %v11092_v15  ;;  %3956 = vmatpush.bf16.msra.mxu0 %v10580_v16  ;;  %v10545_v38 = vld [vmem:[#allocation17 + $0x3b0] sm:$0xf0] }
 0x486   :  { %v10548_v0 = vor.u32 %v13095_v13, %v10545_v38  ;;  %v10801_v62 = vld [vmem:[#allocation17 + $0x5b0] sm:$0xf0] }
 0x487   :  { %v4532_v7 = vadd.f32 %v4531_v32, %v4492_v45  ;;  %v3654_v42 = vadd.f32 %v3653_v54, %v3625_v61  ;;  %v10836_v54 = vor.u32 %v13167_v27, %v10833_v26  ;;  %v13031_v45 = vld [vmem:[#allocation17 + $0x194] sm:$0xf]  ;;  %13752 = vrsqrt.f32 %v15310_v17 }
 0x488   :  { %v10289_v32 = vld [vmem:[#allocation17 + $0x1b0] sm:$0xf0]  ;;  %vm4642_vm10 = vweird.f32 %v15310_v17 }
 0x489   :  { %v3627_v60 = vpop.f32.mrf.mxu0  ;;  %v4533_v19 = vadd.f32 %v4532_v7, %v4500_v58  ;;  %v15307_v6 = vadd.f32 %v3682_v23, %v3654_v42  ;;  %v13223_v61 = vld [vmem:[#allocation17 + $0x794] sm:$0xf]  ;;  %v10292_v7 = vor.u32 %v13031_v45, %v10289_v32  ;;  %3985 = vmatpush.bf16.msra.mxu1 %v10836_v54  ;;  %3957 = vmatpush.bf16.msra.mxu0 %v10548_v0 }
 0x48a   :  { %v3656_v41 = vpop.f32.mrf.mxu1  ;;  %v11057_v23 = vld [vmem:[#allocation17 + $0x7b0] sm:$0xf0] }
 0x48b   :  { %v4534_v8 = vadd.f32 %v4533_v19, %v4508_v30  ;;  %v4303_v58 = vadd.f32 %v4302_v22, %v15307_v6  ;;  %v11060_v1 = vor.u32 %v13223_v61, %v11057_v23  ;;  %v13159_v30 = vld [vmem:[#allocation17 + $0x594] sm:$0xf]  ;;  %3928 = vmatpush.bf16.msra.mxu3 %v10292_v7 }
 0x48c   :  { %v3598_v3 = vpop.f32.mrf.mxu3  ;;  %v3685_v12 = vpop.f32.mrf.mxu2  ;;  %v10804_v19 = vor.u32 %v13159_v30, %v10801_v62  ;;  %v13023_v15 = vld [vmem:[#allocation17 + $0x154] sm:$0xf] }
 0x48d   :  { %3829 = vmatmul.bf16.gmra.mxu3 %v15081_v34  ;;  %v4535_v42 = vrot.slane %v4534_v8, 4  ;;  %v3628_v48 = vadd.f32 %v3627_v60, %v3598_v3  ;;  %4015 = vmatpush.bf16.msra.mxu2 %v11060_v1  ;;  %v10257_v16 = vld [vmem:[#allocation17 + $0x170] sm:$0xf0] }
 0x48e   :  { %v13215_v27 = vld [vmem:[#allocation17 + $0x754] sm:$0xf]  ;;  %v10260_v45 = vor.u32 %v13023_v15, %v10257_v16  ;;  %3986 = vmatpush.bf16.msra.mxu1 %v10804_v19 }
 0x48f   :  { %3916 = vmatmul.bf16.gmra.mxu2 %v14999_v33  ;;  %v4536_v22 = vadd.f32 %v4535_v42, %v4534_v8  ;;  %v3657_v26 = vadd.f32 %v3656_v41, %v3628_v48  ;;  %v11025_v32 = vld [vmem:[#allocation17 + $0x770] sm:$0xf0] }
 0x490   :  { %v13087_v61 = vld [vmem:[#allocation17 + $0x354] sm:$0xf]  ;;  %v11028_v13 = vor.u32 %v13215_v27, %v11025_v32  ;;  %3929 = vmatpush.bf16.msra.mxu3 %v10260_v45 }
 0x491   :  { %3858 = vmatmul.bf16.gmra.mxu0 %v15090_v51  ;;  %v3629_v54 = vpop.f32.mrf.mxu0  ;;  %v10513_v23 = vld [vmem:[#allocation17 + $0x370] sm:$0xf0]  ;;  %v4537_v7 = vrot.slane %v4536_v22, 2  ;;  %v15317_v42 = vadd.f32 %v3685_v12, %v3657_v26 }
 0x492   :  { %v3658_v60 = vpop.f32.mrf.mxu1  ;;  %v10516_v38 = vor.u32 %v13087_v61, %v10513_v23  ;;  %v13015_v3 = vld [vmem:[#allocation17 + $0x114] sm:$0xf]  ;;  %4016 = vmatpush.bf16.msra.mxu2 %v11028_v13 }
 0x493   :  { %3887 = vmatmul.bf16.gmra.mxu1 %v15092_v52  ;;  %v10225_v8 = vld [vmem:[#allocation17 + $0x130] sm:$0xf0]  ;;  %v4538_v62 = vadd.f32 %v4537_v7, %v4536_v22  ;;  %v4304_v28 = vadd.f32 %v4303_v58, %v15317_v42  ;;  %v15320_v7 = vpop.eup %13752 }
 0x494   :  { %v10228_v1 = vor.u32 %v13015_v3, %v10225_v8  ;;  %v13151_v0 = vld [vmem:[#allocation17 + $0x554] sm:$0xf]  ;;  %3958 = vmatpush.bf16.msra.mxu0 %v10516_v38  ;;  %v3600_v26 = vpop.f32.mrf.mxu3  ;;  %v3687_v45 = vpop.f32.mrf.mxu2  ;;  %vm4643_vm7 = vweird.f32 %v15320_v7 }
 0x495   :  { %v10769_v41 = vld [vmem:[#allocation17 + $0x570] sm:$0xf0]  ;;  %v4539_v3 = vrot.slane %v4538_v62, 1  ;;  %v3630_v22 = vadd.f32 %v3629_v54, %v3600_v26  ;;  %vm4644_vm11 = vmor %vm4642_vm10, %vm4643_vm7 }
 0x496   :  { %v13207_v30 = vld [vmem:[#allocation17 + $0x714] sm:$0xf]  ;;  %v10772_v48 = vor.u32 %v13151_v0, %v10769_v41  ;;  %3930 = vmatpush.bf16.msra.mxu3 %v10228_v1 }
 0x497   :  { %v10993_v19 = vld [vmem:[#allocation17 + $0x730] sm:$0xf0]  ;;  %v3659_v50 = vadd.f32 %v3658_v60, %v3630_v22 }
 0x498   :  { %v13079_v15 = vld [vmem:[#allocation17 + $0x314] sm:$0xf]  ;;  %v10996_v27 = vor.u32 %v13207_v30, %v10993_v19  ;;  %3987 = vmatpush.bf16.msra.mxu1 %v10772_v48  ;;  %v4540_v30 = vadd.f32 %v4539_v3, %v4538_v62 }
 0x499   :  { %v10481_v16 = vld [vmem:[#allocation17 + $0x330] sm:$0xf0]  ;;  %v3632_v48 = vpop.f32.mrf.mxu0 }
 0x49a   :  { %v10484_v32 = vor.u32 %v13079_v15, %v10481_v16  ;;  %v13007_v61 = vld [vmem:[#allocation17 + $0xd4] sm:$0xf]  ;;  %4017 = vmatpush.bf16.msra.mxu2 %v10996_v27  ;;  %v3661_v21 = vpop.f32.mrf.mxu1  ;;  %v4620_v1 = vmul.f32 %v4540_v30, %v14436_v20  ;;  %v15326_v27 = vadd.f32 %v3687_v45, %v3659_v50 }
 0x49b   :  { %v10193_v23 = vld [vmem:[#allocation17 + $0xf0] sm:$0xf0] }
 0x49c   :  { %v13143_v12 = vld [vmem:[#allocation17 + $0x514] sm:$0xf]  ;;  %v10196_v13 = vor.u32 %v13007_v61, %v10193_v23  ;;  %3959 = vmatpush.bf16.msra.mxu0 %v10484_v32  ;;  %v3690_v50 = vpop.f32.mrf.mxu2 }
 0x49d   :  { %v10737_v8 = vld [vmem:[#allocation17 + $0x530] sm:$0xf0]  ;;  %3834 = vmatmul.bf16.gmra.mxu3 %v15111_v44 }
 0x49e   :  { %v13199_v36 = vld [vmem:[#allocation17 + $0x6d4] sm:$0xf]  ;;  %v10740_v38 = vor.u32 %v13143_v12, %v10737_v8  ;;  %3931 = vmatpush.bf16.msra.mxu3 %v10196_v13  ;;  %v15329_v8 = vadd.f32 0.8, %v4620_v1 }
 0x49f   :  { %v10961_v0 = vld [vmem:[#allocation17 + $0x6f0] sm:$0xf0]  ;;  %3921 = vmatmul.bf16.gmra.mxu2 %v15001_v59 }
 0x4a0   :  { %v13071_v41 = vld [vmem:[#allocation17 + $0x2d4] sm:$0xf]  ;;  %v10964_v19 = vor.u32 %v13199_v36, %v10961_v0  ;;  %3988 = vmatpush.bf16.msra.mxu1 %v10740_v38  ;;  %v4637_v36 = vmul.f32 %v15320_v7, %v15310_v17  ;;  %v4305_v0 = vadd.f32 %v4304_v28, %v15326_v27  ;;  %13754 = vrsqrt.f32 %v15329_v8 }
 0x4a1   :  { %v10449_v58 = vld [vmem:[#allocation17 + $0x2f0] sm:$0xf0]  ;;  %3863 = vmatmul.bf16.gmra.mxu0 %v15114_v29  ;;  %v3634_v1 = vpop.f32.mrf.mxu0  ;;  %vm4652_vm8 = vweird.f32 %v15329_v8 }
 0x4a2   :  { %v10452_v15 = vor.u32 %v13071_v41, %v10449_v58  ;;  %v12999_v16 = vld [vmem:[#allocation17 + $0x94] sm:$0xf]  ;;  %4018 = vmatpush.bf16.msra.mxu2 %v10964_v19  ;;  %v4638_v19 = vmul.f32 %v15320_v7, %v4637_v36  ;;  %v3663_v4 = vpop.f32.mrf.mxu1 }
 0x4a3   :  { %v10705_v46 = vld [vmem:[#allocation17 + $0x4f0] sm:$0xf0]  ;;  %v10164_v62 = vor.u32 %v12999_v16, %v10161_v56  ;;  %v3603_v56 = vpop.f32.mrf.mxu3  ;;  %3892 = vmatmul.bf16.gmra.mxu1 %v15116_v47 }
 0x4a4   :  { %v13191_v54 = vld [vmem:[#allocation17 + $0x694] sm:$0xf]  ;;  %v10708_v61 = vor.u32 %v13135_v39, %v10705_v46  ;;  %3960 = vmatpush.bf16.msra.mxu0 %v10452_v15  ;;  %v3633_v30 = vadd.f32 %v3632_v48, %v3603_v56  ;;  %v4639_v36 = vmul.f32 0.5, %v4638_v19 }
 0x4a5   :  { %v10929_v26 = vld [vmem:[#allocation17 + $0x6b0] sm:$0xf0]  ;;  %3932 = vmatpush.bf16.msra.mxu3 %v10164_v62 }
 0x4a6   :  { %v13063_v23 = vld [vmem:[#allocation17 + $0x294] sm:$0xf]  ;;  %v10932_v39 = vor.u32 %v13191_v54, %v10929_v26  ;;  %3989 = vmatpush.bf16.msra.mxu1 %v10708_v61  ;;  %v3662_v54 = vadd.f32 %v3661_v21, %v3633_v30 }
 0x4a7   :  { %v10417_v12 = vld [vmem:[#allocation17 + $0x2b0] sm:$0xf0] }
 0x4a8   :  { %v12991_v60 = vld [vmem:[#allocation17 + $0x54] sm:$0xf]  ;;  %v10420_v46 = vor.u32 %v13063_v23, %v10417_v12  ;;  %4019 = vmatpush.bf16.msra.mxu2 %v10932_v39  ;;  %v15336_v61 = vadd.f32 %v3690_v50, %v3662_v54 }
 0x4a9   :  { %v13127_v32 = vld [vmem:[#allocation17 + $0x494] sm:$0xf]  ;;  %v3733_v19 = vpop.f32.mrf.mxu0 }
 0x4aa   :  { %v10673_v3 = vld [vmem:[#allocation17 + $0x4b0] sm:$0xf0]  ;;  %3961 = vmatpush.bf16.msra.mxu0 %v10420_v46 }
 0x4ab   :  { %v10129_v22 = vld [vmem:[#allocation17 + $0x70] sm:$0xf0]  ;;  %v10676_v58 = vor.u32 %v13127_v32, %v10673_v3  ;;  %v13755_v32 = vpop.eup %13754 }
 0x4ac   :  { %v13183_v38 = vld [vmem:[#allocation17 + $0x654] sm:$0xf]  ;;  %v10132_v15 = vor.u32 %v12991_v60, %v10129_v22  ;;  %v4306_v60 = vadd.f32 %v4305_v0, %v15336_v61  ;;  %v4647_v46 = vmul.f32 %v13755_v32, %v15329_v8  ;;  %v3605_v22 = vpop.f32.mrf.mxu3  ;;  %vm4653_vm6 = vweird.f32 %v13755_v32 }
 0x4ad   :  { %v10897_v45 = vld [vmem:[#allocation17 + $0x670] sm:$0xf0]  ;;  %3990 = vmatpush.bf16.msra.mxu1 %v10676_v58  ;;  %vm4654_vm9 = vmor %vm4652_vm8, %vm4653_vm6 }
 0x4ae   :  { %v13055_v13 = vld [vmem:[#allocation17 + $0x254] sm:$0xf]  ;;  %v10900_v26 = vor.u32 %v13183_v38, %v10897_v45  ;;  %3933 = vmatpush.bf16.msra.mxu3 %v10132_v15  ;;  %v3692_v38 = vpop.f32.mrf.mxu2  ;;  %v4648_v30 = vmul.f32 %v13755_v32, %v4647_v46  ;;  %v4640_v15 = vsub.f32 1.5, %v4639_v36 }
 0x4af   :  { %v10385_v41 = vld [vmem:[#allocation17 + $0x270] sm:$0xf0] }
 0x4b0   :  { %v13119_v16 = vld [vmem:[#allocation17 + $0x454] sm:$0xf]  ;;  %v10388_v23 = vor.u32 %v13055_v13, %v10385_v41  ;;  %4020 = vmatpush.bf16.msra.mxu2 %v10900_v26  ;;  %v3635_v41 = vadd.f32 %v3634_v1, %v3605_v22 }
 0x4b1   :  { %v10641_v28 = vld [vmem:[#allocation17 + $0x470] sm:$0xf0]  ;;  %v3735_v46 = vpop.f32.mrf.mxu0 }
 0x4b2   :  { %v12983_v12 = vld [vmem:[#allocation17 + $0x14] sm:$0xf]  ;;  %v10644_v48 = vor.u32 %v13119_v16, %v10641_v28  ;;  %3962 = vmatpush.bf16.msra.mxu0 %v10388_v23  ;;  %v3664_v0 = vadd.f32 %v3663_v4, %v3635_v41  ;;  %v4649_v16 = vmul.f32 0.5, %v4648_v30  ;;  %v3762_v28 = vpop.f32.mrf.mxu1  ;;  %v4641_v23 = vmul.f32 %v15320_v7, %v4640_v15 }
 0x4b3   :  { %v10100_v62 = vor.u32 %v12983_v12, %v10097_v57  ;;  %v13175_v3 = vld [vmem:[#allocation17 + $0x614] sm:$0xf] }
 0x4b4   :  { %v10865_v21 = vld [vmem:[#allocation17 + $0x630] sm:$0xf0]  ;;  %3991 = vmatpush.bf16.msra.mxu1 %v10644_v48  ;;  %v3693_v54 = vadd.f32 %v3692_v38, %v3664_v0  ;;  %v4650_v26 = vsub.f32 1.5, %v4649_v16  ;;  %v3704_v12 = vpop.f32.mrf.mxu3  ;;  %v4645_v22 = vsel %vm4644_vm11, %v15320_v7, %v4641_v23  ;;  %vm4734_vm11 = vcmask 1044484  }
 0x4b5   :  { %v13047_v39 = vld [vmem:[#allocation17 + $0x214] sm:$0xf]  ;;  %v10868_v56 = vor.u32 %v13175_v3, %v10865_v21  ;;  %3934 = vmatpush.bf16.msra.mxu3 %v10100_v62  ;;  %v3734_v62 = vadd.f32 %v3733_v19, %v3704_v12 }
 0x4b6   :  { %v10353_v45 = vld [vmem:[#allocation17 + $0x230] sm:$0xf0]  ;;  %v4307_v1 = vadd.f32 %v4306_v60, %v3693_v54  ;;  %v4651_v4 = vmul.f32 %v13755_v32, %v4650_v26  ;;  %v3791_v48 = vpop.f32.mrf.mxu2 }
 0x4b7   :  { %v13111_v50 = vld [vmem:[#allocation17 + $0x414] sm:$0xf]  ;;  %v10356_v58 = vor.u32 %v13047_v39, %v10353_v45  ;;  %4021 = vmatpush.bf16.msra.mxu2 %v10868_v56  ;;  %v3763_v39 = vadd.f32 %v3762_v28, %v3734_v62 }
 0x4b8   :  { %v10609_v13 = vld [vmem:[#allocation17 + $0x430] sm:$0xf0]  ;;  %3935 = vmatmul.bf16.vlgmr.msra.gmra.mxu3 %v15024_v2  ;;  %v4308_v36 = vrot.slane %v4307_v1, 4  ;;  %v4655_v3 = vsel %vm4654_vm9, %v13755_v32, %v4651_v4 }
 0x4b9   :  { %v10612_v57 = vor.u32 %v13111_v50, %v10609_v13  ;;  %3963 = vmatpush.bf16.msra.mxu0 %v10356_v58  ;;  %v4724_v60 = vrot.slane %v4655_v3, 7  ;;  %v15352_v45 = vadd.f32 %v3791_v48, %v3763_v39  ;;  %v3738_v30 = vpop.f32.mrf.mxu0  ;;  %v11095_v39 = vld [vmem:[#allocation17 + $0x7d8] sm:$0xf] }
 0x4ba   :  { %4022 = vmatmul.bf16.vlgmr.msra.gmra.mxu2 %v15013_v14  ;;  %v4309_v21 = vadd.f32 %v4308_v36, %v4307_v1  ;;  %v3764_v8 = vpop.f32.mrf.mxu1 }
 0x4bb   :  { %3992 = vmatpush.bf16.msra.mxu1 %v10612_v57  ;;  %v15350_v38 = vsel %vm662_vm14, %v4645_v22, %v4724_v60  ;;  %v10327_v60 = vld [vmem:[#allocation17 + $0x1d8] sm:$0xf] }
 0x4bc   :  { %3964 = vmatmul.bf16.vlgmr.msra.gmra.mxu0 %v15027_v5  ;;  %17408 = vst [vmem:[#allocation52_spill] sm:$0xff] %v15350_v38  ;;  %v4310_v56 = vrot.slane %v4309_v21, 2  ;;  %v3706_v13 = vpop.f32.mrf.mxu3  ;;  %v10713_v38 = vld [vmem:[#allocation17 + $0x4f8] sm:$0xf0] }
 0x4bd   :  { %v3736_v41 = vadd.f32 %v3735_v46, %v3706_v13  ;;  %v13108_v13 = vld [vmem:[#allocation17 + $0x3f4] sm:$0xf0] }
 0x4be   :  { %3993 = vmatmul.bf16.vlgmr.msra.gmra.mxu1 %v15032_v25  ;;  %v4311_v50 = vadd.f32 %v4310_v56, %v4309_v21  ;;  %v3793_v17 = vpop.f32.mrf.mxu2  ;;  %v13044_v21 = vld [vmem:[#allocation17 + $0x1f4] sm:$0xf0] }
 0x4bf   :  { %v3765_v57 = vadd.f32 %v3764_v8, %v3736_v41  ;;  %v10328_v8 = vor.u32 %v13044_v21, %v10327_v60  ;;  %v13236_v56 = vld [vmem:[#allocation17 + $0x7f4] sm:$0xf0] }
 0x4c0   :  { %v4312_v32 = vrot.slane %v4311_v50, 1  ;;  %v10839_v41 = vld [vmem:[#allocation17 + $0x5d8] sm:$0xf] }
 0x4c1   :  { %v15355_v15 = vadd.f32 %v3793_v17, %v3765_v57  ;;  %v11096_v17 = vor.u32 %v13236_v56, %v11095_v39  ;;  %4043 = vmatpush.bf16.msrb.mxu3 %v10328_v8  ;;  %v10807_v21 = vld [vmem:[#allocation17 + $0x598] sm:$0xf] }
 0x4c2   :  { %v4313_v58 = vadd.f32 %v4312_v32, %v4311_v50  ;;  %v3767_v0 = vpop.f32.mrf.mxu1  ;;  %v10583_v50 = vld [vmem:[#allocation17 + $0x3d8] sm:$0xf] }
 0x4c3   :  { %v10584_v32 = vor.u32 %v13108_v13, %v10583_v50  ;;  %4130 = vmatpush.bf16.msrb.mxu2 %v11096_v17  ;;  %v13164_v39 = vld [vmem:[#allocation17 + $0x5b4] sm:$0xf0] }
 0x4c4   :  { %v4381_v19 = vmul.f32 %v4313_v58, %v14436_v20  ;;  %v13172_v58 = vld [vmem:[#allocation17 + $0x5f4] sm:$0xf0]  ;;  %v10808_v8 = vor.u32 %v13164_v39, %v10807_v21 }
 0x4c5   :  { %4072 = vmatpush.bf16.msrb.mxu0 %v10584_v32  ;;  %v13028_v56 = vld [vmem:[#allocation17 + $0x174] sm:$0xf0] }
 0x4c6   :  { %v15360_v7 = vsub.f32 %v15253_v18, %v4381_v19  ;;  %v15363_v16 = vsub.f32 %v15256_v40, %v4381_v19  ;;  %v15366_v28 = vsub.f32 %v15297_v35, %v4381_v19  ;;  %v15369_v26 = vsub.f32 %v15307_v6, %v4381_v19  ;;  %v3709_v40 = vpop.f32.mrf.mxu3  ;;  %v3796_v12 = vpop.f32.mrf.mxu2  ;;  %v11031_v50 = vld [vmem:[#allocation17 + $0x758] sm:$0xf] }
 0x4c7   :  { %v15372_v1 = vsub.f32 %v15317_v42, %v4381_v19  ;;  %v15375_v23 = vsub.f32 %v15326_v27, %v4381_v19  ;;  %v15378_v4 = vsub.f32 %v15336_v61, %v4381_v19  ;;  %v15380_v18 = vsub.f32 %v3693_v54, %v4381_v19  ;;  %v3740_v42 = vpop.f32.mrf.mxu0  ;;  %v10295_v19 = vld [vmem:[#allocation17 + $0x198] sm:$0xf] }
 0x4c8   :  { %3940 = vmatmul.bf16.gmra.mxu3 %v15049_v31  ;;  %17409 = vst [vmem:[#allocation53_spill] sm:$0xff] %v15360_v7  ;;  %v4314_v35 = vadd.f32 %v15355_v15, %v15352_v45  ;;  %v3739_v6 = vadd.f32 %v3738_v30, %v3709_v40  ;;  %v10840_v30 = vor.u32 %v13172_v58, %v10839_v41  ;;  %v13036_v40 = vld [vmem:[#allocation17 + $0x1b4] sm:$0xf0] }
 0x4c9   :  { %17410 = vst [vmem:[#allocation54_spill] sm:$0xff] %v15363_v16  ;;  %v13220_v41 = vld [vmem:[#allocation17 + $0x774] sm:$0xf0] }
 0x4ca   :  { %17411 = vst [vmem:[#allocation55_spill] sm:$0xff] %v15366_v28  ;;  %4027 = vmatmul.bf16.gmra.mxu2 %v14997_v9  ;;  %v3769_v48 = vpop.f32.mrf.mxu1  ;;  %v3768_v36 = vadd.f32 %v3767_v0, %v3739_v6  ;;  %v10296_v6 = vor.u32 %v13036_v40, %v10295_v19  ;;  %4101 = vmatpush.bf16.msrb.mxu1 %v10840_v30  ;;  %v10519_v58 = vld [vmem:[#allocation17 + $0x358] sm:$0xf] }
 0x4cb   :  { %17412 = vst [vmem:[#allocation56_spill] sm:$0xff] %v15369_v26  ;;  %v13092_v30 = vld [vmem:[#allocation17 + $0x374] sm:$0xf0]  ;;  %v11032_v19 = vor.u32 %v13220_v41, %v11031_v50 }
 0x4cc   :  { %3969 = vmatmul.bf16.gmra.mxu0 %v15064_v43  ;;  %17413 = vst [vmem:[#allocation57_spill] sm:$0xff] %v15380_v18  ;;  %v15386_v27 = vadd.f32 %v3796_v12, %v3768_v36  ;;  %v11063_v12 = vld [vmem:[#allocation17 + $0x798] sm:$0xf]  ;;  %4044 = vmatpush.bf16.msrb.mxu3 %v10296_v6  ;;  %v10520_v40 = vor.u32 %v13092_v30, %v10519_v58  ;;  %v13176_v18 = vld [vmem:[#allocation17 + $0x61c] sm:$0xf] }
 0x4cd   :  { %v13100_v36 = vld [vmem:[#allocation17 + $0x3b4] sm:$0xf0] }
 0x4ce   :  { %3998 = vmatmul.bf16.gmra.mxu1 %v15068_v11  ;;  %v3711_v62 = vpop.f32.mrf.mxu3  ;;  %v3798_v61 = vpop.f32.mrf.mxu2  ;;  %v4315_v54 = vadd.f32 %v4314_v35, %v15386_v27  ;;  %v10487_v21 = vld [vmem:[#allocation17 + $0x318] sm:$0xf] }
 0x4cf   :  { %v3741_v3 = vadd.f32 %v3740_v42, %v3711_v62  ;;  %v3743_v22 = vpop.f32.mrf.mxu0  ;;  %v13228_v42 = vld [vmem:[#allocation17 + $0x7b4] sm:$0xf0]  ;;  %4102 = vmatpush.bf16.msrb.mxu1 %v10808_v8 }
 0x4d0   :  { %v13084_v39 = vld [vmem:[#allocation17 + $0x334] sm:$0xf0] }
 0x4d1   :  { %v3770_v46 = vadd.f32 %v3769_v48, %v3741_v3  ;;  %v10551_v48 = vld [vmem:[#allocation17 + $0x398] sm:$0xf]  ;;  %v11064_v3 = vor.u32 %v13228_v42, %v11063_v12 }
 0x4d2   :  { %v3772_v0 = vpop.f32.mrf.mxu1  ;;  %v10552_v60 = vor.u32 %v13100_v36, %v10551_v48  ;;  %v10231_v12 = vld [vmem:[#allocation17 + $0x118] sm:$0xf] }
 0x4d3   :  { %v15389_v57 = vadd.f32 %v3798_v61, %v3770_v46  ;;  %4131 = vmatpush.bf16.msrb.mxu2 %v11064_v3  ;;  %v10775_v48 = vld [vmem:[#allocation17 + $0x558] sm:$0xf] }
 0x4d4   :  { %4073 = vmatpush.bf16.msrb.mxu0 %v10552_v60  ;;  %v13156_v36 = vld [vmem:[#allocation17 + $0x574] sm:$0xf0] }
 0x4d5   :  { %v4316_v35 = vadd.f32 %v4315_v54, %v15389_v57  ;;  %v10263_v54 = vld [vmem:[#allocation17 + $0x158] sm:$0xf] }
 0x4d6   :  { %v3714_v62 = vpop.f32.mrf.mxu3  ;;  %v3801_v61 = vpop.f32.mrf.mxu2  ;;  %v10264_v32 = vor.u32 %v13028_v56, %v10263_v54  ;;  %v13212_v60 = vld [vmem:[#allocation17 + $0x734] sm:$0xf0]  ;;  %v10488_v54 = vor.u32 %v13084_v39, %v10487_v21 }
 0x4d7   :  { %v3744_v46 = vadd.f32 %v3743_v22, %v3714_v62  ;;  %v3745_v17 = vpop.f32.mrf.mxu0  ;;  %v13020_v22 = vld [vmem:[#allocation17 + $0x134] sm:$0xf0]  ;;  %4132 = vmatpush.bf16.msrb.mxu2 %v11032_v19 }
 0x4d8   :  { %3945 = vmatmul.bf16.gmra.mxu3 %v15081_v34  ;;  %v10232_v42 = vor.u32 %v13020_v22, %v10231_v12  ;;  %v10999_v62 = vld [vmem:[#allocation17 + $0x718] sm:$0xf]  ;;  %4074 = vmatpush.bf16.msrb.mxu0 %v10520_v40 }
 0x4d9   :  { %v3773_v13 = vadd.f32 %v3772_v0, %v3744_v46  ;;  %4045 = vmatpush.bf16.msrb.mxu3 %v10264_v32  ;;  %v10776_v0 = vor.u32 %v13156_v36, %v10775_v48  ;;  %v11000_v8 = vor.u32 %v13212_v60, %v10999_v62  ;;  %v10199_v56 = vld [vmem:[#allocation17 + $0xd8] sm:$0xf] }
 0x4da   :  { %4032 = vmatmul.bf16.gmra.mxu2 %v14999_v33  ;;  %v3774_v3 = vpop.f32.mrf.mxu1  ;;  %v13012_v50 = vld [vmem:[#allocation17 + $0xf4] sm:$0xf0] }
 0x4db   :  { %v15396_v6 = vadd.f32 %v3801_v61, %v3773_v13  ;;  %v10743_v61 = vld [vmem:[#allocation17 + $0x518] sm:$0xf]  ;;  %4103 = vmatpush.bf16.msrb.mxu1 %v10776_v0  ;;  %v10200_v19 = vor.u32 %v13012_v50, %v10199_v56  ;;  %4133 = vmatpush.bf16.msrb.mxu2 %v11000_v8 }
 0x4dc   :  { %3974 = vmatmul.bf16.gmra.mxu0 %v15090_v51  ;;  %v13148_v41 = vld [vmem:[#allocation17 + $0x534] sm:$0xf0] }
 0x4dd   :  { %v4317_v46 = vadd.f32 %v4316_v35, %v15396_v6  ;;  %v10967_v58 = vld [vmem:[#allocation17 + $0x6d8] sm:$0xf]  ;;  %4046 = vmatpush.bf16.msrb.mxu3 %v10232_v42  ;;  %v10744_v40 = vor.u32 %v13148_v41, %v10743_v61  ;;  %4075 = vmatpush.bf16.msrb.mxu0 %v10488_v54 }
 0x4de   :  { %4003 = vmatmul.bf16.gmra.mxu1 %v15092_v52  ;;  %v3716_v13 = vpop.f32.mrf.mxu3  ;;  %v3803_v32 = vpop.f32.mrf.mxu2  ;;  %v13204_v12 = vld [vmem:[#allocation17 + $0x6f4] sm:$0xf0] }
 0x4df   :  { %v3746_v30 = vadd.f32 %v3745_v17, %v3716_v13  ;;  %v10455_v22 = vld [vmem:[#allocation17 + $0x2d8] sm:$0xf]  ;;  %v10968_v35 = vor.u32 %v13204_v12, %v10967_v58  ;;  %v3748_v39 = vpop.f32.mrf.mxu0  ;;  %4104 = vmatpush.bf16.msrb.mxu1 %v10744_v40 }
 0x4e0   :  { %v13076_v48 = vld [vmem:[#allocation17 + $0x2f4] sm:$0xf0] }
 0x4e1   :  { %v10456_v36 = vor.u32 %v13076_v48, %v10455_v22  ;;  %v10167_v62 = vld [vmem:[#allocation17 + $0x98] sm:$0xf]  ;;  %v3775_v49 = vadd.f32 %v3774_v3, %v3746_v30  ;;  %4047 = vmatpush.bf16.msrb.mxu3 %v10200_v19  ;;  %4134 = vmatpush.bf16.msrb.mxu2 %v10968_v35 }
 0x4e2   :  { %v13004_v60 = vld [vmem:[#allocation17 + $0xb4] sm:$0xf0]  ;;  %v3777_v3 = vpop.f32.mrf.mxu1 }
 0x4e3   :  { %v10711_v21 = vld [vmem:[#allocation17 + $0x4d8] sm:$0xf]  ;;  %v10168_v50 = vor.u32 %v13004_v60, %v10167_v62  ;;  %v15400_v8 = vadd.f32 %v3803_v32, %v3775_v49  ;;  %4076 = vmatpush.bf16.msrb.mxu0 %v10456_v36 }
 0x4e4   :  { %v10935_v0 = vld [vmem:[#allocation17 + $0x698] sm:$0xf]  ;;  %v10712_v17 = vor.u32 %v13140_v63, %v10711_v21 }
 0x4e5   :  { %v10423_v42 = vld [vmem:[#allocation17 + $0x298] sm:$0xf]  ;;  %v10936_v13 = vor.u32 %v13196_v55, %v10935_v0  ;;  %v4318_v40 = vadd.f32 %v4317_v46, %v15400_v8  ;;  %4048 = vmatpush.bf16.msrb.mxu3 %v10168_v50 }
 0x4e6   :  { %v13068_v56 = vld [vmem:[#allocation17 + $0x2b4] sm:$0xf0]  ;;  %v3719_v19 = vpop.f32.mrf.mxu3  ;;  %v3806_v12 = vpop.f32.mrf.mxu2  ;;  %4105 = vmatpush.bf16.msrb.mxu1 %v10712_v17 }
 0x4e7   :  { %v10679_v54 = vld [vmem:[#allocation17 + $0x498] sm:$0xf]  ;;  %v10424_v41 = vor.u32 %v13068_v56, %v10423_v42  ;;  %v3749_v62 = vadd.f32 %v3748_v39, %v3719_v19  ;;  %4135 = vmatpush.bf16.msrb.mxu2 %v10936_v13  ;;  %v3750_v21 = vpop.f32.mrf.mxu0 }
 0x4e8   :  { %3950 = vmatmul.bf16.gmra.mxu3 %v15111_v44  ;;  %v13132_v61 = vld [vmem:[#allocation17 + $0x4b4] sm:$0xf0] }
 0x4e9   :  { %v10135_v58 = vld [vmem:[#allocation17 + $0x58] sm:$0xf]  ;;  %v10680_v48 = vor.u32 %v13132_v61, %v10679_v54  ;;  %4077 = vmatpush.bf16.msrb.mxu0 %v10424_v41  ;;  %v3778_v60 = vadd.f32 %v3777_v3, %v3749_v62 }
 0x4ea   :  { %v12996_v30 = vld [vmem:[#allocation17 + $0x74] sm:$0xf0]  ;;  %4037 = vmatmul.bf16.gmra.mxu2 %v15001_v59  ;;  %v3779_v54 = vpop.f32.mrf.mxu1 }
 0x4eb   :  { %v10903_v63 = vld [vmem:[#allocation17 + $0x658] sm:$0xf]  ;;  %v10136_v55 = vor.u32 %v12996_v30, %v10135_v58  ;;  %4106 = vmatpush.bf16.msrb.mxu1 %v10680_v48  ;;  %v15406_v10 = vadd.f32 %v3806_v12, %v3778_v60 }
 0x4ec   :  { %3979 = vmatmul.bf16.gmra.mxu0 %v15114_v29  ;;  %v13188_v49 = vld [vmem:[#allocation17 + $0x674] sm:$0xf0] }
 0x4ed   :  { %v10391_v32 = vld [vmem:[#allocation17 + $0x258] sm:$0xf]  ;;  %v10904_v46 = vor.u32 %v13188_v49, %v10903_v63  ;;  %4049 = vmatpush.bf16.msrb.mxu3 %v10136_v55  ;;  %v4319_v50 = vadd.f32 %v4318_v40, %v15406_v10 }
 0x4ee   :  { %v13060_v22 = vld [vmem:[#allocation17 + $0x274] sm:$0xf0]  ;;  %4008 = vmatmul.bf16.gmra.mxu1 %v15116_v47  ;;  %v3721_v3 = vpop.f32.mrf.mxu3  ;;  %v3808_v58 = vpop.f32.mrf.mxu2 }
 0x4ef   :  { %v10647_v35 = vld [vmem:[#allocation17 + $0x458] sm:$0xf]  ;;  %v10392_v0 = vor.u32 %v13060_v22, %v10391_v32  ;;  %4136 = vmatpush.bf16.msrb.mxu2 %v10904_v46  ;;  %v3751_v12 = vadd.f32 %v3750_v21, %v3721_v3  ;;  %v3849_v40 = vpop.f32.mrf.mxu0 }
 0x4f0   :  { %v13124_v36 = vld [vmem:[#allocation17 + $0x474] sm:$0xf0] }
 0x4f1   :  { %v10103_v42 = vld [vmem:[#allocation17 + $0x18] sm:$0xf]  ;;  %v10648_v17 = vor.u32 %v13124_v36, %v10647_v35  ;;  %4078 = vmatpush.bf16.msrb.mxu0 %v10392_v0  ;;  %v3780_v48 = vadd.f32 %v3779_v54, %v3751_v12 }
 0x4f2   :  { %v12988_v56 = vld [vmem:[#allocation17 + $0x34] sm:$0xf0]  ;;  %v3878_v35 = vpop.f32.mrf.mxu1 }
 0x4f3   :  { %v10104_v39 = vor.u32 %v12988_v56, %v10103_v42  ;;  %v10871_v61 = vld [vmem:[#allocation17 + $0x618] sm:$0xf]  ;;  %4107 = vmatpush.bf16.msrb.mxu1 %v10648_v17  ;;  %v3809_v62 = vadd.f32 %v3808_v58, %v3780_v48 }
 0x4f4   :  { %v13180_v13 = vld [vmem:[#allocation17 + $0x634] sm:$0xf0] }
 0x4f5   :  { %v10359_v41 = vld [vmem:[#allocation17 + $0x218] sm:$0xf]  ;;  %v10872_v30 = vor.u32 %v13180_v13, %v10871_v61  ;;  %4050 = vmatpush.bf16.msrb.mxu3 %v10104_v39  ;;  %v4320_v55 = vadd.f32 %v4319_v50, %v3809_v62 }
 0x4f6   :  { %v13052_v63 = vld [vmem:[#allocation17 + $0x234] sm:$0xf0]  ;;  %v3820_v36 = vpop.f32.mrf.mxu3  ;;  %v3907_v21 = vpop.f32.mrf.mxu2 }
 0x4f7   :  { %v10615_v19 = vld [vmem:[#allocation17 + $0x418] sm:$0xf]  ;;  %v10360_v32 = vor.u32 %v13052_v63, %v10359_v41  ;;  %4137 = vmatpush.bf16.msrb.mxu2 %v10872_v30  ;;  %v4321_v60 = vrot.slane %v4320_v55, 4  ;;  %v3850_v46 = vadd.f32 %v3849_v40, %v3820_v36  ;;  %v3851_v56 = vpop.f32.mrf.mxu0 }
 0x4f8   :  { %v13116_v49 = vld [vmem:[#allocation17 + $0x434] sm:$0xf0]  ;;  %4051 = vmatmul.bf16.vlgmr.msrb.gmra.mxu3 %v15024_v2 }
 0x4f9   :  { %v10616_v22 = vor.u32 %v13116_v49, %v10615_v19  ;;  %4079 = vmatpush.bf16.msrb.mxu0 %v10360_v32  ;;  %v4322_v0 = vadd.f32 %v4321_v60, %v4320_v55  ;;  %v3879_v42 = vadd.f32 %v3878_v35, %v3850_v46 }
 0x4fa   :  { %4138 = vmatmul.bf16.vlgmr.msrb.gmra.mxu2 %v15013_v14  ;;  %v3880_v61 = vpop.f32.mrf.mxu1 }
 0x4fb   :  { %4108 = vmatpush.bf16.msrb.mxu1 %v10616_v22  ;;  %v4323_v17 = vrot.slane %v4322_v0, 2  ;;  %v15413_v39 = vadd.f32 %v3907_v21, %v3879_v42 }
 0x4fc   :  { %4080 = vmatmul.bf16.vlgmr.msrb.gmra.mxu0 %v15027_v5 }
 0x4fd   :  { %v4324_v54 = vadd.f32 %v4323_v17, %v4322_v0  ;;  %v10329_v17 = vld [vmem:[#allocation17 + $0x1f8] sm:$0xf0] }
 0x4fe   :  { %4109 = vmatmul.bf16.vlgmr.msrb.gmra.mxu1 %v15032_v25  ;;  %v3822_v13 = vpop.f32.mrf.mxu3  ;;  %v3909_v3 = vpop.f32.mrf.mxu2 }
 0x4ff   :  { %v4325_v41 = vrot.slane %v4324_v54, 1  ;;  %v3852_v50 = vadd.f32 %v3851_v56, %v3822_v13  ;;  %v3854_v63 = vpop.f32.mrf.mxu0  ;;  %v13040_v56 = vld [vmem:[#allocation17 + $0x1dc] sm:$0xf] }
 0x501   :  { %v4326_v58 = vadd.f32 %v4325_v41, %v4324_v54  ;;  %v3881_v30 = vadd.f32 %v3880_v61, %v3852_v50  ;;  %v13232_v54 = vld [vmem:[#allocation17 + $0x7dc] sm:$0xf]  ;;  %v10332_v41 = vor.u32 %v13040_v56, %v10329_v17 }
 0x502   :  { %v3883_v40 = vpop.f32.mrf.mxu1  ;;  %v11097_v50 = vld [vmem:[#allocation17 + $0x7f8] sm:$0xf0] }
 0x503   :  { %v4382_v19 = vmul.f32 %v4326_v58, %v14436_v20  ;;  %v15416_v49 = vadd.f32 %v3909_v3, %v3881_v30  ;;  %v13104_v3 = vld [vmem:[#allocation17 + $0x3dc] sm:$0xf]  ;;  %v11100_v30 = vor.u32 %v13232_v54, %v11097_v50  ;;  %4159 = vmatpush.bf16.msra.mxu3 %v10332_v41 }
 0x504   :  { %v10585_v58 = vld [vmem:[#allocation17 + $0x3f8] sm:$0xf0] }
 0x505   :  { %v15421_v12 = vsub.f32 %v15352_v45, %v4382_v19  ;;  %v15424_v32 = vsub.f32 %v15355_v15, %v4382_v19  ;;  %v15427_v22 = vsub.f32 %v15386_v27, %v4382_v19  ;;  %v15430_v48 = vsub.f32 %v15389_v57, %v4382_v19  ;;  %4246 = vmatpush.bf16.msra.mxu2 %v11100_v30  ;;  %v13096_v56 = vld [vmem:[#allocation17 + $0x39c] sm:$0xf] }
 0x506   :  { %v15433_v55 = vsub.f32 %v15396_v6, %v4382_v19  ;;  %v15436_v35 = vsub.f32 %v15400_v8, %v4382_v19  ;;  %v15439_v36 = vsub.f32 %v15406_v10, %v4382_v19  ;;  %v15441_v45 = vsub.f32 %v3809_v62, %v4382_v19  ;;  %v3825_v15 = vpop.f32.mrf.mxu3  ;;  %v3912_v27 = vpop.f32.mrf.mxu2  ;;  %v13168_v19 = vld [vmem:[#allocation17 + $0x5dc] sm:$0xf] }
 0x507   :  { %17414 = vst [vmem:[#allocation58_spill] sm:$0xff] %v15421_v12  ;;  %v4327_v57 = vadd.f32 %v15416_v49, %v15413_v39  ;;  %v3855_v60 = vadd.f32 %v3854_v63, %v3825_v15  ;;  %v3856_v6 = vpop.f32.mrf.mxu0  ;;  %v10588_v63 = vor.u32 %v13104_v3, %v10585_v58  ;;  %v13160_v41 = vld [vmem:[#allocation17 + $0x59c] sm:$0xf] }
 0x508   :  { %4056 = vmatmul.bf16.gmra.mxu3 %v15049_v31  ;;  %17415 = vst [vmem:[#allocation59_spill] sm:$0xff] %v15424_v32  ;;  %v10809_v50 = vld [vmem:[#allocation17 + $0x5b8] sm:$0xf0] }
 0x509   :  { %17416 = vst [vmem:[#allocation60_spill] sm:$0xff] %v15439_v36  ;;  %v3884_v46 = vadd.f32 %v3883_v40, %v3855_v60  ;;  %v10841_v40 = vld [vmem:[#allocation17 + $0x5f8] sm:$0xf0]  ;;  %4188 = vmatpush.bf16.msra.mxu0 %v10588_v63  ;;  %v10812_v58 = vor.u32 %v13160_v41, %v10809_v50 }
 0x50a   :  { %17417 = vst [vmem:[#allocation61_spill] sm:$0xff] %v15441_v45  ;;  %4143 = vmatmul.bf16.gmra.mxu2 %v14997_v9  ;;  %v3885_v8 = vpop.f32.mrf.mxu1  ;;  %v10297_v60 = vld [vmem:[#allocation17 + $0x1b8] sm:$0xf0] }
 0x50b   :  { %v15447_v21 = vadd.f32 %v3912_v27, %v3884_v46  ;;  %v10844_v27 = vor.u32 %v13168_v19, %v10841_v40  ;;  %v10265_v30 = vld [vmem:[#allocation17 + $0x178] sm:$0xf0] }
 0x50c   :  { %4085 = vmatmul.bf16.gmra.mxu0 %v15064_v43  ;;  %v13216_v63 = vld [vmem:[#allocation17 + $0x75c] sm:$0xf] }
 0x50d   :  { %v4328_v10 = vadd.f32 %v4327_v57, %v15447_v21  ;;  %v13032_v57 = vld [vmem:[#allocation17 + $0x19c] sm:$0xf]  ;;  %4217 = vmatpush.bf16.msra.mxu1 %v10844_v27 }
 0x50e   :  { %4114 = vmatmul.bf16.gmra.mxu1 %v15068_v11  ;;  %v3827_v0 = vpop.f32.mrf.mxu3  ;;  %v3914_v42 = vpop.f32.mrf.mxu2  ;;  %v13208_v50 = vld [vmem:[#allocation17 + $0x71c] sm:$0xf] }
 0x50f   :  { %v3857_v62 = vadd.f32 %v3856_v6, %v3827_v0  ;;  %v3859_v13 = vpop.f32.mrf.mxu0  ;;  %v13224_v6 = vld [vmem:[#allocation17 + $0x79c] sm:$0xf]  ;;  %v10300_v0 = vor.u32 %v13032_v57, %v10297_v60 }
 0x510   :  { %v11033_v60 = vld [vmem:[#allocation17 + $0x778] sm:$0xf0] }
 0x511   :  { %v3886_v61 = vadd.f32 %v3885_v8, %v3857_v62  ;;  %v11065_v62 = vld [vmem:[#allocation17 + $0x7b8] sm:$0xf0]  ;;  %4160 = vmatpush.bf16.msra.mxu3 %v10300_v0  ;;  %4218 = vmatpush.bf16.msra.mxu1 %v10812_v58 }
 0x512   :  { %v3888_v8 = vpop.f32.mrf.mxu1  ;;  %v11068_v54 = vor.u32 %v13224_v6, %v11065_v62  ;;  %v13088_v6 = vld [vmem:[#allocation17 + $0x35c] sm:$0xf] }
 0x513   :  { %v15450_v15 = vadd.f32 %v3914_v42, %v3886_v61  ;;  %v10553_v42 = vld [vmem:[#allocation17 + $0x3b8] sm:$0xf0] }
 0x514   :  { %v10556_v61 = vor.u32 %v13096_v56, %v10553_v42  ;;  %4247 = vmatpush.bf16.msra.mxu2 %v11068_v54  ;;  %v10521_v62 = vld [vmem:[#allocation17 + $0x378] sm:$0xf0]  ;;  %v11036_v56 = vor.u32 %v13216_v63, %v11033_v60 }
 0x515   :  { %v4329_v46 = vadd.f32 %v4328_v10, %v15450_v15  ;;  %v13024_v10 = vld [vmem:[#allocation17 + $0x15c] sm:$0xf]  ;;  %v10524_v42 = vor.u32 %v13088_v6, %v10521_v62 }
 0x516   :  { %v3830_v17 = vpop.f32.mrf.mxu3  ;;  %4189 = vmatpush.bf16.msra.mxu0 %v10556_v61  ;;  %v3917_v40 = vpop.f32.mrf.mxu2  ;;  %v10268_v57 = vor.u32 %v13024_v10, %v10265_v30  ;;  %v10777_v0 = vld [vmem:[#allocation17 + $0x578] sm:$0xf0] }
 0x517   :  { %v3860_v3 = vadd.f32 %v3859_v13, %v3830_v17  ;;  %v3861_v27 = vpop.f32.mrf.mxu0  ;;  %v13152_v13 = vld [vmem:[#allocation17 + $0x55c] sm:$0xf] }
 0x518   :  { %4061 = vmatmul.bf16.gmra.mxu3 %v15081_v34  ;;  %v13016_v54 = vld [vmem:[#allocation17 + $0x11c] sm:$0xf]  ;;  %v10780_v41 = vor.u32 %v13152_v13, %v10777_v0  ;;  %4248 = vmatpush.bf16.msra.mxu2 %v11036_v56 }
 0x519   :  { %v3889_v19 = vadd.f32 %v3888_v8, %v3860_v3  ;;  %4161 = vmatpush.bf16.msra.mxu3 %v10268_v57  ;;  %v10233_v61 = vld [vmem:[#allocation17 + $0x138] sm:$0xf0] }
 0x51a   :  { %4148 = vmatmul.bf16.gmra.mxu2 %v14999_v33  ;;  %4190 = vmatpush.bf16.msra.mxu0 %v10524_v42  ;;  %v10236_v8 = vor.u32 %v13016_v54, %v10233_v61  ;;  %v11001_v3 = vld [vmem:[#allocation17 + $0x738] sm:$0xf0]  ;;  %v3890_v37 = vpop.f32.mrf.mxu1 }
 0x51b   :  { %v15457_v17 = vadd.f32 %v3917_v40, %v3889_v19  ;;  %v13080_v10 = vld [vmem:[#allocation17 + $0x31c] sm:$0xf]  ;;  %4219 = vmatpush.bf16.msra.mxu1 %v10780_v41  ;;  %v11004_v63 = vor.u32 %v13208_v50, %v11001_v3 }
 0x51c   :  { %4090 = vmatmul.bf16.gmra.mxu0 %v15090_v51  ;;  %v10489_v58 = vld [vmem:[#allocation17 + $0x338] sm:$0xf0] }
 0x51d   :  { %v4330_v30 = vadd.f32 %v4329_v46, %v15457_v17  ;;  %v10492_v60 = vor.u32 %v13080_v10, %v10489_v58  ;;  %v13008_v6 = vld [vmem:[#allocation17 + $0xdc] sm:$0xf]  ;;  %4162 = vmatpush.bf16.msra.mxu3 %v10236_v8  ;;  %4249 = vmatpush.bf16.msra.mxu2 %v11004_v63 }
 0x51e   :  { %4119 = vmatmul.bf16.gmra.mxu1 %v15092_v52  ;;  %v10201_v19 = vld [vmem:[#allocation17 + $0xf8] sm:$0xf0]  ;;  %v3832_v57 = vpop.f32.mrf.mxu3  ;;  %v3919_v10 = vpop.f32.mrf.mxu2 }
 0x51f   :  { %v13144_v40 = vld [vmem:[#allocation17 + $0x51c] sm:$0xf]  ;;  %v3862_v13 = vadd.f32 %v3861_v27, %v3832_v57  ;;  %v10204_v56 = vor.u32 %v13008_v6, %v10201_v19  ;;  %4191 = vmatpush.bf16.msra.mxu0 %v10492_v60  ;;  %v3864_v58 = vpop.f32.mrf.mxu0 }
 0x520   :  { %v10745_v62 = vld [vmem:[#allocation17 + $0x538] sm:$0xf0] }
 0x521   :  { %v10748_v42 = vor.u32 %v13144_v40, %v10745_v62  ;;  %v10969_v0 = vld [vmem:[#allocation17 + $0x6f8] sm:$0xf0]  ;;  %v3891_v45 = vadd.f32 %v3890_v37, %v3862_v13  ;;  %4163 = vmatpush.bf16.msra.mxu3 %v10204_v56 }
 0x522   :  { %v13072_v54 = vld [vmem:[#allocation17 + $0x2dc] sm:$0xf]  ;;  %v10972_v46 = vor.u32 %v13200_v24, %v10969_v0  ;;  %v3893_v62 = vpop.f32.mrf.mxu1 }
 0x523   :  { %v10457_v61 = vld [vmem:[#allocation17 + $0x2f8] sm:$0xf0]  ;;  %4220 = vmatpush.bf16.msra.mxu1 %v10748_v42  ;;  %v15461_v60 = vadd.f32 %v3919_v10, %v3891_v45 }
 0x524   :  { %v10460_v53 = vor.u32 %v13072_v54, %v10457_v61  ;;  %v13000_v41 = vld [vmem:[#allocation17 + $0x9c] sm:$0xf]  ;;  %4250 = vmatpush.bf16.msra.mxu2 %v10972_v46 }
 0x525   :  { %v10169_v50 = vld [vmem:[#allocation17 + $0xb8] sm:$0xf0]  ;;  %v4331_v0 = vadd.f32 %v4330_v30, %v15461_v60 }
 0x526   :  { %v13136_v3 = vld [vmem:[#allocation17 + $0x4dc] sm:$0xf]  ;;  %v10172_v63 = vor.u32 %v13000_v41, %v10169_v50  ;;  %4192 = vmatpush.bf16.msra.mxu0 %v10460_v53  ;;  %v3835_v45 = vpop.f32.mrf.mxu3  ;;  %v3922_v10 = vpop.f32.mrf.mxu2 }
 0x527   :  { %v13192_v36 = vld [vmem:[#allocation17 + $0x69c] sm:$0xf]  ;;  %v10716_v8 = vor.u32 %v13136_v3, %v10713_v38  ;;  %v3865_v50 = vadd.f32 %v3864_v58, %v3835_v45  ;;  %v3866_v30 = vpop.f32.mrf.mxu0 }
 0x528   :  { %v10937_v27 = vld [vmem:[#allocation17 + $0x6b8] sm:$0xf0]  ;;  %4066 = vmatmul.bf16.gmra.mxu3 %v15111_v44 }
 0x529   :  { %v13064_v6 = vld [vmem:[#allocation17 + $0x29c] sm:$0xf]  ;;  %v10940_v57 = vor.u32 %v13192_v36, %v10937_v27  ;;  %4221 = vmatpush.bf16.msra.mxu1 %v10716_v8  ;;  %4164 = vmatpush.bf16.msra.mxu3 %v10172_v63  ;;  %v3894_v36 = vadd.f32 %v3893_v62, %v3865_v50 }
 0x52a   :  { %v10425_v19 = vld [vmem:[#allocation17 + $0x2b8] sm:$0xf0]  ;;  %4153 = vmatmul.bf16.gmra.mxu2 %v15001_v59  ;;  %v3895_v63 = vpop.f32.mrf.mxu1 }
 0x52b   :  { %v13128_v24 = vld [vmem:[#allocation17 + $0x49c] sm:$0xf]  ;;  %v10428_v37 = vor.u32 %v13064_v6, %v10425_v19  ;;  %4251 = vmatpush.bf16.msra.mxu2 %v10940_v57 }
 0x52c   :  { %4095 = vmatmul.bf16.gmra.mxu0 %v15114_v29  ;;  %v10681_v40 = vld [vmem:[#allocation17 + $0x4b8] sm:$0xf0] }
 0x52d   :  { %v12992_v13 = vld [vmem:[#allocation17 + $0x5c] sm:$0xf]  ;;  %v10684_v56 = vor.u32 %v13128_v24, %v10681_v40  ;;  %4193 = vmatpush.bf16.msra.mxu0 %v10428_v37  ;;  %v3923_v40 = vadd.f32 %v3922_v10, %v3894_v36 }
 0x52e   :  { %v10137_v42 = vld [vmem:[#allocation17 + $0x78] sm:$0xf0]  ;;  %4124 = vmatmul.bf16.gmra.mxu1 %v15116_v47  ;;  %v3837_v62 = vpop.f32.mrf.mxu3 }
 0x52f   :  { %v13184_v38 = vld [vmem:[#allocation17 + $0x65c] sm:$0xf]  ;;  %v10140_v53 = vor.u32 %v12992_v13, %v10137_v42  ;;  %4222 = vmatpush.bf16.msra.mxu1 %v10684_v56  ;;  %v4332_v45 = vadd.f32 %v4331_v0, %v3923_v40 }
 0x530   :  { %v10905_v54 = vld [vmem:[#allocation17 + $0x678] sm:$0xf0] }
 0x531   :  { %v13056_v61 = vld [vmem:[#allocation17 + $0x25c] sm:$0xf]  ;;  %v10908_v27 = vor.u32 %v13184_v38, %v10905_v54  ;;  %4165 = vmatpush.bf16.msra.mxu3 %v10140_v53 }
 0x532   :  { %v10393_v41 = vld [vmem:[#allocation17 + $0x278] sm:$0xf0] }
 0x533   :  { %v13120_v3 = vld [vmem:[#allocation17 + $0x45c] sm:$0xf]  ;;  %v10396_v8 = vor.u32 %v13056_v61, %v10393_v41  ;;  %4252 = vmatpush.bf16.msra.mxu2 %v10908_v27  ;;  %v3867_v61 = vadd.f32 %v3866_v30, %v3837_v62 }
 0x534   :  { %v10649_v46 = vld [vmem:[#allocation17 + $0x478] sm:$0xf0] }
 0x535   :  { %v12984_v6 = vld [vmem:[#allocation17 + $0x1c] sm:$0xf]  ;;  %v10652_v24 = vor.u32 %v13120_v3, %v10649_v46  ;;  %4194 = vmatpush.bf16.msra.mxu0 %v10396_v8  ;;  %v3896_v50 = vadd.f32 %v3895_v63, %v3867_v61  ;;  %v3924_v3 = vpop.f32.mrf.mxu2 }
 0x536   :  { %v10105_v19 = vld [vmem:[#allocation17 + $0x38] sm:$0xf0] }
 0x537   :  { %v10108_v58 = vor.u32 %v12984_v6, %v10105_v19  ;;  %v10873_v13 = vld [vmem:[#allocation17 + $0x638] sm:$0xf0]  ;;  %4223 = vmatpush.bf16.msra.mxu1 %v10652_v24  ;;  %v3925_v46 = vadd.f32 %v3924_v3, %v3896_v50 }
 0x538   :  { %v13048_v57 = vld [vmem:[#allocation17 + $0x21c] sm:$0xf]  ;;  %v10876_v37 = vor.u32 %v13176_v18, %v10873_v13 }
 0x539   :  { %v10361_v42 = vld [vmem:[#allocation17 + $0x238] sm:$0xf0]  ;;  %4166 = vmatpush.bf16.msra.mxu3 %v10108_v58  ;;  %v3965_v0 = vpop.f32.mrf.mxu0  ;;  %v4333_v53 = vadd.f32 %v4332_v45, %v3925_v46 }
 0x53a   :  { %v13112_v38 = vld [vmem:[#allocation17 + $0x41c] sm:$0xf]  ;;  %v10364_v41 = vor.u32 %v13048_v57, %v10361_v42  ;;  %4253 = vmatpush.bf16.msra.mxu2 %v10876_v37 }
 0x53b   :  { %v10617_v54 = vld [vmem:[#allocation17 + $0x438] sm:$0xf0]  ;;  %v3994_v18 = vpop.f32.mrf.mxu1  ;;  %v3936_v36 = vpop.f32.mrf.mxu3  ;;  %v4334_v10 = vrot.slane %v4333_v53, 4 }
 0x53c   :  { %v10620_v56 = vor.u32 %v13112_v38, %v10617_v54  ;;  %4195 = vmatpush.bf16.msra.mxu0 %v10364_v41  ;;  %4167 = vmatmul.bf16.vlgmr.msra.gmra.mxu3 %v15024_v2  ;;  %v3966_v27 = vadd.f32 %v3965_v0, %v3936_v36 }
 0x53d   :  { %4254 = vmatmul.bf16.vlgmr.msra.gmra.mxu2 %v15013_v14  ;;  %v4335_v30 = vadd.f32 %v4334_v10, %v4333_v53  ;;  %v4023_v6 = vpop.f32.mrf.mxu2 }
 0x53e   :  { %4224 = vmatpush.bf16.msra.mxu1 %v10620_v56  ;;  %v3995_v8 = vadd.f32 %v3994_v18, %v3966_v27 }
 0x53f   :  { %4196 = vmatmul.bf16.vlgmr.msra.gmra.mxu0 %v15027_v5  ;;  %v4336_v24 = vrot.slane %v4335_v30, 2 }
 0x540   :  { %v15471_v58 = vadd.f32 %v4023_v6, %v3995_v8 }
 0x541   :  { %4225 = vmatmul.bf16.vlgmr.msra.gmra.mxu1 %v15032_v25  ;;  %v3967_v19 = vpop.f32.mrf.mxu0  ;;  %v4337_v63 = vadd.f32 %v4336_v24, %v4335_v30 }
 0x543   :  { %v3996_v2 = vpop.f32.mrf.mxu1  ;;  %v3938_v13 = vpop.f32.mrf.mxu3  ;;  %v4338_v5 = vrot.slane %v4337_v63, 1 }
 0x544   :  { %v3968_v45 = vadd.f32 %v3967_v19, %v3938_v13 }
 0x545   :  { %v4339_v57 = vadd.f32 %v4338_v5, %v4337_v63  ;;  %v4025_v62 = vpop.f32.mrf.mxu2 }
 0x546   :  { %v3997_v25 = vadd.f32 %v3996_v2, %v3968_v45 }
 0x547   :  { %v4383_v37 = vmul.f32 %v4339_v57, %v14436_v20 }
 0x549   :  { %v3970_v14 = vpop.f32.mrf.mxu0  ;;  %v15477_v42 = vsub.f32 %v15413_v39, %v4383_v37  ;;  %v15480_v38 = vsub.f32 %v15416_v49, %v4383_v37  ;;  %v15483_v54 = vsub.f32 %v15447_v21, %v4383_v37  ;;  %v15486_v61 = vsub.f32 %v15450_v15, %v4383_v37 }
 0x54a   :  { %v15489_v56 = vsub.f32 %v15457_v17, %v4383_v37  ;;  %v15496_v39 = vsub.f32 %v3925_v46, %v4383_v37  ;;  %v15500_v21 = vadd.f32 %v4025_v62, %v3997_v25 }
 0x54b   :  { %17418 = vst [vmem:[#allocation62_spill] sm:$0xff] %v15477_v42  ;;  %v3999_v41 = vpop.f32.mrf.mxu1  ;;  %v3941_v49 = vpop.f32.mrf.mxu3 }
 0x54c   :  { %4172 = vmatmul.bf16.gmra.mxu3 %v15049_v31  ;;  %17419 = vst [vmem:[#allocation63_spill] sm:$0xff] %v15480_v38  ;;  %v15492_v31 = vsub.f32 %v15461_v60, %v4383_v37  ;;  %v3971_v15 = vadd.f32 %v3970_v14, %v3941_v49  ;;  %v4340_v17 = vadd.f32 %v15500_v21, %v15471_v58 }
 0x54d   :  { %17420 = vst [vmem:[#allocation64_spill] sm:$0xff] %v15483_v54  ;;  %4259 = vmatmul.bf16.gmra.mxu2 %v14997_v9  ;;  %v4028_v50 = vpop.f32.mrf.mxu2 }
 0x54e   :  { %17421 = vst [vmem:[#allocation65_spill] sm:$0xff] %v15489_v56  ;;  %v4000_v0 = vadd.f32 %v3999_v41, %v3971_v15 }
 0x54f   :  { %4201 = vmatmul.bf16.gmra.mxu0 %v15064_v43  ;;  %v15494_v43 = vsub.f32 %v3923_v40, %v4383_v37 }
 0x550   :  { %v15504_v60 = vadd.f32 %v4028_v50, %v4000_v0 }
 0x551   :  { %4230 = vmatmul.bf16.gmra.mxu1 %v15068_v11  ;;  %v3972_v3 = vpop.f32.mrf.mxu0 }
 0x552   :  { %v4341_v46 = vadd.f32 %v4340_v17, %v15504_v60 }
 0x553   :  { %v4001_v40 = vpop.f32.mrf.mxu1  ;;  %v3943_v53 = vpop.f32.mrf.mxu3 }
 0x554   :  { %v3973_v18 = vadd.f32 %v3972_v3, %v3943_v53 }
 0x555   :  { %v4030_v9 = vpop.f32.mrf.mxu2 }
 0x556   :  { %v4002_v10 = vadd.f32 %v4001_v40, %v3973_v18 }
 0x558   :  { %v15510_v30 = vadd.f32 %v4030_v9, %v4002_v10 }
 0x559   :  { %v3975_v36 = vpop.f32.mrf.mxu0 }
 0x55a   :  { %v4342_v63 = vadd.f32 %v4341_v46, %v15510_v30 }
 0x55b   :  { %v4004_v11 = vpop.f32.mrf.mxu1  ;;  %v3946_v27 = vpop.f32.mrf.mxu3 }
 0x55c   :  { %4177 = vmatmul.bf16.gmra.mxu3 %v15081_v34  ;;  %v3976_v8 = vadd.f32 %v3975_v36, %v3946_v27 }
 0x55d   :  { %4264 = vmatmul.bf16.gmra.mxu2 %v14999_v33  ;;  %v4033_v19 = vpop.f32.mrf.mxu2 }
 0x55e   :  { %v4005_v6 = vadd.f32 %v4004_v11, %v3976_v8 }
 0x55f   :  { %4206 = vmatmul.bf16.gmra.mxu0 %v15090_v51 }
 0x560   :  { %v4034_v2 = vadd.f32 %v4033_v19, %v4005_v6 }
 0x561   :  { %4235 = vmatmul.bf16.gmra.mxu1 %v15092_v52  ;;  %v3977_v24 = vpop.f32.mrf.mxu0 }
 0x562   :  { %v4343_v13 = vadd.f32 %v4342_v63, %v4034_v2 }
 0x563   :  { %v4006_v5 = vpop.f32.mrf.mxu1  ;;  %v3948_v34 = vpop.f32.mrf.mxu3 }
 0x564   :  { %v3978_v45 = vadd.f32 %v3977_v24, %v3948_v34 }
 0x565   :  { %v4035_v51 = vpop.f32.mrf.mxu2 }
 0x566   :  { %v4007_v62 = vadd.f32 %v4006_v5, %v3978_v45 }
 0x568   :  { %v15517_v14 = vadd.f32 %v4035_v51, %v4007_v62 }
 0x569   :  { %v3980_v57 = vpop.f32.mrf.mxu0 }
 0x56a   :  { %v4344_v15 = vadd.f32 %v4343_v13, %v15517_v14 }
 0x56b   :  { %v4009_v33 = vpop.f32.mrf.mxu1  ;;  %v3951_v52 = vpop.f32.mrf.mxu3 }
 0x56c   :  { %4182 = vmatmul.bf16.gmra.mxu3 %v15111_v44  ;;  %v3981_v37 = vadd.f32 %v3980_v57, %v3951_v52 }
 0x56d   :  { %4269 = vmatmul.bf16.gmra.mxu2 %v15001_v59  ;;  %v4038_v41 = vpop.f32.mrf.mxu2 }
 0x56e   :  { %v4010_v25 = vadd.f32 %v4009_v33, %v3981_v37 }
 0x56f   :  { %4211 = vmatmul.bf16.gmra.mxu0 %v15114_v29 }
 0x570   :  { %v4039_v50 = vadd.f32 %v4038_v41, %v4010_v25 }
 0x571   :  { %4240 = vmatmul.bf16.gmra.mxu1 %v15116_v47  ;;  %v3982_v49 = vpop.f32.mrf.mxu0 }
 0x572   :  { %v4345_v3 = vadd.f32 %v4344_v15, %v4039_v50 }
 0x573   :  { %v4011_v0 = vpop.f32.mrf.mxu1  ;;  %v3953_v44 = vpop.f32.mrf.mxu3 }
 0x574   :  { %v3983_v17 = vadd.f32 %v3982_v49, %v3953_v44 }
 0x575   :  { %v4040_v40 = vpop.f32.mrf.mxu2 }
 0x576   :  { %v4012_v29 = vadd.f32 %v4011_v0, %v3983_v17 }
 0x578   :  { %v15521_v59 = vadd.f32 %v4040_v40, %v4012_v29 }
 0x579   :  { %v4081_v53 = vpop.f32.mrf.mxu0 }
 0x57a   :  { %v4346_v46 = vadd.f32 %v4345_v3, %v15521_v59 }
 0x57b   :  { %v4110_v18 = vpop.f32.mrf.mxu1  ;;  %v4052_v9 = vpop.f32.mrf.mxu3 }
 0x57c   :  { %v4347_v47 = vrot.slane %v4346_v46, 4  ;;  %v4082_v36 = vadd.f32 %v4081_v53, %v4052_v9 }
 0x57d   :  { %v4139_v27 = vpop.f32.mrf.mxu2 }
 0x57e   :  { %v4348_v10 = vadd.f32 %v4347_v47, %v4346_v46  ;;  %v4111_v11 = vadd.f32 %v4110_v18, %v4082_v36 }
 0x580   :  { %v4349_v6 = vrot.slane %v4348_v10, 2  ;;  %v15524_v19 = vadd.f32 %v4139_v27, %v4111_v11 }
 0x581   :  { %v4083_v8 = vpop.f32.mrf.mxu0 }
 0x582   :  { %v4350_v24 = vadd.f32 %v4349_v6, %v4348_v10 }
 0x583   :  { %v4112_v63 = vpop.f32.mrf.mxu1  ;;  %v4054_v13 = vpop.f32.mrf.mxu3 }
 0x584   :  { %v4351_v5 = vrot.slane %v4350_v24, 1  ;;  %v4084_v45 = vadd.f32 %v4083_v8, %v4054_v13 }
 0x585   :  { %v4141_v51 = vpop.f32.mrf.mxu2 }
 0x586   :  { %v4352_v34 = vadd.f32 %v4351_v5, %v4350_v24  ;;  %v4113_v37 = vadd.f32 %v4112_v63, %v4084_v45 }
 0x588   :  { %v15527_v62 = vmul.f32 %v4352_v34, %v14436_v20  ;;  %v15543_v3 = vadd.f32 %v4141_v51, %v4113_v37 }
 0x589   :  { %v4086_v57 = vpop.f32.mrf.mxu0 }
 0x58a   :  { %v15531_v33 = vsub.f32 %v15471_v58, %v15527_v62  ;;  %v15535_v52 = vsub.f32 %v15504_v60, %v15527_v62  ;;  %v15538_v41 = vsub.f32 %v4034_v2, %v15527_v62  ;;  %v15541_v49 = vsub.f32 %v4039_v50, %v15527_v62 }
 0x58b   :  { %v4115_v25 = vpop.f32.mrf.mxu1  ;;  %v4057_v15 = vpop.f32.mrf.mxu3  ;;  %v4353_v29 = vadd.f32 %v15543_v3, %v15524_v19 }
 0x58c   :  { %17422 = vst [vmem:[#allocation66_spill] sm:$0xff] %v15531_v33  ;;  %v4087_v0 = vadd.f32 %v4086_v57, %v4057_v15 }
 0x58d   :  { %17423 = vst [vmem:[#allocation67_spill] sm:$0xff] %v15535_v52  ;;  %v4144_v44 = vpop.f32.mrf.mxu2 }
 0x58e   :  { %17424 = vst [vmem:[#allocation68_spill] sm:$0xff] %v15538_v41  ;;  %v4116_v58 = vadd.f32 %v4115_v25, %v4087_v0 }
 0x590   :  { %v4145_v60 = vadd.f32 %v4144_v44, %v4116_v58 }
 0x591   :  { %v4088_v17 = vpop.f32.mrf.mxu0 }
 0x592   :  { %v4354_v46 = vadd.f32 %v4353_v29, %v4145_v60 }
 0x593   :  { %v4117_v40 = vpop.f32.mrf.mxu1  ;;  %v4059_v53 = vpop.f32.mrf.mxu3 }
 0x594   :  { %v4089_v18 = vadd.f32 %v4088_v17, %v4059_v53 }
 0x595   :  { %v4146_v2 = vpop.f32.mrf.mxu2 }
 0x596   :  { %v4118_v47 = vadd.f32 %v4117_v40, %v4089_v18 }
 0x598   :  { %v15547_v10 = vadd.f32 %v4146_v2, %v4118_v47 }
 0x599   :  { %v4091_v9 = vpop.f32.mrf.mxu0 }
 0x59a   :  { %v4355_v24 = vadd.f32 %v4354_v46, %v15547_v10 }
 0x59b   :  { %v4120_v50 = vpop.f32.mrf.mxu1  ;;  %v4062_v36 = vpop.f32.mrf.mxu3 }
 0x59c   :  { %v4092_v11 = vadd.f32 %v4091_v9, %v4062_v36 }
 0x59d   :  { %v4149_v8 = vpop.f32.mrf.mxu2 }
 0x59e   :  { %v4121_v27 = vadd.f32 %v4120_v50, %v4092_v11 }
 0x5a0   :  { %v4150_v63 = vadd.f32 %v4149_v8, %v4121_v27 }
 0x5a1   :  { %v4093_v6 = vpop.f32.mrf.mxu0 }
 0x5a2   :  { %v4356_v13 = vadd.f32 %v4355_v24, %v4150_v63 }
 0x5a3   :  { %v4122_v5 = vpop.f32.mrf.mxu1  ;;  %v4064_v34 = vpop.f32.mrf.mxu3 }
 0x5a4   :  { %v4094_v45 = vadd.f32 %v4093_v6, %v4064_v34 }
 0x5a5   :  { %v4151_v51 = vpop.f32.mrf.mxu2 }
 0x5a6   :  { %v4123_v37 = vadd.f32 %v4122_v5, %v4094_v45 }
 0x5a8   :  { %v15550_v0 = vadd.f32 %v4151_v51, %v4123_v37 }
 0x5a9   :  { %v4096_v57 = vpop.f32.mrf.mxu0 }
 0x5aa   :  { %v4357_v40 = vadd.f32 %v4356_v13, %v15550_v0 }
 0x5ab   :  { %v4125_v25 = vpop.f32.mrf.mxu1  ;;  %v4067_v15 = vpop.f32.mrf.mxu3 }
 0x5ac   :  { %v4097_v44 = vadd.f32 %v4096_v57, %v4067_v15 }
 0x5ad   :  { %v4154_v58 = vpop.f32.mrf.mxu2 }
 0x5ae   :  { %v4126_v17 = vadd.f32 %v4125_v25, %v4097_v44 }
 0x5b0   :  { %v4155_v53 = vadd.f32 %v4154_v58, %v4126_v17 }
 0x5b1   :  { %v4098_v29 = vpop.f32.mrf.mxu0 }
 0x5b2   :  { %v4358_v46 = vadd.f32 %v4357_v40, %v4155_v53 }
 0x5b3   :  { %v4127_v18 = vpop.f32.mrf.mxu1  ;;  %v4069_v2 = vpop.f32.mrf.mxu3 }
 0x5b4   :  { %v4099_v9 = vadd.f32 %v4098_v29, %v4069_v2 }
 0x5b5   :  { %v4156_v50 = vpop.f32.mrf.mxu2 }
 0x5b6   :  { %v4128_v47 = vadd.f32 %v4127_v18, %v4099_v9 }
 0x5b8   :  { %v15555_v11 = vadd.f32 %v4156_v50, %v4128_v47  ;;  %v4453_v47 = vmul.f32 %v15360_v7, %v15360_v7  ;;  %v4461_v50 = vmul.f32 %v15363_v16, %v15363_v16  ;;  %v4456_v16 = vmul.f32 %v15531_v33, %v15531_v33 }
 0x5b9   :  { %v4471_v33 = vmul.f32 %v15483_v54, %v15483_v54 }
 0x5ba   :  { %v4359_v27 = vadd.f32 %v4358_v46, %v15555_v11 }
 0x5bc   :  { %v15553_v36 = vpop.f32.mrf.mxu0  ;;  %v4360_v24 = vrot.slane %v4359_v27, 4 }
 0x5be   :  { %v15558_v8 = vpop.f32.mrf.mxu1  ;;  %v4361_v5 = vadd.f32 %v4360_v24, %v4359_v27  ;;  %v4454_v24 = vmul.f32 %v15421_v12, %v15421_v12 }
 0x5bf   :  { %v15560_v6 = vpop.f32.mrf.mxu3 }
 0x5c0   :  { %v15562_v13 = vpop.f32.mrf.mxu2  ;;  %v4362_v45 = vrot.slane %v4361_v5, 2 }
 0x5c2   :  { %v4363_v51 = vadd.f32 %v4362_v45, %v4361_v5  ;;  %v15606_v5 = vsub.f32 %v15500_v21, %v15527_v62 }
 0x5c4   :  { %v15564_v34 = vpop.f32.mrf.mxu0  ;;  %v4364_v25 = vrot.slane %v4363_v51, 1  ;;  %17428 = vst [vmem:[#allocation72_spill] sm:$0xff] %v15606_v5  ;;  %v4464_v21 = vmul.f32 %v15606_v5, %v15606_v5 }
 0x5c6   :  { %v15566_v57 = vpop.f32.mrf.mxu1  ;;  %v4365_v15 = vadd.f32 %v4364_v25, %v4363_v51  ;;  %v4469_v51 = vmul.f32 %v15366_v28, %v15366_v28  ;;  %v4455_v25 = vmul.f32 %v15477_v42, %v15477_v42  ;;  %v4477_v42 = vmul.f32 %v15369_v26, %v15369_v26 }
 0x5c7   :  { %v4170_v37 = vpop.f32.mrf.mxu3  ;;  %v4580_v7 = vadd.f32 %v4464_v21, %v4456_v16  ;;  %v4485_v26 = vmul.f32 %v15372_v1, %v15372_v1  ;;  %v4472_v16 = vmul.f32 %v15535_v52, %v15535_v52 }
 0x5c8   :  { %v15568_v44 = vpop.f32.mrf.mxu2  ;;  %v15573_v58 = vmul.f32 %v4365_v15, %v14436_v20  ;;  %v4463_v15 = vmul.f32 %v15480_v38, %v15480_v38 }
 0x5c9   :  { %v4581_v54 = vadd.f32 %v4580_v7, %v4472_v16 }
 0x5ca   :  { %v15577_v29 = vsub.f32 %v15524_v19, %v15573_v58  ;;  %v15580_v40 = vsub.f32 %v4145_v60, %v15573_v58  ;;  %v15585_v18 = vsub.f32 %v4150_v63, %v15573_v58  ;;  %v15588_v2 = vsub.f32 %v4155_v53, %v15573_v58 }
 0x5cb   :  { %v4541_v60 = vadd.f32 %v4461_v50, %v4453_v47  ;;  %v4462_v63 = vmul.f32 %v15424_v32, %v15424_v32  ;;  %v15622_v28 = vsub.f32 %v15543_v3, %v15573_v58 }
 0x5cc   :  { %v15570_v17 = vpop.f32.mrf.mxu0  ;;  %17425 = vst [vmem:[#allocation69_spill] sm:$0xff] %v15577_v29  ;;  %v4457_v5 = vmul.f32 %v15577_v29, %v15577_v29 }
 0x5cd   :  { %17426 = vst [vmem:[#allocation70_spill] sm:$0xff] %v15580_v40  ;;  %v4542_v47 = vadd.f32 %v4541_v60, %v4469_v51  ;;  %v4554_v50 = vadd.f32 %v4462_v63, %v4454_v24  ;;  %v4470_v60 = vmul.f32 %v15427_v22, %v15427_v22  ;;  %v4567_v24 = vadd.f32 %v4463_v15, %v4455_v25 }
 0x5ce   :  { %v15582_v46 = vpop.f32.mrf.mxu1  ;;  %17427 = vst [vmem:[#allocation71_spill] sm:$0xff] %v15588_v2  ;;  %v4465_v3 = vmul.f32 %v15622_v28, %v15622_v28  ;;  %v15642_v15 = vsub.f32 %v15510_v30, %v15527_v62  ;;  %v4486_v30 = vmul.f32 %v15433_v55, %v15433_v55 }
 0x5cf   :  { %v4173_v9 = vpop.f32.mrf.mxu3  ;;  %17429 = vst [vmem:[#allocation73_spill] sm:$0xff] %v15622_v28  ;;  %v4543_v63 = vadd.f32 %v4542_v47, %v4477_v42  ;;  %v4555_v51 = vadd.f32 %v4554_v50, %v4470_v60  ;;  %v4478_v42 = vmul.f32 %v15430_v48, %v15430_v48  ;;  %v4568_v25 = vadd.f32 %v4567_v24, %v4471_v33 }
 0x5d0   :  { %v15594_v19 = vpop.f32.mrf.mxu2  ;;  %17430 = vst [vmem:[#allocation74_spill] sm:$0xff] %v15642_v15  ;;  %v4479_v60 = vmul.f32 %v15486_v61, %v15486_v61  ;;  %v4593_v28 = vadd.f32 %v4465_v3, %v4457_v5  ;;  %v4493_v33 = vmul.f32 %v15375_v23, %v15375_v23  ;;  %v4480_v52 = vmul.f32 %v15642_v15, %v15642_v15 }
 0x5d1   :  { %v4544_v47 = vadd.f32 %v4543_v63, %v4485_v26  ;;  %v4556_v21 = vadd.f32 %v4555_v51, %v4478_v42  ;;  %v15658_v26 = vsub.f32 %v15547_v10, %v15573_v58  ;;  %v4473_v63 = vmul.f32 %v15580_v40, %v15580_v40 }
 0x5d2   :  { %v4569_v24 = vadd.f32 %v4568_v25, %v4479_v60  ;;  %v4200_v5 = vadd.f32 %v15564_v34, %v4170_v37  ;;  %v4487_v42 = vmul.f32 %v15489_v56, %v15489_v56  ;;  %v4582_v16 = vadd.f32 %v4581_v54, %v4480_v52  ;;  %v17432_v52 = vld [vmem:[#allocation57_spill] sm:$0xff] }
 0x5d3   :  { %17431 = vst [vmem:[#allocation75_spill] sm:$0xff] %v15658_v26  ;;  %v4545_v7 = vadd.f32 %v4544_v47, %v4493_v33  ;;  %v4557_v3 = vadd.f32 %v4556_v21, %v4486_v30  ;;  %v4594_v25 = vadd.f32 %v4593_v28, %v4473_v63  ;;  %v4501_v15 = vmul.f32 %v15378_v4, %v15378_v4  ;;  %v17433_v63 = vld [vmem:[#allocation60_spill] sm:$0xff] }
 0x5d4   :  { %v15596_v27 = vpop.f32.mrf.mxu0  ;;  %v4494_v10 = vmul.f32 %v15436_v35, %v15436_v35  ;;  %v4198_v40 = vadd.f32 %v15553_v36, %v15560_v6  ;;  %v4203_v47 = vadd.f32 %v15570_v17, %v4173_v9  ;;  %v4570_v34 = vadd.f32 %v4569_v24, %v4487_v42 }
 0x5d5   :  { %v15674_v37 = vsub.f32 %v15517_v14, %v15527_v62  ;;  %v4488_v28 = vmul.f32 %v15538_v41, %v15538_v41  ;;  %v4481_v54 = vmul.f32 %v15658_v26, %v15658_v26  ;;  %v4509_v21 = vmul.f32 %v17432_v52, %v17432_v52 }
 0x5d6   :  { %v15602_v53 = vpop.f32.mrf.mxu1  ;;  %v4546_v33 = vadd.f32 %v4545_v7, %v4501_v15  ;;  %v4229_v30 = vadd.f32 %v15566_v57, %v4200_v5  ;;  %v4558_v17 = vadd.f32 %v4557_v3, %v4494_v10  ;;  %v4495_v14 = vmul.f32 %v15492_v31, %v15492_v31 }
 0x5d7   :  { %v4175_v45 = vpop.f32.mrf.mxu3  ;;  %v4583_v9 = vadd.f32 %v4582_v16, %v4488_v28  ;;  %v4595_v24 = vadd.f32 %v4594_v25, %v4481_v54  ;;  %v4502_v42 = vmul.f32 %v17433_v63, %v17433_v63  ;;  %v4227_v41 = vadd.f32 %v15558_v8, %v4198_v40  ;;  %v17434_v54 = vld [vmem:[#allocation61_spill] sm:$0xff] }
 0x5d8   :  { %v15614_v12 = vpop.f32.mrf.mxu2  ;;  %v4205_v36 = vadd.f32 %v15596_v27, %v4175_v45  ;;  %v4232_v56 = vadd.f32 %v15582_v46, %v4203_v47  ;;  %v4571_v15 = vadd.f32 %v4570_v34, %v4495_v14  ;;  %v4496_v57 = vmul.f32 %v15674_v37, %v15674_v37 }
 0x5d9   :  { %v15694_v27 = vsub.f32 %v15550_v0, %v15573_v58  ;;  %v4489_v45 = vmul.f32 %v15585_v18, %v15585_v18  ;;  %v4547_v5 = vadd.f32 %v4546_v33, %v4509_v21  ;;  %v15699_v3 = vadd.f32 %v15568_v44, %v4229_v30 }
 0x5da   :  { %v4234_v8 = vadd.f32 %v15602_v53, %v4205_v36  ;;  %v4584_v46 = vadd.f32 %v4583_v9, %v4496_v57  ;;  %v15705_v10 = vadd.f32 %v15562_v13, %v4227_v41  ;;  %v15708_v47 = vadd.f32 %v15594_v19, %v4232_v56 }
 0x5db   :  { %v4596_v16 = vadd.f32 %v4595_v24, %v4489_v45  ;;  %v4504_v53 = vmul.f32 %v15541_v49, %v15541_v49  ;;  %v4510_v41 = vmul.f32 %v17434_v54, %v17434_v54  ;;  %v4548_v9 = vrot.slane %v4547_v5, 4 }
 0x5dc   :  { %v4207_v32 = vpop.f32.mrf.mxu0  ;;  %v4366_v56 = vadd.f32 %v15699_v3, %v15705_v10 }
 0x5de   :  { %v15628_v38 = vpop.f32.mrf.mxu1  ;;  %v4367_v33 = vadd.f32 %v4366_v56, %v15708_v47 }
 0x5df   :  { %v4178_v20 = vpop.f32.mrf.mxu3 }
 0x5e0   :  { %v15646_v50 = vpop.f32.mrf.mxu2  ;;  %v4208_v26 = vadd.f32 %v4207_v32, %v4178_v20  ;;  %v4559_v20 = vadd.f32 %v4558_v17, %v4502_v42  ;;  %v4503_v32 = vmul.f32 %v15494_v43, %v15494_v43 }
 0x5e2   :  { %v4237_v44 = vadd.f32 %v15628_v38, %v4208_v26  ;;  %v4572_v28 = vadd.f32 %v4571_v15, %v4503_v32  ;;  %v15724_v38 = vadd.f32 %v15614_v12, %v4234_v8  ;;  %v4560_v21 = vadd.f32 %v4559_v20, %v4510_v41 }
 0x5e3   :  { %v15736_v12 = vsub.f32 %v15555_v11, %v15573_v58 }
 0x5e4   :  { %v4209_v29 = vpop.f32.mrf.mxu0  ;;  %v15730_v30 = vadd.f32 %v15646_v50, %v4237_v44  ;;  %v4368_v24 = vadd.f32 %v4367_v33, %v15724_v38 }
 0x5e5   :  { %17435 = vst [vmem:[#allocation57_spill] sm:$0xff] %v15736_v12  ;;  %v4513_v58 = vmul.f32 %v15736_v12, %v15736_v12 }
 0x5e6   :  { %v4238_v51 = vpop.f32.mrf.mxu1  ;;  %v4369_v8 = vadd.f32 %v4368_v24, %v15730_v30 }
 0x5e7   :  { %v4180_v60 = vpop.f32.mrf.mxu3 }
 0x5e8   :  { %v4267_v6 = vpop.f32.mrf.mxu2  ;;  %v4210_v40 = vadd.f32 %v4209_v29, %v4180_v60  ;;  %v15713_v29 = vsub.f32 %v15521_v59, %v15527_v62  ;;  %v4497_v60 = vmul.f32 %v15694_v27, %v15694_v27  ;;  %v4511_v59 = vmul.f32 %v15496_v39, %v15496_v39 }
 0x5e9   :  { %v4585_v62 = vadd.f32 %v4584_v46, %v4504_v53  ;;  %v4549_v46 = vadd.f32 %v4548_v9, %v4547_v5 }
 0x5ea   :  { %v4239_v13 = vadd.f32 %v4238_v51, %v4210_v40  ;;  %v4597_v26 = vadd.f32 %v4596_v16, %v4497_v60  ;;  %v4573_v17 = vadd.f32 %v4572_v28, %v4511_v59  ;;  %v4512_v14 = vmul.f32 %v15713_v29, %v15713_v29 }
 0x5eb   :  { %v4505_v51 = vmul.f32 %v15588_v2, %v15588_v2  ;;  %v4550_v41 = vrot.slane %v4549_v46, 2 }
 0x5ec   :  { %v4212_v7 = vpop.f32.mrf.mxu0  ;;  %v15741_v42 = vadd.f32 %v4267_v6, %v4239_v13  ;;  %v4586_v15 = vadd.f32 %v4585_v62, %v4512_v14  ;;  %v4574_v11 = vrot.slane %v4573_v17, 4 }
 0x5ed   :  { %v4598_v50 = vadd.f32 %v4597_v26, %v4505_v51  ;;  %v4551_v33 = vadd.f32 %v4550_v41, %v4549_v46 }
 0x5ee   :  { %v4241_v25 = vpop.f32.mrf.mxu1  ;;  %v4370_v16 = vadd.f32 %v4369_v8, %v15741_v42  ;;  %v4575_v60 = vadd.f32 %v4574_v11, %v4573_v17 }
 0x5ef   :  { %v4183_v0 = vpop.f32.mrf.mxu3 }
 0x5f0   :  { %v4213_v34 = vadd.f32 %v4212_v7, %v4183_v0  ;;  %v4270_v19 = vpop.f32.mrf.mxu2  ;;  %v4561_v7 = vrot.slane %v4560_v21, 4  ;;  %v4599_v0 = vadd.f32 %v4598_v50, %v4513_v58  ;;  %v4576_v26 = vrot.slane %v4575_v60, 2 }
 0x5f1   :  { %v4552_v50 = vrot.slane %v4551_v33, 1 }
 0x5f2   :  { %v4242_v36 = vadd.f32 %v4241_v25, %v4213_v34  ;;  %v4587_v25 = vrot.slane %v4586_v15, 4  ;;  %v4562_v34 = vadd.f32 %v4561_v7, %v4560_v21  ;;  %v4577_v24 = vadd.f32 %v4576_v26, %v4575_v60 }
 0x5f4   :  { %v4214_v57 = vpop.f32.mrf.mxu0  ;;  %v15744_v40 = vadd.f32 %v4270_v19, %v4242_v36  ;;  %v4588_v13 = vadd.f32 %v4587_v25, %v4586_v15  ;;  %v4600_v19 = vrot.slane %v4599_v0, 4  ;;  %v4563_v59 = vrot.slane %v4562_v34, 2 }
 0x5f5   :  { %v4578_v8 = vrot.slane %v4577_v24, 1 }
 0x5f6   :  { %v4243_v32 = vpop.f32.mrf.mxu1  ;;  %v4371_v28 = vadd.f32 %v4370_v16, %v15744_v40  ;;  %v4589_v36 = vrot.slane %v4588_v13, 2  ;;  %v4601_v14 = vadd.f32 %v4600_v19, %v4599_v0  ;;  %v4564_v51 = vadd.f32 %v4563_v59, %v4562_v34  ;;  %v17436_v16 = vld [vmem:[#allocation35_spill] sm:$0xff] }
 0x5f7   :  { %v4185_v45 = vpop.f32.mrf.mxu3 }
 0x5f8   :  { %v4215_v20 = vadd.f32 %v4214_v57, %v4185_v45  ;;  %v4272_v44 = vpop.f32.mrf.mxu2  ;;  %v4590_v57 = vadd.f32 %v4589_v36, %v4588_v13  ;;  %v4602_v45 = vrot.slane %v4601_v14, 2  ;;  %v4565_v7 = vrot.slane %v4564_v51, 1 }
 0x5fa   :  { %v4244_v6 = vadd.f32 %v4243_v32, %v4215_v20  ;;  %v4553_v20 = vadd.f32 %v4552_v50, %v4551_v33  ;;  %v4591_v11 = vrot.slane %v4590_v57, 1  ;;  %v4603_v58 = vadd.f32 %v4602_v45, %v4601_v14 }
 0x5fb   :  { %v4566_v32 = vadd.f32 %v4565_v7, %v4564_v51 }
 0x5fc   :  { %v4273_v53 = vadd.f32 %v4272_v44, %v4244_v6  ;;  %v4579_v6 = vadd.f32 %v4578_v8, %v4577_v24  ;;  %v4621_v25 = vmul.f32 %v4553_v20, %v17436_v16  ;;  %v4604_v60 = vrot.slane %v4603_v58, 1 }
 0x5fd   :  { %v4622_v41 = vmul.f32 %v4566_v32, %v17436_v16 }
 0x5fe   :  { %v4372_v56 = vadd.f32 %v4371_v28, %v4273_v53  ;;  %v4592_v28 = vadd.f32 %v4591_v11, %v4590_v57  ;;  %v4623_v19 = vmul.f32 %v4579_v6, %v17436_v16  ;;  %v4605_v26 = vadd.f32 %v4604_v60, %v4603_v58 }
 0x5ff   :  { %v15778_v33 = vadd.f32 0.8, %v4622_v41 }
 0x600   :  { %v4373_v62 = vrot.slane %v4372_v56, 4  ;;  %v15785_v51 = vadd.f32 0.8, %v4623_v19 }
 0x601   :  { %vm4672_vm2 = vweird.f32 %v15778_v33 }
 0x602   :  { %v4374_v5 = vadd.f32 %v4373_v62, %v4372_v56  ;;  %vm4682_vm5 = vweird.f32 %v15785_v51 }
 0x604   :  { %v4375_v9 = vrot.slane %v4374_v5, 2 }
 0x606   :  { %v4376_v21 = vadd.f32 %v4375_v9, %v4374_v5 }
 0x608   :  { %v4377_v17 = vrot.slane %v4376_v21, 1 }
 0x60a   :  { %v4378_v15 = vadd.f32 %v4377_v17, %v4376_v21 }
 0x60c   :  { %v4386_v46 = vmul.f32 %v4378_v15, %v17436_v16 }
 0x60e   :  { %v15753_v0 = vsub.f32 %v15705_v10, %v4386_v46  ;;  %v15756_v44 = vsub.f32 %v15699_v3, %v4386_v46  ;;  %v15759_v34 = vsub.f32 %v15708_v47, %v4386_v46  ;;  %v15763_v56 = vsub.f32 %v15724_v38, %v4386_v46 }
 0x60f   :  { %v15770_v3 = vadd.f32 0.8, %v4621_v25  ;;  %v15773_v47 = vsub.f32 %v15730_v30, %v4386_v46  ;;  %v4624_v38 = vmul.f32 %v4592_v28, %v17436_v16  ;;  %v15781_v5 = vsub.f32 %v15741_v42, %v4386_v46 }
 0x610   :  { %v4458_v13 = vmul.f32 %v15753_v0, %v15753_v0  ;;  %v4466_v10 = vmul.f32 %v15756_v44, %v15756_v44  ;;  %v4474_v59 = vmul.f32 %v15759_v34, %v15759_v34  ;;  %v4482_v36 = vmul.f32 %v15763_v56, %v15763_v56 }
 0x611   :  { %13756 = vrsqrt.f32 %v15770_v3  ;;  %v15789_v30 = vsub.f32 %v15744_v40, %v4386_v46  ;;  %v4490_v9 = vmul.f32 %v15773_v47, %v15773_v47  ;;  %v15793_v50 = vadd.f32 0.8, %v4624_v38 }
 0x612   :  { %v4606_v62 = vadd.f32 %v4466_v10, %v4458_v13  ;;  %v4625_v42 = vmul.f32 %v4605_v26, %v17436_v16  ;;  %13758 = vrsqrt.f32 %v15778_v33  ;;  %v15797_v21 = vsub.f32 %v4273_v53, %v4386_v46 }
 0x613   :  { %v4498_v57 = vmul.f32 %v15781_v5, %v15781_v5  ;;  %13760 = vrsqrt.f32 %v15785_v51  ;;  %v4506_v40 = vmul.f32 %v15789_v30, %v15789_v30  ;;  %vm4662_vm0 = vweird.f32 %v15770_v3 }
 0x614   :  { %v4607_v14 = vadd.f32 %v4606_v62, %v4474_v59  ;;  %13762 = vrsqrt.f32 %v15793_v50  ;;  %v15805_v17 = vadd.f32 0.8, %v4625_v42  ;;  %v4514_v53 = vmul.f32 %v15797_v21, %v15797_v21 }
 0x615   :  { %vm4692_vm8 = vweird.f32 %v15793_v50 }
 0x616   :  { %v4608_v24 = vadd.f32 %v4607_v14, %v4482_v36  ;;  %13764 = vrsqrt.f32 %v15805_v17 }
 0x617   :  { %v15807_v8 = vpop.eup %13756 }
 0x618   :  { %v4609_v45 = vadd.f32 %v4608_v24, %v4490_v9  ;;  %v15811_v15 = vpop.eup %13758  ;;  %v4657_v32 = vmul.f32 %v15807_v8, %v15770_v3  ;;  %vm4663_vm14 = vweird.f32 %v15807_v8 }
 0x619   :  { %v15813_v58 = vpop.eup %13760  ;;  %v4667_v25 = vmul.f32 %v15811_v15, %v15778_v33  ;;  %vm4673_vm12 = vweird.f32 %v15811_v15  ;;  %vm15842_vm1 = vmor %vm4662_vm0, %vm4663_vm14  ;;  %vm4702_vm14 = vweird.f32 %v15805_v17 }
 0x61a   :  { %v4610_v7 = vadd.f32 %v4609_v45, %v4498_v57  ;;  %v15818_v6 = vpop.eup %13762  ;;  %v4677_v28 = vmul.f32 %v15813_v58, %v15785_v51  ;;  %v4658_v41 = vmul.f32 %v15807_v8, %v4657_v32  ;;  %vm15849_vm3 = vmor %vm4672_vm2, %vm4673_vm12  ;;  %vm4683_vm4 = vweird.f32 %v15813_v58 }
 0x61b   :  { %v4687_v13 = vmul.f32 %v15818_v6, %v15793_v50  ;;  %v4668_v59 = vmul.f32 %v15811_v15, %v4667_v25  ;;  %vm4693_vm6 = vweird.f32 %v15818_v6  ;;  %vm15860_vm7 = vmor %vm4682_vm5, %vm4683_vm4  ;;  %vm4738_vm4 = vcmask 1045508  }
 0x61c   :  { %v4611_v20 = vadd.f32 %v4610_v7, %v4506_v40  ;;  %v15827_v19 = vpop.eup %13764  ;;  %v4678_v62 = vmul.f32 %v15813_v58, %v4677_v28  ;;  %v4659_v26 = vmul.f32 0.5, %v4658_v41  ;;  %vm15876_vm9 = vmor %vm4692_vm8, %vm4693_vm6  ;;  %vm4740_vm5 = vcmask 1043456  }
 0x61d   :  { %v4688_v36 = vmul.f32 %v15818_v6, %v4687_v13  ;;  %v4697_v14 = vmul.f32 %v15827_v19, %v15805_v17  ;;  %v4669_v24 = vmul.f32 0.5, %v4668_v59  ;;  %v11299_v13 = vld [vmem:[#allocation22 + $0x188] sm:$0xf]  ;;  %vm4703_vm10 = vweird.f32 %v15827_v19 }
 0x61e   :  { %v4612_v11 = vadd.f32 %v4611_v20, %v4514_v53  ;;  %v4679_v42 = vmul.f32 0.5, %v4678_v62  ;;  %v4660_v45 = vsub.f32 1.5, %v4659_v26  ;;  %v11523_v59 = vld [vmem:[#allocation22 + $0x348] sm:$0xf]  ;;  %vm15893_vm12 = vmor %vm4702_vm14, %vm4703_vm10 }
 0x61f   :  { %v4689_v40 = vmul.f32 0.5, %v4688_v36  ;;  %v4698_v7 = vmul.f32 %v15827_v19, %v4697_v14  ;;  %v4670_v20 = vsub.f32 1.5, %v4669_v24  ;;  %v11971_v26 = vld [vmem:[#allocation22 + $0x6c8] sm:$0xf]  ;;  %v13457_v36 = vld [vmem:[#allocation22 + $0x6e0] sm:$0xf0] }
 0x620   :  { %v4613_v46 = vrot.slane %v4612_v11, 4  ;;  %v13268_v14 = vld [vmem:[#allocation22 + $0xf8] sm:$0xf0]  ;;  %v11187_v17 = vld [vmem:[#allocation22 + $0xa8] sm:$0xf] }
 0x621   :  { %v4690_v28 = vsub.f32 1.5, %v4689_v40  ;;  %v13401_v40 = vld [vmem:[#allocation22 + $0x520] sm:$0xf0] }
 0x622   :  { %v4614_v60 = vadd.f32 %v4613_v46, %v4612_v11  ;;  %v4680_v11 = vsub.f32 1.5, %v4679_v42  ;;  %v4661_v46 = vmul.f32 %v15807_v8, %v4660_v45  ;;  %v11747_v45 = vld [vmem:[#allocation22 + $0x508] sm:$0xf] }
 0x624   :  { %v4615_v10 = vrot.slane %v4614_v60, 2  ;;  %v4681_v3 = vmul.f32 %v15813_v58, %v4680_v11  ;;  %v4665_v33 = vsel %vm15842_vm1, %v15807_v8, %v4661_v46  ;;  %v11271_v8 = vld [vmem:[#allocation22 + $0x150] sm:$0xf] }
 0x626   :  { %v4616_v38 = vadd.f32 %v4615_v10, %v4614_v60  ;;  %v4671_v60 = vmul.f32 %v15811_v15, %v4670_v20  ;;  %v13289_v10 = vld [vmem:[#allocation22 + $0x1a0] sm:$0xf0]  ;;  %v11748_v20 = vor.u32 %v13401_v40, %v11747_v45  ;;  %v4685_v46 = vsel %vm15860_vm7, %v15813_v58, %v4681_v3  ;;  %v11467_v58 = vld [vmem:[#allocation22 + $0x2d8] sm:$0xf]  ;;  %v13331_v3 = vld [vmem:[#allocation22 + $0x2f0] sm:$0xf0] }
 0x627   :  { %v11300_v62 = vor.u32 %v13289_v10, %v11299_v13  ;;  %v13275_v13 = vld [vmem:[#allocation22 + $0x130] sm:$0xf0]  ;;  %v13324_v45 = vld [vmem:[#allocation22 + $0x2b8] sm:$0xf0] }
 0x628   :  { %v4617_v9 = vrot.slane %v4616_v38, 1  ;;  %v4675_v51 = vsel %vm15849_vm3, %v15811_v15, %v4671_v60  ;;  %v4725_v15 = vrot.slane %v4665_v33, 6  ;;  %8021 = vmatpush.bf16.msrb.mxu1 %v11748_v20  ;;  %v13387_v60 = vld [vmem:[#allocation22 + $0x4b0] sm:$0xf0]  ;;  %vm4736_vm3 = vcmask 1046534  }
 0x629   :  { %7963 = vmatpush.bf16.msrb.mxu3 %v11300_v62  ;;  %v4726_v50 = vrot.slane %v4675_v51, 5  ;;  %v15887_v62 = vrot.slane %v4685_v46, 4  ;;  %v13394_v51 = vld [vmem:[#allocation22 + $0x4e8] sm:$0xf0] }
 0x62a   :  { %v4618_v57 = vadd.f32 %v4617_v9, %v4616_v38  ;;  %v13345_v38 = vld [vmem:[#allocation22 + $0x360] sm:$0xf0]  ;;  %v4691_v9 = vmul.f32 %v15818_v6, %v4690_v28  ;;  %v13338_v28 = vld [vmem:[#allocation22 + $0x328] sm:$0xf0] }
 0x62b   :  { %v11524_v42 = vor.u32 %v13345_v38, %v11523_v59  ;;  %v13450_v46 = vld [vmem:[#allocation22 + $0x6a8] sm:$0xf0] }
 0x62c   :  { %v4626_v53 = vmul.f32 %v4618_v57, %v17436_v16  ;;  %v4699_v16 = vmul.f32 0.5, %v4698_v7  ;;  %v11972_v57 = vor.u32 %v13457_v36, %v11971_v26  ;;  %v13282_v7 = vld [vmem:[#allocation22 + $0x168] sm:$0xf0]  ;;  %v4695_v59 = vsel %vm15876_vm9, %v15818_v6, %v4691_v9  ;;  %v11215_v36 = vld [vmem:[#allocation22 + $0xe0] sm:$0xf] }
 0x62d   :  { %7992 = vmatpush.bf16.msrb.mxu0 %v11524_v42  ;;  %v11272_v25 = vor.u32 %v13282_v7, %v11271_v8  ;;  %v11468_v42 = vor.u32 %v13331_v3, %v11467_v58  ;;  %v11719_v6 = vld [vmem:[#allocation22 + $0x4d0] sm:$0xf]  ;;  %v4728_v9 = vrot.slane %v4695_v59, 3  ;;  %v11915_v3 = vld [vmem:[#allocation22 + $0x658] sm:$0xf] }
 0x62e   :  { %v15838_v32 = vadd.f32 0.8, %v4626_v53  ;;  %v4700_v24 = vsub.f32 1.5, %v4699_v16  ;;  %v11495_v53 = vld [vmem:[#allocation22 + $0x310] sm:$0xf]  ;;  %8050 = vmatpush.bf16.msrb.mxu2 %v11972_v57  ;;  %v11720_v20 = vor.u32 %v13394_v51, %v11719_v6  ;;  %v15907_v51 = vld [vmem:[#allocation20] sm:$0xff] }
 0x62f   :  { %v11243_v16 = vld [vmem:[#allocation22 + $0x118] sm:$0xf]  ;;  %v11496_v10 = vor.u32 %v13338_v28, %v11495_v53  ;;  %7964 = vmatpush.bf16.msrb.mxu3 %v11272_v25  ;;  %v11439_v57 = vld [vmem:[#allocation22 + $0x2a0] sm:$0xf]  ;;  %v11943_v8 = vld [vmem:[#allocation22 + $0x690] sm:$0xf]  ;;  %v11216_v28 = vor.u32 %v13268_v14, %v11215_v36  ;;  %v4732_v36 = vsel %vm1610_vm13, %v4725_v15, %v4726_v50 }
 0x630   :  { %13766 = vrsqrt.f32 %v15838_v32  ;;  %v4701_v33 = vmul.f32 %v15827_v19, %v4700_v24  ;;  %v11244_v26 = vor.u32 %v13275_v13, %v11243_v16  ;;  %v13261_v53 = vld [vmem:[#allocation22 + $0xc0] sm:$0xf0]  ;;  %v11944_v16 = vor.u32 %v13450_v46, %v11943_v8  ;;  %v11691_v13 = vld [vmem:[#allocation22 + $0x498] sm:$0xf]  ;;  %8022 = vmatpush.bf16.msrb.mxu1 %v11720_v20  ;;  %v13443_v59 = vld [vmem:[#allocation22 + $0x670] sm:$0xf0] }
 0x631   :  { %7993 = vmatpush.bf16.msrb.mxu0 %v11496_v10  ;;  %v11411_v10 = vld [vmem:[#allocation22 + $0x268] sm:$0xf]  ;;  %v11692_v58 = vor.u32 %v13387_v60, %v11691_v13  ;;  %vm4712_vm1 = vweird.f32 %v15838_v32  ;;  %v11663_v6 = vld [vmem:[#allocation22 + $0x460] sm:$0xf]  ;;  %v11159_v24 = vld [vmem:[#allocation22 + $0x70] sm:$0xf] }
 0x632   :  { %v4705_v7 = vsel %vm15893_vm12, %v15827_v19, %v4701_v33  ;;  %v13317_v33 = vld [vmem:[#allocation22 + $0x280] sm:$0xf0]  ;;  %8051 = vmatpush.bf16.msrb.mxu2 %v11944_v16  ;;  %v13254_v15 = vld [vmem:[#allocation22 + $0x88] sm:$0xf0]  ;;  %v11383_v50 = vld [vmem:[#allocation22 + $0x230] sm:$0xf] }
 0x633   :  { %7965 = vmatpush.bf16.msrb.mxu3 %v11244_v26  ;;  %v13380_v26 = vld [vmem:[#allocation22 + $0x478] sm:$0xf0]  ;;  %v4729_v14 = vrot.slane %v4705_v7, 2  ;;  %v11412_v8 = vor.u32 %v13317_v33, %v11411_v10  ;;  %v13310_v20 = vld [vmem:[#allocation22 + $0x248] sm:$0xf0]  ;;  %v15919_v33 = vperm.slane %v15907_v51, 0 }
 0x634   :  { %8023 = vmatpush.bf16.msrb.mxu1 %v11692_v58  ;;  %v11664_v7 = vor.u32 %v13380_v26, %v11663_v6  ;;  %v13373_v16 = vld [vmem:[#allocation22 + $0x440] sm:$0xf0]  ;;  %v11859_v60 = vld [vmem:[#allocation22 + $0x5e8] sm:$0xf]  ;;  %v15916_v58 = vperm.slane %v15907_v51, 7 }
 0x635   :  { %7994 = vmatpush.bf16.msrb.mxu0 %v11468_v42  ;;  %v11887_v42 = vld [vmem:[#allocation22 + $0x620] sm:$0xf]  ;;  %v11355_v6 = vld [vmem:[#allocation22 + $0x1f8] sm:$0xf]  ;;  %v13303_v26 = vld [vmem:[#allocation22 + $0x210] sm:$0xf0] }
 0x636   :  { %v15868_v11 = vpop.eup %13766 }
 0x637   :  { %v4707_v41 = vmul.f32 %v15868_v11, %v15838_v32  ;;  %vm4713_vm0 = vweird.f32 %v15868_v11  ;;  %7966 = vmatpush.bf16.msrb.mxu3 %v11216_v28  ;;  %v11188_v32 = vor.u32 %v13261_v53, %v11187_v17  ;;  %v4735_v17 = vsel %vm4734_vm11, %v15887_v62, %v4728_v9  ;;  %v4627_v53 = vld [vmem:[#allocation19] sm:$0xff] }
 0x638   :  { %vm4714_vm2 = vmor %vm4712_vm1, %vm4713_vm0  ;;  %v11384_v62 = vor.u32 %v13310_v20, %v11383_v50  ;;  %8024 = vmatpush.bf16.msrb.mxu1 %v11664_v7  ;;  %v11356_v50 = vor.u32 %v13303_v26, %v11355_v6  ;;  %v13359_v7 = vld [vmem:[#allocation22 + $0x3d0] sm:$0xf0]  ;;  %v11803_v20 = vld [vmem:[#allocation22 + $0x578] sm:$0xf] }
 0x639   :  { %v4708_v38 = vmul.f32 %v15868_v11, %v4707_v41  ;;  %v11440_v41 = vor.u32 %v13324_v45, %v11439_v57  ;;  %v13436_v57 = vld [vmem:[#allocation22 + $0x638] sm:$0xf0]  ;;  %v11551_v6 = vld [vmem:[#allocation22 + $0x380] sm:$0xf] }
 0x63a   :  { %v11888_v46 = vor.u32 %v13436_v57, %v11887_v42  ;;  %v13366_v57 = vld [vmem:[#allocation22 + $0x408] sm:$0xf0] }
 0x63b   :  { %v4709_v40 = vmul.f32 0.5, %v4708_v38  ;;  %v11916_v38 = vor.u32 %v13443_v59, %v11915_v3  ;;  %7995 = vmatpush.bf16.msrb.mxu0 %v11440_v41  ;;  %v13429_v41 = vld [vmem:[#allocation22 + $0x600] sm:$0xf0]  ;;  %7967 = vmatpush.bf16.msrb.mxu3 %v11188_v32  ;;  %v11160_v3 = vor.u32 %v13254_v15, %v11159_v24  ;;  %v11131_v59 = vld [vmem:[#allocation22 + $0x38] sm:$0xf] }
 0x63c   :  { %v11860_v42 = vor.u32 %v13429_v41, %v11859_v60  ;;  %v13422_v32 = vld [vmem:[#allocation22 + $0x5c8] sm:$0xf0]  ;;  %v11103_v24 = vld [vmem:[#allocation22] sm:$0xf]  ;;  %v15924_v15 = vld [vmem:[#allocation22 + $0x3b8] sm:$0xf] }
 0x63d   :  { %v4710_v25 = vsub.f32 1.5, %v4709_v40  ;;  %8052 = vmatpush.bf16.msrb.mxu2 %v11916_v38 }
 0x63f   :  { %v4711_v19 = vmul.f32 %v15868_v11, %v4710_v25  ;;  %v11635_v25 = vld [vmem:[#allocation22 + $0x428] sm:$0xf]  ;;  %7996 = vmatpush.bf16.msrb.mxu0 %v11412_v8  ;;  %7968 = vmatpush.bf16.msrb.mxu3 %v11160_v3 }
 0x640   :  { %v11636_v9 = vor.u32 %v13373_v16, %v11635_v25  ;;  %v15928_v25 = vperm.slane %v15907_v51, 1 }
 0x641   :  { %v4715_v45 = vsel %vm4714_vm2, %v15868_v11, %v4711_v19  ;;  %v17447_v11 = vld [vmem:[#allocation52_spill] sm:$0xff]  ;;  %8053 = vmatpush.bf16.msrb.mxu2 %v11888_v46 }
 0x642   :  { %v4730_v40 = vrot.slane %v4715_v45, 1  ;;  %v4733_v13 = vsel %vm1612_vm15, %v17447_v11, %v4732_v36  ;;  %v13247_v19 = vld [vmem:[#allocation22 + $0x50] sm:$0xf0]  ;;  %v11607_v36 = vld [vmem:[#allocation22 + $0x3f0] sm:$0xf]  ;;  %8025 = vmatpush.bf16.msrb.mxu1 %v11636_v9 }
 0x643   :  { %v11831_v45 = vld [vmem:[#allocation22 + $0x5b0] sm:$0xf]  ;;  %v11132_v8 = vor.u32 %v13247_v19, %v11131_v59  ;;  %7997 = vmatpush.bf16.msrb.mxu0 %v11384_v62  ;;  %v11608_v46 = vor.u32 %v13366_v57, %v11607_v36  ;;  %v13296_v59 = vld [vmem:[#allocation22 + $0x1d8] sm:$0xf0]  ;;  %v12195_v19 = vld [vmem:[#allocation22 + $0x888] sm:$0xf] }
 0x644   :  { %v4737_v28 = vsel %vm4736_vm3, %v4729_v14, %v4730_v40  ;;  %v13240_v40 = vld [vmem:[#allocation22 + $0x18] sm:$0xf0]  ;;  %v11832_v16 = vor.u32 %v13422_v32, %v11831_v45 }
 0x645   :  { %v4739_v10 = vsel %vm4738_vm4, %v4735_v17, %v4737_v28  ;;  %v11327_v17 = vld [vmem:[#allocation22 + $0x1c0] sm:$0xf]  ;;  %8054 = vmatpush.bf16.msrb.mxu2 %v11860_v42  ;;  %7969 = vmatpush.bf16.msrb.mxu3 %v11132_v8  ;;  %v13352_v36 = vld [vmem:[#allocation22 + $0x398] sm:$0xf0]  ;;  %v15966_v8 = vperm.slane %v15907_v51, 2 }
 0x646   :  { %v4741_v38 = vsel %vm4740_vm5, %v4733_v13, %v4739_v10  ;;  %v13415_v13 = vld [vmem:[#allocation22 + $0x590] sm:$0xf0]  ;;  %v11775_v42 = vld [vmem:[#allocation22 + $0x540] sm:$0xf]  ;;  %v13408_v57 = vld [vmem:[#allocation22 + $0x558] sm:$0xf0]  ;;  %8026 = vmatpush.bf16.msrb.mxu1 %v11608_v46 }
 0x647   :  { %v15922_v14 = vmul.f32 %v4741_v38, %v4627_v53  ;;  %v13513_v38 = vld [vmem:[#allocation22 + $0x8a0] sm:$0xf0]  ;;  %v11804_v26 = vor.u32 %v13415_v13, %v11803_v20  ;;  %7998 = vmatpush.bf16.msrb.mxu0 %v11356_v50  ;;  %v11776_v20 = vor.u32 %v13408_v57, %v11775_v42  ;;  %v15969_v50 = vperm.slane %v15907_v51, 3 }
 0x648   :  { %v12196_v32 = vor.u32 %v13513_v38, %v12195_v19  ;;  %v17451_v19 = vld [vmem:[#allocation45_spill] sm:$0xff] }
 0x649   :  { %v4752_v11 = vperm.slane %v15922_v14, 7  ;;  %v15931_v53 = vperm.slane %v15922_v14, 0  ;;  %v15934_v28 = vperm.slane %v15922_v14, 1  ;;  %8055 = vmatpush.bf16.msrb.mxu2 %v11832_v16  ;;  %v15973_v13 = vperm.slane %v15922_v14, 2 }
 0x64b   :  { %v15937_v60 = vmul.f32 %v4752_v11, %v15753_v0  ;;  %v15940_v41 = vmul.f32 %v4752_v11, %v15756_v44  ;;  %v15943_v10 = vmul.f32 %v4752_v11, %v15759_v34  ;;  %v15946_v3 = vmul.f32 %v4752_v11, %v15763_v56 }
 0x64c   :  { %v15949_v62 = vmul.f32 %v4752_v11, %v15773_v47  ;;  %v15952_v9 = vmul.f32 %v4752_v11, %v15781_v5  ;;  %v4816_v0 = vmul.f32 %v4752_v11, %v15789_v30  ;;  %v4824_v44 = vmul.f32 %v4752_v11, %v15797_v21  ;;  %v17448_v30 = vld [vmem:[#allocation36_spill] sm:$0xff]  ;;  %v17449_v11 = vld [vmem:[#allocation37_spill] sm:$0xff] }
 0x64d   :  { %v11104_v34 = vor.u32 %v13240_v40, %v11103_v24  ;;  %v11580_v56 = vor.u32 %v13359_v7, %v15924_v15  ;;  %v11328_v5 = vor.u32 %v13296_v59, %v11327_v17  ;;  %v4761_v21 = vmul.f32 %v15931_v53, %v17448_v30  ;;  %v17450_v40 = vld [vmem:[#allocation44_spill] sm:$0xff]  ;;  %8056 = vmatpush.bf16.msrb.mxu2 %v11804_v26  ;;  %v13569_v30 = vld [vmem:[#allocation22 + $0xa60] sm:$0xf0] }
 0x64e   :  { %v4898_v45 = vadd.f32 %v15916_v58, %v4816_v0  ;;  %v4906_v47 = vadd.f32 %v15916_v58, %v4824_v44  ;;  %v4769_v24 = vmul.f32 %v15931_v53, %v17449_v11  ;;  %v4762_v15 = vmul.f32 %v15934_v28, %v17450_v40 }
 0x64f   :  { %v11552_v7 = vor.u32 %v13352_v36, %v11551_v6  ;;  %7970 = vmatpush.bf16.msrb.mxu3 %v11104_v34  ;;  %v4843_v16 = vadd.f32 %v15919_v33, %v4761_v21  ;;  %7999 = vmatpush.bf16.msrb.mxu0 %v11328_v5  ;;  %v4770_v38 = vmul.f32 %v15934_v28, %v17451_v19  ;;  %v15980_v34 = vperm.slane %v15922_v14, 3  ;;  %v12419_v5 = vld [vmem:[#allocation22 + $0xa48] sm:$0xf] }
 0x650   :  { %vm4962_vm13 = vcmp.ge.f32.partialorder %v4898_v45, 0.0  ;;  %vm4970_vm15 = vcmp.ge.f32.partialorder %v4906_v47, 0.0  ;;  %v5026_v46 = vmul.f32 0.2, %v4898_v45  ;;  %v5034_v17 = vmul.f32 0.2, %v4906_v47  ;;  %8027 = vmatpush.bf16.msrb.mxu1 %v11580_v56 }
 0x651   :  { %v4851_v59 = vadd.f32 %v15919_v33, %v4769_v24  ;;  %v4844_v0 = vadd.f32 %v15928_v25, %v4762_v15  ;;  %vm4907_vm6 = vcmp.ge.f32.partialorder %v4843_v16, 0.0  ;;  %v4971_v6 = vmul.f32 0.2, %v4843_v16  ;;  %v12167_v56 = vld [vmem:[#allocation22 + $0x850] sm:$0xf]  ;;  %v17453_v24 = vld [vmem:[#allocation53_spill] sm:$0xff]  ;;  %8057 = vmatpush.bf16.msrb.mxu2 %v11776_v20 }
 0x652   :  { %v5090_v44 = vsel %vm4962_vm13, %v4898_v45, %v5026_v46  ;;  %v5098_v36 = vsel %vm4970_vm15, %v4906_v47, %v5034_v17  ;;  %v4852_v57 = vadd.f32 %v15928_v25, %v4770_v38  ;;  %v4763_v40 = vmul.f32 %v15973_v13, %v17453_v24  ;;  %v13506_v15 = vld [vmem:[#allocation22 + $0x868] sm:$0xf0]  ;;  %v17455_v17 = vld [vmem:[#allocation54_spill] sm:$0xff] }
 0x653   :  { %8079 = vmatpush.bf16.msra.mxu3 %v12196_v32  ;;  %vm4915_vm7 = vcmp.ge.f32.partialorder %v4851_v59, 0.0  ;;  %v4979_v42 = vmul.f32 0.2, %v4851_v59  ;;  %v15984_v21 = vpack.c.bf16 %v5098_v36, %v5090_v44  ;;  %v5035_v11 = vsel %vm4907_vm6, %v4843_v16, %v4971_v6  ;;  %v17456_v44 = vld [vmem:[#allocation58_spill] sm:$0xff]  ;;  %v17457_v6 = vld [vmem:[#allocation59_spill] sm:$0xff] }
 0x654   :  { %vm4908_vm8 = vcmp.ge.f32.partialorder %v4844_v0, 0.0  ;;  %v4972_v45 = vmul.f32 0.2, %v4844_v0  ;;  %vm4916_vm9 = vcmp.ge.f32.partialorder %v4852_v57, 0.0  ;;  %v4980_v32 = vmul.f32 0.2, %v4852_v57  ;;  %8028 = vmatpush.bf16.msrb.mxu1 %v11552_v7 }
 0x655   :  { %17452 = vst [vmem:[#allocation60_spill] sm:$0xff] %v15984_v21  ;;  %v5043_v26 = vsel %vm4915_vm7, %v4851_v59, %v4979_v42  ;;  %v4771_v19 = vmul.f32 %v15973_v13, %v17455_v17  ;;  %v4845_v16 = vadd.f32 %v15966_v8, %v4763_v40  ;;  %v4764_v59 = vmul.f32 %v15980_v34, %v17456_v44  ;;  %v12391_v42 = vld [vmem:[#allocation22 + $0xa10] sm:$0xf]  ;;  %v13562_v24 = vld [vmem:[#allocation22 + $0xa28] sm:$0xf0]  ;;  %v17459_v17 = vld [vmem:[#allocation38_spill] sm:$0xff] }
 0x656   :  { %v15988_v47 = vpack.c.bf16 %v5043_v26, %v5035_v11  ;;  %v5036_v46 = vsel %vm4908_vm8, %v4844_v0, %v4972_v45  ;;  %v5044_v38 = vsel %vm4916_vm9, %v4852_v57, %v4980_v32  ;;  %v4772_v36 = vmul.f32 %v15980_v34, %v17457_v6 }
 0x657   :  { %v15998_v7 = vpack.c.bf16 %v5044_v38, %v5036_v46  ;;  %v4853_v20 = vadd.f32 %v15966_v8, %v4771_v19  ;;  %v12420_v0 = vor.u32 %v13569_v30, %v12419_v5  ;;  %v12168_v11 = vor.u32 %v13506_v15, %v12167_v56  ;;  %v17460_v15 = vld [vmem:[#allocation39_spill] sm:$0xff] }
 0x658   :  { %17454 = vst [vmem:[#allocation61_spill] sm:$0xff] %v15988_v47  ;;  %7971 = vmatmul.bf16.vlgmr.msrb.gmra.mxu3 %v15988_v47  ;;  %vm4909_vm10 = vcmp.ge.f32.partialorder %v4845_v16, 0.0  ;;  %v4973_v57 = vmul.f32 0.2, %v4845_v16  ;;  %v4846_v45 = vadd.f32 %v15969_v50, %v4764_v59  ;;  %v4854_v26 = vadd.f32 %v15969_v50, %v4772_v36  ;;  %v17462_v36 = vld [vmem:[#allocation46_spill] sm:$0xff] }
 0x659   :  { %17458 = vst [vmem:[#allocation35_spill] sm:$0xff] %v15998_v7  ;;  %8000 = vmatmul.bf16.vlgmr.msrb.gmra.mxu0 %v15998_v7  ;;  %vm4917_vm11 = vcmp.ge.f32.partialorder %v4853_v20, 0.0  ;;  %v4981_v32 = vmul.f32 0.2, %v4853_v20  ;;  %8080 = vmatpush.bf16.msra.mxu3 %v12168_v11  ;;  %v12392_v40 = vor.u32 %v13562_v24, %v12391_v42  ;;  %v4777_v46 = vmul.f32 %v15931_v53, %v17459_v17  ;;  %v17463_v24 = vld [vmem:[#allocation47_spill] sm:$0xff] }
 0x65a   :  { %v5037_v38 = vsel %vm4909_vm10, %v4845_v16, %v4973_v57  ;;  %vm4910_vm14 = vcmp.ge.f32.partialorder %v4846_v45, 0.0  ;;  %vm4918_vm12 = vcmp.ge.f32.partialorder %v4854_v26, 0.0  ;;  %v4974_v5 = vmul.f32 0.2, %v4846_v45  ;;  %8108 = vmatpush.bf16.msra.mxu0 %v12420_v0  ;;  %v13492_v7 = vld [vmem:[#allocation22 + $0x7f8] sm:$0xf0] }
 0x65b   :  { %v5045_v30 = vsel %vm4917_vm11, %v4853_v20, %v4981_v32  ;;  %v4982_v56 = vmul.f32 0.2, %v4854_v26  ;;  %v4785_v19 = vmul.f32 %v15931_v53, %v17460_v15  ;;  %v4859_v44 = vadd.f32 %v15919_v33, %v4777_v46  ;;  %v17465_v46 = vld [vmem:[#allocation55_spill] sm:$0xff] }
 0x65c   :  { %v16009_v59 = vpack.c.bf16 %v5045_v30, %v5037_v38  ;;  %v5038_v6 = vsel %vm4910_vm14, %v4846_v45, %v4974_v5  ;;  %v4778_v42 = vmul.f32 %v15934_v28, %v17462_v36  ;;  %v4786_v16 = vmul.f32 %v15934_v28, %v17463_v24  ;;  %v12139_v5 = vld [vmem:[#allocation22 + $0x818] sm:$0xf] }
 0x65d   :  { %v5046_v11 = vsel %vm4918_vm12, %v4854_v26, %v4982_v56  ;;  %v4867_v57 = vadd.f32 %v15919_v33, %v4785_v19  ;;  %v4987_v0 = vmul.f32 0.2, %v4859_v44  ;;  %vm4923_vm0 = vcmp.ge.f32.partialorder %v4859_v44, 0.0  ;;  %v17466_v56 = vld [vmem:[#allocation56_spill] sm:$0xff]  ;;  %v12363_v36 = vld [vmem:[#allocation22 + $0x9d8] sm:$0xf] }
 0x65e   :  { %17461 = vst [vmem:[#allocation52_spill] sm:$0xff] %v16009_v59  ;;  %8029 = vmatmul.bf16.vlgmr.msrb.gmra.mxu1 %v16009_v59  ;;  %v16017_v20 = vpack.c.bf16 %v5046_v11, %v5038_v6  ;;  %8109 = vmatpush.bf16.msra.mxu0 %v12392_v40  ;;  %v4860_v32 = vadd.f32 %v15928_v25, %v4778_v42  ;;  %v13499_v6 = vld [vmem:[#allocation22 + $0x830] sm:$0xf0] }
 0x65f   :  { %v4868_v17 = vadd.f32 %v15928_v25, %v4786_v16  ;;  %vm4931_vm1 = vcmp.ge.f32.partialorder %v4867_v57, 0.0  ;;  %v4995_v45 = vmul.f32 0.2, %v4867_v57  ;;  %v4779_v38 = vmul.f32 %v15973_v13, %v17465_v46  ;;  %v13555_v42 = vld [vmem:[#allocation22 + $0x9f0] sm:$0xf0] }
 0x660   :  { %17464 = vst [vmem:[#allocation36_spill] sm:$0xff] %v16017_v20  ;;  %8058 = vmatmul.bf16.vlgmr.msrb.gmra.mxu2 %v16017_v20  ;;  %vm4924_vm2 = vcmp.ge.f32.partialorder %v4860_v32, 0.0  ;;  %v4988_v26 = vmul.f32 0.2, %v4860_v32  ;;  %v4787_v40 = vmul.f32 %v15973_v13, %v17466_v56  ;;  %v4780_v19 = vmul.f32 %v15980_v34, %v15427_v22  ;;  %v12111_v20 = vld [vmem:[#allocation22 + $0x7e0] sm:$0xf] }
 0x661   :  { %vm4932_vm3 = vcmp.ge.f32.partialorder %v4868_v17, 0.0  ;;  %v4996_v30 = vmul.f32 0.2, %v4868_v17  ;;  %v4861_v15 = vadd.f32 %v15966_v8, %v4779_v38  ;;  %v5051_v24 = vsel %vm4923_vm0, %v4859_v44, %v4987_v0  ;;  %v12335_v44 = vld [vmem:[#allocation22 + $0x9a0] sm:$0xf] }
 0x662   :  { %v5059_v16 = vsel %vm4931_vm1, %v4867_v57, %v4995_v45  ;;  %v5052_v11 = vsel %vm4924_vm2, %v4860_v32, %v4988_v26  ;;  %v4788_v46 = vmul.f32 %v15980_v34, %v15430_v48  ;;  %v4869_v56 = vadd.f32 %v15966_v8, %v4787_v40  ;;  %v13548_v0 = vld [vmem:[#allocation22 + $0x9b8] sm:$0xf0] }
 0x663   :  { %v5060_v59 = vsel %vm4932_vm3, %v4868_v17, %v4996_v30  ;;  %vm4925_vm4 = vcmp.ge.f32.partialorder %v4861_v15, 0.0  ;;  %v4989_v38 = vmul.f32 0.2, %v4861_v15  ;;  %v4862_v22 = vadd.f32 %v15969_v50, %v4780_v19  ;;  %v17469_v19 = vld [vmem:[#allocation40_spill] sm:$0xff] }
 0x664   :  { %v4870_v47 = vadd.f32 %v15969_v50, %v4788_v46  ;;  %v12140_v21 = vor.u32 %v13499_v6, %v12139_v5  ;;  %v12364_v12 = vor.u32 %v13555_v42, %v12363_v36  ;;  %v16036_v57 = vpack.c.bf16 %v5059_v16, %v5051_v24  ;;  %v17470_v6 = vld [vmem:[#allocation41_spill] sm:$0xff] }
 0x665   :  { %vm4933_vm5 = vcmp.ge.f32.partialorder %v4869_v56, 0.0  ;;  %v4997_v32 = vmul.f32 0.2, %v4869_v56  ;;  %v16038_v48 = vpack.c.bf16 %v5060_v59, %v5052_v11  ;;  %v5053_v17 = vsel %vm4925_vm4, %v4861_v15, %v4989_v38  ;;  %v17471_v59 = vld [vmem:[#allocation48_spill] sm:$0xff] }
 0x666   :  { %17467 = vst [vmem:[#allocation37_spill] sm:$0xff] %v16036_v57  ;;  %v4990_v45 = vmul.f32 0.2, %v4862_v22  ;;  %8081 = vmatpush.bf16.msra.mxu3 %v12140_v21  ;;  %8110 = vmatpush.bf16.msra.mxu0 %v12364_v12  ;;  %v12112_v26 = vor.u32 %v13492_v7, %v12111_v20  ;;  %v4998_v30 = vmul.f32 0.2, %v4870_v47  ;;  %v12336_v40 = vor.u32 %v13548_v0, %v12335_v44  ;;  %v17472_v7 = vld [vmem:[#allocation49_spill] sm:$0xff] }
 0x667   :  { %17468 = vst [vmem:[#allocation44_spill] sm:$0xff] %v16038_v48  ;;  %v4793_v5 = vmul.f32 %v15931_v53, %v17469_v19  ;;  %v4801_v36 = vmul.f32 %v15931_v53, %v17470_v6  ;;  %v5061_v42 = vsel %vm4933_vm5, %v4869_v56, %v4997_v32  ;;  %vm4926_vm13 = vcmp.ge.f32.partialorder %v4862_v22, 0.0  ;;  %v12083_v0 = vld [vmem:[#allocation22 + $0x7a8] sm:$0xf]  ;;  %v13485_v32 = vld [vmem:[#allocation22 + $0x7c0] sm:$0xf0] }
 0x668   :  { %7976 = vmatmul.bf16.gmra.mxu3 %v16036_v57  ;;  %vm4934_vm15 = vcmp.ge.f32.partialorder %v4870_v47, 0.0  ;;  %v4794_v15 = vmul.f32 %v15934_v28, %v17471_v59  ;;  %v4802_v20 = vmul.f32 %v15934_v28, %v17472_v7  ;;  %v4795_v16 = vmul.f32 %v15973_v13, %v15372_v1  ;;  %v12867_v6 = vld [vmem:[#allocation22 + $0xdc8] sm:$0xf]  ;;  %v13541_v59 = vld [vmem:[#allocation22 + $0x980] sm:$0xf0] }
 0x669   :  { %8005 = vmatmul.bf16.gmra.mxu0 %v16038_v48  ;;  %v4875_v12 = vadd.f32 %v15919_v33, %v4793_v5  ;;  %v4883_v21 = vadd.f32 %v15919_v33, %v4801_v36  ;;  %v4803_v11 = vmul.f32 %v15973_v13, %v15375_v23  ;;  %v16057_v46 = vpack.c.bf16 %v5061_v42, %v5053_v17  ;;  %v13681_v23 = vld [vmem:[#allocation22 + $0xde0] sm:$0xf0]  ;;  %v12307_v42 = vld [vmem:[#allocation22 + $0x968] sm:$0xf]  ;;  %v13478_v48 = vld [vmem:[#allocation22 + $0x788] sm:$0xf0] }
 0x66a   :  { %8082 = vmatpush.bf16.msra.mxu3 %v12112_v26  ;;  %8111 = vmatpush.bf16.msra.mxu0 %v12336_v40  ;;  %v4876_v24 = vadd.f32 %v15928_v25, %v4794_v15  ;;  %v5054_v56 = vsel %vm4926_vm13, %v4862_v22, %v4990_v45  ;;  %v5062_v38 = vsel %vm4934_vm15, %v4870_v47, %v4998_v30  ;;  %v12643_v45 = vld [vmem:[#allocation22 + $0xc08] sm:$0xf]  ;;  %v13625_v36 = vld [vmem:[#allocation22 + $0xc20] sm:$0xf0]  ;;  %v13534_v57 = vld [vmem:[#allocation22 + $0x948] sm:$0xf0] }
 0x66b   :  { %17473 = vst [vmem:[#allocation45_spill] sm:$0xff] %v16057_v46  ;;  %v5003_v44 = vmul.f32 0.2, %v4875_v12  ;;  %vm4939_vm6 = vcmp.ge.f32.partialorder %v4875_v12, 0.0  ;;  %v5011_v19 = vmul.f32 0.2, %v4883_v21  ;;  %v4884_v26 = vadd.f32 %v15928_v25, %v4802_v20 }
 0x66c   :  { %v5004_v40 = vmul.f32 0.2, %v4876_v24  ;;  %vm4947_vm7 = vcmp.ge.f32.partialorder %v4883_v21, 0.0  ;;  %vm4940_vm8 = vcmp.ge.f32.partialorder %v4876_v24, 0.0  ;;  %v4877_v5 = vadd.f32 %v15966_v8, %v4795_v16 }
 0x66d   :  { %v4885_v1 = vadd.f32 %v15966_v8, %v4803_v11  ;;  %v16063_v22 = vpack.c.bf16 %v5062_v38, %v5054_v56  ;;  %vm4948_vm9 = vcmp.ge.f32.partialorder %v4884_v26, 0.0  ;;  %v5012_v47 = vmul.f32 0.2, %v4884_v26  ;;  %v12839_v11 = vld [vmem:[#allocation22 + $0xd90] sm:$0xf] }
 0x66e   :  { %8034 = vmatmul.bf16.gmra.mxu1 %v16057_v46  ;;  %v4796_v17 = vmul.f32 %v15980_v34, %v15433_v55  ;;  %v5067_v30 = vsel %vm4939_vm6, %v4875_v12, %v5003_v44  ;;  %v5075_v15 = vsel %vm4947_vm7, %v4883_v21, %v5011_v19  ;;  %v5068_v7 = vsel %vm4940_vm8, %v4876_v24, %v5004_v40  ;;  %v13674_v56 = vld [vmem:[#allocation22 + $0xda8] sm:$0xf0]  ;;  %v12055_v38 = vld [vmem:[#allocation22 + $0x770] sm:$0xf] }
 0x66f   :  { %17474 = vst [vmem:[#allocation53_spill] sm:$0xff] %v16063_v22  ;;  %v4804_v20 = vmul.f32 %v15980_v34, %v15436_v35  ;;  %v12084_v16 = vor.u32 %v13485_v32, %v12083_v0  ;;  %v5076_v55 = vsel %vm4948_vm9, %v4884_v26, %v5012_v47  ;;  %v5005_v46 = vmul.f32 0.2, %v4877_v5  ;;  %v12615_v21 = vld [vmem:[#allocation22 + $0xbd0] sm:$0xf] }
 0x670   :  { %8063 = vmatmul.bf16.gmra.mxu2 %v16063_v22  ;;  %v5013_v12 = vmul.f32 0.2, %v4885_v1  ;;  %v12868_v44 = vor.u32 %v13681_v23, %v12867_v6  ;;  %vm4941_vm10 = vcmp.ge.f32.partialorder %v4877_v5, 0.0  ;;  %vm4949_vm11 = vcmp.ge.f32.partialorder %v4885_v1, 0.0  ;;  %v13618_v24 = vld [vmem:[#allocation22 + $0xbe8] sm:$0xf0] }
 0x671   :  { %v4878_v22 = vadd.f32 %v15969_v50, %v4796_v17  ;;  %8083 = vmatpush.bf16.msra.mxu3 %v12084_v16  ;;  %v4886_v19 = vadd.f32 %v15969_v50, %v4804_v20  ;;  %v12644_v35 = vor.u32 %v13625_v36, %v12643_v45  ;;  %v12308_v0 = vor.u32 %v13541_v59, %v12307_v42  ;;  %v12279_v40 = vld [vmem:[#allocation22 + $0x930] sm:$0xf]  ;;  %v12811_v17 = vld [vmem:[#allocation22 + $0xd58] sm:$0xf]  ;;  %v13667_v16 = vld [vmem:[#allocation22 + $0xd70] sm:$0xf0] }
 0x672   :  { %8166 = vmatpush.bf16.msra.mxu2 %v12868_v44  ;;  %v12840_v32 = vor.u32 %v13674_v56, %v12839_v11  ;;  %v16078_v26 = vadd.f32 %v15916_v58, %v15937_v60  ;;  %v16080_v6 = vpack.c.bf16 %v5075_v15, %v5067_v30  ;;  %v16082_v23 = vpack.c.bf16 %v5076_v55, %v5068_v7  ;;  %v12587_v36 = vld [vmem:[#allocation22 + $0xb98] sm:$0xf]  ;;  %v13611_v60 = vld [vmem:[#allocation22 + $0xbb0] sm:$0xf0]  ;;  %v17477_v30 = vld [vmem:[#allocation42_spill] sm:$0xff] }
 0x673   :  { %v12056_v47 = vor.u32 %v13478_v48, %v12055_v38  ;;  %v5069_v2 = vsel %vm4941_vm10, %v4877_v5, %v5005_v46  ;;  %v5077_v20 = vsel %vm4949_vm11, %v4885_v1, %v5013_v12  ;;  %8137 = vmatpush.bf16.msra.mxu1 %v12644_v35  ;;  %8112 = vmatpush.bf16.msra.mxu0 %v12308_v0  ;;  %vm4942_vm14 = vcmp.ge.f32.partialorder %v4878_v22, 0.0  ;;  %v17478_v46 = vld [vmem:[#allocation43_spill] sm:$0xff]  ;;  %v17479_v1 = vld [vmem:[#allocation50_spill] sm:$0xff]  ;;  %v13660_v38 = vld [vmem:[#allocation22 + $0xd38] sm:$0xf0] }
 0x674   :  { %17475 = vst [vmem:[#allocation54_spill] sm:$0xff] %v16080_v6  ;;  %v12616_v45 = vor.u32 %v13618_v24, %v12615_v21  ;;  %v5006_v42 = vmul.f32 0.2, %v4878_v22  ;;  %v12280_v59 = vor.u32 %v13534_v57, %v12279_v40  ;;  %v4809_v15 = vmul.f32 %v15931_v53, %v17477_v30  ;;  %v12783_v56 = vld [vmem:[#allocation22 + $0xd20] sm:$0xf]  ;;  %v17480_v57 = vld [vmem:[#allocation51_spill] sm:$0xff] }
 0x675   :  { %17476 = vst [vmem:[#allocation58_spill] sm:$0xff] %v16082_v23  ;;  %8084 = vmatpush.bf16.msra.mxu3 %v12056_v47  ;;  %v5014_v48 = vmul.f32 0.2, %v4886_v19  ;;  %v12812_v7 = vor.u32 %v13667_v16, %v12811_v17  ;;  %v4817_v5 = vmul.f32 %v15931_v53, %v17478_v46  ;;  %v4810_v11 = vmul.f32 %v15934_v28, %v17479_v1  ;;  %v13471_v17 = vld [vmem:[#allocation22 + $0x750] sm:$0xf0] }
 0x676   :  { %8167 = vmatpush.bf16.msra.mxu2 %v12840_v32  ;;  %vm4950_vm12 = vcmp.ge.f32.partialorder %v4886_v19, 0.0  ;;  %v4891_v55 = vadd.f32 %v15919_v33, %v4809_v15  ;;  %v4818_v12 = vmul.f32 %v15934_v28, %v17480_v57  ;;  %v4811_v44 = vmul.f32 %v15973_v13, %v15378_v4  ;;  %v12559_v4 = vld [vmem:[#allocation22 + $0xb60] sm:$0xf]  ;;  %v13604_v32 = vld [vmem:[#allocation22 + $0xb78] sm:$0xf0] }
 0x677   :  { %8138 = vmatpush.bf16.msra.mxu1 %v12616_v45  ;;  %v12588_v21 = vor.u32 %v13611_v60, %v12587_v36  ;;  %v4899_v53 = vadd.f32 %v15919_v33, %v4817_v5  ;;  %v4819_v24 = vmul.f32 %v15973_v13, %v17432_v52  ;;  %v16104_v35 = vadd.f32 %v15916_v58, %v15940_v41  ;;  %v12027_v41 = vld [vmem:[#allocation22 + $0x738] sm:$0xf]  ;;  %v12755_v16 = vld [vmem:[#allocation22 + $0xce8] sm:$0xf]  ;;  %v13653_v60 = vld [vmem:[#allocation22 + $0xd00] sm:$0xf0] }
 0x678   :  { %7981 = vmatmul.bf16.gmra.mxu3 %v16080_v6  ;;  %v16108_v0 = vadd.f32 %v15916_v58, %v15943_v10  ;;  %v5070_v28 = vsel %vm4942_vm14, %v4878_v22, %v5006_v42  ;;  %8113 = vmatpush.bf16.msra.mxu0 %v12280_v59  ;;  %v4892_v40 = vadd.f32 %v15928_v25, %v4810_v11  ;;  %v5019_v52 = vmul.f32 0.2, %v4891_v55  ;;  %v12531_v36 = vld [vmem:[#allocation22 + $0xb28] sm:$0xf]  ;;  %v13597_v42 = vld [vmem:[#allocation22 + $0xb40] sm:$0xf0] }
 0x679   :  { %8010 = vmatmul.bf16.gmra.mxu0 %v16082_v23  ;;  %v5078_v33 = vsel %vm4950_vm12, %v4886_v19, %v5014_v48  ;;  %v12784_v47 = vor.u32 %v13660_v38, %v12783_v56  ;;  %v4900_v13 = vadd.f32 %v15928_v25, %v4818_v12  ;;  %v16114_v45 = vpack.c.bf16 %v5077_v20, %v5069_v2  ;;  %v12251_v30 = vld [vmem:[#allocation22 + $0x8f8] sm:$0xf]  ;;  %v13527_v15 = vld [vmem:[#allocation22 + $0x910] sm:$0xf0]  ;;  %v12727_v48 = vld [vmem:[#allocation22 + $0xcb0] sm:$0xf] }
 0x67a   :  { %8168 = vmatpush.bf16.msra.mxu2 %v12812_v7  ;;  %vm4955_vm0 = vcmp.ge.f32.partialorder %v4891_v55, 0.0  ;;  %v5027_v10 = vmul.f32 0.2, %v4899_v53  ;;  %v4893_v22 = vadd.f32 %v15966_v8, %v4811_v44  ;;  %v12560_v59 = vor.u32 %v13604_v32, %v12559_v4  ;;  %v11999_v7 = vld [vmem:[#allocation22 + $0x700] sm:$0xf] }
 0x67b   :  { %17481 = vst [vmem:[#allocation59_spill] sm:$0xff] %v16114_v45  ;;  %8139 = vmatpush.bf16.msra.mxu1 %v12588_v21  ;;  %vm4963_vm1 = vcmp.ge.f32.partialorder %v4899_v53, 0.0  ;;  %v4901_v19 = vadd.f32 %v15966_v8, %v4819_v24  ;;  %v4812_v25 = vmul.f32 %v15980_v34, %v17433_v63  ;;  %v16121_v2 = vpack.c.bf16 %v5078_v33, %v5070_v28  ;;  %v13464_v1 = vld [vmem:[#allocation22 + $0x718] sm:$0xf0]  ;;  %v13646_v12 = vld [vmem:[#allocation22 + $0xcc8] sm:$0xf0] }
 0x67c   :  { %vm4956_vm2 = vcmp.ge.f32.partialorder %v4892_v40, 0.0  ;;  %v5020_v20 = vmul.f32 0.2, %v4892_v40  ;;  %v16124_v46 = vperm.slane %v15922_v14, 4  ;;  %v5083_v5 = vsel %vm4955_vm0, %v4891_v55, %v5019_v52  ;;  %v12223_v44 = vld [vmem:[#allocation22 + $0x8c0] sm:$0xf] }
 0x67d   :  { %17482 = vst [vmem:[#allocation38_spill] sm:$0xff] %v16121_v2  ;;  %vm4964_vm3 = vcmp.ge.f32.partialorder %v4900_v13, 0.0  ;;  %v5028_v8 = vmul.f32 0.2, %v4900_v13  ;;  %v4820_v63 = vmul.f32 %v15980_v34, %v17434_v54  ;;  %v5091_v11 = vsel %vm4963_vm1, %v4899_v53, %v5027_v10  ;;  %v13520_v28 = vld [vmem:[#allocation22 + $0x8d8] sm:$0xf0] }
 0x67e   :  { %8039 = vmatmul.bf16.gmra.mxu1 %v16114_v45  ;;  %8169 = vmatpush.bf16.msra.mxu2 %v12784_v47  ;;  %v5021_v56 = vmul.f32 0.2, %v4893_v22  ;;  %v12028_v38 = vor.u32 %v13471_v17, %v12027_v41  ;;  %v12756_v57 = vor.u32 %v13653_v60, %v12755_v16  ;;  %vm4957_vm4 = vcmp.ge.f32.partialorder %v4893_v22, 0.0  ;;  %v12503_v4 = vld [vmem:[#allocation22 + $0xaf0] sm:$0xf] }
 0x67f   :  { %8140 = vmatpush.bf16.msra.mxu1 %v12560_v59  ;;  %v5029_v21 = vmul.f32 0.2, %v4901_v19  ;;  %v4894_v55 = vadd.f32 %v15969_v50, %v4812_v25  ;;  %v12532_v24 = vor.u32 %v13597_v42, %v12531_v36  ;;  %vm4965_vm5 = vcmp.ge.f32.partialorder %v4901_v19, 0.0  ;;  %v13590_v32 = vld [vmem:[#allocation22 + $0xb08] sm:$0xf0] }
 0x680   :  { %8068 = vmatmul.bf16.gmra.mxu2 %v16121_v2  ;;  %v4902_v54 = vadd.f32 %v15969_v50, %v4820_v63  ;;  %8085 = vmatpush.bf16.msra.mxu3 %v12028_v38  ;;  %v12252_v34 = vor.u32 %v13527_v15, %v12251_v30  ;;  %v12000_v53 = vor.u32 %v13464_v1, %v11999_v7  ;;  %v16139_v41 = vperm.slane %v15907_v51, 4  ;;  %v12699_v10 = vld [vmem:[#allocation22 + $0xc78] sm:$0xf]  ;;  %v13639_v36 = vld [vmem:[#allocation22 + $0xc90] sm:$0xf0]  ;;  %v17487_v1 = vld [vmem:[#allocation66_spill] sm:$0xff] }
 0x681   :  { %v16135_v33 = vadd.f32 %v15916_v58, %v15946_v3  ;;  %v5084_v47 = vsel %vm4956_vm2, %v4892_v40, %v5020_v20  ;;  %v12728_v52 = vor.u32 %v13646_v12, %v12727_v48  ;;  %v16141_v17 = vpack.c.bf16 %v5091_v11, %v5083_v5  ;;  %v12475_v59 = vld [vmem:[#allocation22 + $0xab8] sm:$0xf]  ;;  %v13583_v15 = vld [vmem:[#allocation22 + $0xad0] sm:$0xf0]  ;;  %v17485_v20 = vld [vmem:[#allocation63_spill] sm:$0xff] }
 0x682   :  { %8170 = vmatpush.bf16.msra.mxu2 %v12756_v57  ;;  %v5092_v50 = vsel %vm4964_vm3, %v4900_v13, %v5028_v8  ;;  %v5085_v16 = vsel %vm4957_vm4, %v4893_v22, %v5021_v56  ;;  %8114 = vmatpush.bf16.msra.mxu0 %v12252_v34  ;;  %v12224_v42 = vor.u32 %v13520_v28, %v12223_v44  ;;  %v5022_v60 = vmul.f32 0.2, %v4894_v55  ;;  %v17484_v13 = vld [vmem:[#allocation62_spill] sm:$0xff]  ;;  %v13632_v63 = vld [vmem:[#allocation22 + $0xc58] sm:$0xf0]  ;;  %v17488_v56 = vld [vmem:[#allocation72_spill] sm:$0xff] }
 0x683   :  { %17483 = vst [vmem:[#allocation39_spill] sm:$0xff] %v16141_v17  ;;  %v5093_v3 = vsel %vm4965_vm5, %v4901_v19, %v5029_v21  ;;  %8141 = vmatpush.bf16.msra.mxu1 %v12532_v24  ;;  %v12504_v40 = vor.u32 %v13590_v32, %v12503_v4  ;;  %v16147_v25 = vperm.slane %v15922_v14, 5  ;;  %vm4958_vm13 = vcmp.ge.f32.partialorder %v4894_v55, 0.0  ;;  %v12671_v8 = vld [vmem:[#allocation22 + $0xc40] sm:$0xf] }
 0x684   :  { %v5030_v30 = vmul.f32 0.2, %v4902_v54  ;;  %8086 = vmatpush.bf16.msra.mxu3 %v12000_v53  ;;  %v4765_v22 = vmul.f32 %v16124_v46, %v17484_v13  ;;  %v4773_v48 = vmul.f32 %v16124_v46, %v17485_v20  ;;  %v16155_v19 = vadd.f32 %v15916_v58, %v15949_v62  ;;  %v12447_v28 = vld [vmem:[#allocation22 + $0xa80] sm:$0xf]  ;;  %v13576_v34 = vld [vmem:[#allocation22 + $0xa98] sm:$0xf0] }
 0x685   :  { %v16158_v7 = vpack.c.bf16 %v5092_v50, %v5084_v47  ;;  %vm4966_vm15 = vcmp.ge.f32.partialorder %v4902_v54, 0.0  ;;  %v12700_v5 = vor.u32 %v13639_v36, %v12699_v10  ;;  %v4766_v11 = vmul.f32 %v16147_v25, %v17487_v1  ;;  %v13286_v10 = vld [vmem:[#allocation22 + $0x18c] sm:$0xf]  ;;  %v11301_v36 = vld [vmem:[#allocation22 + $0x1a4] sm:$0xf0] }
 0x686   :  { %8171 = vmatpush.bf16.msra.mxu2 %v12728_v52  ;;  %8115 = vmatpush.bf16.msra.mxu0 %v12224_v42  ;;  %v4774_v38 = vmul.f32 %v16147_v25, %v17488_v56  ;;  %v16165_v57 = vperm.slane %v15907_v51, 5  ;;  %v16168_v62 = vperm.slane %v15922_v14, 6  ;;  %v16171_v12 = vpack.c.bf16 %v5093_v3, %v5085_v16  ;;  %v17490_v52 = vld [vmem:[#allocation69_spill] sm:$0xff]  ;;  %v13279_v13 = vld [vmem:[#allocation22 + $0x154] sm:$0xf] }
 0x687   :  { %17486 = vst [vmem:[#allocation46_spill] sm:$0xff] %v16158_v7  ;;  %v5086_v44 = vsel %vm4958_vm13, %v4894_v55, %v5022_v60  ;;  %8142 = vmatpush.bf16.msra.mxu1 %v12504_v40  ;;  %v12476_v21 = vor.u32 %v13583_v15, %v12475_v59  ;;  %v5094_v24 = vsel %vm4966_vm15, %v4902_v54, %v5030_v30  ;;  %vm4914_vm6 = vcmp.ge.f32.partialorder %v16078_v26, 0.0  ;;  %v17492_v40 = vld [vmem:[#allocation73_spill] sm:$0xff]  ;;  %v13342_v30 = vld [vmem:[#allocation22 + $0x34c] sm:$0xf] }
 0x688   :  { %7986 = vmatmul.bf16.gmra.mxu3 %v16141_v17  ;;  %17489 = vst [vmem:[#allocation47_spill] sm:$0xff] %v16171_v12  ;;  %v12672_v4 = vor.u32 %v13632_v63, %v12671_v8  ;;  %v4847_v32 = vadd.f32 %v16139_v41, %v4765_v22  ;;  %v4855_v53 = vadd.f32 %v16139_v41, %v4773_v48  ;;  %vm4922_vm7 = vcmp.ge.f32.partialorder %v16104_v35, 0.0  ;;  %v11525_v15 = vld [vmem:[#allocation22 + $0x364] sm:$0xf0]  ;;  %v13335_v8 = vld [vmem:[#allocation22 + $0x314] sm:$0xf] }
 0x689   :  { %8015 = vmatmul.bf16.gmra.mxu0 %v16158_v7  ;;  %v4978_v14 = vmul.f32 0.2, %v16078_v26  ;;  %v4986_v47 = vmul.f32 0.2, %v16104_v35  ;;  %v4848_v55 = vadd.f32 %v16165_v57, %v4766_v11  ;;  %v4856_v54 = vadd.f32 %v16165_v57, %v4774_v38  ;;  %v11497_v63 = vld [vmem:[#allocation22 + $0x32c] sm:$0xf0] }
 0x68a   :  { %8172 = vmatpush.bf16.msra.mxu2 %v12700_v5  ;;  %v4767_v50 = vmul.f32 %v16168_v62, %v17490_v52  ;;  %v16185_v16 = vperm.slane %v15907_v51, 6  ;;  %v16189_v42 = vadd.f32 %v15916_v58, %v15952_v9  ;;  %v16191_v3 = vpack.c.bf16 %v5094_v24, %v5086_v44  ;;  %v11273_v9 = vld [vmem:[#allocation22 + $0x16c] sm:$0xf0] }
 0x68b   :  { %8143 = vmatpush.bf16.msra.mxu1 %v12476_v21  ;;  %v12448_v60 = vor.u32 %v13576_v34, %v12447_v28  ;;  %v4775_v59 = vmul.f32 %v16168_v62, %v17492_v40  ;;  %v4975_v51 = vmul.f32 0.2, %v4847_v32  ;;  %v4983_v22 = vmul.f32 0.2, %v4855_v53 }
 0x68c   :  { %17491 = vst [vmem:[#allocation55_spill] sm:$0xff] %v16191_v3  ;;  %v5042_v20 = vsel %vm4914_vm6, %v16078_v26, %v4978_v14  ;;  %v5050_v58 = vsel %vm4922_vm7, %v16104_v35, %v4986_v47  ;;  %vm4911_vm8 = vcmp.ge.f32.partialorder %v4847_v32, 0.0  ;;  %vm4919_vm9 = vcmp.ge.f32.partialorder %v4855_v53, 0.0 }
 0x68d   :  { %v16202_v48 = vpack.c.bf16 %v5050_v58, %v5042_v20  ;;  %v11304_v5 = vor.u32 %v13286_v10, %v11301_v36  ;;  %v4976_v1 = vmul.f32 0.2, %v4848_v55  ;;  %v4984_v11 = vmul.f32 0.2, %v4856_v54  ;;  %v13328_v20 = vld [vmem:[#allocation22 + $0x2dc] sm:$0xf] }
 0x68e   :  { %8044 = vmatmul.bf16.gmra.mxu1 %v16171_v12  ;;  %8173 = vmatpush.bf16.msra.mxu2 %v12672_v4  ;;  %v4849_v56 = vadd.f32 %v16185_v16, %v4767_v50  ;;  %v11528_v26 = vor.u32 %v13342_v30, %v11525_v15  ;;  %vm4912_vm10 = vcmp.ge.f32.partialorder %v4848_v55, 0.0  ;;  %vm4920_vm11 = vcmp.ge.f32.partialorder %v4856_v54, 0.0  ;;  %v11469_v58 = vld [vmem:[#allocation22 + $0x2f4] sm:$0xf0] }
 0x68f   :  { %8144 = vmatpush.bf16.msra.mxu1 %v12448_v60  ;;  %v4857_v35 = vadd.f32 %v16185_v16, %v4775_v59  ;;  %8195 = vmatpush.bf16.msrb.mxu3 %v11304_v5  ;;  %v11276_v38 = vor.u32 %v13279_v13, %v11273_v9  ;;  %v5002_v44 = vmul.f32 0.2, %v16135_v33  ;;  %v5039_v21 = vsel %vm4911_vm8, %v4847_v32, %v4975_v51  ;;  %v17496_v59 = vld [vmem:[#allocation74_spill] sm:$0xff]  ;;  %v13272_v13 = vld [vmem:[#allocation22 + $0x11c] sm:$0xf] }
 0x690   :  { %8073 = vmatmul.bf16.gmra.mxu2 %v16191_v3  ;;  %v5047_v24 = vsel %vm4919_vm9, %v4855_v53, %v4983_v22  ;;  %8224 = vmatpush.bf16.msrb.mxu0 %v11528_v26  ;;  %v11500_v28 = vor.u32 %v13335_v8, %v11497_v63  ;;  %vm4946_vm14 = vcmp.ge.f32.partialorder %v16155_v19, 0.0  ;;  %vm4954_vm12 = vcmp.ge.f32.partialorder %v16189_v42, 0.0  ;;  %v17493_v53 = vld [vmem:[#allocation64_spill] sm:$0xff]  ;;  %v11245_v22 = vld [vmem:[#allocation22 + $0x134] sm:$0xf0]  ;;  %v17497_v5 = vld [vmem:[#allocation70_spill] sm:$0xff] }
 0x691   :  { %v5010_v34 = vmul.f32 0.2, %v16155_v19  ;;  %v4994_v4 = vmul.f32 0.2, %v16108_v0  ;;  %v5040_v14 = vsel %vm4912_vm10, %v4848_v55, %v4976_v1  ;;  %v5048_v47 = vsel %vm4920_vm11, %v4856_v54, %v4984_v11  ;;  %v17495_v54 = vld [vmem:[#allocation67_spill] sm:$0xff] }
 0x692   :  { %v4977_v52 = vmul.f32 0.2, %v4849_v56  ;;  %vm4930_vm0 = vcmp.ge.f32.partialorder %v16108_v0, 0.0  ;;  %v16215_v50 = vpack.c.bf16 %v5047_v24, %v5039_v21  ;;  %vm4913_vm1 = vcmp.ge.f32.partialorder %v4849_v56, 0.0  ;;  %v13265_v1 = vld [vmem:[#allocation22 + $0xe4] sm:$0xf] }
 0x693   :  { %v4985_v32 = vmul.f32 0.2, %v4857_v35  ;;  %8196 = vmatpush.bf16.msrb.mxu3 %v11276_v38  ;;  %v4781_v10 = vmul.f32 %v16124_v46, %v17493_v53  ;;  %v5018_v36 = vmul.f32 0.2, %v16189_v42  ;;  %vm4921_vm2 = vcmp.ge.f32.partialorder %v4857_v35, 0.0  ;;  %v17498_v26 = vld [vmem:[#allocation75_spill] sm:$0xff] }
 0x694   :  { %8225 = vmatpush.bf16.msrb.mxu0 %v11500_v28  ;;  %v4789_v60 = vmul.f32 %v16124_v46, %v15486_v61  ;;  %vm4938_vm3 = vcmp.ge.f32.partialorder %v16135_v33, 0.0  ;;  %v16224_v55 = vpack.c.bf16 %v5048_v47, %v5040_v14  ;;  %v4782_v40 = vmul.f32 %v16147_v25, %v17495_v54  ;;  %v11217_v38 = vld [vmem:[#allocation22 + $0xfc] sm:$0xf0]  ;;  %v13321_v21 = vld [vmem:[#allocation22 + $0x2a4] sm:$0xf] }
 0x695   :  { %v4790_v30 = vmul.f32 %v16147_v25, %v17496_v59  ;;  %v5058_v15 = vsel %vm4930_vm0, %v16108_v0, %v4994_v4  ;;  %v5041_v51 = vsel %vm4913_vm1, %v4849_v56, %v4977_v52  ;;  %v5049_v61 = vsel %vm4921_vm2, %v4857_v35, %v4985_v32  ;;  %v11441_v24 = vld [vmem:[#allocation22 + $0x2bc] sm:$0xf0] }
 0x696   :  { %17494 = vst [vmem:[#allocation56_spill] sm:$0xff] %v16224_v55  ;;  %v4863_v9 = vadd.f32 %v16139_v41, %v4781_v10  ;;  %v4783_v8 = vmul.f32 %v16168_v62, %v17497_v5  ;;  %v5066_v63 = vsel %vm4938_vm3, %v16135_v33, %v5002_v44  ;;  %v4871_v11 = vadd.f32 %v16139_v41, %v4789_v60 }
 0x697   :  { %v4791_v0 = vmul.f32 %v16168_v62, %v17498_v26  ;;  %v16239_v56 = vpack.c.bf16 %v5066_v63, %v5058_v15  ;;  %v4864_v35 = vadd.f32 %v16165_v57, %v4782_v40  ;;  %v4872_v28 = vadd.f32 %v16165_v57, %v4790_v30  ;;  %v13258_v15 = vld [vmem:[#allocation22 + $0xac] sm:$0xf]  ;;  %v11749_v63 = vld [vmem:[#allocation22 + $0x524] sm:$0xf0] }
 0x698   :  { %8087 = vmatmul.bf16.vlgmr.msra.gmra.mxu3 %v16215_v50  ;;  %v11248_v4 = vor.u32 %v13272_v13, %v11245_v22  ;;  %v11472_v14 = vor.u32 %v13328_v20, %v11469_v58  ;;  %v5082_v33 = vsel %vm4954_vm12, %v16189_v42, %v5018_v36  ;;  %v16246_v44 = vpack.c.bf16 %v5049_v61, %v5041_v51  ;;  %v11189_v13 = vld [vmem:[#allocation22 + $0xc4] sm:$0xf0]  ;;  %v13454_v22 = vld [vmem:[#allocation22 + $0x6cc] sm:$0xf] }
 0x699   :  { %8116 = vmatmul.bf16.vlgmr.msra.gmra.mxu0 %v16224_v55  ;;  %vm4927_vm4 = vcmp.ge.f32.partialorder %v4863_v9, 0.0  ;;  %v16249_v47 = vadd.f32 %v16185_v16, %v4783_v8  ;;  %v11220_v52 = vor.u32 %v13265_v1, %v11217_v38  ;;  %v11444_v32 = vor.u32 %v13321_v21, %v11441_v24  ;;  %v11973_v20 = vld [vmem:[#allocation22 + $0x6e4] sm:$0xf0]  ;;  %v13398_v8 = vld [vmem:[#allocation22 + $0x50c] sm:$0xf] }
 0x69a   :  { %17499 = vst [vmem:[#allocation40_spill] sm:$0xff] %v16246_v44  ;;  %8197 = vmatpush.bf16.msrb.mxu3 %v11248_v4  ;;  %8226 = vmatpush.bf16.msrb.mxu0 %v11472_v14  ;;  %v4991_v53 = vmul.f32 0.2, %v4863_v9  ;;  %v4999_v10 = vmul.f32 0.2, %v4871_v11  ;;  %v4873_v60 = vadd.f32 %v16185_v16, %v4791_v0  ;;  %v5074_v42 = vsel %vm4946_vm14, %v16155_v19, %v5010_v34 }
 0x69b   :  { %vm4935_vm5 = vcmp.ge.f32.partialorder %v4871_v11, 0.0  ;;  %v4992_v36 = vmul.f32 0.2, %v4864_v35  ;;  %v5000_v54 = vmul.f32 0.2, %v4872_v28  ;;  %v16256_v40 = vpack.c.bf16 %v5082_v33, %v5074_v42 }
 0x69c   :  { %vm4928_vm13 = vcmp.ge.f32.partialorder %v4864_v35, 0.0  ;;  %vm4936_vm15 = vcmp.ge.f32.partialorder %v4872_v28, 0.0  ;;  %v5055_v59 = vsel %vm4927_vm4, %v4863_v9, %v4991_v53  ;;  %v5063_v30 = vsel %vm4935_vm5, %v4871_v11, %v4999_v10  ;;  %v17500_v9 = vld [vmem:[#allocation65_spill] sm:$0xff]  ;;  %v13314_v0 = vld [vmem:[#allocation22 + $0x26c] sm:$0xf] }
 0x69d   :  { %vm4929_vm6 = vcmp.ge.f32.partialorder %v16249_v47, 0.0  ;;  %vm4937_vm7 = vcmp.ge.f32.partialorder %v4873_v60, 0.0  ;;  %v5056_v19 = vsel %vm4928_vm13, %v4864_v35, %v4992_v36  ;;  %v5064_v34 = vsel %vm4936_vm15, %v4872_v28, %v5000_v54  ;;  %v11413_v38 = vld [vmem:[#allocation22 + $0x284] sm:$0xf0]  ;;  %v13391_v21 = vld [vmem:[#allocation22 + $0x4d4] sm:$0xf] }
 0x69e   :  { %8145 = vmatmul.bf16.vlgmr.msra.gmra.mxu1 %v16246_v44  ;;  %8198 = vmatpush.bf16.msrb.mxu3 %v11220_v52  ;;  %v4993_v51 = vmul.f32 0.2, %v16249_v47  ;;  %v5001_v58 = vmul.f32 0.2, %v4873_v60  ;;  %v11192_v61 = vor.u32 %v13258_v15, %v11189_v13  ;;  %v11976_v5 = vor.u32 %v13454_v22, %v11973_v20  ;;  %v11721_v4 = vld [vmem:[#allocation22 + $0x4ec] sm:$0xf0] }
 0x69f   :  { %8227 = vmatpush.bf16.msrb.mxu0 %v11444_v32  ;;  %v16262_v1 = vpack.c.bf16 %v5063_v30, %v5055_v59  ;;  %v4797_v11 = vmul.f32 %v16124_v46, %v17500_v9  ;;  %v11752_v26 = vor.u32 %v13398_v8, %v11749_v63  ;;  %v16266_v24 = vpack.c.bf16 %v5064_v34, %v5056_v19  ;;  %v13447_v14 = vld [vmem:[#allocation22 + $0x694] sm:$0xf]  ;;  %v11945_v33 = vld [vmem:[#allocation22 + $0x6ac] sm:$0xf0]  ;;  %v13384_v54 = vld [vmem:[#allocation22 + $0x49c] sm:$0xf] }
 0x6a0   :  { %8174 = vmatmul.bf16.vlgmr.msra.gmra.mxu2 %v16202_v48  ;;  %v4805_v35 = vmul.f32 %v16124_v46, %v15492_v31  ;;  %v11416_v28 = vor.u32 %v13314_v0, %v11413_v38  ;;  %v17501_v52 = vld [vmem:[#allocation68_spill] sm:$0xff]  ;;  %v11724_v53 = vor.u32 %v13391_v21, %v11721_v4  ;;  %v11948_v10 = vor.u32 %v13447_v14, %v11945_v33  ;;  %v11693_v15 = vld [vmem:[#allocation22 + $0x4b4] sm:$0xf0]  ;;  %v13440_v13 = vld [vmem:[#allocation22 + $0x65c] sm:$0xf] }
 0x6a1   :  { %8282 = vmatpush.bf16.msrb.mxu2 %v11976_v5  ;;  %v4798_v32 = vmul.f32 %v16147_v25, %v17501_v52  ;;  %8253 = vmatpush.bf16.msrb.mxu1 %v11752_v26  ;;  %v13251_v42 = vld [vmem:[#allocation22 + $0x74] sm:$0xf]  ;;  %v11161_v36 = vld [vmem:[#allocation22 + $0x8c] sm:$0xf0]  ;;  %v4806_v31 = vmul.f32 %v16147_v25, %v15674_v37  ;;  %v4799_v59 = vmul.f32 %v16168_v62, %v15585_v18  ;;  %v11917_v19 = vld [vmem:[#allocation22 + $0x674] sm:$0xf0] }
 0x6a2   :  { %8199 = vmatpush.bf16.msrb.mxu3 %v11192_v61  ;;  %v11164_v30 = vor.u32 %v13251_v42, %v11161_v36  ;;  %v5057_v34 = vsel %vm4929_vm6, %v16249_v47, %v4993_v51  ;;  %v5065_v22 = vsel %vm4937_vm7, %v4873_v60, %v5001_v58  ;;  %v4879_v20 = vadd.f32 %v16139_v41, %v4797_v11  ;;  %v13307_v61 = vld [vmem:[#allocation22 + $0x234] sm:$0xf]  ;;  %v11385_v37 = vld [vmem:[#allocation22 + $0x24c] sm:$0xf0]  ;;  %v13433_v26 = vld [vmem:[#allocation22 + $0x624] sm:$0xf] }
 0x6a3   :  { %8228 = vmatpush.bf16.msrb.mxu0 %v11416_v28  ;;  %v4887_v5 = vadd.f32 %v16139_v41, %v4805_v35  ;;  %v11920_v18 = vor.u32 %v13440_v13, %v11917_v19  ;;  %v11388_v8 = vor.u32 %v13307_v61, %v11385_v37  ;;  %v4880_v63 = vadd.f32 %v16165_v57, %v4798_v32  ;;  %v11889_v0 = vld [vmem:[#allocation22 + $0x63c] sm:$0xf0]  ;;  %v13377_v51 = vld [vmem:[#allocation22 + $0x464] sm:$0xf]  ;;  %v13244_v32 = vld [vmem:[#allocation22 + $0x3c] sm:$0xf] }
 0x6a4   :  { %v11696_v9 = vor.u32 %v13384_v54, %v11693_v15  ;;  %v16285_v38 = vpack.c.bf16 %v5065_v22, %v5057_v34  ;;  %v4888_v47 = vadd.f32 %v16165_v57, %v4806_v31  ;;  %v16289_v60 = vadd.f32 %v16185_v16, %v4799_v59  ;;  %v11665_v58 = vld [vmem:[#allocation22 + $0x47c] sm:$0xf0]  ;;  %v11637_v31 = vld [vmem:[#allocation22 + $0x444] sm:$0xf0]  ;;  %v13426_v59 = vld [vmem:[#allocation22 + $0x5ec] sm:$0xf] }
 0x6a5   :  { %8283 = vmatpush.bf16.msrb.mxu2 %v11948_v10  ;;  %8254 = vmatpush.bf16.msrb.mxu1 %v11724_v53  ;;  %v4807_v11 = vmul.f32 %v16168_v62, %v15694_v27  ;;  %vm4943_vm8 = vcmp.ge.f32.partialorder %v4879_v20, 0.0  ;;  %v5007_v21 = vmul.f32 0.2, %v4879_v20  ;;  %v5015_v35 = vmul.f32 0.2, %v4887_v5 }
 0x6a6   :  { %8200 = vmatpush.bf16.msrb.mxu3 %v11164_v30  ;;  %v11892_v28 = vor.u32 %v13433_v26, %v11889_v0  ;;  %vm4951_vm9 = vcmp.ge.f32.partialorder %v4887_v5, 0.0  ;;  %vm4944_vm10 = vcmp.ge.f32.partialorder %v4880_v63, 0.0  ;;  %v5008_v4 = vmul.f32 0.2, %v4880_v63  ;;  %v11133_v53 = vld [vmem:[#allocation22 + $0x54] sm:$0xf0] }
 0x6a7   :  { %8229 = vmatpush.bf16.msrb.mxu0 %v11388_v8  ;;  %v11668_v14 = vor.u32 %v13377_v51, %v11665_v58  ;;  %vm4952_vm11 = vcmp.ge.f32.partialorder %v4888_v47, 0.0  ;;  %v5016_v33 = vmul.f32 0.2, %v4888_v47  ;;  %vm4945_vm14 = vcmp.ge.f32.partialorder %v16289_v60, 0.0  ;;  %v13370_v10 = vld [vmem:[#allocation22 + $0x42c] sm:$0xf] }
 0x6a8   :  { %8092 = vmatmul.bf16.gmra.mxu3 %v16262_v1  ;;  %v5009_v27 = vmul.f32 0.2, %v16289_v60  ;;  %v4889_v52 = vadd.f32 %v16185_v16, %v4807_v11  ;;  %v5071_v42 = vsel %vm4943_vm8, %v4879_v20, %v5007_v21  ;;  %v5079_v36 = vsel %vm4951_vm9, %v4887_v5, %v5015_v35  ;;  %v11861_v30 = vld [vmem:[#allocation22 + $0x604] sm:$0xf0]  ;;  %v13300_v19 = vld [vmem:[#allocation22 + $0x1fc] sm:$0xf] }
 0x6a9   :  { %8121 = vmatmul.bf16.gmra.mxu0 %v16266_v24  ;;  %8284 = vmatpush.bf16.msrb.mxu2 %v11920_v18  ;;  %v11136_v54 = vor.u32 %v13244_v32, %v11133_v53  ;;  %v11640_v15 = vor.u32 %v13370_v10, %v11637_v31  ;;  %v11864_v13 = vor.u32 %v13426_v59, %v11861_v30  ;;  %v11357_v34 = vld [vmem:[#allocation22 + $0x214] sm:$0xf0]  ;;  %v13363_v22 = vld [vmem:[#allocation22 + $0x3f4] sm:$0xf]  ;;  %v11609_v8 = vld [vmem:[#allocation22 + $0x40c] sm:$0xf0] }
 0x6aa   :  { %8255 = vmatpush.bf16.msrb.mxu1 %v11696_v9  ;;  %v5072_v61 = vsel %vm4944_vm10, %v4880_v63, %v5008_v4  ;;  %v5080_v37 = vsel %vm4952_vm11, %v4888_v47, %v5016_v33  ;;  %v11360_v18 = vor.u32 %v13300_v19, %v11357_v34  ;;  %v13419_v20 = vld [vmem:[#allocation22 + $0x5b4] sm:$0xf]  ;;  %v11833_v5 = vld [vmem:[#allocation22 + $0x5cc] sm:$0xf0]  ;;  %v16301_v9 = vpack.c.bf16 %v5079_v36, %v5071_v42  ;;  %v13237_v51 = vld [vmem:[#allocation22 + $0x4] sm:$0xf] }
 0x6ab   :  { %8201 = vmatpush.bf16.msrb.mxu3 %v11136_v54  ;;  %v5017_v26 = vmul.f32 0.2, %v4889_v52  ;;  %v4813_v0 = vmul.f32 %v16124_v46, %v15494_v43  ;;  %v11105_v58 = vld [vmem:[#allocation22 + $0x1c] sm:$0xf0]  ;;  %vm4953_vm12 = vcmp.ge.f32.partialorder %v4889_v52, 0.0  ;;  %v4821_v11 = vmul.f32 %v16124_v46, %v15496_v39  ;;  %v17503_v19 = vld [vmem:[#allocation57_spill] sm:$0xff] }
 0x6ac   :  { %8230 = vmatpush.bf16.msrb.mxu0 %v11360_v18  ;;  %v11836_v63 = vor.u32 %v13419_v20, %v11833_v5  ;;  %v11108_v47 = vor.u32 %v13237_v51, %v11105_v58  ;;  %v13412_v21 = vld [vmem:[#allocation22 + $0x57c] sm:$0xf]  ;;  %v16308_v35 = vpack.c.bf16 %v5080_v37, %v5072_v61  ;;  %v11612_v43 = vor.u32 %v13363_v22, %v11609_v8  ;;  %v11805_v4 = vld [vmem:[#allocation22 + $0x594] sm:$0xf0]  ;;  %v11329_v33 = vld [vmem:[#allocation22 + $0x1dc] sm:$0xf0] }
 0x6ad   :  { %8285 = vmatpush.bf16.msrb.mxu2 %v11892_v28  ;;  %v4814_v28 = vmul.f32 %v16147_v25, %v15541_v49  ;;  %v4822_v39 = vmul.f32 %v16147_v25, %v15713_v29  ;;  %v13356_v46 = vld [vmem:[#allocation22 + $0x3bc] sm:$0xf]  ;;  %v11581_v32 = vld [vmem:[#allocation22 + $0x3d4] sm:$0xf0]  ;;  %v5073_v10 = vsel %vm4945_vm14, %v16289_v60, %v5009_v27  ;;  %v5081_v49 = vsel %vm4953_vm12, %v4889_v52, %v5017_v26  ;;  %v13405_v31 = vld [vmem:[#allocation22 + $0x544] sm:$0xf] }
 0x6ae   :  { %8150 = vmatmul.bf16.gmra.mxu1 %v16285_v38  ;;  %v4895_v42 = vadd.f32 %v16139_v41, %v4813_v0  ;;  %v4903_v36 = vadd.f32 %v16139_v41, %v4821_v11  ;;  %v11808_v54 = vor.u32 %v13412_v21, %v11805_v4  ;;  %v11584_v25 = vor.u32 %v13356_v46, %v11581_v32  ;;  %v11553_v60 = vld [vmem:[#allocation22 + $0x39c] sm:$0xf0]  ;;  %v17502_v52 = vld [vmem:[#allocation71_spill] sm:$0xff]  ;;  %v13503_v21 = vld [vmem:[#allocation22 + $0x854] sm:$0xf] }
 0x6af   :  { %8256 = vmatpush.bf16.msrb.mxu1 %v11668_v14  ;;  %v13293_v14 = vld [vmem:[#allocation22 + $0x1c4] sm:$0xf]  ;;  %8202 = vmatpush.bf16.msrb.mxu3 %v11108_v47  ;;  %v4896_v29 = vadd.f32 %v16165_v57, %v4814_v28  ;;  %v16322_v59 = vpack.c.bf16 %v5081_v49, %v5073_v10  ;;  %v4904_v30 = vadd.f32 %v16165_v57, %v4822_v39  ;;  %v11777_v27 = vld [vmem:[#allocation22 + $0x55c] sm:$0xf0]  ;;  %v13510_v8 = vld [vmem:[#allocation22 + $0x88c] sm:$0xf] }
 0x6b0   :  { %8179 = vmatmul.bf16.gmra.mxu2 %v16239_v56  ;;  %v11332_v53 = vor.u32 %v13293_v14, %v11329_v33  ;;  %v4823_v41 = vmul.f32 %v16168_v62, %v17503_v19  ;;  %vm4959_vm0 = vcmp.ge.f32.partialorder %v4895_v42, 0.0  ;;  %v5023_v34 = vmul.f32 0.2, %v4895_v42  ;;  %v12197_v20 = vld [vmem:[#allocation22 + $0x8a4] sm:$0xf0]  ;;  %v17505_v19 = vld [vmem:[#allocation61_spill] sm:$0xff] }
 0x6b1   :  { %8286 = vmatpush.bf16.msrb.mxu2 %v11864_v13  ;;  %v4815_v13 = vmul.f32 %v16168_v62, %v17502_v52  ;;  %v5031_v22 = vmul.f32 0.2, %v4903_v36  ;;  %v11780_v61 = vor.u32 %v13405_v31, %v11777_v27  ;;  %vm4967_vm1 = vcmp.ge.f32.partialorder %v4903_v36, 0.0  ;;  %v12421_v47 = vld [vmem:[#allocation22 + $0xa64] sm:$0xf0] }
 0x6b2   :  { %8231 = vmatpush.bf16.msrb.mxu0 %v11332_v53  ;;  %vm4960_vm2 = vcmp.ge.f32.partialorder %v4896_v29, 0.0  ;;  %v5024_v37 = vmul.f32 0.2, %v4896_v29  ;;  %v5032_v18 = vmul.f32 0.2, %v4904_v30  ;;  %vm4968_vm3 = vcmp.ge.f32.partialorder %v4904_v30, 0.0 }
 0x6b3   :  { %8257 = vmatpush.bf16.msrb.mxu1 %v11640_v15  ;;  %v13349_v15 = vld [vmem:[#allocation22 + $0x384] sm:$0xf]  ;;  %v4897_v62 = vadd.f32 %v16185_v16, %v4815_v13  ;;  %v4905_v5 = vadd.f32 %v16185_v16, %v4823_v41  ;;  %v12200_v26 = vor.u32 %v13510_v8, %v12197_v20  ;;  %v5087_v0 = vsel %vm4959_vm0, %v4895_v42, %v5023_v34  ;;  %v12169_v33 = vld [vmem:[#allocation22 + $0x86c] sm:$0xf0]  ;;  %v13559_v10 = vld [vmem:[#allocation22 + $0xa14] sm:$0xf] }
 0x6b4   :  { %v11556_v57 = vor.u32 %v13349_v15, %v11553_v60  ;;  %v5095_v51 = vsel %vm4967_vm1, %v4903_v36, %v5031_v22  ;;  %v5088_v58 = vsel %vm4960_vm2, %v4896_v29, %v5024_v37  ;;  %v5096_v11 = vsel %vm4968_vm3, %v4904_v30, %v5032_v18  ;;  %v12393_v49 = vld [vmem:[#allocation22 + $0xa2c] sm:$0xf0]  ;;  %v12141_v29 = vld [vmem:[#allocation22 + $0x834] sm:$0xf0]  ;;  %v13552_v31 = vld [vmem:[#allocation22 + $0x9dc] sm:$0xf] }
 0x6b5   :  { %8287 = vmatpush.bf16.msrb.mxu2 %v11836_v63  ;;  %8311 = vmatpush.bf16.msra.mxu3 %v12200_v26  ;;  %v13566_v63 = vld [vmem:[#allocation22 + $0xa4c] sm:$0xf]  ;;  %v16335_v28 = vpack.c.bf16 %v5095_v51, %v5087_v0  ;;  %v5033_v4 = vmul.f32 0.2, %v4905_v5  ;;  %vm4961_vm4 = vcmp.ge.f32.partialorder %v4897_v62, 0.0  ;;  %vm4969_vm5 = vcmp.ge.f32.partialorder %v4905_v5, 0.0 }
 0x6b6   :  { %v12424_v14 = vor.u32 %v13566_v63, %v12421_v47  ;;  %v12172_v16 = vor.u32 %v13503_v21, %v12169_v33  ;;  %v16338_v39 = vpack.c.bf16 %v5096_v11, %v5088_v58  ;;  %v12396_v42 = vor.u32 %v13559_v10, %v12393_v49  ;;  %v17504_v36 = vld [vmem:[#allocation60_spill] sm:$0xff]  ;;  %v12365_v30 = vld [vmem:[#allocation22 + $0x9f4] sm:$0xf0]  ;;  %v13489_v15 = vld [vmem:[#allocation22 + $0x7e4] sm:$0xf] }
 0x6b7   :  { %8258 = vmatpush.bf16.msrb.mxu1 %v11612_v43  ;;  %v5025_v43 = vmul.f32 0.2, %v4897_v62  ;;  %v5097_v32 = vsel %vm4969_vm5, %v4905_v5, %v5033_v4  ;;  %v12368_v60 = vor.u32 %v13552_v31, %v12365_v30  ;;  %v12113_v27 = vld [vmem:[#allocation22 + $0x7fc] sm:$0xf0]  ;;  %v17506_v41 = vld [vmem:[#allocation35_spill] sm:$0xff]  ;;  %v17507_v18 = vld [vmem:[#allocation52_spill] sm:$0xff] }
 0x6b8   :  { %8097 = vmatmul.bf16.gmra.mxu3 %v16301_v9  ;;  %8340 = vmatpush.bf16.msra.mxu0 %v12424_v14  ;;  %v12116_v13 = vor.u32 %v13489_v15, %v12113_v27  ;;  %v12337_v37 = vld [vmem:[#allocation22 + $0x9bc] sm:$0xf0]  ;;  %v17508_v20 = vld [vmem:[#allocation36_spill] sm:$0xff]  ;;  %v12085_v5 = vld [vmem:[#allocation22 + $0x7c4] sm:$0xf0] }
 0x6b9   :  { %8126 = vmatmul.bf16.gmra.mxu0 %v16308_v35  ;;  %8288 = vmatpush.bf16.msrb.mxu2 %v11808_v54  ;;  %v5089_v46 = vsel %vm4961_vm4, %v4897_v62, %v5025_v43  ;;  %v13496_v54 = vld [vmem:[#allocation22 + $0x81c] sm:$0xf]  ;;  %v13482_v62 = vld [vmem:[#allocation22 + $0x7ac] sm:$0xf]  ;;  %v12869_v51 = vld [vmem:[#allocation22 + $0xde4] sm:$0xf0] }
 0x6ba   :  { %8312 = vmatpush.bf16.msra.mxu3 %v12172_v16  ;;  %v16341_v53 = vpack.c.bf16 %v5097_v32, %v5089_v46  ;;  %v13678_v26 = vld [vmem:[#allocation22 + $0xdcc] sm:$0xf]  ;;  %v12088_v0 = vor.u32 %v13482_v62, %v12085_v5  ;;  %v12645_v11 = vld [vmem:[#allocation22 + $0xc24] sm:$0xf0]  ;;  %v13615_v16 = vld [vmem:[#allocation22 + $0xbd4] sm:$0xf] }
 0x6bb   :  { %8259 = vmatpush.bf16.msrb.mxu1 %v11584_v25  ;;  %v12144_v25 = vor.u32 %v13496_v54, %v12141_v29  ;;  %v13622_v58 = vld [vmem:[#allocation22 + $0xc0c] sm:$0xf]  ;;  %v12872_v47 = vor.u32 %v13678_v26, %v12869_v51  ;;  %v12309_v33 = vld [vmem:[#allocation22 + $0x984] sm:$0xf0]  ;;  %v12617_v32 = vld [vmem:[#allocation22 + $0xbec] sm:$0xf0] }
 0x6bc   :  { %8341 = vmatpush.bf16.msra.mxu0 %v12396_v42  ;;  %v12648_v21 = vor.u32 %v13622_v58, %v12645_v11  ;;  %v13538_v14 = vld [vmem:[#allocation22 + $0x96c] sm:$0xf]  ;;  %v13671_v10 = vld [vmem:[#allocation22 + $0xd94] sm:$0xf]  ;;  %v12841_v49 = vld [vmem:[#allocation22 + $0xdac] sm:$0xf0]  ;;  %v12620_v54 = vor.u32 %v13615_v16, %v12617_v32 }
 0x6bd   :  { %8289 = vmatpush.bf16.msrb.mxu2 %v11780_v61  ;;  %v13545_v61 = vld [vmem:[#allocation22 + $0x9a4] sm:$0xf]  ;;  %v12312_v46 = vor.u32 %v13538_v14, %v12309_v33  ;;  %v12844_v29 = vor.u32 %v13671_v10, %v12841_v49  ;;  %v12057_v31 = vld [vmem:[#allocation22 + $0x78c] sm:$0xf0]  ;;  %v13608_v30 = vld [vmem:[#allocation22 + $0xb9c] sm:$0xf] }
 0x6be   :  { %8155 = vmatmul.bf16.gmra.mxu1 %v16322_v59  ;;  %8313 = vmatpush.bf16.msra.mxu3 %v12144_v25  ;;  %v13475_v25 = vld [vmem:[#allocation22 + $0x774] sm:$0xf]  ;;  %v17509_v15 = vld [vmem:[#allocation37_spill] sm:$0xff]  ;;  %v12281_v58 = vld [vmem:[#allocation22 + $0x94c] sm:$0xf0] }
 0x6bf   :  { %8260 = vmatpush.bf16.msrb.mxu1 %v11556_v57  ;;  %v12340_v57 = vor.u32 %v13545_v61, %v12337_v37  ;;  %v12589_v27 = vld [vmem:[#allocation22 + $0xbb4] sm:$0xf0]  ;;  %v17510_v62 = vld [vmem:[#allocation44_spill] sm:$0xff]  ;;  %v13601_v11 = vld [vmem:[#allocation22 + $0xb64] sm:$0xf] }
 0x6c0   :  { %8184 = vmatmul.bf16.gmra.mxu2 %v16256_v40  ;;  %8342 = vmatpush.bf16.msra.mxu0 %v12368_v60  ;;  %v12060_v60 = vor.u32 %v13475_v25, %v12057_v31  ;;  %v12813_v61 = vld [vmem:[#allocation22 + $0xd74] sm:$0xf0]  ;;  %v12592_v37 = vor.u32 %v13608_v30, %v12589_v27  ;;  %v13531_v51 = vld [vmem:[#allocation22 + $0x934] sm:$0xf]  ;;  %v13657_v14 = vld [vmem:[#allocation22 + $0xd24] sm:$0xf] }
 0x6c1   :  { %8398 = vmatpush.bf16.msra.mxu2 %v12872_v47  ;;  %v12284_v47 = vor.u32 %v13531_v51, %v12281_v58  ;;  %v12785_v33 = vld [vmem:[#allocation22 + $0xd3c] sm:$0xf0]  ;;  %v17511_v16 = vld [vmem:[#allocation45_spill] sm:$0xff]  ;;  %v13594_v25 = vld [vmem:[#allocation22 + $0xb2c] sm:$0xf] }
 0x6c2   :  { %8314 = vmatpush.bf16.msra.mxu3 %v12116_v13  ;;  %v13664_v13 = vld [vmem:[#allocation22 + $0xd5c] sm:$0xf]  ;;  %v12788_v10 = vor.u32 %v13657_v14, %v12785_v33  ;;  %v12533_v30 = vld [vmem:[#allocation22 + $0xb44] sm:$0xf0]  ;;  %v12505_v14 = vld [vmem:[#allocation22 + $0xb0c] sm:$0xf0] }
 0x6c3   :  { %8369 = vmatpush.bf16.msra.mxu1 %v12648_v21  ;;  %v12561_v21 = vld [vmem:[#allocation22 + $0xb7c] sm:$0xf0]  ;;  %v17512_v49 = vld [vmem:[#allocation53_spill] sm:$0xff]  ;;  %v12757_v27 = vld [vmem:[#allocation22 + $0xd04] sm:$0xf0] }
 0x6c4   :  { %8343 = vmatpush.bf16.msra.mxu0 %v12340_v57  ;;  %v12816_v57 = vor.u32 %v13664_v13, %v12813_v61  ;;  %v12564_v32 = vor.u32 %v13601_v11, %v12561_v21  ;;  %v12536_v61 = vor.u32 %v13594_v25, %v12533_v30  ;;  %v13524_v58 = vld [vmem:[#allocation22 + $0x8fc] sm:$0xf]  ;;  %v12253_v11 = vld [vmem:[#allocation22 + $0x914] sm:$0xf0]  ;;  %v13643_v33 = vld [vmem:[#allocation22 + $0xcb4] sm:$0xf] }
 0x6c5   :  { %8399 = vmatpush.bf16.msra.mxu2 %v12844_v29  ;;  %v12029_v29 = vld [vmem:[#allocation22 + $0x754] sm:$0xf0]  ;;  %v12256_v21 = vor.u32 %v13524_v58, %v12253_v11  ;;  %v13461_v25 = vld [vmem:[#allocation22 + $0x704] sm:$0xf]  ;;  %v12001_v30 = vld [vmem:[#allocation22 + $0x71c] sm:$0xf0] }
 0x6c6   :  { %8315 = vmatpush.bf16.msra.mxu3 %v12088_v0 }
 0x6c7   :  { %8370 = vmatpush.bf16.msra.mxu1 %v12620_v54  ;;  %v13468_v54 = vld [vmem:[#allocation22 + $0x73c] sm:$0xf] }
 0x6c8   :  { %8102 = vmatmul.bf16.gmra.mxu3 %v16335_v28  ;;  %8344 = vmatpush.bf16.msra.mxu0 %v12312_v46  ;;  %v12032_v31 = vor.u32 %v13468_v54, %v12029_v29 }
 0x6c9   :  { %8131 = vmatmul.bf16.gmra.mxu0 %v16338_v39  ;;  %8400 = vmatpush.bf16.msra.mxu2 %v12816_v57 }
 0x6ca   :  { %8316 = vmatpush.bf16.msra.mxu3 %v12060_v60  ;;  %v13650_v60 = vld [vmem:[#allocation22 + $0xcec] sm:$0xf] }
 0x6cb   :  { %8371 = vmatpush.bf16.msra.mxu1 %v12592_v37  ;;  %v12760_v37 = vor.u32 %v13650_v60, %v12757_v27  ;;  %v13580_v60 = vld [vmem:[#allocation22 + $0xabc] sm:$0xf]  ;;  %v12477_v27 = vld [vmem:[#allocation22 + $0xad4] sm:$0xf0] }
 0x6cc   :  { %8345 = vmatpush.bf16.msra.mxu0 %v12284_v47  ;;  %v13587_v47 = vld [vmem:[#allocation22 + $0xaf4] sm:$0xf] }
 0x6cd   :  { %8401 = vmatpush.bf16.msra.mxu2 %v12788_v10  ;;  %v12508_v54 = vor.u32 %v13587_v47, %v12505_v14 }
 0x6ce   :  { %8160 = vmatmul.bf16.gmra.mxu1 %v16341_v53  ;;  %8317 = vmatpush.bf16.msra.mxu3 %v12032_v31  ;;  %v12004_v31 = vor.u32 %v13461_v25, %v12001_v30  ;;  %v12449_v30 = vld [vmem:[#allocation22 + $0xa9c] sm:$0xf0] }
 0x6cf   :  { %8372 = vmatpush.bf16.msra.mxu1 %v12564_v32  ;;  %v12729_v32 = vld [vmem:[#allocation22 + $0xccc] sm:$0xf0] }
 0x6d0   :  { %8189 = vmatmul.bf16.gmra.mxu2 %v17504_v36  ;;  %v12732_v29 = vor.u32 %v13643_v33, %v12729_v32  ;;  %8346 = vmatpush.bf16.msra.mxu0 %v12256_v21  ;;  %v13517_v33 = vld [vmem:[#allocation22 + $0x8c4] sm:$0xf]  ;;  %v12225_v21 = vld [vmem:[#allocation22 + $0x8dc] sm:$0xf0] }
 0x6d1   :  { %8402 = vmatpush.bf16.msra.mxu2 %v12760_v37  ;;  %v12480_v37 = vor.u32 %v13580_v60, %v12477_v27  ;;  %v13573_v32 = vld [vmem:[#allocation22 + $0xa84] sm:$0xf]  ;;  %v12228_v25 = vor.u32 %v13517_v33, %v12225_v21  ;;  %v12673_v60 = vld [vmem:[#allocation22 + $0xc5c] sm:$0xf0] }
 0x6d2   :  { %8318 = vmatpush.bf16.msra.mxu3 %v12004_v31  ;;  %v11307_v31 = vld [vmem:[#allocation22 + $0x190] sm:$0xf]  ;;  %v16403_v21 = vld [vmem:[#allocation23] sm:$0xff] }
 0x6d3   :  { %8373 = vmatpush.bf16.msra.mxu1 %v12536_v61  ;;  %v13636_v61 = vld [vmem:[#allocation22 + $0xc7c] sm:$0xf]  ;;  %17513 = vst [vmem:[#allocation41_spill] sm:$0xff] %v16403_v21 }
 0x6d4   :  { %8347 = vmatpush.bf16.msra.mxu0 %v12228_v25 }
 0x6d5   :  { %8403 = vmatpush.bf16.msra.mxu2 %v12732_v29 }
 0x6d6   :  { %v16345_v52 = vpop.f32.mrf.mxu0 }
 0x6d7   :  { %8374 = vmatpush.bf16.msra.mxu1 %v12508_v54  ;;  %v13629_v54 = vld [vmem:[#allocation22 + $0xc44] sm:$0xf] }
 0x6d8   :  { %8203 = vmatmul.bf16.vlgmr.msrb.gmra.mxu3 %v17505_v19  ;;  %v12676_v27 = vor.u32 %v13629_v54, %v12673_v60 }
 0x6d9   :  { %8232 = vmatmul.bf16.vlgmr.msrb.gmra.mxu0 %v17506_v41 }
 0x6db   :  { %v16349_v34 = vpop.f32.mrf.mxu3  ;;  %v16351_v22 = vpop.f32.mrf.mxu1  ;;  %8375 = vmatpush.bf16.msra.mxu1 %v12480_v37 }
 0x6de   :  { %8261 = vmatmul.bf16.vlgmr.msrb.gmra.mxu1 %v17507_v18  ;;  %v16354_v8 = vpop.f32.mrf.mxu0 }
 0x6e0   :  { %8290 = vmatmul.bf16.vlgmr.msrb.gmra.mxu2 %v17508_v20 }
 0x6e3   :  { %v16357_v63 = vpop.f32.mrf.mxu3  ;;  %v16359_v43 = vpop.f32.mrf.mxu2 }
 0x6e4   :  { %v16361_v4 = vpop.f32.mrf.mxu1 }
 0x6e6   :  { %v16363_v42 = vpop.f32.mrf.mxu0 }
 0x6e8   :  { %8208 = vmatmul.bf16.gmra.mxu3 %v17509_v15 }
 0x6e9   :  { %8237 = vmatmul.bf16.gmra.mxu0 %v17510_v62 }
 0x6eb   :  { %v16367_v5 = vpop.f32.mrf.mxu3  ;;  %v16369_v26 = vpop.f32.mrf.mxu2 }
 0x6ec   :  { %v16371_v0 = vpop.f32.mrf.mxu1 }
 0x6ee   :  { %8266 = vmatmul.bf16.gmra.mxu1 %v17511_v16  ;;  %v16374_v46 = vpop.f32.mrf.mxu0 }
 0x6f0   :  { %8295 = vmatmul.bf16.gmra.mxu2 %v17512_v49  ;;  %v12701_v49 = vld [vmem:[#allocation22 + $0xc94] sm:$0xf0] }
 0x6f1   :  { %v12704_v58 = vor.u32 %v13636_v61, %v12701_v49  ;;  %v12452_v49 = vor.u32 %v13573_v32, %v12449_v30  ;;  %v13290_v61 = vld [vmem:[#allocation22 + $0x1a8] sm:$0xf0]  ;;  %v16409_v32 = vperm.slane %v16403_v21, 0  ;;  %v13283_v21 = vld [vmem:[#allocation22 + $0x170] sm:$0xf0] }
 0x6f2   :  { %v11308_v37 = vor.u32 %v13290_v61, %v11307_v31  ;;  %v11279_v31 = vld [vmem:[#allocation22 + $0x158] sm:$0xf] }
 0x6f3   :  { %v16377_v13 = vpop.f32.mrf.mxu3  ;;  %v16379_v57 = vpop.f32.mrf.mxu2  ;;  %8404 = vmatpush.bf16.msra.mxu2 %v12704_v58  ;;  %8376 = vmatpush.bf16.msra.mxu1 %v12452_v49  ;;  %v7973_v60 = vadd.f32 %v16349_v34, %v16409_v32  ;;  %v11531_v49 = vld [vmem:[#allocation22 + $0x350] sm:$0xf] }
 0x6f4   :  { %v16381_v51 = vpop.f32.mrf.mxu1  ;;  %8427 = vmatpush.bf16.msrb.mxu3 %v11308_v37 }
 0x6f6   :  { %v16383_v10 = vpop.f32.mrf.mxu0 }
 0x6f7   :  { %8405 = vmatpush.bf16.msra.mxu2 %v12676_v27  ;;  %v13346_v27 = vld [vmem:[#allocation22 + $0x368] sm:$0xf0] }
 0x6f8   :  { %8213 = vmatmul.bf16.gmra.mxu3 %v16080_v6  ;;  %v11532_v37 = vor.u32 %v13346_v27, %v11531_v49  ;;  %v11503_v49 = vld [vmem:[#allocation22 + $0x318] sm:$0xf]  ;;  %v13339_v27 = vld [vmem:[#allocation22 + $0x330] sm:$0xf0] }
 0x6f9   :  { %8242 = vmatmul.bf16.gmra.mxu0 %v16082_v23 }
 0x6fa   :  { %8456 = vmatpush.bf16.msrb.mxu0 %v11532_v37  ;;  %v13276_v37 = vld [vmem:[#allocation22 + $0x138] sm:$0xf0] }
 0x6fb   :  { %v16387_v11 = vpop.f32.mrf.mxu3  ;;  %v16389_v47 = vpop.f32.mrf.mxu2 }
 0x6fc   :  { %v16391_v14 = vpop.f32.mrf.mxu1 }
 0x6fe   :  { %8271 = vmatmul.bf16.gmra.mxu1 %v16114_v45  ;;  %v16394_v29 = vpop.f32.mrf.mxu0 }
 0x700   :  { %8300 = vmatmul.bf16.gmra.mxu2 %v16121_v2 }
 0x703   :  { %v16397_v23 = vpop.f32.mrf.mxu3  ;;  %v16399_v58 = vpop.f32.mrf.mxu2 }
 0x704   :  { %v16401_v33 = vpop.f32.mrf.mxu1 }
 0x706   :  { %v16405_v45 = vpop.f32.mrf.mxu0 }
 0x708   :  { %8218 = vmatmul.bf16.gmra.mxu3 %v16141_v17  ;;  %v11280_v17 = vor.u32 %v13283_v21, %v11279_v31  ;;  %v11251_v21 = vld [vmem:[#allocation22 + $0x120] sm:$0xf] }
 0x709   :  { %8247 = vmatmul.bf16.gmra.mxu0 %v16158_v7  ;;  %v8002_v7 = vadd.f32 %v16345_v52, %v7973_v60 }
 0x70a   :  { %8428 = vmatpush.bf16.msrb.mxu3 %v11280_v17  ;;  %v11252_v17 = vor.u32 %v13276_v37, %v11251_v21  ;;  %v11475_v21 = vld [vmem:[#allocation22 + $0x2e0] sm:$0xf]  ;;  %v11223_v37 = vld [vmem:[#allocation22 + $0xe8] sm:$0xf] }
 0x70b   :  { %v16412_v25 = vpop.f32.mrf.mxu3  ;;  %v16414_v30 = vpop.f32.mrf.mxu2  ;;  %v8031_v16 = vadd.f32 %v16351_v22, %v8002_v7 }
 0x70c   :  { %v16416_v54 = vpop.f32.mrf.mxu1 }
 0x70d   :  { %v8060_v52 = vadd.f32 %v16359_v43, %v8031_v16  ;;  %v13269_v43 = vld [vmem:[#allocation22 + $0x100] sm:$0xf0] }
 0x70e   :  { %8276 = vmatmul.bf16.gmra.mxu1 %v16171_v12  ;;  %v16421_v61 = vpop.f32.mrf.mxu0  ;;  %v7975_v12 = vadd.f32 %v16357_v63, %v16409_v32  ;;  %8429 = vmatpush.bf16.msrb.mxu3 %v11252_v17  ;;  %v11224_v16 = vor.u32 %v13269_v43, %v11223_v37  ;;  %v11447_v37 = vld [vmem:[#allocation22 + $0x2a8] sm:$0xf]  ;;  %v13325_v43 = vld [vmem:[#allocation22 + $0x2c0] sm:$0xf0] }
 0x710   :  { %8305 = vmatmul.bf16.gmra.mxu2 %v16191_v3  ;;  %v11504_v3 = vor.u32 %v13339_v27, %v11503_v49  ;;  %v8004_v60 = vadd.f32 %v16354_v8, %v7975_v12  ;;  %v7978_v49 = vadd.f32 %v16367_v5, %v16409_v32 }
 0x712   :  { %8457 = vmatpush.bf16.msrb.mxu0 %v11504_v3  ;;  %v8033_v15 = vadd.f32 %v16361_v4, %v8004_v60  ;;  %v13332_v3 = vld [vmem:[#allocation22 + $0x2f8] sm:$0xf0]  ;;  %v8007_v4 = vadd.f32 %v16363_v42, %v7978_v49  ;;  %8430 = vmatpush.bf16.msrb.mxu3 %v11224_v16  ;;  %v11979_v42 = vld [vmem:[#allocation22 + $0x6d0] sm:$0xf]  ;;  %v13458_v49 = vld [vmem:[#allocation22 + $0x6e8] sm:$0xf0] }
 0x713   :  { %v16425_v2 = vpop.f32.mrf.mxu3  ;;  %v16427_v6 = vpop.f32.mrf.mxu2  ;;  %v11476_v8 = vor.u32 %v13332_v3, %v11475_v21  ;;  %v7980_v21 = vadd.f32 %v16377_v13, %v16409_v32  ;;  %v11980_v16 = vor.u32 %v13458_v49, %v11979_v42  ;;  %v11951_v42 = vld [vmem:[#allocation22 + $0x698] sm:$0xf] }
 0x714   :  { %v16429_v34 = vpop.f32.mrf.mxu1 }
 0x715   :  { %8514 = vmatpush.bf16.msrb.mxu2 %v11980_v16  ;;  %v11167_v16 = vld [vmem:[#allocation22 + $0x78] sm:$0xf] }
 0x716   :  { %v8117_v31 = vpop.f32.mrf.mxu0  ;;  %8458 = vmatpush.bf16.msrb.mxu0 %v11476_v8 }
 0x718   :  { %8319 = vmatmul.bf16.vlgmr.msra.gmra.mxu3 %v16215_v50 }
 0x719   :  { %8348 = vmatmul.bf16.vlgmr.msra.gmra.mxu0 %v16224_v55 }
 0x71b   :  { %v8088_v7 = vpop.f32.mrf.mxu3  ;;  %v16438_v22 = vpop.f32.mrf.mxu2 }
 0x71c   :  { %v8146_v63 = vpop.f32.mrf.mxu1  ;;  %v8089_v62 = vadd.f32 %v8088_v7, %v8060_v52  ;;  %v8062_v52 = vadd.f32 %v16369_v26, %v8033_v15  ;;  %v11448_v15 = vor.u32 %v13325_v43, %v11447_v37  ;;  %v13262_v26 = vld [vmem:[#allocation22 + $0xc8] sm:$0xf0] }
 0x71e   :  { %v8118_v27 = vadd.f32 %v8117_v31, %v8089_v62  ;;  %8377 = vmatmul.bf16.vlgmr.msra.gmra.mxu1 %v16246_v44  ;;  %v8119_v12 = vpop.f32.mrf.mxu0  ;;  %v8036_v44 = vadd.f32 %v16371_v0, %v8007_v4  ;;  %8459 = vmatpush.bf16.msrb.mxu0 %v11448_v15  ;;  %v11727_v15 = vld [vmem:[#allocation22 + $0x4d8] sm:$0xf] }
 0x720   :  { %8406 = vmatmul.bf16.vlgmr.msra.gmra.mxu2 %v16202_v48  ;;  %v8147_v17 = vadd.f32 %v8146_v63, %v8118_v27  ;;  %v11195_v63 = vld [vmem:[#allocation22 + $0xb0] sm:$0xf]  ;;  %v8065_v13 = vadd.f32 %v16379_v57, %v8036_v44 }
 0x721   :  { %v11196_v8 = vor.u32 %v13262_v26, %v11195_v63  ;;  %v11419_v57 = vld [vmem:[#allocation22 + $0x270] sm:$0xf]  ;;  %v13395_v26 = vld [vmem:[#allocation22 + $0x4f0] sm:$0xf0] }
 0x722   :  { %v11728_v49 = vor.u32 %v13395_v26, %v11727_v15  ;;  %v7985_v15 = vadd.f32 %v16397_v23, %v16409_v32 }
 0x723   :  { %v8090_v5 = vpop.f32.mrf.mxu3  ;;  %v8175_v62 = vpop.f32.mrf.mxu2  ;;  %8431 = vmatpush.bf16.msrb.mxu3 %v11196_v8  ;;  %v13451_v8 = vld [vmem:[#allocation22 + $0x6b0] sm:$0xf0] }
 0x724   :  { %v8148_v31 = vpop.f32.mrf.mxu1  ;;  %v8091_v60 = vadd.f32 %v8090_v5, %v8062_v52  ;;  %v8176_v7 = vadd.f32 %v8175_v62, %v8147_v17  ;;  %v11755_v17 = vld [vmem:[#allocation22 + $0x510] sm:$0xf]  ;;  %v13402_v52 = vld [vmem:[#allocation22 + $0x528] sm:$0xf0] }
 0x725   :  { %v11756_v4 = vor.u32 %v13402_v52, %v11755_v17  ;;  %v13255_v17 = vld [vmem:[#allocation22 + $0x90] sm:$0xf0]  ;;  %v11699_v52 = vld [vmem:[#allocation22 + $0x4a0] sm:$0xf] }
 0x726   :  { %v8120_v3 = vadd.f32 %v8119_v12, %v8091_v60  ;;  %13768 = vtanh.f32 %v8176_v7  ;;  %v8122_v27 = vpop.f32.mrf.mxu0  ;;  %v8009_v12 = vadd.f32 %v16374_v46, %v7980_v21  ;;  %v13318_v46 = vld [vmem:[#allocation22 + $0x288] sm:$0xf0] }
 0x727   :  { %8485 = vmatpush.bf16.msrb.mxu1 %v11756_v4  ;;  %v11923_v4 = vld [vmem:[#allocation22 + $0x660] sm:$0xf] }
 0x728   :  { %8324 = vmatmul.bf16.gmra.mxu3 %v16262_v1  ;;  %v8149_v0 = vadd.f32 %v8148_v31, %v8120_v3  ;;  %v8038_v63 = vadd.f32 %v16381_v51, %v8009_v12  ;;  %v7983_v31 = vadd.f32 %v16387_v11, %v16409_v32  ;;  %v11420_v3 = vor.u32 %v13318_v46, %v11419_v57 }
 0x729   :  { %8353 = vmatmul.bf16.gmra.mxu0 %v16266_v24  ;;  %v11952_v11 = vor.u32 %v13451_v8, %v11951_v42  ;;  %v11671_v42 = vld [vmem:[#allocation22 + $0x468] sm:$0xf] }
 0x72a   :  { %8460 = vmatpush.bf16.msrb.mxu0 %v11420_v3  ;;  %v8012_v12 = vadd.f32 %v16383_v10, %v7983_v31  ;;  %v11391_v10 = vld [vmem:[#allocation22 + $0x238] sm:$0xf]  ;;  %v11895_v8 = vld [vmem:[#allocation22 + $0x628] sm:$0xf] }
 0x72b   :  { %v8093_v5 = vpop.f32.mrf.mxu3  ;;  %v8177_v62 = vpop.f32.mrf.mxu2  ;;  %8486 = vmatpush.bf16.msrb.mxu1 %v11728_v49  ;;  %8515 = vmatpush.bf16.msrb.mxu2 %v11952_v11  ;;  %v13381_v49 = vld [vmem:[#allocation22 + $0x480] sm:$0xf0] }
 0x72c   :  { %v8151_v60 = vpop.f32.mrf.mxu1  ;;  %v8094_v7 = vadd.f32 %v8093_v5, %v8065_v13  ;;  %v13769_v37 = vpop.eup %13768  ;;  %v8178_v43 = vadd.f32 %v8177_v62, %v8149_v0  ;;  %v13388_v0 = vld [vmem:[#allocation22 + $0x4b8] sm:$0xf0]  ;;  %v8067_v13 = vadd.f32 %v16389_v47, %v8038_v63  ;;  %v8041_v3 = vadd.f32 %v16391_v14, %v8012_v12  ;;  %v13311_v63 = vld [vmem:[#allocation22 + $0x250] sm:$0xf0]  ;;  %v11139_v14 = vld [vmem:[#allocation22 + $0x40] sm:$0xf] }
 0x72d   :  { %9643 = vst [vmem:[#allocation25] sm:$0xff] %v13769_v37  ;;  %v11700_v5 = vor.u32 %v13388_v0, %v11699_v52  ;;  %v13444_v62 = vld [vmem:[#allocation22 + $0x678] sm:$0xf0]  ;;  %v11392_v26 = vor.u32 %v13311_v63, %v11391_v10  ;;  %v13374_v52 = vld [vmem:[#allocation22 + $0x448] sm:$0xf0] }
 0x72e   :  { %v8123_v44 = vadd.f32 %v8122_v27, %v8094_v7  ;;  %13770 = vtanh.f32 %v8178_v43  ;;  %8382 = vmatmul.bf16.gmra.mxu1 %v16285_v38  ;;  %v8124_v21 = vpop.f32.mrf.mxu0  ;;  %v11168_v27 = vor.u32 %v13255_v17, %v11167_v16  ;;  %v11924_v37 = vor.u32 %v13444_v62, %v11923_v4  ;;  %v13437_v17 = vld [vmem:[#allocation22 + $0x640] sm:$0xf0]  ;;  %v11867_v0 = vld [vmem:[#allocation22 + $0x5f0] sm:$0xf]  ;;  %v11615_v63 = vld [vmem:[#allocation22 + $0x3f8] sm:$0xf] }
 0x72f   :  { %8487 = vmatpush.bf16.msrb.mxu1 %v11700_v5  ;;  %v11672_v16 = vor.u32 %v13381_v49, %v11671_v42  ;;  %8461 = vmatpush.bf16.msrb.mxu0 %v11392_v26  ;;  %v11896_v23 = vor.u32 %v13437_v17, %v11895_v8  ;;  %v8070_v4 = vadd.f32 %v16399_v58, %v8041_v3  ;;  %v13430_v5 = vld [vmem:[#allocation22 + $0x608] sm:$0xf0]  ;;  %v11363_v3 = vld [vmem:[#allocation22 + $0x200] sm:$0xf]  ;;  %v13367_v26 = vld [vmem:[#allocation22 + $0x410] sm:$0xf0] }
 0x730   :  { %8411 = vmatmul.bf16.gmra.mxu2 %v16239_v56  ;;  %v8152_v51 = vadd.f32 %v8151_v60, %v8123_v44  ;;  %8432 = vmatpush.bf16.msrb.mxu3 %v11168_v27  ;;  %v11643_v27 = vld [vmem:[#allocation22 + $0x430] sm:$0xf]  ;;  %v7988_v58 = vadd.f32 %v16412_v25, %v16409_v32  ;;  %v11839_v42 = vld [vmem:[#allocation22 + $0x5b8] sm:$0xf]  ;;  %v11616_v49 = vor.u32 %v13367_v26, %v11615_v63  ;;  %v13423_v8 = vld [vmem:[#allocation22 + $0x5d0] sm:$0xf0] }
 0x731   :  { %8516 = vmatpush.bf16.msrb.mxu2 %v11924_v37  ;;  %v11644_v12 = vor.u32 %v13374_v52, %v11643_v27  ;;  %v13416_v52 = vld [vmem:[#allocation22 + $0x598] sm:$0xf0]  ;;  %v13570_v26 = vld [vmem:[#allocation22 + $0xa68] sm:$0xf0] }
 0x733   :  { %v8095_v7 = vpop.f32.mrf.mxu3  ;;  %v8180_v43 = vpop.f32.mrf.mxu2  ;;  %8488 = vmatpush.bf16.msrb.mxu1 %v11672_v16  ;;  %v13241_v16 = vld [vmem:[#allocation22 + $0x20] sm:$0xf0] }
 0x734   :  { %v8153_v57 = vpop.f32.mrf.mxu1  ;;  %v8096_v60 = vadd.f32 %v8095_v7, %v8067_v13  ;;  %v13771_v44 = vpop.eup %13770  ;;  %v8181_v46 = vadd.f32 %v8180_v43, %v8152_v51  ;;  %v13248_v51 = vld [vmem:[#allocation22 + $0x58] sm:$0xf0]  ;;  %v8014_v13 = vadd.f32 %v16394_v29, %v7985_v15  ;;  %v11868_v7 = vor.u32 %v13430_v5, %v11867_v0 }
 0x735   :  { %9650 = vst [vmem:[#allocation25 + $0x38] sm:$0xff] %v13771_v44  ;;  %8517 = vmatpush.bf16.msrb.mxu2 %v11896_v23  ;;  %v13304_v15 = vld [vmem:[#allocation22 + $0x218] sm:$0xf0] }
 0x736   :  { %v8125_v47 = vadd.f32 %v8124_v21, %v8096_v60  ;;  %13772 = vtanh.f32 %v8181_v46  ;;  %v8127_v31 = vpop.f32.mrf.mxu0  ;;  %v11140_v21 = vor.u32 %v13248_v51, %v11139_v14  ;;  %v8043_v46 = vadd.f32 %v16401_v33, %v8014_v13  ;;  %v11111_v33 = vld [vmem:[#allocation22 + $0x8] sm:$0xf]  ;;  %v11587_v14 = vld [vmem:[#allocation22 + $0x3c0] sm:$0xf]  ;;  %v13360_v51 = vld [vmem:[#allocation22 + $0x3d8] sm:$0xf0] }
 0x737   :  { %8489 = vmatpush.bf16.msrb.mxu1 %v11644_v12  ;;  %v11364_v10 = vor.u32 %v13304_v15, %v11363_v3  ;;  %v11112_v17 = vor.u32 %v13241_v16, %v11111_v33  ;;  %v11588_v27 = vor.u32 %v13360_v51, %v11587_v14  ;;  %v13409_v15 = vld [vmem:[#allocation22 + $0x560] sm:$0xf0]  ;;  %v13507_v16 = vld [vmem:[#allocation22 + $0x870] sm:$0xf0] }
 0x738   :  { %8329 = vmatmul.bf16.gmra.mxu3 %v16301_v9  ;;  %v8154_v11 = vadd.f32 %v8153_v57, %v8125_v47  ;;  %v8072_v23 = vadd.f32 %v16414_v30, %v8043_v46  ;;  %v11559_v46 = vld [vmem:[#allocation22 + $0x388] sm:$0xf] }
 0x739   :  { %8358 = vmatmul.bf16.gmra.mxu0 %v16308_v35  ;;  %8433 = vmatpush.bf16.msrb.mxu3 %v11140_v21  ;;  %v8017_v21 = vadd.f32 %v16405_v45, %v7988_v58  ;;  %v11335_v45 = vld [vmem:[#allocation22 + $0x1c8] sm:$0xf]  ;;  %v13353_v58 = vld [vmem:[#allocation22 + $0x3a0] sm:$0xf0] }
 0x73a   :  { %8518 = vmatpush.bf16.msrb.mxu2 %v11868_v7  ;;  %8462 = vmatpush.bf16.msrb.mxu0 %v11364_v10  ;;  %v11560_v3 = vor.u32 %v13353_v58, %v11559_v46  ;;  %v13514_v10 = vld [vmem:[#allocation22 + $0x8a8] sm:$0xf0] }
 0x73b   :  { %v8098_v62 = vpop.f32.mrf.mxu3  ;;  %v8182_v37 = vpop.f32.mrf.mxu2  ;;  %8490 = vmatpush.bf16.msrb.mxu1 %v11616_v49 }
 0x73c   :  { %v8156_v43 = vpop.f32.mrf.mxu1  ;;  %v8099_v57 = vadd.f32 %v8098_v62, %v8070_v4  ;;  %v13773_v60 = vpop.eup %13772  ;;  %v8183_v44 = vadd.f32 %v8182_v37, %v8154_v11  ;;  %v11811_v11 = vld [vmem:[#allocation22 + $0x580] sm:$0xf]  ;;  %v8046_v37 = vadd.f32 %v16416_v54, %v8017_v21  ;;  %v12203_v54 = vld [vmem:[#allocation22 + $0x890] sm:$0xf]  ;;  %v12399_v21 = vld [vmem:[#allocation22 + $0xa18] sm:$0xf] }
 0x73d   :  { %9657 = vst [vmem:[#allocation25 + $0x70] sm:$0xff] %v13773_v60  ;;  %8434 = vmatpush.bf16.msrb.mxu3 %v11112_v17  ;;  %v11812_v4 = vor.u32 %v13416_v52, %v11811_v11 }
 0x73e   :  { %v8128_v29 = vadd.f32 %v8127_v31, %v8099_v57  ;;  %13774 = vtanh.f32 %v8183_v44  ;;  %8387 = vmatmul.bf16.gmra.mxu1 %v16322_v59  ;;  %v8129_v47 = vpop.f32.mrf.mxu0  ;;  %v11840_v31 = vor.u32 %v13423_v8, %v11839_v42  ;;  %v13297_v57 = vld [vmem:[#allocation22 + $0x1e0] sm:$0xf0]  ;;  %v12175_v42 = vld [vmem:[#allocation22 + $0x858] sm:$0xf]  ;;  %v8075_v49 = vadd.f32 %v16427_v6, %v8046_v37 }
 0x73f   :  { %8491 = vmatpush.bf16.msrb.mxu1 %v11588_v27  ;;  %v11336_v44 = vor.u32 %v13297_v57, %v11335_v45  ;;  %v13563_v27 = vld [vmem:[#allocation22 + $0xa30] sm:$0xf0]  ;;  %v12371_v57 = vld [vmem:[#allocation22 + $0x9e0] sm:$0xf] }
 0x740   :  { %8416 = vmatmul.bf16.gmra.mxu2 %v16256_v40  ;;  %v8157_v25 = vadd.f32 %v8156_v43, %v8128_v29  ;;  %v7990_v43 = vadd.f32 %v16425_v2, %v16409_v32  ;;  %v11783_v29 = vld [vmem:[#allocation22 + $0x548] sm:$0xf]  ;;  %v12204_v32 = vor.u32 %v13514_v10, %v12203_v54  ;;  %v12400_v52 = vor.u32 %v13563_v27, %v12399_v21 }
 0x741   :  { %8519 = vmatpush.bf16.msrb.mxu2 %v11840_v31  ;;  %8463 = vmatpush.bf16.msrb.mxu0 %v11336_v44  ;;  %v11784_v2 = vor.u32 %v13409_v15, %v11783_v29  ;;  %v12176_v31 = vor.u32 %v13507_v16, %v12175_v42  ;;  %v12119_v44 = vld [vmem:[#allocation22 + $0x7e8] sm:$0xf]  ;;  %v13493_v29 = vld [vmem:[#allocation22 + $0x800] sm:$0xf0]  ;;  %v12875_v16 = vld [vmem:[#allocation22 + $0xdd0] sm:$0xf] }
 0x742   :  { %v8019_v8 = vadd.f32 %v16421_v61, %v7990_v43  ;;  %8543 = vmatpush.bf16.msra.mxu3 %v12204_v32  ;;  %v12120_v15 = vor.u32 %v13493_v29, %v12119_v44  ;;  %v12819_v44 = vld [vmem:[#allocation22 + $0xd60] sm:$0xf]  ;;  %v17515_v29 = vld [vmem:[#allocation44_spill] sm:$0xff] }
 0x743   :  { %v8100_v0 = vpop.f32.mrf.mxu3  ;;  %v8185_v13 = vpop.f32.mrf.mxu2  ;;  %8492 = vmatpush.bf16.msrb.mxu1 %v11560_v3 }
 0x744   :  { %v8158_v12 = vpop.f32.mrf.mxu1  ;;  %v8101_v5 = vadd.f32 %v8100_v0, %v8072_v23  ;;  %v13775_v62 = vpop.eup %13774  ;;  %v8186_v7 = vadd.f32 %v8185_v13, %v8157_v25  ;;  %v8048_v6 = vadd.f32 %v16429_v34, %v8019_v8  ;;  %v12147_v13 = vld [vmem:[#allocation22 + $0x820] sm:$0xf]  ;;  %v12091_v8 = vld [vmem:[#allocation22 + $0x7b0] sm:$0xf] }
 0x745   :  { %9664 = vst [vmem:[#allocation25 + $0xa8] sm:$0xff] %v13775_v62  ;;  %8520 = vmatpush.bf16.msrb.mxu2 %v11812_v4 }
 0x746   :  { %v8130_v30 = vadd.f32 %v8129_v47, %v8101_v5  ;;  %13776 = vtanh.f32 %v8186_v7  ;;  %v8132_v60 = vpop.f32.mrf.mxu0  ;;  %v12427_v47 = vld [vmem:[#allocation22 + $0xa50] sm:$0xf]  ;;  %8544 = vmatpush.bf16.msra.mxu3 %v12176_v31  ;;  %v8077_v5 = vadd.f32 %v16438_v22, %v8048_v6  ;;  %v13682_v31 = vld [vmem:[#allocation22 + $0xde8] sm:$0xf0] }
 0x747   :  { %v12428_v33 = vor.u32 %v13570_v26, %v12427_v47  ;;  %v12343_v47 = vld [vmem:[#allocation22 + $0x9a8] sm:$0xf]  ;;  %v13549_v26 = vld [vmem:[#allocation22 + $0x9c0] sm:$0xf0] }
 0x748   :  { %8334 = vmatmul.bf16.gmra.mxu3 %v16335_v28  ;;  %v8159_v63 = vadd.f32 %v8158_v12, %v8130_v30  ;;  %v13500_v12 = vld [vmem:[#allocation22 + $0x838] sm:$0xf0]  ;;  %v12344_v42 = vor.u32 %v13549_v26, %v12343_v47  ;;  %v13535_v47 = vld [vmem:[#allocation22 + $0x950] sm:$0xf0]  ;;  %v12567_v26 = vld [vmem:[#allocation22 + $0xb68] sm:$0xf] }
 0x749   :  { %8363 = vmatmul.bf16.gmra.mxu0 %v16338_v39  ;;  %8521 = vmatpush.bf16.msrb.mxu2 %v11784_v2  ;;  %v12148_v62 = vor.u32 %v13500_v12, %v12147_v13  ;;  %v13619_v13 = vld [vmem:[#allocation22 + $0xbf0] sm:$0xf0]  ;;  %v12847_v12 = vld [vmem:[#allocation22 + $0xd98] sm:$0xf] }
 0x74a   :  { %8572 = vmatpush.bf16.msra.mxu0 %v12428_v33  ;;  %v13486_v33 = vld [vmem:[#allocation22 + $0x7c8] sm:$0xf0] }
 0x74b   :  { %v8103_v25 = vpop.f32.mrf.mxu3  ;;  %v8187_v17 = vpop.f32.mrf.mxu2  ;;  %8545 = vmatpush.bf16.msra.mxu3 %v12148_v62 }
 0x74c   :  { %v8161_v14 = vpop.f32.mrf.mxu1  ;;  %v8104_v51 = vadd.f32 %v8103_v25, %v8075_v49  ;;  %v13777_v11 = vpop.eup %13776  ;;  %v8188_v23 = vadd.f32 %v8187_v17, %v8159_v63  ;;  %v12092_v25 = vor.u32 %v13486_v33, %v12091_v8  ;;  %v12651_v17 = vld [vmem:[#allocation22 + $0xc10] sm:$0xf]  ;;  %v13605_v8 = vld [vmem:[#allocation22 + $0xb80] sm:$0xf0]  ;;  %v12791_v33 = vld [vmem:[#allocation22 + $0xd28] sm:$0xf] }
 0x74d   :  { %9671 = vst [vmem:[#allocation25 + $0xe0] sm:$0xff] %v13777_v11  ;;  %v12876_v11 = vor.u32 %v13682_v31, %v12875_v16  ;;  %v13661_v16 = vld [vmem:[#allocation22 + $0xd40] sm:$0xf0] }
 0x74e   :  { %v8133_v61 = vadd.f32 %v8132_v60, %v8104_v51  ;;  %13778 = vtanh.f32 %v8188_v23  ;;  %8392 = vmatmul.bf16.gmra.mxu1 %v16341_v53  ;;  %v8134_v0 = vpop.f32.mrf.mxu0  ;;  %8573 = vmatpush.bf16.msra.mxu0 %v12400_v52  ;;  %v13556_v60 = vld [vmem:[#allocation22 + $0x9f8] sm:$0xf0]  ;;  %v13542_v52 = vld [vmem:[#allocation22 + $0x988] sm:$0xf0] }
 0x74f   :  { %v12372_v58 = vor.u32 %v13556_v60, %v12371_v57  ;;  %8546 = vmatpush.bf16.msra.mxu3 %v12120_v15  ;;  %8630 = vmatpush.bf16.msra.mxu2 %v12876_v11  ;;  %v12595_v57 = vld [vmem:[#allocation22 + $0xba0] sm:$0xf]  ;;  %v13612_v60 = vld [vmem:[#allocation22 + $0xbb8] sm:$0xf0] }
 0x750   :  { %8421 = vmatmul.bf16.gmra.mxu2 %v17504_v36  ;;  %v8162_v4 = vadd.f32 %v8161_v14, %v8133_v61  ;;  %v13626_v14 = vld [vmem:[#allocation22 + $0xc28] sm:$0xf0]  ;;  %v12315_v61 = vld [vmem:[#allocation22 + $0x970] sm:$0xf]  ;;  %v17517_v11 = vld [vmem:[#allocation53_spill] sm:$0xff] }
 0x751   :  { %v12652_v23 = vor.u32 %v13626_v14, %v12651_v17  ;;  %v12568_v17 = vor.u32 %v13605_v8, %v12567_v26  ;;  %v12792_v14 = vor.u32 %v13661_v16, %v12791_v33  ;;  %v12007_v26 = vld [vmem:[#allocation22 + $0x708] sm:$0xf]  ;;  %v12483_v8 = vld [vmem:[#allocation22 + $0xac0] sm:$0xf] }
 0x752   :  { %8574 = vmatpush.bf16.msra.mxu0 %v12372_v58  ;;  %v13668_v58 = vld [vmem:[#allocation22 + $0xd78] sm:$0xf0]  ;;  %v17518_v33 = vld [vmem:[#allocation54_spill] sm:$0xff] }
 0x753   :  { %v8105_v7 = vpop.f32.mrf.mxu3  ;;  %v8190_v37 = vpop.f32.mrf.mxu2  ;;  %8547 = vmatpush.bf16.msra.mxu3 %v12092_v25  ;;  %8601 = vmatpush.bf16.msra.mxu1 %v12652_v23  ;;  %v12820_v15 = vor.u32 %v13668_v58, %v12819_v44  ;;  %v17516_v25 = vld [vmem:[#allocation45_spill] sm:$0xff]  ;;  %v12035_v23 = vld [vmem:[#allocation22 + $0x740] sm:$0xf]  ;;  %v13591_v44 = vld [vmem:[#allocation22 + $0xb10] sm:$0xf0] }
 0x754   :  { %v8163_v34 = vpop.f32.mrf.mxu1  ;;  %v8106_v43 = vadd.f32 %v8105_v7, %v8077_v5  ;;  %v13779_v30 = vpop.eup %13778  ;;  %v8191_v45 = vadd.f32 %v8190_v37, %v8162_v4  ;;  %v12316_v4 = vor.u32 %v13542_v52, %v12315_v61  ;;  %v13675_v7 = vld [vmem:[#allocation22 + $0xdb0] sm:$0xf0]  ;;  %v12063_v37 = vld [vmem:[#allocation22 + $0x778] sm:$0xf]  ;;  %v12539_v61 = vld [vmem:[#allocation22 + $0xb30] sm:$0xf] }
 0x755   :  { %9678 = vst [vmem:[#allocation25 + $0x118] sm:$0xff] %v13779_v30  ;;  %v12848_v30 = vor.u32 %v13675_v7, %v12847_v12  ;;  %v13647_v58 = vld [vmem:[#allocation22 + $0xcd0] sm:$0xf0] }
 0x756   :  { %v8135_v46 = vadd.f32 %v8134_v0, %v8106_v43  ;;  %13780 = vtanh.f32 %v8191_v45  ;;  %v16486_v3 = vpop.f32.mrf.mxu0  ;;  %8575 = vmatpush.bf16.msra.mxu0 %v12344_v42  ;;  %v12623_v0 = vld [vmem:[#allocation22 + $0xbd8] sm:$0xf] }
 0x757   :  { %v12624_v62 = vor.u32 %v13619_v13, %v12623_v0  ;;  %v17514_v43 = vld [vmem:[#allocation37_spill] sm:$0xff]  ;;  %8631 = vmatpush.bf16.msra.mxu2 %v12848_v30  ;;  %v13598_v0 = vld [vmem:[#allocation22 + $0xb48] sm:$0xf0]  ;;  %v12259_v30 = vld [vmem:[#allocation22 + $0x900] sm:$0xf] }
 0x758   :  { %8435 = vmatmul.bf16.vlgmr.msrb.gmra.mxu3 %v17505_v19  ;;  %v8164_v22 = vadd.f32 %v8163_v34, %v8135_v46  ;;  %v13479_v34 = vld [vmem:[#allocation22 + $0x790] sm:$0xf0]  ;;  %v12596_v46 = vor.u32 %v13612_v60, %v12595_v57  ;;  %v13654_v13 = vld [vmem:[#allocation22 + $0xd08] sm:$0xf0]  ;;  %v12511_v57 = vld [vmem:[#allocation22 + $0xaf8] sm:$0xf] }
 0x759   :  { %8464 = vmatmul.bf16.vlgmr.msrb.gmra.mxu0 %v17506_v41  ;;  %v12064_v45 = vor.u32 %v13479_v34, %v12063_v37  ;;  %8602 = vmatpush.bf16.msra.mxu1 %v12624_v62  ;;  %v12540_v62 = vor.u32 %v13598_v0, %v12539_v61  ;;  %v17519_v61 = vld [vmem:[#allocation58_spill] sm:$0xff] }
 0x75a   :  { %8576 = vmatpush.bf16.msra.mxu0 %v12316_v4  ;;  %v12763_v4 = vld [vmem:[#allocation22 + $0xcf0] sm:$0xf] }
 0x75b   :  { %v16490_v54 = vpop.f32.mrf.mxu3  ;;  %v8192_v10 = vpop.f32.mrf.mxu2  ;;  %8548 = vmatpush.bf16.msra.mxu3 %v12064_v45  ;;  %8632 = vmatpush.bf16.msra.mxu2 %v12820_v15  ;;  %v12764_v7 = vor.u32 %v13654_v13, %v12763_v4  ;;  %v13528_v45 = vld [vmem:[#allocation22 + $0x918] sm:$0xf0] }
 0x75c   :  { %v16492_v63 = vpop.f32.mrf.mxu1  ;;  %v13781_v2 = vpop.eup %13780  ;;  %v8193_v32 = vadd.f32 %v8192_v10, %v8164_v22  ;;  %v12260_v60 = vor.u32 %v13528_v45, %v12259_v30  ;;  %v12455_v30 = vld [vmem:[#allocation22 + $0xa88] sm:$0xf] }
 0x75d   :  { %9685 = vst [vmem:[#allocation25 + $0x150] sm:$0xff] %v13781_v2  ;;  %8603 = vmatpush.bf16.msra.mxu1 %v12596_v46  ;;  %v12735_v46 = vld [vmem:[#allocation22 + $0xcb8] sm:$0xf] }
 0x75e   :  { %13782 = vtanh.f32 %v8193_v32  ;;  %8493 = vmatmul.bf16.vlgmr.msrb.gmra.mxu1 %v17507_v18  ;;  %v16495_v49 = vpop.f32.mrf.mxu0  ;;  %v12287_v32 = vld [vmem:[#allocation22 + $0x938] sm:$0xf] }
 0x75f   :  { %v12288_v42 = vor.u32 %v13535_v47, %v12287_v32  ;;  %8633 = vmatpush.bf16.msra.mxu2 %v12792_v14  ;;  %v12512_v32 = vor.u32 %v13591_v44, %v12511_v57  ;;  %v12736_v47 = vor.u32 %v13647_v58, %v12735_v46  ;;  %v12707_v14 = vld [vmem:[#allocation22 + $0xc80] sm:$0xf]  ;;  %v13577_v57 = vld [vmem:[#allocation22 + $0xaa0] sm:$0xf0]  ;;  %v17520_v46 = vld [vmem:[#allocation59_spill] sm:$0xff] }
 0x760   :  { %8522 = vmatmul.bf16.vlgmr.msrb.gmra.mxu2 %v17508_v20  ;;  %v13633_v44 = vld [vmem:[#allocation22 + $0xc60] sm:$0xf0] }
 0x761   :  { %8577 = vmatpush.bf16.msra.mxu0 %v12288_v42  ;;  %8604 = vmatpush.bf16.msra.mxu1 %v12568_v17  ;;  %v13465_v42 = vld [vmem:[#allocation22 + $0x720] sm:$0xf0]  ;;  %v13584_v17 = vld [vmem:[#allocation22 + $0xad8] sm:$0xf0] }
 0x762   :  { %v12008_v16 = vor.u32 %v13465_v42, %v12007_v26  ;;  %v17521_v26 = vld [vmem:[#allocation38_spill] sm:$0xff]  ;;  %v13287_v42 = vld [vmem:[#allocation22 + $0x194] sm:$0xf] }
 0x763   :  { %v16498_v51 = vpop.f32.mrf.mxu3  ;;  %v16500_v21 = vpop.f32.mrf.mxu2  ;;  %8634 = vmatpush.bf16.msra.mxu2 %v12764_v7  ;;  %v13521_v7 = vld [vmem:[#allocation22 + $0x8e0] sm:$0xf0] }
 0x764   :  { %v16502_v27 = vpop.f32.mrf.mxu1  ;;  %v13783_v6 = vpop.eup %13782 }
 0x765   :  { %9692 = vst [vmem:[#allocation25 + $0x188] sm:$0xff] %v13783_v6  ;;  %v13472_v6 = vld [vmem:[#allocation22 + $0x758] sm:$0xf0]  ;;  %8605 = vmatpush.bf16.msra.mxu1 %v12540_v62  ;;  %8578 = vmatpush.bf16.msra.mxu0 %v12260_v60  ;;  %v12231_v62 = vld [vmem:[#allocation22 + $0x8c8] sm:$0xf] }
 0x766   :  { %v16504_v5 = vpop.f32.mrf.mxu0  ;;  %v12036_v52 = vor.u32 %v13472_v6, %v12035_v23  ;;  %v13640_v23 = vld [vmem:[#allocation22 + $0xc98] sm:$0xf0]  ;;  %v12484_v6 = vor.u32 %v13584_v17, %v12483_v8  ;;  %v12232_v45 = vor.u32 %v13521_v7, %v12231_v62  ;;  %v12679_v60 = vld [vmem:[#allocation22 + $0xc48] sm:$0xf]  ;;  %v11309_v8 = vld [vmem:[#allocation22 + $0x1ac] sm:$0xf0] }
 0x767   :  { %8635 = vmatpush.bf16.msra.mxu2 %v12736_v47  ;;  %v12680_v47 = vor.u32 %v13633_v44, %v12679_v60  ;;  %v17523_v62 = vld [vmem:[#allocation41_spill] sm:$0xff] }
 0x768   :  { %8440 = vmatmul.bf16.gmra.mxu3 %v17514_v43  ;;  %v16548_v7 = vperm.slane %v17523_v62, 1 }
 0x769   :  { %8469 = vmatmul.bf16.gmra.mxu0 %v17515_v29  ;;  %8549 = vmatpush.bf16.msra.mxu3 %v12036_v52  ;;  %v12708_v52 = vor.u32 %v13640_v23, %v12707_v14 }
 0x76a   :  { %8606 = vmatpush.bf16.msra.mxu1 %v12512_v32  ;;  %v12456_v32 = vor.u32 %v13577_v57, %v12455_v30  ;;  %8579 = vmatpush.bf16.msra.mxu0 %v12232_v45  ;;  %v17524_v30 = vld [vmem:[#allocation46_spill] sm:$0xff]  ;;  %v8205_v44 = vadd.f32 %v16490_v54, %v16548_v7 }
 0x76b   :  { %v16508_v22 = vpop.f32.mrf.mxu3  ;;  %v16510_v10 = vpop.f32.mrf.mxu2  ;;  %8636 = vmatpush.bf16.msra.mxu2 %v12708_v52  ;;  %v17522_v52 = vld [vmem:[#allocation39_spill] sm:$0xff] }
 0x76c   :  { %v16512_v2 = vpop.f32.mrf.mxu1 }
 0x76d   :  { %8550 = vmatpush.bf16.msra.mxu3 %v12008_v16  ;;  %v11312_v16 = vor.u32 %v13287_v42, %v11309_v8  ;;  %v13280_v42 = vld [vmem:[#allocation22 + $0x15c] sm:$0xf]  ;;  %v17525_v8 = vld [vmem:[#allocation47_spill] sm:$0xff] }
 0x76e   :  { %8498 = vmatmul.bf16.gmra.mxu1 %v17516_v25  ;;  %v16515_v31 = vpop.f32.mrf.mxu0 }
 0x76f   :  { %8607 = vmatpush.bf16.msra.mxu1 %v12484_v6  ;;  %8637 = vmatpush.bf16.msra.mxu2 %v12680_v47  ;;  %v11533_v47 = vld [vmem:[#allocation22 + $0x36c] sm:$0xf0] }
 0x770   :  { %8527 = vmatmul.bf16.gmra.mxu2 %v17517_v11 }
 0x771   :  { %8659 = vmatpush.bf16.msrb.mxu3 %v11312_v16 }
 0x773   :  { %v16518_v12 = vpop.f32.mrf.mxu3  ;;  %v16520_v37 = vpop.f32.mrf.mxu2  ;;  %8608 = vmatpush.bf16.msra.mxu1 %v12456_v32  ;;  %v13343_v32 = vld [vmem:[#allocation22 + $0x354] sm:$0xf] }
 0x774   :  { %v16522_v34 = vpop.f32.mrf.mxu1  ;;  %v11536_v62 = vor.u32 %v13343_v32, %v11533_v47  ;;  %v13336_v32 = vld [vmem:[#allocation22 + $0x31c] sm:$0xf]  ;;  %v11505_v47 = vld [vmem:[#allocation22 + $0x334] sm:$0xf0] }
 0x776   :  { %v16524_v15 = vpop.f32.mrf.mxu0  ;;  %8688 = vmatpush.bf16.msrb.mxu0 %v11536_v62  ;;  %v11253_v62 = vld [vmem:[#allocation22 + $0x13c] sm:$0xf0] }
 0x778   :  { %8445 = vmatmul.bf16.gmra.mxu3 %v17518_v33 }
 0x779   :  { %8474 = vmatmul.bf16.gmra.mxu0 %v17519_v61 }
 0x77b   :  { %v16528_v0 = vpop.f32.mrf.mxu3  ;;  %v16530_v4 = vpop.f32.mrf.mxu2 }
 0x77c   :  { %v16532_v13 = vpop.f32.mrf.mxu1 }
 0x77e   :  { %8503 = vmatmul.bf16.gmra.mxu1 %v17520_v46  ;;  %v16535_v58 = vpop.f32.mrf.mxu0  ;;  %v8234_v46 = vadd.f32 %v16486_v3, %v8205_v44 }
 0x780   :  { %8532 = vmatmul.bf16.gmra.mxu2 %v17521_v26  ;;  %v8263_v11 = vadd.f32 %v16492_v63, %v8234_v46 }
 0x783   :  { %v16538_v17 = vpop.f32.mrf.mxu3  ;;  %v16540_v14 = vpop.f32.mrf.mxu2 }
 0x784   :  { %v16542_v23 = vpop.f32.mrf.mxu1 }
 0x786   :  { %v16544_v6 = vpop.f32.mrf.mxu0 }
 0x788   :  { %8450 = vmatmul.bf16.gmra.mxu3 %v17522_v52  ;;  %v11281_v52 = vld [vmem:[#allocation22 + $0x174] sm:$0xf0] }
 0x789   :  { %8479 = vmatmul.bf16.gmra.mxu0 %v17524_v30  ;;  %v11284_v26 = vor.u32 %v13280_v42, %v11281_v52  ;;  %v17526_v30 = vld [vmem:[#allocation55_spill] sm:$0xff]  ;;  %v13273_v52 = vld [vmem:[#allocation22 + $0x124] sm:$0xf] }
 0x78a   :  { %v11256_v3 = vor.u32 %v13273_v52, %v11253_v62  ;;  %v13329_v52 = vld [vmem:[#allocation22 + $0x2e4] sm:$0xf]  ;;  %v13266_v62 = vld [vmem:[#allocation22 + $0xec] sm:$0xf] }
 0x78b   :  { %v16551_v45 = vpop.f32.mrf.mxu3  ;;  %v16553_v57 = vpop.f32.mrf.mxu2  ;;  %8660 = vmatpush.bf16.msrb.mxu3 %v11284_v26  ;;  %v8292_v26 = vadd.f32 %v16500_v21, %v8263_v11  ;;  %v17527_v21 = vld [vmem:[#allocation40_spill] sm:$0xff] }
 0x78c   :  { %v16555_v60 = vpop.f32.mrf.mxu1 }
 0x78e   :  { %8508 = vmatmul.bf16.gmra.mxu1 %v17525_v8  ;;  %v16560_v16 = vpop.f32.mrf.mxu0  ;;  %v8207_v8 = vadd.f32 %v16498_v51, %v16548_v7 }
 0x78f   :  { %8661 = vmatpush.bf16.msrb.mxu3 %v11256_v3 }
 0x790   :  { %8537 = vmatmul.bf16.gmra.mxu2 %v17526_v30  ;;  %v11508_v30 = vor.u32 %v13336_v32, %v11505_v47  ;;  %v8236_v44 = vadd.f32 %v16495_v49, %v8207_v8  ;;  %v8210_v32 = vadd.f32 %v16508_v22, %v16548_v7  ;;  %v11225_v8 = vld [vmem:[#allocation22 + $0x104] sm:$0xf0] }
 0x791   :  { %v11228_v3 = vor.u32 %v13266_v62, %v11225_v8  ;;  %v13322_v62 = vld [vmem:[#allocation22 + $0x2ac] sm:$0xf]  ;;  %v11449_v8 = vld [vmem:[#allocation22 + $0x2c4] sm:$0xf0] }
 0x792   :  { %8689 = vmatpush.bf16.msrb.mxu0 %v11508_v30  ;;  %v8265_v29 = vadd.f32 %v16502_v27, %v8236_v44  ;;  %v11477_v30 = vld [vmem:[#allocation22 + $0x2fc] sm:$0xf0]  ;;  %v8239_v27 = vadd.f32 %v16504_v5, %v8210_v32  ;;  %v13455_v5 = vld [vmem:[#allocation22 + $0x6d4] sm:$0xf]  ;;  %v11981_v32 = vld [vmem:[#allocation22 + $0x6ec] sm:$0xf0] }
 0x793   :  { %v16564_v61 = vpop.f32.mrf.mxu3  ;;  %v16566_v33 = vpop.f32.mrf.mxu2  ;;  %v11480_v11 = vor.u32 %v13329_v52, %v11477_v30  ;;  %8662 = vmatpush.bf16.msrb.mxu3 %v11228_v3  ;;  %v8212_v52 = vadd.f32 %v16518_v12, %v16548_v7  ;;  %v11984_v3 = vor.u32 %v13455_v5, %v11981_v32  ;;  %v13448_v5 = vld [vmem:[#allocation22 + $0x69c] sm:$0xf] }
 0x794   :  { %v16568_v54 = vpop.f32.mrf.mxu1 }
 0x795   :  { %8746 = vmatpush.bf16.msrb.mxu2 %v11984_v3  ;;  %v13252_v3 = vld [vmem:[#allocation22 + $0x7c] sm:$0xf] }
 0x796   :  { %v8349_v42 = vpop.f32.mrf.mxu0  ;;  %8690 = vmatpush.bf16.msrb.mxu0 %v11480_v11 }
 0x798   :  { %8551 = vmatmul.bf16.vlgmr.msra.gmra.mxu3 %v16215_v50 }
 0x799   :  { %8580 = vmatmul.bf16.vlgmr.msra.gmra.mxu0 %v16224_v55 }
 0x79b   :  { %v8320_v63 = vpop.f32.mrf.mxu3  ;;  %v16577_v46 = vpop.f32.mrf.mxu2 }
 0x79c   :  { %v8378_v51 = vpop.f32.mrf.mxu1  ;;  %v8321_v25 = vadd.f32 %v8320_v63, %v8292_v26  ;;  %v8294_v26 = vadd.f32 %v16510_v10, %v8265_v29  ;;  %v11452_v29 = vor.u32 %v13322_v62, %v11449_v8  ;;  %v11197_v10 = vld [vmem:[#allocation22 + $0xcc] sm:$0xf0] }
 0x79e   :  { %v8350_v47 = vadd.f32 %v8349_v42, %v8321_v25  ;;  %8609 = vmatmul.bf16.vlgmr.msra.gmra.mxu1 %v17527_v21  ;;  %v8351_v49 = vpop.f32.mrf.mxu0  ;;  %v8268_v21 = vadd.f32 %v16512_v2, %v8239_v27  ;;  %8691 = vmatpush.bf16.msrb.mxu0 %v11452_v29  ;;  %v13392_v29 = vld [vmem:[#allocation22 + $0x4dc] sm:$0xf] }
 0x7a0   :  { %8638 = vmatmul.bf16.vlgmr.msra.gmra.mxu2 %v16202_v48  ;;  %v8379_v55 = vadd.f32 %v8378_v51, %v8350_v47  ;;  %v13259_v51 = vld [vmem:[#allocation22 + $0xb4] sm:$0xf]  ;;  %v8297_v12 = vadd.f32 %v16520_v37, %v8268_v21 }
 0x7a1   :  { %v11200_v11 = vor.u32 %v13259_v51, %v11197_v10  ;;  %v13315_v21 = vld [vmem:[#allocation22 + $0x274] sm:$0xf]  ;;  %v11729_v10 = vld [vmem:[#allocation22 + $0x4f4] sm:$0xf0] }
 0x7a2   :  { %v11732_v32 = vor.u32 %v13392_v29, %v11729_v10  ;;  %v8217_v29 = vadd.f32 %v16538_v17, %v16548_v7 }
 0x7a3   :  { %v8322_v22 = vpop.f32.mrf.mxu3  ;;  %v8407_v25 = vpop.f32.mrf.mxu2  ;;  %8663 = vmatpush.bf16.msrb.mxu3 %v11200_v11  ;;  %v11953_v11 = vld [vmem:[#allocation22 + $0x6b4] sm:$0xf0] }
 0x7a4   :  { %v8380_v42 = vpop.f32.mrf.mxu1  ;;  %v8323_v44 = vadd.f32 %v8322_v22, %v8294_v26  ;;  %v8408_v63 = vadd.f32 %v8407_v25, %v8379_v55  ;;  %v13399_v55 = vld [vmem:[#allocation22 + $0x514] sm:$0xf]  ;;  %v11757_v26 = vld [vmem:[#allocation22 + $0x52c] sm:$0xf0] }
 0x7a5   :  { %v11760_v27 = vor.u32 %v13399_v55, %v11757_v26  ;;  %v11169_v55 = vld [vmem:[#allocation22 + $0x94] sm:$0xf0]  ;;  %v13385_v26 = vld [vmem:[#allocation22 + $0x4a4] sm:$0xf] }
 0x7a6   :  { %v8352_v30 = vadd.f32 %v8351_v49, %v8323_v44  ;;  %13784 = vtanh.f32 %v8408_v63  ;;  %v8354_v47 = vpop.f32.mrf.mxu0  ;;  %v8241_v49 = vadd.f32 %v16515_v31, %v8212_v52  ;;  %v11421_v31 = vld [vmem:[#allocation22 + $0x28c] sm:$0xf0] }
 0x7a7   :  { %8717 = vmatpush.bf16.msrb.mxu1 %v11760_v27  ;;  %v13441_v27 = vld [vmem:[#allocation22 + $0x664] sm:$0xf] }
 0x7a8   :  { %8556 = vmatmul.bf16.gmra.mxu3 %v16262_v1  ;;  %v8381_v2 = vadd.f32 %v8380_v42, %v8352_v30  ;;  %v8270_v51 = vadd.f32 %v16522_v34, %v8241_v49  ;;  %v8215_v42 = vadd.f32 %v16528_v0, %v16548_v7  ;;  %v11424_v30 = vor.u32 %v13315_v21, %v11421_v31 }
 0x7a9   :  { %8585 = vmatmul.bf16.gmra.mxu0 %v16266_v24  ;;  %v11956_v0 = vor.u32 %v13448_v5, %v11953_v11  ;;  %v13378_v5 = vld [vmem:[#allocation22 + $0x46c] sm:$0xf] }
 0x7aa   :  { %8692 = vmatpush.bf16.msrb.mxu0 %v11424_v30  ;;  %v8244_v49 = vadd.f32 %v16524_v15, %v8215_v42  ;;  %v13308_v15 = vld [vmem:[#allocation22 + $0x23c] sm:$0xf]  ;;  %v13434_v11 = vld [vmem:[#allocation22 + $0x62c] sm:$0xf] }
 0x7ab   :  { %v8325_v22 = vpop.f32.mrf.mxu3  ;;  %v8409_v25 = vpop.f32.mrf.mxu2  ;;  %8718 = vmatpush.bf16.msrb.mxu1 %v11732_v32  ;;  %8747 = vmatpush.bf16.msrb.mxu2 %v11956_v0  ;;  %v11673_v32 = vld [vmem:[#allocation22 + $0x484] sm:$0xf0] }
 0x7ac   :  { %v8383_v44 = vpop.f32.mrf.mxu1  ;;  %v8326_v63 = vadd.f32 %v8325_v22, %v8297_v12  ;;  %v13785_v62 = vpop.eup %13784  ;;  %v8410_v8 = vadd.f32 %v8409_v25, %v8381_v2  ;;  %v11701_v2 = vld [vmem:[#allocation22 + $0x4bc] sm:$0xf0]  ;;  %v8299_v12 = vadd.f32 %v16530_v4, %v8270_v51  ;;  %v8273_v30 = vadd.f32 %v16532_v13, %v8244_v49  ;;  %v11393_v51 = vld [vmem:[#allocation22 + $0x254] sm:$0xf0]  ;;  %v13245_v13 = vld [vmem:[#allocation22 + $0x44] sm:$0xf] }
 0x7ad   :  { %9644 = vst [vmem:[#allocation25 + $0x8] sm:$0xff] %v13785_v62  ;;  %v11704_v22 = vor.u32 %v13385_v26, %v11701_v2  ;;  %v11925_v25 = vld [vmem:[#allocation22 + $0x67c] sm:$0xf0]  ;;  %v11396_v10 = vor.u32 %v13308_v15, %v11393_v51  ;;  %v11645_v26 = vld [vmem:[#allocation22 + $0x44c] sm:$0xf0] }
 0x7ae   :  { %v8355_v37 = vadd.f32 %v8354_v47, %v8326_v63  ;;  %13786 = vtanh.f32 %v8410_v8  ;;  %8614 = vmatmul.bf16.gmra.mxu1 %v16285_v38  ;;  %v8356_v52 = vpop.f32.mrf.mxu0  ;;  %v11172_v47 = vor.u32 %v13252_v3, %v11169_v55  ;;  %v11928_v62 = vor.u32 %v13441_v27, %v11925_v25  ;;  %v11897_v55 = vld [vmem:[#allocation22 + $0x644] sm:$0xf0]  ;;  %v13427_v2 = vld [vmem:[#allocation22 + $0x5f4] sm:$0xf]  ;;  %v13364_v51 = vld [vmem:[#allocation22 + $0x3fc] sm:$0xf] }
 0x7af   :  { %8719 = vmatpush.bf16.msrb.mxu1 %v11704_v22  ;;  %v11676_v3 = vor.u32 %v13378_v5, %v11673_v32  ;;  %8693 = vmatpush.bf16.msrb.mxu0 %v11396_v10  ;;  %v11900_v17 = vor.u32 %v13434_v11, %v11897_v55  ;;  %v8302_v27 = vadd.f32 %v16540_v14, %v8273_v30  ;;  %v11869_v22 = vld [vmem:[#allocation22 + $0x60c] sm:$0xf0]  ;;  %v13301_v30 = vld [vmem:[#allocation22 + $0x204] sm:$0xf]  ;;  %v11617_v10 = vld [vmem:[#allocation22 + $0x414] sm:$0xf0] }
 0x7b0   :  { %8643 = vmatmul.bf16.gmra.mxu2 %v16239_v56  ;;  %v8384_v34 = vadd.f32 %v8383_v44, %v8355_v37  ;;  %8664 = vmatpush.bf16.msrb.mxu3 %v11172_v47  ;;  %v13371_v47 = vld [vmem:[#allocation22 + $0x434] sm:$0xf]  ;;  %v8220_v14 = vadd.f32 %v16551_v45, %v16548_v7  ;;  %v13420_v5 = vld [vmem:[#allocation22 + $0x5bc] sm:$0xf]  ;;  %v11620_v32 = vor.u32 %v13364_v51, %v11617_v10  ;;  %v11841_v11 = vld [vmem:[#allocation22 + $0x5d4] sm:$0xf0] }
 0x7b1   :  { %8748 = vmatpush.bf16.msrb.mxu2 %v11928_v62  ;;  %v11648_v49 = vor.u32 %v13371_v47, %v11645_v26  ;;  %v11813_v26 = vld [vmem:[#allocation22 + $0x59c] sm:$0xf0]  ;;  %v12429_v10 = vld [vmem:[#allocation22 + $0xa6c] sm:$0xf0] }
 0x7b3   :  { %v8327_v63 = vpop.f32.mrf.mxu3  ;;  %v8412_v8 = vpop.f32.mrf.mxu2  ;;  %8720 = vmatpush.bf16.msrb.mxu1 %v11676_v3  ;;  %v11113_v3 = vld [vmem:[#allocation22 + $0x24] sm:$0xf0] }
 0x7b4   :  { %v8385_v21 = vpop.f32.mrf.mxu1  ;;  %v8328_v44 = vadd.f32 %v8327_v63, %v8299_v12  ;;  %v13787_v37 = vpop.eup %13786  ;;  %v8413_v31 = vadd.f32 %v8412_v8, %v8384_v34  ;;  %v11141_v34 = vld [vmem:[#allocation22 + $0x5c] sm:$0xf0]  ;;  %v8246_v12 = vadd.f32 %v16535_v58, %v8217_v29  ;;  %v11872_v63 = vor.u32 %v13427_v2, %v11869_v22 }
 0x7b5   :  { %9651 = vst [vmem:[#allocation25 + $0x40] sm:$0xff] %v13787_v37  ;;  %8749 = vmatpush.bf16.msrb.mxu2 %v11900_v17  ;;  %v11365_v29 = vld [vmem:[#allocation22 + $0x21c] sm:$0xf0] }
 0x7b6   :  { %v8357_v4 = vadd.f32 %v8356_v52, %v8328_v44  ;;  %13788 = vtanh.f32 %v8413_v31  ;;  %v8359_v42 = vpop.f32.mrf.mxu0  ;;  %v11144_v52 = vor.u32 %v13245_v13, %v11141_v34  ;;  %v8275_v31 = vadd.f32 %v16542_v23, %v8246_v12  ;;  %v13238_v23 = vld [vmem:[#allocation22 + $0xc] sm:$0xf]  ;;  %v13357_v13 = vld [vmem:[#allocation22 + $0x3c4] sm:$0xf]  ;;  %v11589_v34 = vld [vmem:[#allocation22 + $0x3dc] sm:$0xf0] }
 0x7b7   :  { %8721 = vmatpush.bf16.msrb.mxu1 %v11648_v49  ;;  %v11368_v15 = vor.u32 %v13301_v30, %v11365_v29  ;;  %v11116_v55 = vor.u32 %v13238_v23, %v11113_v3  ;;  %v11592_v47 = vor.u32 %v13357_v13, %v11589_v34  ;;  %v11785_v29 = vld [vmem:[#allocation22 + $0x564] sm:$0xf0]  ;;  %v12177_v3 = vld [vmem:[#allocation22 + $0x874] sm:$0xf0] }
 0x7b8   :  { %8561 = vmatmul.bf16.gmra.mxu3 %v16301_v9  ;;  %v8386_v0 = vadd.f32 %v8385_v21, %v8357_v4  ;;  %v8304_v17 = vadd.f32 %v16553_v57, %v8275_v31  ;;  %v13350_v31 = vld [vmem:[#allocation22 + $0x38c] sm:$0xf] }
 0x7b9   :  { %8590 = vmatmul.bf16.gmra.mxu0 %v16308_v35  ;;  %8665 = vmatpush.bf16.msrb.mxu3 %v11144_v52  ;;  %v8249_v52 = vadd.f32 %v16544_v6, %v8220_v14  ;;  %v13294_v6 = vld [vmem:[#allocation22 + $0x1cc] sm:$0xf]  ;;  %v11561_v14 = vld [vmem:[#allocation22 + $0x3a4] sm:$0xf0] }
 0x7ba   :  { %8750 = vmatpush.bf16.msrb.mxu2 %v11872_v63  ;;  %8694 = vmatpush.bf16.msrb.mxu0 %v11368_v15  ;;  %v11564_v30 = vor.u32 %v13350_v31, %v11561_v14  ;;  %v12205_v15 = vld [vmem:[#allocation22 + $0x8ac] sm:$0xf0] }
 0x7bb   :  { %v8330_v25 = vpop.f32.mrf.mxu3  ;;  %v8414_v62 = vpop.f32.mrf.mxu2  ;;  %8722 = vmatpush.bf16.msrb.mxu1 %v11620_v32 }
 0x7bc   :  { %v8388_v8 = vpop.f32.mrf.mxu1  ;;  %v8331_v21 = vadd.f32 %v8330_v25, %v8302_v27  ;;  %v13789_v44 = vpop.eup %13788  ;;  %v8415_v37 = vadd.f32 %v8414_v62, %v8386_v0  ;;  %v13413_v0 = vld [vmem:[#allocation22 + $0x584] sm:$0xf]  ;;  %v8278_v62 = vadd.f32 %v16555_v60, %v8249_v52  ;;  %v13511_v60 = vld [vmem:[#allocation22 + $0x894] sm:$0xf]  ;;  %v13560_v52 = vld [vmem:[#allocation22 + $0xa1c] sm:$0xf] }
 0x7bd   :  { %9658 = vst [vmem:[#allocation25 + $0x78] sm:$0xff] %v13789_v44  ;;  %8666 = vmatpush.bf16.msrb.mxu3 %v11116_v55  ;;  %v11816_v27 = vor.u32 %v13413_v0, %v11813_v26 }
 0x7be   :  { %v8360_v58 = vadd.f32 %v8359_v42, %v8331_v21  ;;  %13790 = vtanh.f32 %v8415_v37  ;;  %8619 = vmatmul.bf16.gmra.mxu1 %v16322_v59  ;;  %v8361_v4 = vpop.f32.mrf.mxu0  ;;  %v11844_v42 = vor.u32 %v13420_v5, %v11841_v11  ;;  %v11337_v21 = vld [vmem:[#allocation22 + $0x1e4] sm:$0xf0]  ;;  %v13504_v5 = vld [vmem:[#allocation22 + $0x85c] sm:$0xf]  ;;  %v8307_v32 = vadd.f32 %v16566_v33, %v8278_v62 }
 0x7bf   :  { %8723 = vmatpush.bf16.msrb.mxu1 %v11592_v47  ;;  %v11340_v37 = vor.u32 %v13294_v6, %v11337_v21  ;;  %v12401_v47 = vld [vmem:[#allocation22 + $0xa34] sm:$0xf0]  ;;  %v13553_v21 = vld [vmem:[#allocation22 + $0x9e4] sm:$0xf] }
 0x7c0   :  { %8648 = vmatmul.bf16.gmra.mxu2 %v16256_v40  ;;  %v8389_v45 = vadd.f32 %v8388_v8, %v8360_v58  ;;  %v8222_v8 = vadd.f32 %v16564_v61, %v16548_v7  ;;  %v13406_v58 = vld [vmem:[#allocation22 + $0x54c] sm:$0xf]  ;;  %v12208_v7 = vor.u32 %v13511_v60, %v12205_v15  ;;  %v12404_v26 = vor.u32 %v13560_v52, %v12401_v47 }
 0x7c1   :  { %8751 = vmatpush.bf16.msrb.mxu2 %v11844_v42  ;;  %8695 = vmatpush.bf16.msrb.mxu0 %v11340_v37  ;;  %v11788_v61 = vor.u32 %v13406_v58, %v11785_v29  ;;  %v12180_v42 = vor.u32 %v13504_v5, %v12177_v3  ;;  %v13490_v37 = vld [vmem:[#allocation22 + $0x7ec] sm:$0xf]  ;;  %v12121_v58 = vld [vmem:[#allocation22 + $0x804] sm:$0xf0]  ;;  %v13679_v3 = vld [vmem:[#allocation22 + $0xdd4] sm:$0xf] }
 0x7c2   :  { %v8251_v11 = vadd.f32 %v16560_v16, %v8222_v8  ;;  %8775 = vmatpush.bf16.msra.mxu3 %v12208_v7  ;;  %v12124_v29 = vor.u32 %v13490_v37, %v12121_v58 }
 0x7c3   :  { %v8332_v2 = vpop.f32.mrf.mxu3  ;;  %v8417_v12 = vpop.f32.mrf.mxu2  ;;  %8724 = vmatpush.bf16.msrb.mxu1 %v11564_v30 }
 0x7c4   :  { %v8390_v49 = vpop.f32.mrf.mxu1  ;;  %v8333_v22 = vadd.f32 %v8332_v2, %v8304_v17  ;;  %v13791_v25 = vpop.eup %13790  ;;  %v8418_v63 = vadd.f32 %v8417_v12, %v8389_v45  ;;  %v8280_v33 = vadd.f32 %v16568_v54, %v8251_v11  ;;  %v13497_v12 = vld [vmem:[#allocation22 + $0x824] sm:$0xf]  ;;  %v13483_v11 = vld [vmem:[#allocation22 + $0x7b4] sm:$0xf] }
 0x7c5   :  { %9665 = vst [vmem:[#allocation25 + $0xb0] sm:$0xff] %v13791_v25  ;;  %8752 = vmatpush.bf16.msrb.mxu2 %v11816_v27 }
 0x7c6   :  { %v8362_v57 = vadd.f32 %v8361_v4, %v8333_v22  ;;  %13792 = vtanh.f32 %v8418_v63  ;;  %v8364_v44 = vpop.f32.mrf.mxu0  ;;  %v13567_v4 = vld [vmem:[#allocation22 + $0xa54] sm:$0xf]  ;;  %8776 = vmatpush.bf16.msra.mxu3 %v12180_v42  ;;  %v8309_v22 = vadd.f32 %v16577_v46, %v8280_v33  ;;  %v12877_v42 = vld [vmem:[#allocation22 + $0xdec] sm:$0xf0] }
 0x7c7   :  { %v12432_v23 = vor.u32 %v13567_v4, %v12429_v10  ;;  %v13546_v4 = vld [vmem:[#allocation22 + $0x9ac] sm:$0xf]  ;;  %v12345_v10 = vld [vmem:[#allocation22 + $0x9c4] sm:$0xf0] }
 0x7c8   :  { %8566 = vmatmul.bf16.gmra.mxu3 %v16335_v28  ;;  %v8391_v51 = vadd.f32 %v8390_v49, %v8362_v57  ;;  %v12149_v49 = vld [vmem:[#allocation22 + $0x83c] sm:$0xf0]  ;;  %v12348_v5 = vor.u32 %v13546_v4, %v12345_v10  ;;  %v13602_v4 = vld [vmem:[#allocation22 + $0xb6c] sm:$0xf] }
 0x7c9   :  { %8595 = vmatmul.bf16.gmra.mxu0 %v16338_v39  ;;  %8753 = vmatpush.bf16.msrb.mxu2 %v11788_v61  ;;  %v12152_v25 = vor.u32 %v13497_v12, %v12149_v49  ;;  %v12625_v12 = vld [vmem:[#allocation22 + $0xbf4] sm:$0xf0]  ;;  %v13672_v49 = vld [vmem:[#allocation22 + $0xd9c] sm:$0xf] }
 0x7ca   :  { %8804 = vmatpush.bf16.msra.mxu0 %v12432_v23  ;;  %v12093_v23 = vld [vmem:[#allocation22 + $0x7cc] sm:$0xf0] }
 0x7cb   :  { %v8335_v45 = vpop.f32.mrf.mxu3  ;;  %v8419_v55 = vpop.f32.mrf.mxu2  ;;  %8777 = vmatpush.bf16.msra.mxu3 %v12152_v25 }
 0x7cc   :  { %v8393_v13 = vpop.f32.mrf.mxu1  ;;  %v8336_v34 = vadd.f32 %v8335_v45, %v8307_v32  ;;  %v13793_v0 = vpop.eup %13792  ;;  %v8420_v17 = vadd.f32 %v8419_v55, %v8391_v51  ;;  %v12096_v45 = vor.u32 %v13483_v11, %v12093_v23  ;;  %v13623_v55 = vld [vmem:[#allocation22 + $0xc14] sm:$0xf]  ;;  %v13658_v11 = vld [vmem:[#allocation22 + $0xd2c] sm:$0xf]  ;;  %v12793_v23 = vld [vmem:[#allocation22 + $0xd44] sm:$0xf0] }
 0x7cd   :  { %9672 = vst [vmem:[#allocation25 + $0xe8] sm:$0xff] %v13793_v0  ;;  %v12880_v0 = vor.u32 %v13679_v3, %v12877_v42  ;;  %v17529_v3 = vld [vmem:[#allocation45_spill] sm:$0xff] }
 0x7ce   :  { %v8365_v16 = vadd.f32 %v8364_v44, %v8336_v34  ;;  %13794 = vtanh.f32 %v8420_v17  ;;  %8624 = vmatmul.bf16.gmra.mxu1 %v16341_v53  ;;  %v8366_v2 = vpop.f32.mrf.mxu0  ;;  %8805 = vmatpush.bf16.msra.mxu0 %v12404_v26  ;;  %v12373_v44 = vld [vmem:[#allocation22 + $0x9fc] sm:$0xf0]  ;;  %v12317_v26 = vld [vmem:[#allocation22 + $0x98c] sm:$0xf0] }
 0x7cf   :  { %v12376_v14 = vor.u32 %v13553_v21, %v12373_v44  ;;  %8778 = vmatpush.bf16.msra.mxu3 %v12124_v29  ;;  %8862 = vmatpush.bf16.msra.mxu2 %v12880_v0  ;;  %v12597_v21 = vld [vmem:[#allocation22 + $0xbbc] sm:$0xf0]  ;;  %v13665_v44 = vld [vmem:[#allocation22 + $0xd64] sm:$0xf] }
 0x7d0   :  { %8653 = vmatmul.bf16.gmra.mxu2 %v17504_v36  ;;  %v8394_v27 = vadd.f32 %v8393_v13, %v8365_v16  ;;  %v12653_v13 = vld [vmem:[#allocation22 + $0xc2c] sm:$0xf0]  ;;  %v13539_v16 = vld [vmem:[#allocation22 + $0x974] sm:$0xf]  ;;  %v13469_v0 = vld [vmem:[#allocation22 + $0x744] sm:$0xf] }
 0x7d1   :  { %v12656_v17 = vor.u32 %v13623_v55, %v12653_v13  ;;  %v12796_v55 = vor.u32 %v13658_v11, %v12793_v23  ;;  %v17530_v13 = vld [vmem:[#allocation53_spill] sm:$0xff]  ;;  %v12485_v23 = vld [vmem:[#allocation22 + $0xadc] sm:$0xf0] }
 0x7d2   :  { %8806 = vmatpush.bf16.msra.mxu0 %v12376_v14  ;;  %v17528_v14 = vld [vmem:[#allocation44_spill] sm:$0xff] }
 0x7d3   :  { %v8337_v63 = vpop.f32.mrf.mxu3  ;;  %v8422_v62 = vpop.f32.mrf.mxu2  ;;  %8779 = vmatpush.bf16.msra.mxu3 %v12096_v45  ;;  %8833 = vmatpush.bf16.msra.mxu1 %v12656_v17  ;;  %v12037_v17 = vld [vmem:[#allocation22 + $0x75c] sm:$0xf0] }
 0x7d4   :  { %v8395_v54 = vpop.f32.mrf.mxu1  ;;  %v8338_v8 = vadd.f32 %v8337_v63, %v8309_v22  ;;  %v13795_v57 = vpop.eup %13794  ;;  %v8423_v6 = vadd.f32 %v8422_v62, %v8394_v27  ;;  %v12320_v27 = vor.u32 %v13539_v16, %v12317_v26  ;;  %v12849_v63 = vld [vmem:[#allocation22 + $0xdb4] sm:$0xf0]  ;;  %v13476_v62 = vld [vmem:[#allocation22 + $0x77c] sm:$0xf]  ;;  %v12040_v16 = vor.u32 %v13469_v0, %v12037_v17  ;;  %v12541_v26 = vld [vmem:[#allocation22 + $0xb4c] sm:$0xf0] }
 0x7d5   :  { %9679 = vst [vmem:[#allocation25 + $0x120] sm:$0xff] %v13795_v57  ;;  %v17532_v17 = vld [vmem:[#allocation58_spill] sm:$0xff] }
 0x7d6   :  { %v8367_v31 = vadd.f32 %v8366_v2, %v8338_v8  ;;  %13796 = vtanh.f32 %v8423_v6  ;;  %v16625_v30 = vpop.f32.mrf.mxu0  ;;  %8807 = vmatpush.bf16.msra.mxu0 %v12348_v5  ;;  %v13616_v2 = vld [vmem:[#allocation22 + $0xbdc] sm:$0xf]  ;;  %v12852_v8 = vor.u32 %v13672_v49, %v12849_v63  ;;  %v13609_v6 = vld [vmem:[#allocation22 + $0xba4] sm:$0xf]  ;;  %v12569_v5 = vld [vmem:[#allocation22 + $0xb84] sm:$0xf0] }
 0x7d7   :  { %v12628_v25 = vor.u32 %v13616_v2, %v12625_v12  ;;  %v12600_v37 = vor.u32 %v13609_v6, %v12597_v21  ;;  %v12572_v42 = vor.u32 %v13602_v4, %v12569_v5  ;;  %v13651_v2 = vld [vmem:[#allocation22 + $0xcf4] sm:$0xf]  ;;  %v12513_v21 = vld [vmem:[#allocation22 + $0xb14] sm:$0xf0]  ;;  %v12009_v4 = vld [vmem:[#allocation22 + $0x724] sm:$0xf0] }
 0x7d8   :  { %8667 = vmatmul.bf16.vlgmr.msrb.gmra.mxu3 %v17505_v19  ;;  %v8396_v46 = vadd.f32 %v8395_v54, %v8367_v31  ;;  %v12065_v54 = vld [vmem:[#allocation22 + $0x794] sm:$0xf0]  ;;  %v12821_v31 = vld [vmem:[#allocation22 + $0xd7c] sm:$0xf0]  ;;  %8863 = vmatpush.bf16.msra.mxu2 %v12852_v8 }
 0x7d9   :  { %8696 = vmatmul.bf16.vlgmr.msrb.gmra.mxu0 %v17506_v41  ;;  %v12068_v57 = vor.u32 %v13476_v62, %v12065_v54  ;;  %8834 = vmatpush.bf16.msra.mxu1 %v12628_v25  ;;  %v12824_v58 = vor.u32 %v13665_v44, %v12821_v31  ;;  %v13525_v54 = vld [vmem:[#allocation22 + $0x904] sm:$0xf]  ;;  %v12261_v8 = vld [vmem:[#allocation22 + $0x91c] sm:$0xf0]  ;;  %v13644_v44 = vld [vmem:[#allocation22 + $0xcbc] sm:$0xf] }
 0x7da   :  { %8808 = vmatpush.bf16.msra.mxu0 %v12320_v27  ;;  %v12765_v27 = vld [vmem:[#allocation22 + $0xd0c] sm:$0xf0]  ;;  %v12264_v6 = vor.u32 %v13525_v54, %v12261_v8  ;;  %v17531_v5 = vld [vmem:[#allocation54_spill] sm:$0xff]  ;;  %v12457_v8 = vld [vmem:[#allocation22 + $0xaa4] sm:$0xf0] }
 0x7db   :  { %v16629_v60 = vpop.f32.mrf.mxu3  ;;  %v8424_v15 = vpop.f32.mrf.mxu2  ;;  %8780 = vmatpush.bf16.msra.mxu3 %v12068_v57  ;;  %v12768_v25 = vor.u32 %v13651_v2, %v12765_v27  ;;  %v13588_v57 = vld [vmem:[#allocation22 + $0xafc] sm:$0xf]  ;;  %v13518_v27 = vld [vmem:[#allocation22 + $0x8cc] sm:$0xf] }
 0x7dc   :  { %v16631_v51 = vpop.f32.mrf.mxu1  ;;  %v13797_v61 = vpop.eup %13796  ;;  %v8425_v7 = vadd.f32 %v8424_v15, %v8396_v46  ;;  %8864 = vmatpush.bf16.msra.mxu2 %v12824_v58  ;;  %v12516_v58 = vor.u32 %v13588_v57, %v12513_v21  ;;  %v13630_v57 = vld [vmem:[#allocation22 + $0xc4c] sm:$0xf] }
 0x7dd   :  { %9686 = vst [vmem:[#allocation25 + $0x158] sm:$0xff] %v13797_v61  ;;  %8835 = vmatpush.bf16.msra.mxu1 %v12600_v37  ;;  %v13532_v61 = vld [vmem:[#allocation22 + $0x93c] sm:$0xf]  ;;  %v12737_v37 = vld [vmem:[#allocation22 + $0xcd4] sm:$0xf0]  ;;  %v17533_v21 = vld [vmem:[#allocation59_spill] sm:$0xff] }
 0x7de   :  { %13798 = vtanh.f32 %v8425_v7  ;;  %8725 = vmatmul.bf16.vlgmr.msrb.gmra.mxu1 %v17507_v18  ;;  %v16634_v32 = vpop.f32.mrf.mxu0  ;;  %v12289_v7 = vld [vmem:[#allocation22 + $0x954] sm:$0xf0] }
 0x7df   :  { %v12292_v10 = vor.u32 %v13532_v61, %v12289_v7  ;;  %8781 = vmatpush.bf16.msra.mxu3 %v12040_v16  ;;  %v12740_v61 = vor.u32 %v13644_v44, %v12737_v37  ;;  %v13462_v7 = vld [vmem:[#allocation22 + $0x70c] sm:$0xf] }
 0x7e0   :  { %8754 = vmatmul.bf16.vlgmr.msrb.gmra.mxu2 %v17508_v20  ;;  %v12012_v11 = vor.u32 %v13462_v7, %v12009_v4  ;;  %v11315_v7 = vld [vmem:[#allocation22 + $0x198] sm:$0xf]  ;;  %v13291_v4 = vld [vmem:[#allocation22 + $0x1b0] sm:$0xf0] }
 0x7e1   :  { %8809 = vmatpush.bf16.msra.mxu0 %v12292_v10  ;;  %8836 = vmatpush.bf16.msra.mxu1 %v12572_v42  ;;  %v13581_v10 = vld [vmem:[#allocation22 + $0xac4] sm:$0xf] }
 0x7e2   :  { %8865 = vmatpush.bf16.msra.mxu2 %v12796_v55  ;;  %v13637_v42 = vld [vmem:[#allocation22 + $0xc84] sm:$0xf]  ;;  %v12709_v55 = vld [vmem:[#allocation22 + $0xc9c] sm:$0xf0]  ;;  %v12488_v0 = vor.u32 %v13581_v10, %v12485_v23  ;;  %v11316_v10 = vor.u32 %v13291_v4, %v11315_v7  ;;  %v17538_v7 = vld [vmem:[#allocation47_spill] sm:$0xff] }
 0x7e3   :  { %v16637_v34 = vpop.f32.mrf.mxu3  ;;  %v16639_v52 = vpop.f32.mrf.mxu2  ;;  %8782 = vmatpush.bf16.msra.mxu3 %v12012_v11 }
 0x7e4   :  { %v16641_v47 = vpop.f32.mrf.mxu1  ;;  %v13799_v33 = vpop.eup %13798 }
 0x7e5   :  { %9693 = vst [vmem:[#allocation25 + $0x190] sm:$0xff] %v13799_v33  ;;  %v13595_v33 = vld [vmem:[#allocation22 + $0xb34] sm:$0xf]  ;;  %8810 = vmatpush.bf16.msra.mxu0 %v12264_v6  ;;  %v12681_v6 = vld [vmem:[#allocation22 + $0xc64] sm:$0xf0] }
 0x7e6   :  { %v16643_v22 = vpop.f32.mrf.mxu0  ;;  %v12544_v49 = vor.u32 %v13595_v33, %v12541_v26  ;;  %8866 = vmatpush.bf16.msra.mxu2 %v12768_v25  ;;  %v12712_v33 = vor.u32 %v13637_v42, %v12709_v55  ;;  %v13574_v25 = vld [vmem:[#allocation22 + $0xa8c] sm:$0xf] }
 0x7e7   :  { %v12460_v37 = vor.u32 %v13574_v25, %v12457_v8  ;;  %8891 = vmatpush.bf16.msrb.mxu3 %v11316_v10 }
 0x7e8   :  { %8672 = vmatmul.bf16.gmra.mxu3 %v17514_v43  ;;  %8837 = vmatpush.bf16.msra.mxu1 %v12544_v49  ;;  %v12233_v49 = vld [vmem:[#allocation22 + $0x8e4] sm:$0xf0] }
 0x7e9   :  { %8701 = vmatmul.bf16.gmra.mxu0 %v17528_v14  ;;  %v12236_v54 = vor.u32 %v13518_v27, %v12233_v49  ;;  %v17537_v49 = vld [vmem:[#allocation46_spill] sm:$0xff] }
 0x7ea   :  { %8867 = vmatpush.bf16.msra.mxu2 %v12740_v61  ;;  %v17534_v61 = vld [vmem:[#allocation38_spill] sm:$0xff] }
 0x7eb   :  { %v16647_v29 = vpop.f32.mrf.mxu3  ;;  %v16649_v46 = vpop.f32.mrf.mxu2  ;;  %8811 = vmatpush.bf16.msra.mxu0 %v12236_v54 }
 0x7ec   :  { %v16651_v15 = vpop.f32.mrf.mxu1  ;;  %8838 = vmatpush.bf16.msra.mxu1 %v12516_v58  ;;  %v12684_v58 = vor.u32 %v13630_v57, %v12681_v6  ;;  %v11539_v6 = vld [vmem:[#allocation22 + $0x358] sm:$0xf] }
 0x7ee   :  { %8730 = vmatmul.bf16.gmra.mxu1 %v17529_v3  ;;  %v16654_v45 = vpop.f32.mrf.mxu0  ;;  %8868 = vmatpush.bf16.msra.mxu2 %v12712_v33  ;;  %v16686_v33 = vld [vmem:[#allocation23] sm:$0xff] }
 0x7ef   :  { %17536 = vst [vmem:[#allocation48_spill] sm:$0xff] %v16686_v33  ;;  %v16689_v27 = vperm.slane %v16686_v33, 2  ;;  %v13284_v33 = vld [vmem:[#allocation22 + $0x178] sm:$0xf0] }
 0x7f0   :  { %8759 = vmatmul.bf16.gmra.mxu2 %v17530_v13  ;;  %8839 = vmatpush.bf16.msra.mxu1 %v12488_v0  ;;  %v17535_v0 = vld [vmem:[#allocation39_spill] sm:$0xff]  ;;  %v17540_v13 = vld [vmem:[#allocation56_spill] sm:$0xff] }
 0x7f1   :  { %v8437_v57 = vadd.f32 %v16629_v60, %v16689_v27 }
 0x7f2   :  { %8869 = vmatpush.bf16.msra.mxu2 %v12684_v58  ;;  %v11287_v58 = vld [vmem:[#allocation22 + $0x160] sm:$0xf] }
 0x7f3   :  { %v16657_v12 = vpop.f32.mrf.mxu3  ;;  %v16659_v63 = vpop.f32.mrf.mxu2 }
 0x7f4   :  { %v16661_v62 = vpop.f32.mrf.mxu1  ;;  %8840 = vmatpush.bf16.msra.mxu1 %v12460_v37  ;;  %v13347_v37 = vld [vmem:[#allocation22 + $0x370] sm:$0xf0] }
 0x7f5   :  { %v11540_v10 = vor.u32 %v13347_v37, %v11539_v6  ;;  %v11511_v6 = vld [vmem:[#allocation22 + $0x320] sm:$0xf]  ;;  %v13340_v37 = vld [vmem:[#allocation22 + $0x338] sm:$0xf0] }
 0x7f6   :  { %v16663_v31 = vpop.f32.mrf.mxu0 }
 0x7f7   :  { %8920 = vmatpush.bf16.msrb.mxu0 %v11540_v10  ;;  %v13277_v10 = vld [vmem:[#allocation22 + $0x140] sm:$0xf0] }
 0x7f8   :  { %8677 = vmatmul.bf16.gmra.mxu3 %v17531_v5 }
 0x7f9   :  { %8706 = vmatmul.bf16.gmra.mxu0 %v17532_v17 }
 0x7fb   :  { %v16667_v16 = vpop.f32.mrf.mxu3  ;;  %v16669_v26 = vpop.f32.mrf.mxu2 }
 0x7fc   :  { %v16671_v2 = vpop.f32.mrf.mxu1 }
 0x7fe   :  { %8735 = vmatmul.bf16.gmra.mxu1 %v17533_v21  ;;  %v16674_v44 = vpop.f32.mrf.mxu0 }
 0x800   :  { %8764 = vmatmul.bf16.gmra.mxu2 %v17534_v61  ;;  %v8466_v61 = vadd.f32 %v16625_v30, %v8437_v57 }
 0x802   :  { %v8495_v5 = vadd.f32 %v16631_v51, %v8466_v61 }
 0x803   :  { %v16677_v11 = vpop.f32.mrf.mxu3  ;;  %v16679_v23 = vpop.f32.mrf.mxu2 }
 0x804   :  { %v16681_v42 = vpop.f32.mrf.mxu1 }
 0x806   :  { %v16683_v55 = vpop.f32.mrf.mxu0 }
 0x808   :  { %8682 = vmatmul.bf16.gmra.mxu3 %v17535_v0  ;;  %v11288_v0 = vor.u32 %v13284_v33, %v11287_v58  ;;  %v11259_v33 = vld [vmem:[#allocation22 + $0x128] sm:$0xf] }
 0x809   :  { %8711 = vmatmul.bf16.gmra.mxu0 %v17537_v49  ;;  %v17539_v49 = vld [vmem:[#allocation55_spill] sm:$0xff]  ;;  %v11260_v30 = vor.u32 %v13277_v10, %v11259_v33  ;;  %v11231_v10 = vld [vmem:[#allocation22 + $0xf0] sm:$0xf] }
 0x80a   :  { %8892 = vmatpush.bf16.msrb.mxu3 %v11288_v0  ;;  %v8524_v0 = vadd.f32 %v16639_v52, %v8495_v5  ;;  %v11483_v33 = vld [vmem:[#allocation22 + $0x2e8] sm:$0xf]  ;;  %v17541_v52 = vld [vmem:[#allocation40_spill] sm:$0xff] }
 0x80b   :  { %v16692_v25 = vpop.f32.mrf.mxu3  ;;  %v16694_v54 = vpop.f32.mrf.mxu2 }
 0x80c   :  { %v16696_v8 = vpop.f32.mrf.mxu1 }
 0x80e   :  { %8740 = vmatmul.bf16.gmra.mxu1 %v17538_v7  ;;  %v16701_v4 = vpop.f32.mrf.mxu0  ;;  %v8439_v7 = vadd.f32 %v16637_v34, %v16689_v27  ;;  %8893 = vmatpush.bf16.msrb.mxu3 %v11260_v30 }
 0x810   :  { %8769 = vmatmul.bf16.gmra.mxu2 %v17539_v49  ;;  %v11512_v49 = vor.u32 %v13340_v37, %v11511_v6  ;;  %v8468_v57 = vadd.f32 %v16634_v32, %v8439_v7  ;;  %v8442_v6 = vadd.f32 %v16647_v29, %v16689_v27  ;;  %v13270_v7 = vld [vmem:[#allocation22 + $0x108] sm:$0xf0] }
 0x811   :  { %v11232_v30 = vor.u32 %v13270_v7, %v11231_v10  ;;  %v11455_v10 = vld [vmem:[#allocation22 + $0x2b0] sm:$0xf]  ;;  %v13326_v7 = vld [vmem:[#allocation22 + $0x2c8] sm:$0xf0] }
 0x812   :  { %8921 = vmatpush.bf16.msrb.mxu0 %v11512_v49  ;;  %v8497_v14 = vadd.f32 %v16641_v47, %v8468_v57  ;;  %v13333_v49 = vld [vmem:[#allocation22 + $0x300] sm:$0xf0]  ;;  %v8471_v47 = vadd.f32 %v16643_v22, %v8442_v6  ;;  %v11987_v22 = vld [vmem:[#allocation22 + $0x6d8] sm:$0xf]  ;;  %v13459_v6 = vld [vmem:[#allocation22 + $0x6f0] sm:$0xf0] }
 0x813   :  { %v16705_v21 = vpop.f32.mrf.mxu3  ;;  %v16707_v17 = vpop.f32.mrf.mxu2  ;;  %v11484_v5 = vor.u32 %v13333_v49, %v11483_v33  ;;  %8894 = vmatpush.bf16.msrb.mxu3 %v11232_v30  ;;  %v8444_v33 = vadd.f32 %v16657_v12, %v16689_v27  ;;  %v11988_v30 = vor.u32 %v13459_v6, %v11987_v22  ;;  %v11959_v22 = vld [vmem:[#allocation22 + $0x6a0] sm:$0xf] }
 0x814   :  { %v16709_v60 = vpop.f32.mrf.mxu1 }
 0x815   :  { %8978 = vmatpush.bf16.msrb.mxu2 %v11988_v30  ;;  %v11175_v30 = vld [vmem:[#allocation22 + $0x80] sm:$0xf] }
 0x816   :  { %v8581_v58 = vpop.f32.mrf.mxu0  ;;  %8922 = vmatpush.bf16.msrb.mxu0 %v11484_v5 }
 0x818   :  { %8783 = vmatmul.bf16.vlgmr.msra.gmra.mxu3 %v16215_v50 }
 0x819   :  { %8812 = vmatmul.bf16.vlgmr.msra.gmra.mxu0 %v17540_v13 }
 0x81b   :  { %v8552_v51 = vpop.f32.mrf.mxu3  ;;  %v16718_v61 = vpop.f32.mrf.mxu2 }
 0x81c   :  { %v8610_v34 = vpop.f32.mrf.mxu1  ;;  %v8553_v3 = vadd.f32 %v8552_v51, %v8524_v0  ;;  %v8526_v0 = vadd.f32 %v16649_v46, %v8497_v14  ;;  %v11456_v14 = vor.u32 %v13326_v7, %v11455_v10  ;;  %v13263_v46 = vld [vmem:[#allocation22 + $0xd0] sm:$0xf0] }
 0x81e   :  { %v8582_v37 = vadd.f32 %v8581_v58, %v8553_v3  ;;  %8841 = vmatmul.bf16.vlgmr.msra.gmra.mxu1 %v17541_v52  ;;  %v8583_v32 = vpop.f32.mrf.mxu0  ;;  %v8500_v52 = vadd.f32 %v16651_v15, %v8471_v47  ;;  %8923 = vmatpush.bf16.msrb.mxu0 %v11456_v14  ;;  %v11735_v14 = vld [vmem:[#allocation22 + $0x4e0] sm:$0xf] }
 0x820   :  { %8870 = vmatmul.bf16.vlgmr.msra.gmra.mxu2 %v16202_v48  ;;  %v8611_v13 = vadd.f32 %v8610_v34, %v8582_v37  ;;  %v11203_v34 = vld [vmem:[#allocation22 + $0xb8] sm:$0xf]  ;;  %v8529_v12 = vadd.f32 %v16659_v63, %v8500_v52 }
 0x821   :  { %v11204_v5 = vor.u32 %v13263_v46, %v11203_v34  ;;  %v11427_v52 = vld [vmem:[#allocation22 + $0x278] sm:$0xf]  ;;  %v13396_v46 = vld [vmem:[#allocation22 + $0x4f8] sm:$0xf0] }
 0x822   :  { %v11736_v6 = vor.u32 %v13396_v46, %v11735_v14  ;;  %v8449_v14 = vadd.f32 %v16677_v11, %v16689_v27 }
 0x823   :  { %v8554_v29 = vpop.f32.mrf.mxu3  ;;  %v8639_v3 = vpop.f32.mrf.mxu2  ;;  %8895 = vmatpush.bf16.msrb.mxu3 %v11204_v5  ;;  %v13452_v5 = vld [vmem:[#allocation22 + $0x6b8] sm:$0xf0] }
 0x824   :  { %v8612_v58 = vpop.f32.mrf.mxu1  ;;  %v8555_v57 = vadd.f32 %v8554_v29, %v8526_v0  ;;  %v8640_v51 = vadd.f32 %v8639_v3, %v8611_v13  ;;  %v11763_v13 = vld [vmem:[#allocation22 + $0x518] sm:$0xf]  ;;  %v13403_v0 = vld [vmem:[#allocation22 + $0x530] sm:$0xf0] }
 0x825   :  { %v11764_v47 = vor.u32 %v13403_v0, %v11763_v13  ;;  %v13256_v13 = vld [vmem:[#allocation22 + $0x98] sm:$0xf0]  ;;  %v11707_v0 = vld [vmem:[#allocation22 + $0x4a8] sm:$0xf] }
 0x826   :  { %v8584_v49 = vadd.f32 %v8583_v32, %v8555_v57  ;;  %13800 = vtanh.f32 %v8640_v51  ;;  %v8586_v37 = vpop.f32.mrf.mxu0  ;;  %v8473_v32 = vadd.f32 %v16654_v45, %v8444_v33  ;;  %v13319_v45 = vld [vmem:[#allocation22 + $0x290] sm:$0xf0] }
 0x827   :  { %8949 = vmatpush.bf16.msrb.mxu1 %v11764_v47  ;;  %v11931_v47 = vld [vmem:[#allocation22 + $0x668] sm:$0xf] }
 0x828   :  { %8788 = vmatmul.bf16.gmra.mxu3 %v16262_v1  ;;  %v8613_v15 = vadd.f32 %v8612_v58, %v8584_v49  ;;  %v8502_v34 = vadd.f32 %v16661_v62, %v8473_v32  ;;  %v8447_v58 = vadd.f32 %v16667_v16, %v16689_v27  ;;  %v11428_v49 = vor.u32 %v13319_v45, %v11427_v52 }
 0x829   :  { %8817 = vmatmul.bf16.gmra.mxu0 %v16266_v24  ;;  %v11960_v16 = vor.u32 %v13452_v5, %v11959_v22  ;;  %v11679_v22 = vld [vmem:[#allocation22 + $0x470] sm:$0xf] }
 0x82a   :  { %8924 = vmatpush.bf16.msrb.mxu0 %v11428_v49  ;;  %v8476_v32 = vadd.f32 %v16663_v31, %v8447_v58  ;;  %v11399_v31 = vld [vmem:[#allocation22 + $0x240] sm:$0xf]  ;;  %v11903_v5 = vld [vmem:[#allocation22 + $0x630] sm:$0xf] }
 0x82b   :  { %v8557_v29 = vpop.f32.mrf.mxu3  ;;  %v8641_v3 = vpop.f32.mrf.mxu2  ;;  %8950 = vmatpush.bf16.msrb.mxu1 %v11736_v6  ;;  %8979 = vmatpush.bf16.msrb.mxu2 %v11960_v16  ;;  %v13382_v6 = vld [vmem:[#allocation22 + $0x488] sm:$0xf0] }
 0x82c   :  { %v8615_v57 = vpop.f32.mrf.mxu1  ;;  %v8558_v51 = vadd.f32 %v8557_v29, %v8529_v12  ;;  %v13801_v10 = vpop.eup %13800  ;;  %v8642_v7 = vadd.f32 %v8641_v3, %v8613_v15  ;;  %v13389_v15 = vld [vmem:[#allocation22 + $0x4c0] sm:$0xf0]  ;;  %v8531_v12 = vadd.f32 %v16669_v26, %v8502_v34  ;;  %v8505_v49 = vadd.f32 %v16671_v2, %v8476_v32  ;;  %v13312_v34 = vld [vmem:[#allocation22 + $0x258] sm:$0xf0]  ;;  %v11147_v2 = vld [vmem:[#allocation22 + $0x48] sm:$0xf] }
 0x82d   :  { %9645 = vst [vmem:[#allocation25 + $0x10] sm:$0xff] %v13801_v10  ;;  %v11708_v29 = vor.u32 %v13389_v15, %v11707_v0  ;;  %v13445_v3 = vld [vmem:[#allocation22 + $0x680] sm:$0xf0]  ;;  %v11400_v46 = vor.u32 %v13312_v34, %v11399_v31  ;;  %v13375_v0 = vld [vmem:[#allocation22 + $0x450] sm:$0xf0] }
 0x82e   :  { %v8587_v63 = vadd.f32 %v8586_v37, %v8558_v51  ;;  %13802 = vtanh.f32 %v8642_v7  ;;  %8846 = vmatmul.bf16.gmra.mxu1 %v16285_v38  ;;  %v8588_v33 = vpop.f32.mrf.mxu0  ;;  %v11176_v37 = vor.u32 %v13256_v13, %v11175_v30  ;;  %v11932_v10 = vor.u32 %v13445_v3, %v11931_v47  ;;  %v13438_v13 = vld [vmem:[#allocation22 + $0x648] sm:$0xf0]  ;;  %v11875_v15 = vld [vmem:[#allocation22 + $0x5f8] sm:$0xf]  ;;  %v11623_v34 = vld [vmem:[#allocation22 + $0x400] sm:$0xf] }
 0x82f   :  { %8951 = vmatpush.bf16.msrb.mxu1 %v11708_v29  ;;  %v11680_v30 = vor.u32 %v13382_v6, %v11679_v22  ;;  %8925 = vmatpush.bf16.msrb.mxu0 %v11400_v46  ;;  %v11904_v11 = vor.u32 %v13438_v13, %v11903_v5  ;;  %v8534_v47 = vadd.f32 %v16679_v23, %v8505_v49  ;;  %v13431_v29 = vld [vmem:[#allocation22 + $0x610] sm:$0xf0]  ;;  %v11371_v49 = vld [vmem:[#allocation22 + $0x208] sm:$0xf]  ;;  %v13368_v46 = vld [vmem:[#allocation22 + $0x418] sm:$0xf0] }
 0x830   :  { %8875 = vmatmul.bf16.gmra.mxu2 %v16239_v56  ;;  %v8616_v62 = vadd.f32 %v8615_v57, %v8587_v63  ;;  %8896 = vmatpush.bf16.msrb.mxu3 %v11176_v37  ;;  %v11651_v37 = vld [vmem:[#allocation22 + $0x438] sm:$0xf]  ;;  %v8452_v23 = vadd.f32 %v16692_v25, %v16689_v27  ;;  %v11847_v22 = vld [vmem:[#allocation22 + $0x5c0] sm:$0xf]  ;;  %v11624_v6 = vor.u32 %v13368_v46, %v11623_v34  ;;  %v13424_v5 = vld [vmem:[#allocation22 + $0x5d8] sm:$0xf0] }
 0x831   :  { %8980 = vmatpush.bf16.msrb.mxu2 %v11932_v10  ;;  %v11652_v32 = vor.u32 %v13375_v0, %v11651_v37  ;;  %v13417_v0 = vld [vmem:[#allocation22 + $0x5a0] sm:$0xf0]  ;;  %v13571_v46 = vld [vmem:[#allocation22 + $0xa70] sm:$0xf0] }
 0x833   :  { %v8559_v51 = vpop.f32.mrf.mxu3  ;;  %v8644_v7 = vpop.f32.mrf.mxu2  ;;  %8952 = vmatpush.bf16.msrb.mxu1 %v11680_v30  ;;  %v13242_v30 = vld [vmem:[#allocation22 + $0x28] sm:$0xf0] }
 0x834   :  { %v8617_v52 = vpop.f32.mrf.mxu1  ;;  %v8560_v57 = vadd.f32 %v8559_v51, %v8531_v12  ;;  %v13803_v63 = vpop.eup %13802  ;;  %v8645_v45 = vadd.f32 %v8644_v7, %v8616_v62  ;;  %v13249_v62 = vld [vmem:[#allocation22 + $0x60] sm:$0xf0]  ;;  %v8478_v12 = vadd.f32 %v16674_v44, %v8449_v14  ;;  %v11876_v51 = vor.u32 %v13431_v29, %v11875_v15 }
 0x835   :  { %9652 = vst [vmem:[#allocation25 + $0x48] sm:$0xff] %v13803_v63  ;;  %8981 = vmatpush.bf16.msrb.mxu2 %v11904_v11  ;;  %v13305_v14 = vld [vmem:[#allocation22 + $0x220] sm:$0xf0] }
 0x836   :  { %v8589_v26 = vadd.f32 %v8588_v33, %v8560_v57  ;;  %13804 = vtanh.f32 %v8645_v45  ;;  %v8591_v58 = vpop.f32.mrf.mxu0  ;;  %v11148_v33 = vor.u32 %v13249_v62, %v11147_v2  ;;  %v8507_v45 = vadd.f32 %v16681_v42, %v8478_v12  ;;  %v11119_v42 = vld [vmem:[#allocation22 + $0x10] sm:$0xf]  ;;  %v11595_v2 = vld [vmem:[#allocation22 + $0x3c8] sm:$0xf]  ;;  %v13361_v62 = vld [vmem:[#allocation22 + $0x3e0] sm:$0xf0] }
 0x837   :  { %8953 = vmatpush.bf16.msrb.mxu1 %v11652_v32  ;;  %v11372_v31 = vor.u32 %v13305_v14, %v11371_v49  ;;  %v11120_v13 = vor.u32 %v13242_v30, %v11119_v42  ;;  %v11596_v37 = vor.u32 %v13361_v62, %v11595_v2  ;;  %v13410_v14 = vld [vmem:[#allocation22 + $0x568] sm:$0xf0]  ;;  %v13508_v30 = vld [vmem:[#allocation22 + $0x878] sm:$0xf0] }
 0x838   :  { %8793 = vmatmul.bf16.gmra.mxu3 %v16301_v9  ;;  %v8618_v16 = vadd.f32 %v8617_v52, %v8589_v26  ;;  %v8536_v11 = vadd.f32 %v16694_v54, %v8507_v45  ;;  %v11567_v45 = vld [vmem:[#allocation22 + $0x390] sm:$0xf] }
 0x839   :  { %8822 = vmatmul.bf16.gmra.mxu0 %v16308_v35  ;;  %8897 = vmatpush.bf16.msrb.mxu3 %v11148_v33  ;;  %v8481_v33 = vadd.f32 %v16683_v55, %v8452_v23  ;;  %v11343_v55 = vld [vmem:[#allocation22 + $0x1d0] sm:$0xf]  ;;  %v13354_v23 = vld [vmem:[#allocation22 + $0x3a8] sm:$0xf0] }
 0x83a   :  { %8982 = vmatpush.bf16.msrb.mxu2 %v11876_v51  ;;  %8926 = vmatpush.bf16.msrb.mxu0 %v11372_v31  ;;  %v11568_v49 = vor.u32 %v13354_v23, %v11567_v45  ;;  %v13515_v31 = vld [vmem:[#allocation22 + $0x8b0] sm:$0xf0] }
 0x83b   :  { %v8562_v3 = vpop.f32.mrf.mxu3  ;;  %v8646_v10 = vpop.f32.mrf.mxu2  ;;  %8954 = vmatpush.bf16.msrb.mxu1 %v11624_v6 }
 0x83c   :  { %v8620_v7 = vpop.f32.mrf.mxu1  ;;  %v8563_v52 = vadd.f32 %v8562_v3, %v8534_v47  ;;  %v13805_v57 = vpop.eup %13804  ;;  %v8647_v63 = vadd.f32 %v8646_v10, %v8618_v16  ;;  %v11819_v16 = vld [vmem:[#allocation22 + $0x588] sm:$0xf]  ;;  %v8510_v10 = vadd.f32 %v16696_v8, %v8481_v33  ;;  %v12211_v8 = vld [vmem:[#allocation22 + $0x898] sm:$0xf]  ;;  %v12407_v33 = vld [vmem:[#allocation22 + $0xa20] sm:$0xf] }
 0x83d   :  { %9659 = vst [vmem:[#allocation25 + $0x80] sm:$0xff] %v13805_v57  ;;  %8898 = vmatpush.bf16.msrb.mxu3 %v11120_v13  ;;  %v11820_v47 = vor.u32 %v13417_v0, %v11819_v16 }
 0x83e   :  { %v8592_v44 = vadd.f32 %v8591_v58, %v8563_v52  ;;  %13806 = vtanh.f32 %v8647_v63  ;;  %8851 = vmatmul.bf16.gmra.mxu1 %v16322_v59  ;;  %v8593_v26 = vpop.f32.mrf.mxu0  ;;  %v11848_v58 = vor.u32 %v13424_v5, %v11847_v22  ;;  %v13298_v52 = vld [vmem:[#allocation22 + $0x1e8] sm:$0xf0]  ;;  %v12183_v22 = vld [vmem:[#allocation22 + $0x860] sm:$0xf]  ;;  %v8539_v6 = vadd.f32 %v16707_v17, %v8510_v10 }
 0x83f   :  { %8955 = vmatpush.bf16.msrb.mxu1 %v11596_v37  ;;  %v11344_v63 = vor.u32 %v13298_v52, %v11343_v55  ;;  %v13564_v37 = vld [vmem:[#allocation22 + $0xa38] sm:$0xf0]  ;;  %v12379_v52 = vld [vmem:[#allocation22 + $0x9e8] sm:$0xf] }
 0x840   :  { %8880 = vmatmul.bf16.gmra.mxu2 %v16256_v40  ;;  %v8621_v25 = vadd.f32 %v8620_v7, %v8592_v44  ;;  %v8454_v7 = vadd.f32 %v16705_v21, %v16689_v27  ;;  %v11791_v44 = vld [vmem:[#allocation22 + $0x550] sm:$0xf]  ;;  %v12212_v27 = vor.u32 %v13515_v31, %v12211_v8  ;;  %v12408_v0 = vor.u32 %v13564_v37, %v12407_v33 }
 0x841   :  { %8983 = vmatpush.bf16.msrb.mxu2 %v11848_v58  ;;  %8927 = vmatpush.bf16.msrb.mxu0 %v11344_v63  ;;  %v11792_v21 = vor.u32 %v13410_v14, %v11791_v44  ;;  %v12184_v58 = vor.u32 %v13508_v30, %v12183_v22  ;;  %v12127_v63 = vld [vmem:[#allocation22 + $0x7f0] sm:$0xf]  ;;  %v13494_v44 = vld [vmem:[#allocation22 + $0x808] sm:$0xf0]  ;;  %v12883_v30 = vld [vmem:[#allocation22 + $0xdd8] sm:$0xf] }
 0x842   :  { %v8483_v5 = vadd.f32 %v16701_v4, %v8454_v7  ;;  %9007 = vmatpush.bf16.msra.mxu3 %v12212_v27  ;;  %v12128_v14 = vor.u32 %v13494_v44, %v12127_v63 }
 0x843   :  { %v8564_v15 = vpop.f32.mrf.mxu3  ;;  %v8649_v12 = vpop.f32.mrf.mxu2  ;;  %8956 = vmatpush.bf16.msrb.mxu1 %v11568_v49 }
 0x844   :  { %v8622_v32 = vpop.f32.mrf.mxu1  ;;  %v8565_v29 = vadd.f32 %v8564_v15, %v8536_v11  ;;  %v13807_v3 = vpop.eup %13806  ;;  %v8650_v51 = vadd.f32 %v8649_v12, %v8621_v25  ;;  %v8512_v17 = vadd.f32 %v16709_v60, %v8483_v5  ;;  %v12155_v12 = vld [vmem:[#allocation22 + $0x828] sm:$0xf]  ;;  %v12099_v5 = vld [vmem:[#allocation22 + $0x7b8] sm:$0xf] }
 0x845   :  { %9666 = vst [vmem:[#allocation25 + $0xb8] sm:$0xff] %v13807_v3  ;;  %8984 = vmatpush.bf16.msrb.mxu2 %v11820_v47 }
 0x846   :  { %v8594_v54 = vadd.f32 %v8593_v26, %v8565_v29  ;;  %13808 = vtanh.f32 %v8650_v51  ;;  %v8596_v57 = vpop.f32.mrf.mxu0  ;;  %v12435_v26 = vld [vmem:[#allocation22 + $0xa58] sm:$0xf]  ;;  %9008 = vmatpush.bf16.msra.mxu3 %v12184_v58  ;;  %v8541_v29 = vadd.f32 %v16718_v61, %v8512_v17  ;;  %v13683_v58 = vld [vmem:[#allocation22 + $0xdf0] sm:$0xf0] }
 0x847   :  { %v12436_v42 = vor.u32 %v13571_v46, %v12435_v26  ;;  %v12351_v26 = vld [vmem:[#allocation22 + $0x9b0] sm:$0xf]  ;;  %v13550_v46 = vld [vmem:[#allocation22 + $0x9c8] sm:$0xf0] }
 0x848   :  { %8798 = vmatmul.bf16.gmra.mxu3 %v16335_v28  ;;  %v8623_v34 = vadd.f32 %v8622_v32, %v8594_v54  ;;  %v13501_v32 = vld [vmem:[#allocation22 + $0x840] sm:$0xf0]  ;;  %v12352_v22 = vor.u32 %v13550_v46, %v12351_v26  ;;  %v12575_v26 = vld [vmem:[#allocation22 + $0xb70] sm:$0xf] }
 0x849   :  { %8827 = vmatmul.bf16.gmra.mxu0 %v16338_v39  ;;  %8985 = vmatpush.bf16.msrb.mxu2 %v11792_v21  ;;  %v12156_v3 = vor.u32 %v13501_v32, %v12155_v12  ;;  %v13620_v12 = vld [vmem:[#allocation22 + $0xbf8] sm:$0xf0]  ;;  %v12855_v32 = vld [vmem:[#allocation22 + $0xda0] sm:$0xf] }
 0x84a   :  { %9036 = vmatpush.bf16.msra.mxu0 %v12436_v42  ;;  %v13487_v42 = vld [vmem:[#allocation22 + $0x7d0] sm:$0xf0] }
 0x84b   :  { %v8567_v25 = vpop.f32.mrf.mxu3  ;;  %v8651_v13 = vpop.f32.mrf.mxu2  ;;  %9009 = vmatpush.bf16.msra.mxu3 %v12156_v3 }
 0x84c   :  { %v8625_v2 = vpop.f32.mrf.mxu1  ;;  %v8568_v62 = vadd.f32 %v8567_v25, %v8539_v6  ;;  %v13809_v16 = vpop.eup %13808  ;;  %v8652_v11 = vadd.f32 %v8651_v13, %v8623_v34  ;;  %v12100_v25 = vor.u32 %v13487_v42, %v12099_v5  ;;  %v12659_v13 = vld [vmem:[#allocation22 + $0xc18] sm:$0xf]  ;;  %v12799_v5 = vld [vmem:[#allocation22 + $0xd30] sm:$0xf]  ;;  %v13662_v42 = vld [vmem:[#allocation22 + $0xd48] sm:$0xf0] }
 0x84d   :  { %9673 = vst [vmem:[#allocation25 + $0xf0] sm:$0xff] %v13809_v16  ;;  %v12884_v16 = vor.u32 %v13683_v58, %v12883_v30  ;;  %v17543_v30 = vld [vmem:[#allocation45_spill] sm:$0xff] }
 0x84e   :  { %v8597_v4 = vadd.f32 %v8596_v57, %v8568_v62  ;;  %13810 = vtanh.f32 %v8652_v11  ;;  %8856 = vmatmul.bf16.gmra.mxu1 %v16341_v53  ;;  %v8598_v15 = vpop.f32.mrf.mxu0  ;;  %9037 = vmatpush.bf16.msra.mxu0 %v12408_v0  ;;  %v13557_v57 = vld [vmem:[#allocation22 + $0xa00] sm:$0xf0]  ;;  %v13543_v0 = vld [vmem:[#allocation22 + $0x990] sm:$0xf0] }
 0x84f   :  { %v12380_v23 = vor.u32 %v13557_v57, %v12379_v52  ;;  %9010 = vmatpush.bf16.msra.mxu3 %v12128_v14  ;;  %9094 = vmatpush.bf16.msra.mxu2 %v12884_v16  ;;  %v13613_v52 = vld [vmem:[#allocation22 + $0xbc0] sm:$0xf0]  ;;  %v12827_v57 = vld [vmem:[#allocation22 + $0xd68] sm:$0xf] }
 0x850   :  { %8885 = vmatmul.bf16.gmra.mxu2 %v17504_v36  ;;  %v8626_v47 = vadd.f32 %v8625_v2, %v8597_v4  ;;  %v13627_v2 = vld [vmem:[#allocation22 + $0xc30] sm:$0xf0]  ;;  %v12323_v4 = vld [vmem:[#allocation22 + $0x978] sm:$0xf]  ;;  %v12043_v16 = vld [vmem:[#allocation22 + $0x748] sm:$0xf] }
 0x851   :  { %v12660_v11 = vor.u32 %v13627_v2, %v12659_v13  ;;  %v12800_v13 = vor.u32 %v13662_v42, %v12799_v5  ;;  %v17544_v2 = vld [vmem:[#allocation53_spill] sm:$0xff]  ;;  %v13585_v42 = vld [vmem:[#allocation22 + $0xae0] sm:$0xf0] }
 0x852   :  { %9038 = vmatpush.bf16.msra.mxu0 %v12380_v23  ;;  %v17542_v23 = vld [vmem:[#allocation44_spill] sm:$0xff] }
 0x853   :  { %v8569_v51 = vpop.f32.mrf.mxu3  ;;  %v8654_v10 = vpop.f32.mrf.mxu2  ;;  %9011 = vmatpush.bf16.msra.mxu3 %v12100_v25  ;;  %9065 = vmatpush.bf16.msra.mxu1 %v12660_v11  ;;  %v13473_v11 = vld [vmem:[#allocation22 + $0x760] sm:$0xf0] }
 0x854   :  { %v8627_v60 = vpop.f32.mrf.mxu1  ;;  %v8570_v7 = vadd.f32 %v8569_v51, %v8541_v29  ;;  %v13811_v54 = vpop.eup %13810  ;;  %v8655_v55 = vadd.f32 %v8654_v10, %v8626_v47  ;;  %v12324_v47 = vor.u32 %v13543_v0, %v12323_v4  ;;  %v13676_v51 = vld [vmem:[#allocation22 + $0xdb8] sm:$0xf0]  ;;  %v12071_v10 = vld [vmem:[#allocation22 + $0x780] sm:$0xf]  ;;  %v12044_v4 = vor.u32 %v13473_v11, %v12043_v16  ;;  %v13599_v0 = vld [vmem:[#allocation22 + $0xb50] sm:$0xf0] }
 0x855   :  { %9680 = vst [vmem:[#allocation25 + $0x128] sm:$0xff] %v13811_v54  ;;  %v17546_v11 = vld [vmem:[#allocation58_spill] sm:$0xff] }
 0x856   :  { %v8599_v45 = vadd.f32 %v8598_v15, %v8570_v7  ;;  %13812 = vtanh.f32 %v8655_v55  ;;  %v16766_v49 = vpop.f32.mrf.mxu0  ;;  %9039 = vmatpush.bf16.msra.mxu0 %v12352_v22  ;;  %v12631_v15 = vld [vmem:[#allocation22 + $0xbe0] sm:$0xf]  ;;  %v12856_v7 = vor.u32 %v13676_v51, %v12855_v32  ;;  %v12603_v55 = vld [vmem:[#allocation22 + $0xba8] sm:$0xf]  ;;  %v13606_v22 = vld [vmem:[#allocation22 + $0xb88] sm:$0xf0] }
 0x857   :  { %v12632_v3 = vor.u32 %v13620_v12, %v12631_v15  ;;  %v12604_v63 = vor.u32 %v13613_v52, %v12603_v55  ;;  %v12576_v58 = vor.u32 %v13606_v22, %v12575_v26  ;;  %v12771_v15 = vld [vmem:[#allocation22 + $0xcf8] sm:$0xf]  ;;  %v13592_v52 = vld [vmem:[#allocation22 + $0xb18] sm:$0xf0]  ;;  %v13466_v26 = vld [vmem:[#allocation22 + $0x728] sm:$0xf0] }
 0x858   :  { %8899 = vmatmul.bf16.vlgmr.msrb.gmra.mxu3 %v17505_v19  ;;  %v8628_v61 = vadd.f32 %v8627_v60, %v8599_v45  ;;  %v13480_v60 = vld [vmem:[#allocation22 + $0x798] sm:$0xf0]  ;;  %v13669_v45 = vld [vmem:[#allocation22 + $0xd80] sm:$0xf0]  ;;  %9095 = vmatpush.bf16.msra.mxu2 %v12856_v7 }
 0x859   :  { %8928 = vmatmul.bf16.vlgmr.msrb.gmra.mxu0 %v17506_v41  ;;  %v12072_v54 = vor.u32 %v13480_v60, %v12071_v10  ;;  %9066 = vmatpush.bf16.msra.mxu1 %v12632_v3  ;;  %v12828_v44 = vor.u32 %v13669_v45, %v12827_v57  ;;  %v12267_v60 = vld [vmem:[#allocation22 + $0x908] sm:$0xf]  ;;  %v13529_v7 = vld [vmem:[#allocation22 + $0x920] sm:$0xf0]  ;;  %v12743_v57 = vld [vmem:[#allocation22 + $0xcc0] sm:$0xf] }
 0x85a   :  { %9040 = vmatpush.bf16.msra.mxu0 %v12324_v47  ;;  %v13655_v47 = vld [vmem:[#allocation22 + $0xd10] sm:$0xf0]  ;;  %v12268_v55 = vor.u32 %v13529_v7, %v12267_v60  ;;  %v17545_v22 = vld [vmem:[#allocation54_spill] sm:$0xff]  ;;  %v13578_v7 = vld [vmem:[#allocation22 + $0xaa8] sm:$0xf0] }
 0x85b   :  { %v16770_v8 = vpop.f32.mrf.mxu3  ;;  %v8656_v31 = vpop.f32.mrf.mxu2  ;;  %9012 = vmatpush.bf16.msra.mxu3 %v12072_v54  ;;  %v12772_v3 = vor.u32 %v13655_v47, %v12771_v15  ;;  %v12519_v54 = vld [vmem:[#allocation22 + $0xb00] sm:$0xf]  ;;  %v12239_v47 = vld [vmem:[#allocation22 + $0x8d0] sm:$0xf] }
 0x85c   :  { %v16772_v34 = vpop.f32.mrf.mxu1  ;;  %v13813_v21 = vpop.eup %13812  ;;  %v8657_v27 = vadd.f32 %v8656_v31, %v8628_v61  ;;  %9096 = vmatpush.bf16.msra.mxu2 %v12828_v44  ;;  %v12520_v44 = vor.u32 %v13592_v52, %v12519_v54  ;;  %v12687_v54 = vld [vmem:[#allocation22 + $0xc50] sm:$0xf]  ;;  %v17547_v52 = vld [vmem:[#allocation59_spill] sm:$0xff] }
 0x85d   :  { %9687 = vst [vmem:[#allocation25 + $0x160] sm:$0xff] %v13813_v21  ;;  %9067 = vmatpush.bf16.msra.mxu1 %v12604_v63  ;;  %v12295_v21 = vld [vmem:[#allocation22 + $0x940] sm:$0xf]  ;;  %v13648_v63 = vld [vmem:[#allocation22 + $0xcd8] sm:$0xf0] }
 0x85e   :  { %13814 = vtanh.f32 %v8657_v27  ;;  %8957 = vmatmul.bf16.vlgmr.msrb.gmra.mxu1 %v17507_v18  ;;  %v16775_v6 = vpop.f32.mrf.mxu0  ;;  %v13536_v27 = vld [vmem:[#allocation22 + $0x958] sm:$0xf0] }
 0x85f   :  { %v12296_v46 = vor.u32 %v13536_v27, %v12295_v21  ;;  %9013 = vmatpush.bf16.msra.mxu3 %v12044_v4  ;;  %v12744_v21 = vor.u32 %v13648_v63, %v12743_v57  ;;  %v12015_v27 = vld [vmem:[#allocation22 + $0x710] sm:$0xf] }
 0x860   :  { %8986 = vmatmul.bf16.vlgmr.msrb.gmra.mxu2 %v17508_v20  ;;  %v12016_v5 = vor.u32 %v13466_v26, %v12015_v27  ;;  %v13288_v27 = vld [vmem:[#allocation22 + $0x19c] sm:$0xf]  ;;  %v11317_v26 = vld [vmem:[#allocation22 + $0x1b4] sm:$0xf0] }
 0x861   :  { %9041 = vmatpush.bf16.msra.mxu0 %v12296_v46  ;;  %9068 = vmatpush.bf16.msra.mxu1 %v12576_v58  ;;  %v12491_v46 = vld [vmem:[#allocation22 + $0xac8] sm:$0xf] }
 0x862   :  { %9097 = vmatpush.bf16.msra.mxu2 %v12800_v13  ;;  %v12715_v58 = vld [vmem:[#allocation22 + $0xc88] sm:$0xf]  ;;  %v13641_v13 = vld [vmem:[#allocation22 + $0xca0] sm:$0xf0]  ;;  %v12492_v16 = vor.u32 %v13585_v42, %v12491_v46  ;;  %v11320_v46 = vor.u32 %v13288_v27, %v11317_v26 }
 0x863   :  { %v16778_v62 = vpop.f32.mrf.mxu3  ;;  %v16780_v33 = vpop.f32.mrf.mxu2  ;;  %9014 = vmatpush.bf16.msra.mxu3 %v12016_v5  ;;  %v17552_v27 = vld [vmem:[#allocation47_spill] sm:$0xff] }
 0x864   :  { %v16782_v37 = vpop.f32.mrf.mxu1  ;;  %v13815_v17 = vpop.eup %13814 }
 0x865   :  { %9694 = vst [vmem:[#allocation25 + $0x198] sm:$0xff] %v13815_v17  ;;  %v12547_v17 = vld [vmem:[#allocation22 + $0xb38] sm:$0xf]  ;;  %9042 = vmatpush.bf16.msra.mxu0 %v12268_v55  ;;  %v13634_v55 = vld [vmem:[#allocation22 + $0xc68] sm:$0xf0] }
 0x866   :  { %v16784_v29 = vpop.f32.mrf.mxu0  ;;  %v12548_v32 = vor.u32 %v13599_v0, %v12547_v17  ;;  %9098 = vmatpush.bf16.msra.mxu2 %v12772_v3  ;;  %v12716_v17 = vor.u32 %v13641_v13, %v12715_v58  ;;  %v12463_v3 = vld [vmem:[#allocation22 + $0xa90] sm:$0xf] }
 0x867   :  { %v12464_v63 = vor.u32 %v13578_v7, %v12463_v3  ;;  %9123 = vmatpush.bf16.msrb.mxu3 %v11320_v46 }
 0x868   :  { %8904 = vmatmul.bf16.gmra.mxu3 %v17514_v43  ;;  %9069 = vmatpush.bf16.msra.mxu1 %v12548_v32  ;;  %v13522_v32 = vld [vmem:[#allocation22 + $0x8e8] sm:$0xf0] }
 0x869   :  { %8933 = vmatmul.bf16.gmra.mxu0 %v17542_v23  ;;  %v12240_v60 = vor.u32 %v13522_v32, %v12239_v47  ;;  %v17551_v32 = vld [vmem:[#allocation46_spill] sm:$0xff] }
 0x86a   :  { %9099 = vmatpush.bf16.msra.mxu2 %v12744_v21  ;;  %v17548_v21 = vld [vmem:[#allocation38_spill] sm:$0xff] }
 0x86b   :  { %v16788_v14 = vpop.f32.mrf.mxu3  ;;  %v16790_v61 = vpop.f32.mrf.mxu2  ;;  %9043 = vmatpush.bf16.msra.mxu0 %v12240_v60 }
 0x86c   :  { %v16792_v31 = vpop.f32.mrf.mxu1  ;;  %9070 = vmatpush.bf16.msra.mxu1 %v12520_v44  ;;  %v12688_v44 = vor.u32 %v13634_v55, %v12687_v54  ;;  %v13344_v55 = vld [vmem:[#allocation22 + $0x35c] sm:$0xf] }
 0x86e   :  { %8962 = vmatmul.bf16.gmra.mxu1 %v17543_v30  ;;  %v16795_v25 = vpop.f32.mrf.mxu0  ;;  %9100 = vmatpush.bf16.msra.mxu2 %v12716_v17  ;;  %v17550_v17 = vld [vmem:[#allocation48_spill] sm:$0xff] }
 0x86f   :  { %v16828_v47 = vperm.slane %v17550_v17, 3  ;;  %v11289_v17 = vld [vmem:[#allocation22 + $0x17c] sm:$0xf0] }
 0x870   :  { %8991 = vmatmul.bf16.gmra.mxu2 %v17544_v2  ;;  %9071 = vmatpush.bf16.msra.mxu1 %v12492_v16  ;;  %v17549_v16 = vld [vmem:[#allocation39_spill] sm:$0xff]  ;;  %v17554_v2 = vld [vmem:[#allocation56_spill] sm:$0xff] }
 0x871   :  { %v8669_v54 = vadd.f32 %v16770_v8, %v16828_v47 }
 0x872   :  { %9101 = vmatpush.bf16.msra.mxu2 %v12688_v44  ;;  %v13281_v44 = vld [vmem:[#allocation22 + $0x164] sm:$0xf] }
 0x873   :  { %v16798_v12 = vpop.f32.mrf.mxu3  ;;  %v16800_v51 = vpop.f32.mrf.mxu2 }
 0x874   :  { %v16802_v10 = vpop.f32.mrf.mxu1  ;;  %9072 = vmatpush.bf16.msra.mxu1 %v12464_v63  ;;  %v11541_v63 = vld [vmem:[#allocation22 + $0x374] sm:$0xf0] }
 0x875   :  { %v11544_v46 = vor.u32 %v13344_v55, %v11541_v63  ;;  %v13337_v55 = vld [vmem:[#allocation22 + $0x324] sm:$0xf]  ;;  %v11513_v63 = vld [vmem:[#allocation22 + $0x33c] sm:$0xf0] }
 0x876   :  { %v16804_v45 = vpop.f32.mrf.mxu0 }
 0x877   :  { %9152 = vmatpush.bf16.msrb.mxu0 %v11544_v46  ;;  %v11261_v46 = vld [vmem:[#allocation22 + $0x144] sm:$0xf0] }
 0x878   :  { %8909 = vmatmul.bf16.gmra.mxu3 %v17545_v22 }
 0x879   :  { %8938 = vmatmul.bf16.gmra.mxu0 %v17546_v11 }
 0x87b   :  { %v16808_v4 = vpop.f32.mrf.mxu3  ;;  %v16810_v0 = vpop.f32.mrf.mxu2 }
 0x87c   :  { %v16812_v15 = vpop.f32.mrf.mxu1 }
 0x87e   :  { %8967 = vmatmul.bf16.gmra.mxu1 %v17547_v52  ;;  %v16815_v57 = vpop.f32.mrf.mxu0 }
 0x880   :  { %8996 = vmatmul.bf16.gmra.mxu2 %v17548_v21  ;;  %v8698_v21 = vadd.f32 %v16766_v49, %v8669_v54 }
 0x882   :  { %v8727_v22 = vadd.f32 %v16772_v34, %v8698_v21 }
 0x883   :  { %v16818_v5 = vpop.f32.mrf.mxu3  ;;  %v16820_v42 = vpop.f32.mrf.mxu2 }
 0x884   :  { %v16822_v58 = vpop.f32.mrf.mxu1 }
 0x886   :  { %v16824_v13 = vpop.f32.mrf.mxu0 }
 0x888   :  { %8914 = vmatmul.bf16.gmra.mxu3 %v17549_v16  ;;  %v11292_v16 = vor.u32 %v13281_v44, %v11289_v17  ;;  %v13274_v44 = vld [vmem:[#allocation22 + $0x12c] sm:$0xf] }
 0x889   :  { %8943 = vmatmul.bf16.gmra.mxu0 %v17551_v32  ;;  %v17553_v32 = vld [vmem:[#allocation55_spill] sm:$0xff]  ;;  %v11264_v49 = vor.u32 %v13274_v44, %v11261_v46  ;;  %v13267_v46 = vld [vmem:[#allocation22 + $0xf4] sm:$0xf] }
 0x88a   :  { %9124 = vmatpush.bf16.msrb.mxu3 %v11292_v16  ;;  %v8756_v16 = vadd.f32 %v16780_v33, %v8727_v22  ;;  %v13330_v44 = vld [vmem:[#allocation22 + $0x2ec] sm:$0xf]  ;;  %v17555_v33 = vld [vmem:[#allocation40_spill] sm:$0xff] }
 0x88b   :  { %v16831_v3 = vpop.f32.mrf.mxu3  ;;  %v16833_v60 = vpop.f32.mrf.mxu2 }
 0x88c   :  { %v16835_v7 = vpop.f32.mrf.mxu1 }
 0x88e   :  { %8972 = vmatmul.bf16.gmra.mxu1 %v17552_v27  ;;  %v16840_v26 = vpop.f32.mrf.mxu0  ;;  %v8671_v27 = vadd.f32 %v16778_v62, %v16828_v47  ;;  %9125 = vmatpush.bf16.msrb.mxu3 %v11264_v49 }
 0x890   :  { %9001 = vmatmul.bf16.gmra.mxu2 %v17553_v32  ;;  %v11516_v32 = vor.u32 %v13337_v55, %v11513_v63  ;;  %v8700_v54 = vadd.f32 %v16775_v6, %v8671_v27  ;;  %v8674_v55 = vadd.f32 %v16788_v14, %v16828_v47  ;;  %v11233_v27 = vld [vmem:[#allocation22 + $0x10c] sm:$0xf0] }
 0x891   :  { %v11236_v49 = vor.u32 %v13267_v46, %v11233_v27  ;;  %v13323_v46 = vld [vmem:[#allocation22 + $0x2b4] sm:$0xf]  ;;  %v11457_v27 = vld [vmem:[#allocation22 + $0x2cc] sm:$0xf0] }
 0x892   :  { %9153 = vmatpush.bf16.msrb.mxu0 %v11516_v32  ;;  %v8729_v23 = vadd.f32 %v16782_v37, %v8700_v54  ;;  %v11485_v32 = vld [vmem:[#allocation22 + $0x304] sm:$0xf0]  ;;  %v8703_v37 = vadd.f32 %v16784_v29, %v8674_v55  ;;  %v13456_v29 = vld [vmem:[#allocation22 + $0x6dc] sm:$0xf]  ;;  %v11989_v55 = vld [vmem:[#allocation22 + $0x6f4] sm:$0xf0] }
 0x893   :  { %v16844_v52 = vpop.f32.mrf.mxu3  ;;  %v16846_v11 = vpop.f32.mrf.mxu2  ;;  %v11488_v22 = vor.u32 %v13330_v44, %v11485_v32  ;;  %9126 = vmatpush.bf16.msrb.mxu3 %v11236_v49  ;;  %v8676_v44 = vadd.f32 %v16798_v12, %v16828_v47  ;;  %v11992_v49 = vor.u32 %v13456_v29, %v11989_v55  ;;  %v13449_v29 = vld [vmem:[#allocation22 + $0x6a4] sm:$0xf] }
 0x894   :  { %v16848_v8 = vpop.f32.mrf.mxu1 }
 0x895   :  { %9210 = vmatpush.bf16.msrb.mxu2 %v11992_v49  ;;  %v13253_v49 = vld [vmem:[#allocation22 + $0x84] sm:$0xf] }
 0x896   :  { %v8813_v17 = vpop.f32.mrf.mxu0  ;;  %9154 = vmatpush.bf16.msrb.mxu0 %v11488_v22 }
 0x898   :  { %9015 = vmatmul.bf16.vlgmr.msra.gmra.mxu3 %v16215_v50 }
 0x899   :  { %9044 = vmatmul.bf16.vlgmr.msra.gmra.mxu0 %v17554_v2 }
 0x89b   :  { %v8784_v34 = vpop.f32.mrf.mxu3  ;;  %v16857_v21 = vpop.f32.mrf.mxu2 }
 0x89c   :  { %v8842_v62 = vpop.f32.mrf.mxu1  ;;  %v8785_v30 = vadd.f32 %v8784_v34, %v8756_v16  ;;  %v8758_v16 = vadd.f32 %v16790_v61, %v8729_v23  ;;  %v11460_v23 = vor.u32 %v13323_v46, %v11457_v27  ;;  %v11205_v61 = vld [vmem:[#allocation22 + $0xd4] sm:$0xf0] }
 0x89e   :  { %v8814_v63 = vadd.f32 %v8813_v17, %v8785_v30  ;;  %9073 = vmatmul.bf16.vlgmr.msra.gmra.mxu1 %v17555_v33  ;;  %v8815_v6 = vpop.f32.mrf.mxu0  ;;  %v8732_v33 = vadd.f32 %v16792_v31, %v8703_v37  ;;  %9155 = vmatpush.bf16.msrb.mxu0 %v11460_v23  ;;  %v13393_v23 = vld [vmem:[#allocation22 + $0x4e4] sm:$0xf] }
 0x8a0   :  { %9102 = vmatmul.bf16.vlgmr.msra.gmra.mxu2 %v16202_v48  ;;  %v8843_v2 = vadd.f32 %v8842_v62, %v8814_v63  ;;  %v13260_v62 = vld [vmem:[#allocation22 + $0xbc] sm:$0xf]  ;;  %v8761_v12 = vadd.f32 %v16800_v51, %v8732_v33 }
 0x8a1   :  { %v11208_v22 = vor.u32 %v13260_v62, %v11205_v61  ;;  %v13316_v33 = vld [vmem:[#allocation22 + $0x27c] sm:$0xf]  ;;  %v11737_v61 = vld [vmem:[#allocation22 + $0x4fc] sm:$0xf0] }
 0x8a2   :  { %v11740_v55 = vor.u32 %v13393_v23, %v11737_v61  ;;  %v8681_v23 = vadd.f32 %v16818_v5, %v16828_v47 }
 0x8a3   :  { %v8786_v14 = vpop.f32.mrf.mxu3  ;;  %v8871_v30 = vpop.f32.mrf.mxu2  ;;  %9127 = vmatpush.bf16.msrb.mxu3 %v11208_v22  ;;  %v11961_v22 = vld [vmem:[#allocation22 + $0x6bc] sm:$0xf0] }
 0x8a4   :  { %v8844_v17 = vpop.f32.mrf.mxu1  ;;  %v8787_v54 = vadd.f32 %v8786_v14, %v8758_v16  ;;  %v8872_v34 = vadd.f32 %v8871_v30, %v8843_v2  ;;  %v13400_v2 = vld [vmem:[#allocation22 + $0x51c] sm:$0xf]  ;;  %v11765_v16 = vld [vmem:[#allocation22 + $0x534] sm:$0xf0] }
 0x8a5   :  { %v11768_v37 = vor.u32 %v13400_v2, %v11765_v16  ;;  %v11177_v2 = vld [vmem:[#allocation22 + $0x9c] sm:$0xf0]  ;;  %v13386_v16 = vld [vmem:[#allocation22 + $0x4ac] sm:$0xf] }
 0x8a6   :  { %v8816_v32 = vadd.f32 %v8815_v6, %v8787_v54  ;;  %13816 = vtanh.f32 %v8872_v34  ;;  %v8818_v63 = vpop.f32.mrf.mxu0  ;;  %v8705_v6 = vadd.f32 %v16795_v25, %v8676_v44  ;;  %v11429_v25 = vld [vmem:[#allocation22 + $0x294] sm:$0xf0] }
 0x8a7   :  { %9181 = vmatpush.bf16.msrb.mxu1 %v11768_v37  ;;  %v13442_v37 = vld [vmem:[#allocation22 + $0x66c] sm:$0xf] }
 0x8a8   :  { %9020 = vmatmul.bf16.gmra.mxu3 %v16262_v1  ;;  %v8845_v31 = vadd.f32 %v8844_v17, %v8816_v32  ;;  %v8734_v62 = vadd.f32 %v16802_v10, %v8705_v6  ;;  %v8679_v17 = vadd.f32 %v16808_v4, %v16828_v47  ;;  %v11432_v32 = vor.u32 %v13316_v33, %v11429_v25 }
 0x8a9   :  { %9049 = vmatmul.bf16.gmra.mxu0 %v16266_v24  ;;  %v11964_v4 = vor.u32 %v13449_v29, %v11961_v22  ;;  %v13379_v29 = vld [vmem:[#allocation22 + $0x474] sm:$0xf] }
 0x8aa   :  { %9156 = vmatpush.bf16.msrb.mxu0 %v11432_v32  ;;  %v8708_v6 = vadd.f32 %v16804_v45, %v8679_v17  ;;  %v13309_v45 = vld [vmem:[#allocation22 + $0x244] sm:$0xf]  ;;  %v13435_v22 = vld [vmem:[#allocation22 + $0x634] sm:$0xf] }
 0x8ab   :  { %v8789_v14 = vpop.f32.mrf.mxu3  ;;  %v8873_v30 = vpop.f32.mrf.mxu2  ;;  %9182 = vmatpush.bf16.msrb.mxu1 %v11740_v55  ;;  %9211 = vmatpush.bf16.msrb.mxu2 %v11964_v4  ;;  %v11681_v55 = vld [vmem:[#allocation22 + $0x48c] sm:$0xf0] }
 0x8ac   :  { %v8847_v54 = vpop.f32.mrf.mxu1  ;;  %v8790_v34 = vadd.f32 %v8789_v14, %v8761_v12  ;;  %v13817_v46 = vpop.eup %13816  ;;  %v8874_v27 = vadd.f32 %v8873_v30, %v8845_v31  ;;  %v11709_v31 = vld [vmem:[#allocation22 + $0x4c4] sm:$0xf0]  ;;  %v8763_v12 = vadd.f32 %v16810_v0, %v8734_v62  ;;  %v8737_v32 = vadd.f32 %v16812_v15, %v8708_v6  ;;  %v11401_v62 = vld [vmem:[#allocation22 + $0x25c] sm:$0xf0]  ;;  %v13246_v15 = vld [vmem:[#allocation22 + $0x4c] sm:$0xf] }
 0x8ad   :  { %9646 = vst [vmem:[#allocation25 + $0x18] sm:$0xff] %v13817_v46  ;;  %v11712_v14 = vor.u32 %v13386_v16, %v11709_v31  ;;  %v11933_v30 = vld [vmem:[#allocation22 + $0x684] sm:$0xf0]  ;;  %v11404_v61 = vor.u32 %v13309_v45, %v11401_v62  ;;  %v11653_v16 = vld [vmem:[#allocation22 + $0x454] sm:$0xf0] }
 0x8ae   :  { %v8819_v51 = vadd.f32 %v8818_v63, %v8790_v34  ;;  %13818 = vtanh.f32 %v8874_v27  ;;  %9078 = vmatmul.bf16.gmra.mxu1 %v16285_v38  ;;  %v8820_v44 = vpop.f32.mrf.mxu0  ;;  %v11180_v63 = vor.u32 %v13253_v49, %v11177_v2  ;;  %v11936_v46 = vor.u32 %v13442_v37, %v11933_v30  ;;  %v11905_v2 = vld [vmem:[#allocation22 + $0x64c] sm:$0xf0]  ;;  %v13428_v31 = vld [vmem:[#allocation22 + $0x5fc] sm:$0xf]  ;;  %v13365_v62 = vld [vmem:[#allocation22 + $0x404] sm:$0xf] }
 0x8af   :  { %9183 = vmatpush.bf16.msrb.mxu1 %v11712_v14  ;;  %v11684_v49 = vor.u32 %v13379_v29, %v11681_v55  ;;  %9157 = vmatpush.bf16.msrb.mxu0 %v11404_v61  ;;  %v11908_v5 = vor.u32 %v13435_v22, %v11905_v2  ;;  %v8766_v37 = vadd.f32 %v16820_v42, %v8737_v32  ;;  %v11877_v14 = vld [vmem:[#allocation22 + $0x614] sm:$0xf0]  ;;  %v13302_v32 = vld [vmem:[#allocation22 + $0x20c] sm:$0xf]  ;;  %v11625_v61 = vld [vmem:[#allocation22 + $0x41c] sm:$0xf0] }
 0x8b0   :  { %9107 = vmatmul.bf16.gmra.mxu2 %v16239_v56  ;;  %v8848_v10 = vadd.f32 %v8847_v54, %v8819_v51  ;;  %9128 = vmatpush.bf16.msrb.mxu3 %v11180_v63  ;;  %v13372_v63 = vld [vmem:[#allocation22 + $0x43c] sm:$0xf]  ;;  %v8684_v42 = vadd.f32 %v16831_v3, %v16828_v47  ;;  %v13421_v29 = vld [vmem:[#allocation22 + $0x5c4] sm:$0xf]  ;;  %v11628_v55 = vor.u32 %v13365_v62, %v11625_v61  ;;  %v11849_v22 = vld [vmem:[#allocation22 + $0x5dc] sm:$0xf0] }
 0x8b1   :  { %9212 = vmatpush.bf16.msrb.mxu2 %v11936_v46  ;;  %v11656_v6 = vor.u32 %v13372_v63, %v11653_v16  ;;  %v11821_v16 = vld [vmem:[#allocation22 + $0x5a4] sm:$0xf0]  ;;  %v12437_v61 = vld [vmem:[#allocation22 + $0xa74] sm:$0xf0] }
 0x8b3   :  { %v8791_v34 = vpop.f32.mrf.mxu3  ;;  %v8876_v27 = vpop.f32.mrf.mxu2  ;;  %9184 = vmatpush.bf16.msrb.mxu1 %v11684_v49  ;;  %v11121_v49 = vld [vmem:[#allocation22 + $0x2c] sm:$0xf0] }
 0x8b4   :  { %v8849_v33 = vpop.f32.mrf.mxu1  ;;  %v8792_v54 = vadd.f32 %v8791_v34, %v8763_v12  ;;  %v13819_v51 = vpop.eup %13818  ;;  %v8877_v25 = vadd.f32 %v8876_v27, %v8848_v10  ;;  %v11149_v10 = vld [vmem:[#allocation22 + $0x64] sm:$0xf0]  ;;  %v8710_v12 = vadd.f32 %v16815_v57, %v8681_v23  ;;  %v11880_v34 = vor.u32 %v13428_v31, %v11877_v14 }
 0x8b5   :  { %9653 = vst [vmem:[#allocation25 + $0x50] sm:$0xff] %v13819_v51  ;;  %9213 = vmatpush.bf16.msrb.mxu2 %v11908_v5  ;;  %v11373_v23 = vld [vmem:[#allocation22 + $0x224] sm:$0xf0] }
 0x8b6   :  { %v8821_v0 = vadd.f32 %v8820_v44, %v8792_v54  ;;  %13820 = vtanh.f32 %v8877_v25  ;;  %v8823_v17 = vpop.f32.mrf.mxu0  ;;  %v11152_v44 = vor.u32 %v13246_v15, %v11149_v10  ;;  %v8739_v25 = vadd.f32 %v16822_v58, %v8710_v12  ;;  %v13239_v58 = vld [vmem:[#allocation22 + $0x14] sm:$0xf]  ;;  %v13358_v15 = vld [vmem:[#allocation22 + $0x3cc] sm:$0xf]  ;;  %v11597_v10 = vld [vmem:[#allocation22 + $0x3e4] sm:$0xf0] }
 0x8b7   :  { %9185 = vmatpush.bf16.msrb.mxu1 %v11656_v6  ;;  %v11376_v45 = vor.u32 %v13302_v32, %v11373_v23  ;;  %v11124_v2 = vor.u32 %v13239_v58, %v11121_v49  ;;  %v11600_v63 = vor.u32 %v13358_v15, %v11597_v10  ;;  %v11793_v23 = vld [vmem:[#allocation22 + $0x56c] sm:$0xf0]  ;;  %v12185_v49 = vld [vmem:[#allocation22 + $0x87c] sm:$0xf0] }
 0x8b8   :  { %9025 = vmatmul.bf16.gmra.mxu3 %v16301_v9  ;;  %v8850_v4 = vadd.f32 %v8849_v33, %v8821_v0  ;;  %v8768_v5 = vadd.f32 %v16833_v60, %v8739_v25  ;;  %v13351_v25 = vld [vmem:[#allocation22 + $0x394] sm:$0xf] }
 0x8b9   :  { %9054 = vmatmul.bf16.gmra.mxu0 %v16308_v35  ;;  %9129 = vmatpush.bf16.msrb.mxu3 %v11152_v44  ;;  %v8713_v44 = vadd.f32 %v16824_v13, %v8684_v42  ;;  %v13295_v13 = vld [vmem:[#allocation22 + $0x1d4] sm:$0xf]  ;;  %v11569_v42 = vld [vmem:[#allocation22 + $0x3ac] sm:$0xf0] }
 0x8ba   :  { %9214 = vmatpush.bf16.msrb.mxu2 %v11880_v34  ;;  %9158 = vmatpush.bf16.msrb.mxu0 %v11376_v45  ;;  %v11572_v32 = vor.u32 %v13351_v25, %v11569_v42  ;;  %v12213_v45 = vld [vmem:[#allocation22 + $0x8b4] sm:$0xf0] }
 0x8bb   :  { %v8794_v30 = vpop.f32.mrf.mxu3  ;;  %v8878_v46 = vpop.f32.mrf.mxu2  ;;  %9186 = vmatpush.bf16.msrb.mxu1 %v11628_v55 }
 0x8bc   :  { %v8852_v27 = vpop.f32.mrf.mxu1  ;;  %v8795_v33 = vadd.f32 %v8794_v30, %v8766_v37  ;;  %v13821_v54 = vpop.eup %13820  ;;  %v8879_v51 = vadd.f32 %v8878_v46, %v8850_v4  ;;  %v13414_v4 = vld [vmem:[#allocation22 + $0x58c] sm:$0xf]  ;;  %v8742_v46 = vadd.f32 %v16835_v7, %v8713_v44  ;;  %v13512_v7 = vld [vmem:[#allocation22 + $0x89c] sm:$0xf]  ;;  %v13561_v44 = vld [vmem:[#allocation22 + $0xa24] sm:$0xf] }
 0x8bd   :  { %9660 = vst [vmem:[#allocation25 + $0x88] sm:$0xff] %v13821_v54  ;;  %9130 = vmatpush.bf16.msrb.mxu3 %v11124_v2  ;;  %v11824_v37 = vor.u32 %v13414_v4, %v11821_v16 }
 0x8be   :  { %v8824_v57 = vadd.f32 %v8823_v17, %v8795_v33  ;;  %13822 = vtanh.f32 %v8879_v51  ;;  %9083 = vmatmul.bf16.gmra.mxu1 %v16322_v59  ;;  %v8825_v0 = vpop.f32.mrf.mxu0  ;;  %v11852_v17 = vor.u32 %v13421_v29, %v11849_v22  ;;  %v11345_v33 = vld [vmem:[#allocation22 + $0x1ec] sm:$0xf0]  ;;  %v13505_v29 = vld [vmem:[#allocation22 + $0x864] sm:$0xf]  ;;  %v8771_v55 = vadd.f32 %v16846_v11, %v8742_v46 }
 0x8bf   :  { %9187 = vmatpush.bf16.msrb.mxu1 %v11600_v63  ;;  %v11348_v51 = vor.u32 %v13295_v13, %v11345_v33  ;;  %v12409_v63 = vld [vmem:[#allocation22 + $0xa3c] sm:$0xf0]  ;;  %v13554_v33 = vld [vmem:[#allocation22 + $0x9ec] sm:$0xf] }
 0x8c0   :  { %9112 = vmatmul.bf16.gmra.mxu2 %v16256_v40  ;;  %v8853_v3 = vadd.f32 %v8852_v27, %v8824_v57  ;;  %v8686_v27 = vadd.f32 %v16844_v52, %v16828_v47  ;;  %v13407_v57 = vld [vmem:[#allocation22 + $0x554] sm:$0xf]  ;;  %v12216_v47 = vor.u32 %v13512_v7, %v12213_v45  ;;  %v12412_v16 = vor.u32 %v13561_v44, %v12409_v63 }
 0x8c1   :  { %9215 = vmatpush.bf16.msrb.mxu2 %v11852_v17  ;;  %9159 = vmatpush.bf16.msrb.mxu0 %v11348_v51  ;;  %v11796_v52 = vor.u32 %v13407_v57, %v11793_v23  ;;  %v12188_v17 = vor.u32 %v13505_v29, %v12185_v49  ;;  %v13491_v51 = vld [vmem:[#allocation22 + $0x7f4] sm:$0xf]  ;;  %v12129_v57 = vld [vmem:[#allocation22 + $0x80c] sm:$0xf0]  ;;  %v13680_v49 = vld [vmem:[#allocation22 + $0xddc] sm:$0xf] }
 0x8c2   :  { %v8715_v22 = vadd.f32 %v16840_v26, %v8686_v27  ;;  %9239 = vmatpush.bf16.msra.mxu3 %v12216_v47  ;;  %v12132_v23 = vor.u32 %v13491_v51, %v12129_v57 }
 0x8c3   :  { %v8796_v31 = vpop.f32.mrf.mxu3  ;;  %v8881_v12 = vpop.f32.mrf.mxu2  ;;  %9188 = vmatpush.bf16.msrb.mxu1 %v11572_v32 }
 0x8c4   :  { %v8854_v6 = vpop.f32.mrf.mxu1  ;;  %v8797_v14 = vadd.f32 %v8796_v31, %v8768_v5  ;;  %v13823_v30 = vpop.eup %13822  ;;  %v8882_v34 = vadd.f32 %v8881_v12, %v8853_v3  ;;  %v8744_v11 = vadd.f32 %v16848_v8, %v8715_v22  ;;  %v13498_v12 = vld [vmem:[#allocation22 + $0x82c] sm:$0xf]  ;;  %v13484_v22 = vld [vmem:[#allocation22 + $0x7bc] sm:$0xf] }
 0x8c5   :  { %9667 = vst [vmem:[#allocation25 + $0xc0] sm:$0xff] %v13823_v30  ;;  %9216 = vmatpush.bf16.msrb.mxu2 %v11824_v37 }
 0x8c6   :  { %v8826_v60 = vadd.f32 %v8825_v0, %v8797_v14  ;;  %13824 = vtanh.f32 %v8882_v34  ;;  %v8828_v54 = vpop.f32.mrf.mxu0  ;;  %v13568_v0 = vld [vmem:[#allocation22 + $0xa5c] sm:$0xf]  ;;  %9240 = vmatpush.bf16.msra.mxu3 %v12188_v17  ;;  %v8773_v14 = vadd.f32 %v16857_v21, %v8744_v11  ;;  %v12885_v17 = vld [vmem:[#allocation22 + $0xdf4] sm:$0xf0] }
 0x8c7   :  { %v12440_v58 = vor.u32 %v13568_v0, %v12437_v61  ;;  %v13547_v0 = vld [vmem:[#allocation22 + $0x9b4] sm:$0xf]  ;;  %v12353_v61 = vld [vmem:[#allocation22 + $0x9cc] sm:$0xf0] }
 0x8c8   :  { %9030 = vmatmul.bf16.gmra.mxu3 %v16335_v28  ;;  %v8855_v62 = vadd.f32 %v8854_v6, %v8826_v60  ;;  %v12157_v6 = vld [vmem:[#allocation22 + $0x844] sm:$0xf0]  ;;  %v12356_v29 = vor.u32 %v13547_v0, %v12353_v61  ;;  %v13603_v0 = vld [vmem:[#allocation22 + $0xb74] sm:$0xf] }
 0x8c9   :  { %9059 = vmatmul.bf16.gmra.mxu0 %v16338_v39  ;;  %9217 = vmatpush.bf16.msrb.mxu2 %v11796_v52  ;;  %v12160_v30 = vor.u32 %v13498_v12, %v12157_v6  ;;  %v12633_v12 = vld [vmem:[#allocation22 + $0xbfc] sm:$0xf0]  ;;  %v13673_v6 = vld [vmem:[#allocation22 + $0xda4] sm:$0xf] }
 0x8ca   :  { %9268 = vmatpush.bf16.msra.mxu0 %v12440_v58  ;;  %v12101_v58 = vld [vmem:[#allocation22 + $0x7d4] sm:$0xf0] }
 0x8cb   :  { %v8799_v3 = vpop.f32.mrf.mxu3  ;;  %v8883_v2 = vpop.f32.mrf.mxu2  ;;  %9241 = vmatpush.bf16.msra.mxu3 %v12160_v30 }
 0x8cc   :  { %v8857_v15 = vpop.f32.mrf.mxu1  ;;  %v8800_v10 = vadd.f32 %v8799_v3, %v8771_v55  ;;  %v13825_v4 = vpop.eup %13824  ;;  %v8884_v5 = vadd.f32 %v8883_v2, %v8855_v62  ;;  %v12104_v3 = vor.u32 %v13484_v22, %v12101_v58  ;;  %v13624_v2 = vld [vmem:[#allocation22 + $0xc1c] sm:$0xf]  ;;  %v13659_v22 = vld [vmem:[#allocation22 + $0xd34] sm:$0xf]  ;;  %v12801_v58 = vld [vmem:[#allocation22 + $0xd4c] sm:$0xf0] }
 0x8cd   :  { %9674 = vst [vmem:[#allocation25 + $0xf8] sm:$0xff] %v13825_v4  ;;  %v12888_v4 = vor.u32 %v13680_v49, %v12885_v17  ;;  %v17557_v49 = vld [vmem:[#allocation45_spill] sm:$0xff] }
 0x8ce   :  { %v8829_v26 = vadd.f32 %v8828_v54, %v8800_v10  ;;  %13826 = vtanh.f32 %v8884_v5  ;;  %9088 = vmatmul.bf16.gmra.mxu1 %v16341_v53  ;;  %v8830_v31 = vpop.f32.mrf.mxu0  ;;  %9269 = vmatpush.bf16.msra.mxu0 %v12412_v16  ;;  %v12381_v54 = vld [vmem:[#allocation22 + $0xa04] sm:$0xf0]  ;;  %v12325_v16 = vld [vmem:[#allocation22 + $0x994] sm:$0xf0] }
 0x8cf   :  { %v12384_v42 = vor.u32 %v13554_v33, %v12381_v54  ;;  %9242 = vmatpush.bf16.msra.mxu3 %v12132_v23  ;;  %9326 = vmatpush.bf16.msra.mxu2 %v12888_v4  ;;  %v12605_v33 = vld [vmem:[#allocation22 + $0xbc4] sm:$0xf0]  ;;  %v13666_v54 = vld [vmem:[#allocation22 + $0xd6c] sm:$0xf] }
 0x8d0   :  { %9117 = vmatmul.bf16.gmra.mxu2 %v17504_v36  ;;  %v8858_v37 = vadd.f32 %v8857_v15, %v8829_v26  ;;  %v12661_v15 = vld [vmem:[#allocation22 + $0xc34] sm:$0xf0]  ;;  %v13540_v26 = vld [vmem:[#allocation22 + $0x97c] sm:$0xf]  ;;  %v13470_v4 = vld [vmem:[#allocation22 + $0x74c] sm:$0xf] }
 0x8d1   :  { %v12664_v5 = vor.u32 %v13624_v2, %v12661_v15  ;;  %v12804_v2 = vor.u32 %v13659_v22, %v12801_v58  ;;  %v17558_v15 = vld [vmem:[#allocation53_spill] sm:$0xff]  ;;  %v12493_v58 = vld [vmem:[#allocation22 + $0xae4] sm:$0xf0] }
 0x8d2   :  { %9270 = vmatpush.bf16.msra.mxu0 %v12384_v42  ;;  %v17556_v42 = vld [vmem:[#allocation44_spill] sm:$0xff] }
 0x8d3   :  { %v8801_v34 = vpop.f32.mrf.mxu3  ;;  %v8886_v46 = vpop.f32.mrf.mxu2  ;;  %9243 = vmatpush.bf16.msra.mxu3 %v12104_v3  ;;  %9297 = vmatpush.bf16.msra.mxu1 %v12664_v5  ;;  %v12045_v5 = vld [vmem:[#allocation22 + $0x764] sm:$0xf0] }
 0x8d4   :  { %v8859_v8 = vpop.f32.mrf.mxu1  ;;  %v8802_v27 = vadd.f32 %v8801_v34, %v8773_v14  ;;  %v13827_v60 = vpop.eup %13826  ;;  %v8887_v13 = vadd.f32 %v8886_v46, %v8858_v37  ;;  %v12328_v37 = vor.u32 %v13540_v26, %v12325_v16  ;;  %v12857_v34 = vld [vmem:[#allocation22 + $0xdbc] sm:$0xf0]  ;;  %v13477_v46 = vld [vmem:[#allocation22 + $0x784] sm:$0xf]  ;;  %v12048_v26 = vor.u32 %v13470_v4, %v12045_v5  ;;  %v12549_v16 = vld [vmem:[#allocation22 + $0xb54] sm:$0xf0] }
 0x8d5   :  { %9681 = vst [vmem:[#allocation25 + $0x130] sm:$0xff] %v13827_v60  ;;  %v17560_v5 = vld [vmem:[#allocation58_spill] sm:$0xff] }
 0x8d6   :  { %v8831_v25 = vadd.f32 %v8830_v31, %v8802_v27  ;;  %13828 = vtanh.f32 %v8887_v13  ;;  %v16905_v32 = vpop.f32.mrf.mxu0  ;;  %9271 = vmatpush.bf16.msra.mxu0 %v12356_v29  ;;  %v13617_v31 = vld [vmem:[#allocation22 + $0xbe4] sm:$0xf]  ;;  %v12860_v27 = vor.u32 %v13673_v6, %v12857_v34  ;;  %v13610_v13 = vld [vmem:[#allocation22 + $0xbac] sm:$0xf]  ;;  %v12577_v29 = vld [vmem:[#allocation22 + $0xb8c] sm:$0xf0] }
 0x8d7   :  { %v12636_v30 = vor.u32 %v13617_v31, %v12633_v12  ;;  %v12608_v51 = vor.u32 %v13610_v13, %v12605_v33  ;;  %v12580_v17 = vor.u32 %v13603_v0, %v12577_v29  ;;  %v13652_v31 = vld [vmem:[#allocation22 + $0xcfc] sm:$0xf]  ;;  %v12521_v33 = vld [vmem:[#allocation22 + $0xb1c] sm:$0xf0]  ;;  %v12017_v0 = vld [vmem:[#allocation22 + $0x72c] sm:$0xf0] }
 0x8d8   :  { %9131 = vmatmul.bf16.vlgmr.msrb.gmra.mxu3 %v17505_v19  ;;  %v8860_v21 = vadd.f32 %v8859_v8, %v8831_v25  ;;  %v12073_v8 = vld [vmem:[#allocation22 + $0x79c] sm:$0xf0]  ;;  %v12829_v25 = vld [vmem:[#allocation22 + $0xd84] sm:$0xf0]  ;;  %9327 = vmatpush.bf16.msra.mxu2 %v12860_v27 }
 0x8d9   :  { %9160 = vmatmul.bf16.vlgmr.msrb.gmra.mxu0 %v17506_v41  ;;  %v12076_v60 = vor.u32 %v13477_v46, %v12073_v8  ;;  %9298 = vmatpush.bf16.msra.mxu1 %v12636_v30  ;;  %v12832_v57 = vor.u32 %v13666_v54, %v12829_v25  ;;  %v13526_v8 = vld [vmem:[#allocation22 + $0x90c] sm:$0xf]  ;;  %v12269_v27 = vld [vmem:[#allocation22 + $0x924] sm:$0xf0]  ;;  %v13645_v54 = vld [vmem:[#allocation22 + $0xcc4] sm:$0xf] }
 0x8da   :  { %9272 = vmatpush.bf16.msra.mxu0 %v12328_v37  ;;  %v12773_v37 = vld [vmem:[#allocation22 + $0xd14] sm:$0xf0]  ;;  %v12272_v13 = vor.u32 %v13526_v8, %v12269_v27  ;;  %v17559_v29 = vld [vmem:[#allocation54_spill] sm:$0xff]  ;;  %v12465_v27 = vld [vmem:[#allocation22 + $0xaac] sm:$0xf0] }
 0x8db   :  { %v16909_v7 = vpop.f32.mrf.mxu3  ;;  %v8888_v45 = vpop.f32.mrf.mxu2  ;;  %9244 = vmatpush.bf16.msra.mxu3 %v12076_v60  ;;  %v12776_v30 = vor.u32 %v13652_v31, %v12773_v37  ;;  %v13589_v60 = vld [vmem:[#allocation22 + $0xb04] sm:$0xf]  ;;  %v13519_v37 = vld [vmem:[#allocation22 + $0x8d4] sm:$0xf] }
 0x8dc   :  { %v16911_v62 = vpop.f32.mrf.mxu1  ;;  %v13829_v52 = vpop.eup %13828  ;;  %v8889_v47 = vadd.f32 %v8888_v45, %v8860_v21  ;;  %9328 = vmatpush.bf16.msra.mxu2 %v12832_v57  ;;  %v12524_v57 = vor.u32 %v13589_v60, %v12521_v33  ;;  %v13631_v60 = vld [vmem:[#allocation22 + $0xc54] sm:$0xf]  ;;  %v17561_v33 = vld [vmem:[#allocation59_spill] sm:$0xff] }
 0x8dd   :  { %9688 = vst [vmem:[#allocation25 + $0x168] sm:$0xff] %v13829_v52  ;;  %9299 = vmatpush.bf16.msra.mxu1 %v12608_v51  ;;  %v13533_v52 = vld [vmem:[#allocation22 + $0x944] sm:$0xf]  ;;  %v12745_v51 = vld [vmem:[#allocation22 + $0xcdc] sm:$0xf0] }
 0x8de   :  { %13830 = vtanh.f32 %v8889_v47  ;;  %9189 = vmatmul.bf16.vlgmr.msrb.gmra.mxu1 %v17507_v18  ;;  %v16914_v55 = vpop.f32.mrf.mxu0  ;;  %v12297_v47 = vld [vmem:[#allocation22 + $0x95c] sm:$0xf0] }
 0x8df   :  { %v12300_v61 = vor.u32 %v13533_v52, %v12297_v47  ;;  %9245 = vmatpush.bf16.msra.mxu3 %v12048_v26  ;;  %v12748_v52 = vor.u32 %v13645_v54, %v12745_v51  ;;  %v13463_v47 = vld [vmem:[#allocation22 + $0x714] sm:$0xf] }
 0x8e0   :  { %9218 = vmatmul.bf16.vlgmr.msrb.gmra.mxu2 %v17508_v20  ;;  %v12020_v22 = vor.u32 %v13463_v47, %v12017_v0  ;;  %v11323_v47 = vld [vmem:[#allocation22 + $0x1a0] sm:$0xf]  ;;  %v13292_v0 = vld [vmem:[#allocation22 + $0x1b8] sm:$0xf0] }
 0x8e1   :  { %9273 = vmatpush.bf16.msra.mxu0 %v12300_v61  ;;  %9300 = vmatpush.bf16.msra.mxu1 %v12580_v17  ;;  %v13582_v61 = vld [vmem:[#allocation22 + $0xacc] sm:$0xf] }
 0x8e2   :  { %9329 = vmatpush.bf16.msra.mxu2 %v12804_v2  ;;  %v13638_v17 = vld [vmem:[#allocation22 + $0xc8c] sm:$0xf]  ;;  %v12717_v2 = vld [vmem:[#allocation22 + $0xca4] sm:$0xf0]  ;;  %v12496_v4 = vor.u32 %v13582_v61, %v12493_v58  ;;  %v11324_v61 = vor.u32 %v13292_v0, %v11323_v47 }
 0x8e3   :  { %v16917_v10 = vpop.f32.mrf.mxu3  ;;  %v16919_v44 = vpop.f32.mrf.mxu2  ;;  %9246 = vmatpush.bf16.msra.mxu3 %v12020_v22  ;;  %v17566_v47 = vld [vmem:[#allocation47_spill] sm:$0xff] }
 0x8e4   :  { %v16921_v63 = vpop.f32.mrf.mxu1  ;;  %v13831_v11 = vpop.eup %13830 }
 0x8e5   :  { %9695 = vst [vmem:[#allocation25 + $0x1a0] sm:$0xff] %v13831_v11  ;;  %v13596_v11 = vld [vmem:[#allocation22 + $0xb3c] sm:$0xf]  ;;  %9274 = vmatpush.bf16.msra.mxu0 %v12272_v13  ;;  %v12689_v13 = vld [vmem:[#allocation22 + $0xc6c] sm:$0xf0] }
 0x8e6   :  { %v16923_v14 = vpop.f32.mrf.mxu0  ;;  %v12552_v6 = vor.u32 %v13596_v11, %v12549_v16  ;;  %9330 = vmatpush.bf16.msra.mxu2 %v12776_v30  ;;  %v12720_v11 = vor.u32 %v13638_v17, %v12717_v2  ;;  %v13575_v30 = vld [vmem:[#allocation22 + $0xa94] sm:$0xf] }
 0x8e7   :  { %v12468_v51 = vor.u32 %v13575_v30, %v12465_v27  ;;  %9355 = vmatpush.bf16.msrb.mxu3 %v11324_v61 }
 0x8e8   :  { %9136 = vmatmul.bf16.gmra.mxu3 %v17514_v43  ;;  %9301 = vmatpush.bf16.msra.mxu1 %v12552_v6  ;;  %v12241_v6 = vld [vmem:[#allocation22 + $0x8ec] sm:$0xf0] }
 0x8e9   :  { %9165 = vmatmul.bf16.gmra.mxu0 %v17556_v42  ;;  %v12244_v8 = vor.u32 %v13519_v37, %v12241_v6  ;;  %v17565_v6 = vld [vmem:[#allocation46_spill] sm:$0xff] }
 0x8ea   :  { %9331 = vmatpush.bf16.msra.mxu2 %v12748_v52  ;;  %v17562_v52 = vld [vmem:[#allocation38_spill] sm:$0xff] }
 0x8eb   :  { %v16927_v23 = vpop.f32.mrf.mxu3  ;;  %v16929_v21 = vpop.f32.mrf.mxu2  ;;  %9275 = vmatpush.bf16.msra.mxu0 %v12244_v8 }
 0x8ec   :  { %v16931_v45 = vpop.f32.mrf.mxu1  ;;  %9302 = vmatpush.bf16.msra.mxu1 %v12524_v57  ;;  %v12692_v57 = vor.u32 %v13631_v60, %v12689_v13  ;;  %v11547_v13 = vld [vmem:[#allocation22 + $0x360] sm:$0xf] }
 0x8ee   :  { %9194 = vmatmul.bf16.gmra.mxu1 %v17557_v49  ;;  %v16934_v3 = vpop.f32.mrf.mxu0  ;;  %9332 = vmatpush.bf16.msra.mxu2 %v12720_v11  ;;  %v16966_v11 = vld [vmem:[#allocation23] sm:$0xff] }
 0x8ef   :  { %17564 = vst [vmem:[#allocation49_spill] sm:$0xff] %v16966_v11  ;;  %v16969_v37 = vperm.slane %v16966_v11, 4  ;;  %v13285_v11 = vld [vmem:[#allocation22 + $0x180] sm:$0xf0] }
 0x8f0   :  { %9223 = vmatmul.bf16.gmra.mxu2 %v17558_v15  ;;  %9303 = vmatpush.bf16.msra.mxu1 %v12496_v4  ;;  %v17563_v4 = vld [vmem:[#allocation39_spill] sm:$0xff]  ;;  %v17568_v15 = vld [vmem:[#allocation56_spill] sm:$0xff] }
 0x8f1   :  { %v8901_v60 = vadd.f32 %v16909_v7, %v16969_v37 }
 0x8f2   :  { %9333 = vmatpush.bf16.msra.mxu2 %v12692_v57  ;;  %v11295_v57 = vld [vmem:[#allocation22 + $0x168] sm:$0xf] }
 0x8f3   :  { %v16937_v12 = vpop.f32.mrf.mxu3  ;;  %v16939_v34 = vpop.f32.mrf.mxu2 }
 0x8f4   :  { %v16941_v46 = vpop.f32.mrf.mxu1  ;;  %9304 = vmatpush.bf16.msra.mxu1 %v12468_v51  ;;  %v13348_v51 = vld [vmem:[#allocation22 + $0x378] sm:$0xf0] }
 0x8f5   :  { %v11548_v61 = vor.u32 %v13348_v51, %v11547_v13  ;;  %v11519_v13 = vld [vmem:[#allocation22 + $0x328] sm:$0xf]  ;;  %v13341_v51 = vld [vmem:[#allocation22 + $0x340] sm:$0xf0] }
 0x8f6   :  { %v16943_v25 = vpop.f32.mrf.mxu0 }
 0x8f7   :  { %9384 = vmatpush.bf16.msrb.mxu0 %v11548_v61  ;;  %v13278_v61 = vld [vmem:[#allocation22 + $0x148] sm:$0xf0] }
 0x8f8   :  { %9141 = vmatmul.bf16.gmra.mxu3 %v17559_v29 }
 0x8f9   :  { %9170 = vmatmul.bf16.gmra.mxu0 %v17560_v5 }
 0x8fb   :  { %v16947_v26 = vpop.f32.mrf.mxu3  ;;  %v16949_v16 = vpop.f32.mrf.mxu2 }
 0x8fc   :  { %v16951_v31 = vpop.f32.mrf.mxu1 }
 0x8fe   :  { %9199 = vmatmul.bf16.gmra.mxu1 %v17561_v33  ;;  %v16954_v54 = vpop.f32.mrf.mxu0 }
 0x900   :  { %9228 = vmatmul.bf16.gmra.mxu2 %v17562_v52  ;;  %v8930_v52 = vadd.f32 %v16905_v32, %v8901_v60 }
 0x902   :  { %v8959_v29 = vadd.f32 %v16911_v62, %v8930_v52 }
 0x903   :  { %v16957_v22 = vpop.f32.mrf.mxu3  ;;  %v16959_v58 = vpop.f32.mrf.mxu2 }
 0x904   :  { %v16961_v17 = vpop.f32.mrf.mxu1 }
 0x906   :  { %v16963_v2 = vpop.f32.mrf.mxu0 }
 0x908   :  { %9146 = vmatmul.bf16.gmra.mxu3 %v17563_v4  ;;  %v11296_v4 = vor.u32 %v13285_v11, %v11295_v57  ;;  %v11267_v11 = vld [vmem:[#allocation22 + $0x130] sm:$0xf] }
 0x909   :  { %9175 = vmatmul.bf16.gmra.mxu0 %v17565_v6  ;;  %v17567_v6 = vld [vmem:[#allocation55_spill] sm:$0xff]  ;;  %v11268_v32 = vor.u32 %v13278_v61, %v11267_v11  ;;  %v11491_v11 = vld [vmem:[#allocation22 + $0x2f0] sm:$0xf]  ;;  %v11239_v61 = vld [vmem:[#allocation22 + $0xf8] sm:$0xf] }
 0x90a   :  { %9356 = vmatpush.bf16.msrb.mxu3 %v11296_v4  ;;  %v8988_v4 = vadd.f32 %v16919_v44, %v8959_v29  ;;  %v17569_v44 = vld [vmem:[#allocation40_spill] sm:$0xff] }
 0x90b   :  { %v16972_v30 = vpop.f32.mrf.mxu3  ;;  %v16974_v8 = vpop.f32.mrf.mxu2 }
 0x90c   :  { %v16976_v27 = vpop.f32.mrf.mxu1 }
 0x90e   :  { %9204 = vmatmul.bf16.gmra.mxu1 %v17566_v47  ;;  %v16981_v0 = vpop.f32.mrf.mxu0  ;;  %v8903_v47 = vadd.f32 %v16917_v10, %v16969_v37  ;;  %9357 = vmatpush.bf16.msrb.mxu3 %v11268_v32 }
 0x910   :  { %9233 = vmatmul.bf16.gmra.mxu2 %v17567_v6  ;;  %v11520_v6 = vor.u32 %v13341_v51, %v11519_v13  ;;  %v8932_v60 = vadd.f32 %v16914_v55, %v8903_v47  ;;  %v8906_v13 = vadd.f32 %v16927_v23, %v16969_v37  ;;  %v13271_v47 = vld [vmem:[#allocation22 + $0x110] sm:$0xf0] }
 0x911   :  { %v11240_v32 = vor.u32 %v13271_v47, %v11239_v61  ;;  %v11463_v61 = vld [vmem:[#allocation22 + $0x2b8] sm:$0xf]  ;;  %v13327_v47 = vld [vmem:[#allocation22 + $0x2d0] sm:$0xf0] }
 0x912   :  { %9385 = vmatpush.bf16.msrb.mxu0 %v11520_v6  ;;  %v8961_v42 = vadd.f32 %v16921_v63, %v8932_v60  ;;  %v13334_v6 = vld [vmem:[#allocation22 + $0x308] sm:$0xf0]  ;;  %v8935_v63 = vadd.f32 %v16923_v14, %v8906_v13  ;;  %v11995_v14 = vld [vmem:[#allocation22 + $0x6e0] sm:$0xf]  ;;  %v13460_v13 = vld [vmem:[#allocation22 + $0x6f8] sm:$0xf0] }
 0x913   :  { %v16985_v33 = vpop.f32.mrf.mxu3  ;;  %v16987_v5 = vpop.f32.mrf.mxu2  ;;  %v11492_v29 = vor.u32 %v13334_v6, %v11491_v11  ;;  %9358 = vmatpush.bf16.msrb.mxu3 %v11240_v32  ;;  %v8908_v11 = vadd.f32 %v16937_v12, %v16969_v37  ;;  %v11996_v32 = vor.u32 %v13460_v13, %v11995_v14  ;;  %v11967_v14 = vld [vmem:[#allocation22 + $0x6a8] sm:$0xf] }
 0x914   :  { %v16989_v7 = vpop.f32.mrf.mxu1 }
 0x915   :  { %9442 = vmatpush.bf16.msrb.mxu2 %v11996_v32  ;;  %v11183_v32 = vld [vmem:[#allocation22 + $0x88] sm:$0xf] }
 0x916   :  { %v9045_v57 = vpop.f32.mrf.mxu0  ;;  %9386 = vmatpush.bf16.msrb.mxu0 %v11492_v29 }
 0x918   :  { %9247 = vmatmul.bf16.vlgmr.msra.gmra.mxu3 %v16215_v50 }
 0x919   :  { %9276 = vmatmul.bf16.vlgmr.msra.gmra.mxu0 %v17568_v15 }
 0x91b   :  { %v9016_v62 = vpop.f32.mrf.mxu3  ;;  %v16998_v52 = vpop.f32.mrf.mxu2 }
 0x91c   :  { %v9074_v10 = vpop.f32.mrf.mxu1  ;;  %v9017_v49 = vadd.f32 %v9016_v62, %v8988_v4  ;;  %v8990_v4 = vadd.f32 %v16929_v21, %v8961_v42  ;;  %v11464_v42 = vor.u32 %v13327_v47, %v11463_v61  ;;  %v13264_v21 = vld [vmem:[#allocation22 + $0xd8] sm:$0xf0] }
 0x91e   :  { %v9046_v51 = vadd.f32 %v9045_v57, %v9017_v49  ;;  %9305 = vmatmul.bf16.vlgmr.msra.gmra.mxu1 %v17569_v44  ;;  %v9047_v55 = vpop.f32.mrf.mxu0  ;;  %v8964_v44 = vadd.f32 %v16931_v45, %v8935_v63  ;;  %9387 = vmatpush.bf16.msrb.mxu0 %v11464_v42  ;;  %v11743_v42 = vld [vmem:[#allocation22 + $0x4e8] sm:$0xf] }
 0x920   :  { %9334 = vmatmul.bf16.vlgmr.msra.gmra.mxu2 %v16202_v48  ;;  %v9075_v15 = vadd.f32 %v9074_v10, %v9046_v51  ;;  %v11211_v10 = vld [vmem:[#allocation22 + $0xc0] sm:$0xf]  ;;  %v8993_v12 = vadd.f32 %v16939_v34, %v8964_v44 }
 0x921   :  { %v11212_v29 = vor.u32 %v13264_v21, %v11211_v10  ;;  %v11435_v44 = vld [vmem:[#allocation22 + $0x280] sm:$0xf]  ;;  %v13397_v21 = vld [vmem:[#allocation22 + $0x500] sm:$0xf0] }
 0x922   :  { %v11744_v13 = vor.u32 %v13397_v21, %v11743_v42  ;;  %v8913_v42 = vadd.f32 %v16957_v22, %v16969_v37 }
 0x923   :  { %v9018_v23 = vpop.f32.mrf.mxu3  ;;  %v9103_v49 = vpop.f32.mrf.mxu2  ;;  %9359 = vmatpush.bf16.msrb.mxu3 %v11212_v29  ;;  %v13453_v29 = vld [vmem:[#allocation22 + $0x6c0] sm:$0xf0] }
 0x924   :  { %v9076_v57 = vpop.f32.mrf.mxu1  ;;  %v9019_v60 = vadd.f32 %v9018_v23, %v8990_v4  ;;  %v9104_v62 = vadd.f32 %v9103_v49, %v9075_v15  ;;  %v11771_v15 = vld [vmem:[#allocation22 + $0x520] sm:$0xf]  ;;  %v13404_v4 = vld [vmem:[#allocation22 + $0x538] sm:$0xf0] }
 0x925   :  { %v11772_v63 = vor.u32 %v13404_v4, %v11771_v15  ;;  %v13257_v15 = vld [vmem:[#allocation22 + $0xa0] sm:$0xf0]  ;;  %v11715_v4 = vld [vmem:[#allocation22 + $0x4b0] sm:$0xf] }
 0x926   :  { %v9048_v6 = vadd.f32 %v9047_v55, %v9019_v60  ;;  %13832 = vtanh.f32 %v9104_v62  ;;  %v9050_v51 = vpop.f32.mrf.mxu0  ;;  %v8937_v55 = vadd.f32 %v16934_v3, %v8908_v11  ;;  %v13320_v3 = vld [vmem:[#allocation22 + $0x298] sm:$0xf0] }
 0x927   :  { %9413 = vmatpush.bf16.msrb.mxu1 %v11772_v63  ;;  %v11939_v63 = vld [vmem:[#allocation22 + $0x670] sm:$0xf] }
 0x928   :  { %9252 = vmatmul.bf16.gmra.mxu3 %v16262_v1  ;;  %v9077_v45 = vadd.f32 %v9076_v57, %v9048_v6  ;;  %v8966_v10 = vadd.f32 %v16941_v46, %v8937_v55  ;;  %v8911_v57 = vadd.f32 %v16947_v26, %v16969_v37  ;;  %v11436_v6 = vor.u32 %v13320_v3, %v11435_v44 }
 0x929   :  { %9281 = vmatmul.bf16.gmra.mxu0 %v16266_v24  ;;  %v11968_v26 = vor.u32 %v13453_v29, %v11967_v14  ;;  %v11687_v14 = vld [vmem:[#allocation22 + $0x478] sm:$0xf] }
 0x92a   :  { %9388 = vmatpush.bf16.msrb.mxu0 %v11436_v6  ;;  %v8940_v55 = vadd.f32 %v16943_v25, %v8911_v57  ;;  %v11407_v25 = vld [vmem:[#allocation22 + $0x248] sm:$0xf]  ;;  %v11911_v29 = vld [vmem:[#allocation22 + $0x638] sm:$0xf] }
 0x92b   :  { %v9021_v23 = vpop.f32.mrf.mxu3  ;;  %v9105_v49 = vpop.f32.mrf.mxu2  ;;  %9414 = vmatpush.bf16.msrb.mxu1 %v11744_v13  ;;  %9443 = vmatpush.bf16.msrb.mxu2 %v11968_v26  ;;  %v13383_v13 = vld [vmem:[#allocation22 + $0x490] sm:$0xf0] }
 0x92c   :  { %v9079_v60 = vpop.f32.mrf.mxu1  ;;  %v9022_v62 = vadd.f32 %v9021_v23, %v8993_v12  ;;  %v13833_v61 = vpop.eup %13832  ;;  %v9106_v47 = vadd.f32 %v9105_v49, %v9077_v45  ;;  %v13390_v45 = vld [vmem:[#allocation22 + $0x4c8] sm:$0xf0]  ;;  %v8995_v12 = vadd.f32 %v16949_v16, %v8966_v10  ;;  %v8969_v6 = vadd.f32 %v16951_v31, %v8940_v55  ;;  %v13313_v10 = vld [vmem:[#allocation22 + $0x260] sm:$0xf0]  ;;  %v11155_v31 = vld [vmem:[#allocation22 + $0x50] sm:$0xf] }
 0x92d   :  { %9647 = vst [vmem:[#allocation25 + $0x20] sm:$0xff] %v13833_v61  ;;  %v11716_v23 = vor.u32 %v13390_v45, %v11715_v4  ;;  %v13446_v49 = vld [vmem:[#allocation22 + $0x688] sm:$0xf0]  ;;  %v11408_v21 = vor.u32 %v13313_v10, %v11407_v25  ;;  %v13376_v4 = vld [vmem:[#allocation22 + $0x458] sm:$0xf0] }
 0x92e   :  { %v9051_v34 = vadd.f32 %v9050_v51, %v9022_v62  ;;  %13834 = vtanh.f32 %v9106_v47  ;;  %9310 = vmatmul.bf16.gmra.mxu1 %v16285_v38  ;;  %v9052_v11 = vpop.f32.mrf.mxu0  ;;  %v11184_v51 = vor.u32 %v13257_v15, %v11183_v32  ;;  %v11940_v61 = vor.u32 %v13446_v49, %v11939_v63  ;;  %v13439_v15 = vld [vmem:[#allocation22 + $0x650] sm:$0xf0]  ;;  %v11883_v45 = vld [vmem:[#allocation22 + $0x600] sm:$0xf]  ;;  %v11631_v10 = vld [vmem:[#allocation22 + $0x408] sm:$0xf] }
 0x92f   :  { %9415 = vmatpush.bf16.msrb.mxu1 %v11716_v23  ;;  %v11688_v32 = vor.u32 %v13383_v13, %v11687_v14  ;;  %9389 = vmatpush.bf16.msrb.mxu0 %v11408_v21  ;;  %v11912_v22 = vor.u32 %v13439_v15, %v11911_v29  ;;  %v8998_v63 = vadd.f32 %v16959_v58, %v8969_v6  ;;  %v13432_v23 = vld [vmem:[#allocation22 + $0x618] sm:$0xf0]  ;;  %v11379_v6 = vld [vmem:[#allocation22 + $0x210] sm:$0xf]  ;;  %v13369_v21 = vld [vmem:[#allocation22 + $0x420] sm:$0xf0] }
 0x930   :  { %9339 = vmatmul.bf16.gmra.mxu2 %v16239_v56  ;;  %v9080_v46 = vadd.f32 %v9079_v60, %v9051_v34  ;;  %9360 = vmatpush.bf16.msrb.mxu3 %v11184_v51  ;;  %v11659_v51 = vld [vmem:[#allocation22 + $0x440] sm:$0xf]  ;;  %v8916_v58 = vadd.f32 %v16972_v30, %v16969_v37  ;;  %v11855_v14 = vld [vmem:[#allocation22 + $0x5c8] sm:$0xf]  ;;  %v11632_v13 = vor.u32 %v13369_v21, %v11631_v10  ;;  %v13425_v29 = vld [vmem:[#allocation22 + $0x5e0] sm:$0xf0] }
 0x931   :  { %9444 = vmatpush.bf16.msrb.mxu2 %v11940_v61  ;;  %v11660_v55 = vor.u32 %v13376_v4, %v11659_v51  ;;  %v13418_v4 = vld [vmem:[#allocation22 + $0x5a8] sm:$0xf0]  ;;  %v13572_v21 = vld [vmem:[#allocation22 + $0xa78] sm:$0xf0] }
 0x933   :  { %v9023_v62 = vpop.f32.mrf.mxu3  ;;  %v9108_v47 = vpop.f32.mrf.mxu2  ;;  %9416 = vmatpush.bf16.msrb.mxu1 %v11688_v32  ;;  %v13243_v32 = vld [vmem:[#allocation22 + $0x30] sm:$0xf0] }
 0x934   :  { %v9081_v44 = vpop.f32.mrf.mxu1  ;;  %v9024_v60 = vadd.f32 %v9023_v62, %v8995_v12  ;;  %v13835_v34 = vpop.eup %13834  ;;  %v9109_v3 = vadd.f32 %v9108_v47, %v9080_v46  ;;  %v13250_v46 = vld [vmem:[#allocation22 + $0x68] sm:$0xf0]  ;;  %v8942_v12 = vadd.f32 %v16954_v54, %v8913_v42  ;;  %v11884_v62 = vor.u32 %v13432_v23, %v11883_v45 }
 0x935   :  { %9654 = vst [vmem:[#allocation25 + $0x58] sm:$0xff] %v13835_v34  ;;  %9445 = vmatpush.bf16.msrb.mxu2 %v11912_v22  ;;  %v13306_v42 = vld [vmem:[#allocation22 + $0x228] sm:$0xf0] }
 0x936   :  { %v9053_v16 = vadd.f32 %v9052_v11, %v9024_v60  ;;  %13836 = vtanh.f32 %v9109_v3  ;;  %v9055_v57 = vpop.f32.mrf.mxu0  ;;  %v11156_v11 = vor.u32 %v13250_v46, %v11155_v31  ;;  %v8971_v3 = vadd.f32 %v16961_v17, %v8942_v12  ;;  %v11127_v17 = vld [vmem:[#allocation22 + $0x18] sm:$0xf]  ;;  %v11603_v31 = vld [vmem:[#allocation22 + $0x3d0] sm:$0xf]  ;;  %v13362_v46 = vld [vmem:[#allocation22 + $0x3e8] sm:$0xf0] }
 0x937   :  { %9417 = vmatpush.bf16.msrb.mxu1 %v11660_v55  ;;  %v11380_v25 = vor.u32 %v13306_v42, %v11379_v6  ;;  %v11128_v15 = vor.u32 %v13243_v32, %v11127_v17  ;;  %v11604_v51 = vor.u32 %v13362_v46, %v11603_v31  ;;  %v13411_v42 = vld [vmem:[#allocation22 + $0x570] sm:$0xf0]  ;;  %v13509_v32 = vld [vmem:[#allocation22 + $0x880] sm:$0xf0] }
 0x938   :  { %9257 = vmatmul.bf16.gmra.mxu3 %v16301_v9  ;;  %v9082_v26 = vadd.f32 %v9081_v44, %v9053_v16  ;;  %v9000_v22 = vadd.f32 %v16974_v8, %v8971_v3  ;;  %v11575_v3 = vld [vmem:[#allocation22 + $0x398] sm:$0xf] }
 0x939   :  { %9286 = vmatmul.bf16.gmra.mxu0 %v16308_v35  ;;  %9361 = vmatpush.bf16.msrb.mxu3 %v11156_v11  ;;  %v8945_v11 = vadd.f32 %v16963_v2, %v8916_v58  ;;  %v11351_v2 = vld [vmem:[#allocation22 + $0x1d8] sm:$0xf]  ;;  %v13355_v58 = vld [vmem:[#allocation22 + $0x3b0] sm:$0xf0] }
 0x93a   :  { %9446 = vmatpush.bf16.msrb.mxu2 %v11884_v62  ;;  %9390 = vmatpush.bf16.msrb.mxu0 %v11380_v25  ;;  %v11576_v6 = vor.u32 %v13355_v58, %v11575_v3  ;;  %v13516_v25 = vld [vmem:[#allocation22 + $0x8b8] sm:$0xf0] }
 0x93b   :  { %v9026_v49 = vpop.f32.mrf.mxu3  ;;  %v9110_v61 = vpop.f32.mrf.mxu2  ;;  %9418 = vmatpush.bf16.msrb.mxu1 %v11632_v13 }
 0x93c   :  { %v9084_v47 = vpop.f32.mrf.mxu1  ;;  %v9027_v44 = vadd.f32 %v9026_v49, %v8998_v63  ;;  %v13837_v60 = vpop.eup %13836  ;;  %v9111_v34 = vadd.f32 %v9110_v61, %v9082_v26  ;;  %v11827_v26 = vld [vmem:[#allocation22 + $0x590] sm:$0xf]  ;;  %v8974_v61 = vadd.f32 %v16976_v27, %v8945_v11  ;;  %v12219_v27 = vld [vmem:[#allocation22 + $0x8a0] sm:$0xf]  ;;  %v12415_v11 = vld [vmem:[#allocation22 + $0xa28] sm:$0xf] }
 0x93d   :  { %9661 = vst [vmem:[#allocation25 + $0x90] sm:$0xff] %v13837_v60  ;;  %9362 = vmatpush.bf16.msrb.mxu3 %v11128_v15  ;;  %v11828_v63 = vor.u32 %v13418_v4, %v11827_v26 }
 0x93e   :  { %v9056_v54 = vadd.f32 %v9055_v57, %v9027_v44  ;;  %13838 = vtanh.f32 %v9111_v34  ;;  %9315 = vmatmul.bf16.gmra.mxu1 %v16322_v59  ;;  %v9057_v16 = vpop.f32.mrf.mxu0  ;;  %v11856_v57 = vor.u32 %v13425_v29, %v11855_v14  ;;  %v13299_v44 = vld [vmem:[#allocation22 + $0x1f0] sm:$0xf0]  ;;  %v12191_v14 = vld [vmem:[#allocation22 + $0x868] sm:$0xf]  ;;  %v9003_v13 = vadd.f32 %v16987_v5, %v8974_v61 }
 0x93f   :  { %9419 = vmatpush.bf16.msrb.mxu1 %v11604_v51  ;;  %v11352_v34 = vor.u32 %v13299_v44, %v11351_v2  ;;  %v13565_v51 = vld [vmem:[#allocation22 + $0xa40] sm:$0xf0]  ;;  %v12387_v44 = vld [vmem:[#allocation22 + $0x9f0] sm:$0xf] }
 0x940   :  { %9344 = vmatmul.bf16.gmra.mxu2 %v16256_v40  ;;  %v9085_v30 = vadd.f32 %v9084_v47, %v9056_v54  ;;  %v8918_v47 = vadd.f32 %v16985_v33, %v16969_v37  ;;  %v11799_v54 = vld [vmem:[#allocation22 + $0x558] sm:$0xf]  ;;  %v12220_v37 = vor.u32 %v13516_v25, %v12219_v27  ;;  %v12416_v4 = vor.u32 %v13565_v51, %v12415_v11  ;;  %v13544_v11 = vld [vmem:[#allocation22 + $0x998] sm:$0xf0]  ;;  %v12639_v51 = vld [vmem:[#allocation22 + $0xbe8] sm:$0xf] }
 0x941   :  { %9447 = vmatpush.bf16.msrb.mxu2 %v11856_v57  ;;  %9391 = vmatpush.bf16.msrb.mxu0 %v11352_v34  ;;  %v11800_v33 = vor.u32 %v13411_v42, %v11799_v54  ;;  %v12192_v57 = vor.u32 %v13509_v32, %v12191_v14  ;;  %v12135_v34 = vld [vmem:[#allocation22 + $0x7f8] sm:$0xf]  ;;  %v13495_v54 = vld [vmem:[#allocation22 + $0x810] sm:$0xf0]  ;;  %v13684_v32 = vld [vmem:[#allocation22 + $0xdf8] sm:$0xf0] }
 0x942   :  { %v8947_v29 = vadd.f32 %v16981_v0, %v8918_v47  ;;  %9471 = vmatpush.bf16.msra.mxu3 %v12220_v37  ;;  %v12136_v42 = vor.u32 %v13495_v54, %v12135_v34  ;;  %v13537_v54 = vld [vmem:[#allocation22 + $0x960] sm:$0xf0] }
 0x943   :  { %v9028_v45 = vpop.f32.mrf.mxu3  ;;  %v9113_v12 = vpop.f32.mrf.mxu2  ;;  %9420 = vmatpush.bf16.msrb.mxu1 %v11576_v6 }
 0x944   :  { %v9086_v55 = vpop.f32.mrf.mxu1  ;;  %v9029_v23 = vadd.f32 %v9028_v45, %v9000_v22  ;;  %v13839_v49 = vpop.eup %13838  ;;  %v9114_v62 = vadd.f32 %v9113_v12, %v9085_v30  ;;  %v8976_v5 = vadd.f32 %v16989_v7, %v8947_v29  ;;  %v12163_v12 = vld [vmem:[#allocation22 + $0x830] sm:$0xf]  ;;  %v12891_v29 = vld [vmem:[#allocation22 + $0xde0] sm:$0xf] }
 0x945   :  { %9668 = vst [vmem:[#allocation25 + $0xc8] sm:$0xff] %v13839_v49  ;;  %9448 = vmatpush.bf16.msrb.mxu2 %v11828_v63 }
 0x946   :  { %v9058_v8 = vadd.f32 %v9057_v16, %v9029_v23  ;;  %13840 = vtanh.f32 %v9114_v62  ;;  %v9060_v60 = vpop.f32.mrf.mxu0  ;;  %v12443_v16 = vld [vmem:[#allocation22 + $0xa60] sm:$0xf]  ;;  %9472 = vmatpush.bf16.msra.mxu3 %v12192_v57  ;;  %v9005_v23 = vadd.f32 %v16998_v52, %v8976_v5  ;;  %v13628_v57 = vld [vmem:[#allocation22 + $0xc38] sm:$0xf0] }
 0x947   :  { %v12444_v17 = vor.u32 %v13572_v21, %v12443_v16  ;;  %v12359_v16 = vld [vmem:[#allocation22 + $0x9b8] sm:$0xf]  ;;  %v13551_v21 = vld [vmem:[#allocation22 + $0x9d0] sm:$0xf0] }
 0x948   :  { %9262 = vmatmul.bf16.gmra.mxu3 %v16335_v28  ;;  %v9087_v10 = vadd.f32 %v9086_v55, %v9058_v8  ;;  %v13502_v55 = vld [vmem:[#allocation22 + $0x848] sm:$0xf0]  ;;  %v12360_v14 = vor.u32 %v13551_v21, %v12359_v16  ;;  %v17571_v16 = vld [vmem:[#allocation45_spill] sm:$0xff] }
 0x949   :  { %9291 = vmatmul.bf16.gmra.mxu0 %v16338_v39  ;;  %9449 = vmatpush.bf16.msrb.mxu2 %v11800_v33  ;;  %v12164_v49 = vor.u32 %v13502_v55, %v12163_v12  ;;  %v13677_v12 = vld [vmem:[#allocation22 + $0xdc0] sm:$0xf0]  ;;  %v12079_v55 = vld [vmem:[#allocation22 + $0x788] sm:$0xf] }
 0x94a   :  { %9500 = vmatpush.bf16.msra.mxu0 %v12444_v17 }
 0x94b   :  { %v9031_v30 = vpop.f32.mrf.mxu3  ;;  %v9115_v15 = vpop.f32.mrf.mxu2  ;;  %9473 = vmatpush.bf16.msra.mxu3 %v12164_v49 }
 0x94c   :  { %v9089_v31 = vpop.f32.mrf.mxu1  ;;  %v9032_v46 = vadd.f32 %v9031_v30, %v9003_v13  ;;  %v13841_v26 = vpop.eup %13840  ;;  %v9116_v22 = vadd.f32 %v9115_v15, %v9087_v10  ;;  %v13488_v13 = vld [vmem:[#allocation22 + $0x7d8] sm:$0xf0]  ;;  %v12667_v30 = vld [vmem:[#allocation22 + $0xc20] sm:$0xf] }
 0x94d   :  { %9675 = vst [vmem:[#allocation25 + $0x100] sm:$0xff] %v13841_v26 }
 0x94e   :  { %v9061_v0 = vadd.f32 %v9060_v60, %v9032_v46  ;;  %13842 = vtanh.f32 %v9116_v22  ;;  %9320 = vmatmul.bf16.gmra.mxu1 %v16341_v53  ;;  %v9062_v45 = vpop.f32.mrf.mxu0  ;;  %9501 = vmatpush.bf16.msra.mxu0 %v12416_v4  ;;  %v13558_v60 = vld [vmem:[#allocation22 + $0xa08] sm:$0xf0]  ;;  %v17062_v46 = vor.u32 %v13628_v57, %v12667_v30  ;;  %v12863_v4 = vld [vmem:[#allocation22 + $0xda8] sm:$0xf]  ;;  %v13600_v57 = vld [vmem:[#allocation22 + $0xb58] sm:$0xf0] }
 0x94f   :  { %v12388_v58 = vor.u32 %v13558_v60, %v12387_v44  ;;  %9474 = vmatpush.bf16.msra.mxu3 %v12136_v42  ;;  %v17075_v49 = vor.u32 %v13677_v12, %v12863_v4  ;;  %v17570_v44 = vld [vmem:[#allocation44_spill] sm:$0xff]  ;;  %v12583_v42 = vld [vmem:[#allocation22 + $0xb78] sm:$0xf] }
 0x950   :  { %9349 = vmatmul.bf16.gmra.mxu2 %v17504_v36  ;;  %v9090_v63 = vadd.f32 %v9089_v31, %v9061_v0  ;;  %v17060_v31 = vor.u32 %v13684_v32, %v12891_v29  ;;  %13693 = vmatpush.bf16.msra.mxu1 %v17062_v46  ;;  %v13621_v0 = vld [vmem:[#allocation22 + $0xc00] sm:$0xf0]  ;;  %v12051_v29 = vld [vmem:[#allocation22 + $0x750] sm:$0xf]  ;;  %v12555_v32 = vld [vmem:[#allocation22 + $0xb40] sm:$0xf] }
 0x951   :  { %v12275_v12 = vld [vmem:[#allocation22 + $0x910] sm:$0xf] }
 0x952   :  { %9502 = vmatpush.bf16.msra.mxu0 %v12388_v58  ;;  %9558 = vmatpush.bf16.msra.mxu2 %v17060_v31  ;;  %v12303_v58 = vld [vmem:[#allocation22 + $0x948] sm:$0xf] }
 0x953   :  { %v9033_v62 = vpop.f32.mrf.mxu3  ;;  %v9118_v61 = vpop.f32.mrf.mxu2 }
 0x954   :  { %v9091_v7 = vpop.f32.mrf.mxu1  ;;  %v9034_v47 = vadd.f32 %v9033_v62, %v9005_v23  ;;  %v13843_v8 = vpop.eup %13842  ;;  %v9119_v2 = vadd.f32 %v9118_v61, %v9090_v63  ;;  %v17072_v63 = vor.u32 %v13621_v0, %v12639_v51  ;;  %v13481_v23 = vld [vmem:[#allocation22 + $0x7a0] sm:$0xf0]  ;;  %v12611_v61 = vld [vmem:[#allocation22 + $0xbb0] sm:$0xf]  ;;  %v17104_v51 = vor.u32 %v13600_v57, %v12555_v32 }
 0x955   :  { %9682 = vst [vmem:[#allocation25 + $0x138] sm:$0xff] %v13843_v8  ;;  %v12080_v62 = vor.u32 %v13481_v23, %v12079_v55  ;;  %v13530_v55 = vld [vmem:[#allocation22 + $0x928] sm:$0xf0]  ;;  %v12527_v23 = vld [vmem:[#allocation22 + $0xb08] sm:$0xf] }
 0x956   :  { %v9063_v3 = vadd.f32 %v9062_v45, %v9034_v47  ;;  %13844 = vtanh.f32 %v9119_v2  ;;  %v17046_v6 = vpop.f32.mrf.mxu0  ;;  %9503 = vmatpush.bf16.msra.mxu0 %v12360_v14  ;;  %v12835_v47 = vld [vmem:[#allocation22 + $0xd70] sm:$0xf]  ;;  %13694 = vmatpush.bf16.msra.mxu1 %v17072_v63  ;;  %v13670_v2 = vld [vmem:[#allocation22 + $0xd88] sm:$0xf0] }
 0x957   :  { %9559 = vmatpush.bf16.msra.mxu2 %v17075_v49  ;;  %v17082_v60 = vor.u32 %v13670_v2, %v12835_v47  ;;  %v13649_v47 = vld [vmem:[#allocation22 + $0xce0] sm:$0xf0] }
 0x958   :  { %9363 = vmatmul.bf16.vlgmr.msrb.gmra.mxu3 %v17505_v19  ;;  %v9092_v52 = vadd.f32 %v9091_v7, %v9063_v3  ;;  %v13614_v7 = vld [vmem:[#allocation22 + $0xbc8] sm:$0xf0] }
 0x959   :  { %9392 = vmatmul.bf16.vlgmr.msrb.gmra.mxu0 %v17506_v41  ;;  %v12107_v41 = vld [vmem:[#allocation22 + $0x7c0] sm:$0xf]  ;;  %v17078_v8 = vor.u32 %v13614_v7, %v12611_v61  ;;  %v13593_v61 = vld [vmem:[#allocation22 + $0xb20] sm:$0xf0]  ;;  %v12751_v7 = vld [vmem:[#allocation22 + $0xcc8] sm:$0xf] }
 0x95a   :  { %v12108_v17 = vor.u32 %v13488_v13, %v12107_v41  ;;  %v17572_v13 = vld [vmem:[#allocation53_spill] sm:$0xff] }
 0x95b   :  { %v17050_v27 = vpop.f32.mrf.mxu3  ;;  %v9120_v25 = vpop.f32.mrf.mxu2  ;;  %13695 = vmatpush.bf16.msra.mxu1 %v17078_v8  ;;  %9560 = vmatpush.bf16.msra.mxu2 %v17082_v60 }
 0x95c   :  { %v17052_v10 = vpop.f32.mrf.mxu1  ;;  %v13845_v33 = vpop.eup %13844  ;;  %v9121_v37 = vadd.f32 %v9120_v25, %v9092_v52  ;;  %9475 = vmatpush.bf16.msra.mxu3 %v12108_v17  ;;  %v12304_v52 = vor.u32 %v13537_v54, %v12303_v58  ;;  %v13607_v25 = vld [vmem:[#allocation22 + $0xb90] sm:$0xf0]  ;;  %v13474_v17 = vld [vmem:[#allocation22 + $0x768] sm:$0xf0]  ;;  %v12752_v58 = vor.u32 %v13649_v47, %v12751_v7  ;;  %v12023_v54 = vld [vmem:[#allocation22 + $0x718] sm:$0xf] }
 0x95d   :  { %9689 = vst [vmem:[#allocation25 + $0x170] sm:$0xff] %v13845_v33  ;;  %v12807_v33 = vld [vmem:[#allocation22 + $0xd38] sm:$0xf]  ;;  %v17095_v14 = vor.u32 %v13607_v25, %v12583_v42  ;;  %v12052_v30 = vor.u32 %v13474_v17, %v12051_v29  ;;  %v13467_v42 = vld [vmem:[#allocation22 + $0x730] sm:$0xf0]  ;;  %v17573_v25 = vld [vmem:[#allocation54_spill] sm:$0xff] }
 0x95e   :  { %13846 = vtanh.f32 %v9121_v37  ;;  %9421 = vmatmul.bf16.vlgmr.msrb.gmra.mxu1 %v17507_v18  ;;  %v17055_v19 = vpop.f32.mrf.mxu0  ;;  %v13663_v37 = vld [vmem:[#allocation22 + $0xd50] sm:$0xf0]  ;;  %v17574_v17 = vld [vmem:[#allocation58_spill] sm:$0xff]  ;;  %v17575_v47 = vld [vmem:[#allocation59_spill] sm:$0xff] }
 0x95f   :  { %v17097_v41 = vor.u32 %v13663_v37, %v12807_v33  ;;  %13696 = vmatpush.bf16.msra.mxu1 %v17095_v14  ;;  %v12024_v33 = vor.u32 %v13467_v42, %v12023_v54  ;;  %v13586_v37 = vld [vmem:[#allocation22 + $0xae8] sm:$0xf0]  ;;  %v13635_v7 = vld [vmem:[#allocation22 + $0xc70] sm:$0xf0] }
 0x960   :  { %9450 = vmatmul.bf16.vlgmr.msrb.gmra.mxu2 %v17508_v20  ;;  %v12331_v20 = vld [vmem:[#allocation22 + $0x980] sm:$0xf]  ;;  %9476 = vmatpush.bf16.msra.mxu3 %v12080_v62  ;;  %v12276_v62 = vor.u32 %v13530_v55, %v12275_v12  ;;  %v13523_v12 = vld [vmem:[#allocation22 + $0x8f0] sm:$0xf0]  ;;  %v12471_v55 = vld [vmem:[#allocation22 + $0xa98] sm:$0xf] }
 0x961   :  { %v12332_v5 = vor.u32 %v13544_v11, %v12331_v20  ;;  %9561 = vmatpush.bf16.msra.mxu2 %v17097_v41  ;;  %v13656_v20 = vld [vmem:[#allocation22 + $0xd18] sm:$0xf0] }
 0x963   :  { %v17058_v15 = vpop.f32.mrf.mxu3  ;;  %v17064_v26 = vpop.f32.mrf.mxu2  ;;  %9504 = vmatpush.bf16.msra.mxu0 %v12332_v5  ;;  %13697 = vmatpush.bf16.msra.mxu1 %v17104_v51 }
 0x964   :  { %v17066_v18 = vpop.f32.mrf.mxu1  ;;  %v13847_v22 = vpop.eup %13846  ;;  %9477 = vmatpush.bf16.msra.mxu3 %v12052_v30 }
 0x965   :  { %9696 = vst [vmem:[#allocation25 + $0x1a8] sm:$0xff] %v13847_v22  ;;  %v12779_v22 = vld [vmem:[#allocation22 + $0xd00] sm:$0xf] }
 0x966   :  { %v17070_v45 = vpop.f32.mrf.mxu0  ;;  %v17106_v5 = vor.u32 %v13656_v20, %v12779_v22  ;;  %v12247_v20 = vld [vmem:[#allocation22 + $0x8d8] sm:$0xf] }
 0x967   :  { %9505 = vmatpush.bf16.msra.mxu0 %v12304_v52  ;;  %v12499_v52 = vld [vmem:[#allocation22 + $0xad0] sm:$0xf] }
 0x968   :  { %9368 = vmatmul.bf16.gmra.mxu3 %v17514_v43  ;;  %9562 = vmatpush.bf16.msra.mxu2 %v17106_v5  ;;  %v17120_v29 = vor.u32 %v13586_v37, %v12499_v52 }
 0x969   :  { %9397 = vmatmul.bf16.gmra.mxu0 %v17570_v44  ;;  %v17116_v44 = vor.u32 %v13593_v61, %v12527_v23  ;;  %9478 = vmatpush.bf16.msra.mxu3 %v12024_v33  ;;  %v12248_v23 = vor.u32 %v13523_v12, %v12247_v20  ;;  %v12695_v61 = vld [vmem:[#allocation22 + $0xc58] sm:$0xf] }
 0x96a   :  { %v12696_v52 = vor.u32 %v13635_v7, %v12695_v61 }
 0x96b   :  { %v17084_v34 = vpop.f32.mrf.mxu3  ;;  %v17086_v43 = vpop.f32.mrf.mxu2  ;;  %9506 = vmatpush.bf16.msra.mxu0 %v12276_v62  ;;  %13698 = vmatpush.bf16.msra.mxu1 %v17116_v44  ;;  %v13579_v62 = vld [vmem:[#allocation22 + $0xab0] sm:$0xf0] }
 0x96c   :  { %v17088_v3 = vpop.f32.mrf.mxu1  ;;  %9563 = vmatpush.bf16.msra.mxu2 %v12752_v58  ;;  %v12472_v42 = vor.u32 %v13579_v62, %v12471_v55  ;;  %v17580_v55 = vld [vmem:[#allocation47_spill] sm:$0xff] }
 0x96d   :  { %13701 = vmatpush.bf16.msrb.mxu3 %v17060_v31  ;;  %v17576_v31 = vld [vmem:[#allocation38_spill] sm:$0xff] }
 0x96e   :  { %9426 = vmatmul.bf16.gmra.mxu1 %v17571_v16  ;;  %v17093_v21 = vpop.f32.mrf.mxu0  ;;  %v12723_v16 = vld [vmem:[#allocation22 + $0xc90] sm:$0xf] }
 0x96f   :  { %13699 = vmatpush.bf16.msra.mxu1 %v17120_v29  ;;  %9507 = vmatpush.bf16.msra.mxu0 %v12248_v23  ;;  %v17581_v23 = vld [vmem:[#allocation55_spill] sm:$0xff] }
 0x970   :  { %9455 = vmatmul.bf16.gmra.mxu2 %v17572_v13  ;;  %v13642_v13 = vld [vmem:[#allocation22 + $0xca8] sm:$0xf0] }
 0x971   :  { %v12724_v32 = vor.u32 %v13642_v13, %v12723_v16  ;;  %13702 = vmatpush.bf16.msrb.mxu3 %v17075_v49  ;;  %v17577_v13 = vld [vmem:[#allocation39_spill] sm:$0xff]  ;;  %v17578_v49 = vld [vmem:[#allocation49_spill] sm:$0xff] }
 0x973   :  { %v17102_v11 = vpop.f32.mrf.mxu3  ;;  %v17108_v0 = vpop.f32.mrf.mxu2  ;;  %9564 = vmatpush.bf16.msra.mxu2 %v12724_v32  ;;  %13700 = vmatpush.bf16.msra.mxu1 %v12472_v42 }
 0x974   :  { %v17110_v4 = vpop.f32.mrf.mxu1  ;;  %9529 = vmatpush.bf16.msrb.mxu0 %v17062_v46  ;;  %v17579_v46 = vld [vmem:[#allocation46_spill] sm:$0xff] }
 0x975   :  { %13703 = vmatpush.bf16.msrb.mxu3 %v17082_v60 }
 0x976   :  { %v17114_v2 = vpop.f32.mrf.mxu0 }
 0x977   :  { %9565 = vmatpush.bf16.msra.mxu2 %v12696_v52 }
 0x978   :  { %9373 = vmatmul.bf16.gmra.mxu3 %v17573_v25  ;;  %9530 = vmatpush.bf16.msrb.mxu0 %v17072_v63 }
 0x979   :  { %9402 = vmatmul.bf16.gmra.mxu0 %v17574_v17  ;;  %13704 = vmatpush.bf16.msrb.mxu3 %v17097_v41  ;;  %v17150_v17 = vperm.slane %v17578_v49, 5 }
 0x97b   :  { %v17123_v30 = vpop.f32.mrf.mxu3  ;;  %v17125_v57 = vpop.f32.mrf.mxu2  ;;  %v9133_v63 = vadd.f32 %v17050_v27, %v17150_v17  ;;  %v9135_v7 = vadd.f32 %v17058_v15, %v17150_v17 }
 0x97c   :  { %v17127_v22 = vpop.f32.mrf.mxu1  ;;  %9531 = vmatpush.bf16.msrb.mxu0 %v17078_v8 }
 0x97d   :  { %13705 = vmatpush.bf16.msrb.mxu3 %v17106_v5  ;;  %v9162_v8 = vadd.f32 %v17046_v6, %v9133_v63 }
 0x97e   :  { %9431 = vmatmul.bf16.gmra.mxu1 %v17575_v47  ;;  %v17132_v54 = vpop.f32.mrf.mxu0 }
 0x97f   :  { %v9191_v27 = vadd.f32 %v17052_v10, %v9162_v8 }
 0x980   :  { %9460 = vmatmul.bf16.gmra.mxu2 %v17576_v31  ;;  %9532 = vmatpush.bf16.msrb.mxu0 %v17095_v14 }
 0x981   :  { %13706 = vmatpush.bf16.msrb.mxu3 %v12752_v58  ;;  %v9220_v6 = vadd.f32 %v17064_v26, %v9191_v27  ;;  %v17582_v58 = vld [vmem:[#allocation56_spill] sm:$0xff] }
 0x983   :  { %v17137_v25 = vpop.f32.mrf.mxu3  ;;  %v17139_v33 = vpop.f32.mrf.mxu2 }
 0x984   :  { %v17141_v37 = vpop.f32.mrf.mxu1  ;;  %9533 = vmatpush.bf16.msrb.mxu0 %v17104_v51  ;;  %v9164_v51 = vadd.f32 %v17055_v19, %v9135_v7 }
 0x985   :  { %13707 = vmatpush.bf16.msrb.mxu3 %v12724_v32 }
 0x986   :  { %v17145_v16 = vpop.f32.mrf.mxu0  ;;  %v9193_v15 = vadd.f32 %v17066_v18, %v9164_v51 }
 0x988   :  { %9378 = vmatmul.bf16.gmra.mxu3 %v17577_v13  ;;  %9534 = vmatpush.bf16.msrb.mxu0 %v17116_v44  ;;  %v9138_v44 = vadd.f32 %v17084_v34, %v17150_v17  ;;  %v9140_v34 = vadd.f32 %v17102_v11, %v17150_v17 }
 0x989   :  { %9407 = vmatmul.bf16.gmra.mxu0 %v17579_v46  ;;  %13708 = vmatpush.bf16.msrb.mxu3 %v12696_v52  ;;  %v9222_v52 = vadd.f32 %v17086_v43, %v9193_v15 }
 0x98b   :  { %v17153_v20 = vpop.f32.mrf.mxu3  ;;  %v17156_v12 = vpop.f32.mrf.mxu2 }
 0x98c   :  { %v17158_v60 = vpop.f32.mrf.mxu1  ;;  %9535 = vmatpush.bf16.msrb.mxu0 %v17120_v29  ;;  %v9167_v29 = vadd.f32 %v17070_v45, %v9138_v44  ;;  %v9169_v45 = vadd.f32 %v17093_v21, %v9140_v34  ;;  %v9145_v44 = vadd.f32 %v17137_v25, %v17150_v17 }
 0x98e   :  { %9436 = vmatmul.bf16.gmra.mxu1 %v17580_v55  ;;  %v17164_v41 = vpop.f32.mrf.mxu0  ;;  %v9196_v55 = vadd.f32 %v17088_v3, %v9167_v29  ;;  %v9198_v11 = vadd.f32 %v17110_v4, %v9169_v45 }
 0x990   :  { %9465 = vmatmul.bf16.gmra.mxu2 %v17581_v23  ;;  %9536 = vmatpush.bf16.msrb.mxu0 %v12472_v42  ;;  %v9225_v43 = vadd.f32 %v17108_v0, %v9196_v55  ;;  %v9227_v21 = vadd.f32 %v17125_v57, %v9198_v11 }
 0x993   :  { %v17169_v62 = vpop.f32.mrf.mxu3  ;;  %v17172_v61 = vpop.f32.mrf.mxu2 }
 0x994   :  { %v17174_v5 = vpop.f32.mrf.mxu1 }
 0x996   :  { %v9277_v14 = vpop.f32.mrf.mxu0 }
 0x998   :  { %9479 = vmatmul.bf16.vlgmr.msra.gmra.mxu3 %v16215_v50 }
 0x999   :  { %9508 = vmatmul.bf16.vlgmr.msra.gmra.mxu0 %v17582_v58 }
 0x99b   :  { %v9248_v47 = vpop.f32.mrf.mxu3  ;;  %v17185_v32 = vpop.f32.mrf.mxu2 }
 0x99c   :  { %v9306_v10 = vpop.f32.mrf.mxu1  ;;  %v9249_v31 = vadd.f32 %v9248_v47, %v9220_v6  ;;  %v9143_v6 = vadd.f32 %v17123_v30, %v17150_v17 }
 0x99e   :  { %v9278_v50 = vadd.f32 %v9277_v14, %v9249_v31  ;;  %9542 = vmatmul.bf16.vlgmr.msra.gmra.mxu1 %v16285_v38  ;;  %v9279_v26 = vpop.f32.mrf.mxu0  ;;  %v9172_v51 = vadd.f32 %v17114_v2, %v9143_v6 }
 0x9a0   :  { %9566 = vmatmul.bf16.vlgmr.msra.gmra.mxu2 %v16202_v48  ;;  %v9307_v19 = vadd.f32 %v9306_v10, %v9278_v50  ;;  %v9201_v30 = vadd.f32 %v17127_v22, %v9172_v51  ;;  %v9174_v50 = vadd.f32 %v17132_v54, %v9145_v44  ;;  %v17583_v51 = vld [vmem:[#allocation40_spill] sm:$0xff] }
 0x9a2   :  { %v9230_v2 = vadd.f32 %v17139_v33, %v9201_v30  ;;  %v9203_v25 = vadd.f32 %v17141_v37, %v9174_v50 }
 0x9a3   :  { %v9250_v13 = vpop.f32.mrf.mxu3  ;;  %v9335_v49 = vpop.f32.mrf.mxu2 }
 0x9a4   :  { %v9308_v46 = vpop.f32.mrf.mxu1  ;;  %v9251_v63 = vadd.f32 %v9250_v13, %v9222_v52  ;;  %v9336_v18 = vadd.f32 %v9335_v49, %v9307_v19  ;;  %v9148_v49 = vadd.f32 %v17153_v20, %v17150_v17  ;;  %v9232_v54 = vadd.f32 %v17156_v12, %v9203_v25 }
 0x9a6   :  { %v9280_v38 = vadd.f32 %v9279_v26, %v9251_v63  ;;  %13848 = vtanh.f32 %v9336_v18  ;;  %v9282_v42 = vpop.f32.mrf.mxu0 }
 0x9a8   :  { %9484 = vmatmul.bf16.gmra.mxu3 %v16262_v1  ;;  %v9309_v48 = vadd.f32 %v9308_v46, %v9280_v38  ;;  %v9177_v46 = vadd.f32 %v17145_v16, %v9148_v49 }
 0x9a9   :  { %9513 = vmatmul.bf16.gmra.mxu0 %v16266_v24 }
 0x9aa   :  { %v9206_v20 = vadd.f32 %v17158_v60, %v9177_v46 }
 0x9ab   :  { %v9253_v23 = vpop.f32.mrf.mxu3  ;;  %v9337_v8 = vpop.f32.mrf.mxu2 }
 0x9ac   :  { %v9311_v27 = vpop.f32.mrf.mxu1  ;;  %v9254_v7 = vadd.f32 %v9253_v23, %v9225_v43  ;;  %v13849_v3 = vpop.eup %13848  ;;  %v9338_v14 = vadd.f32 %v9337_v8, %v9309_v48  ;;  %v9235_v16 = vadd.f32 %v17172_v61, %v9206_v20 }
 0x9ad   :  { %9648 = vst [vmem:[#allocation25 + $0x28] sm:$0xff] %v13849_v3 }
 0x9ae   :  { %v9283_v1 = vadd.f32 %v9282_v42, %v9254_v7  ;;  %13850 = vtanh.f32 %v9338_v14  ;;  %9547 = vmatmul.bf16.gmra.mxu1 %v16322_v59  ;;  %v9284_v0 = vpop.f32.mrf.mxu0  ;;  %v9150_v42 = vadd.f32 %v17169_v62, %v17150_v17 }
 0x9b0   :  { %9571 = vmatmul.bf16.gmra.mxu2 %v16239_v56  ;;  %v9312_v24 = vadd.f32 %v9311_v27, %v9283_v1  ;;  %v9179_v48 = vadd.f32 %v17164_v41, %v9150_v42 }
 0x9b2   :  { %v9208_v17 = vadd.f32 %v17174_v5, %v9179_v48  ;;  %v13882_v5 = vld [vmem:[#allocation23] sm:$0xff] }
 0x9b3   :  { %v9255_v58 = vpop.f32.mrf.mxu3  ;;  %v9340_v47 = vpop.f32.mrf.mxu2 }
 0x9b4   :  { %v9313_v10 = vpop.f32.mrf.mxu1  ;;  %v9256_v4 = vadd.f32 %v9255_v58, %v9227_v21  ;;  %v13851_v31 = vpop.eup %13850  ;;  %v9341_v15 = vadd.f32 %v9340_v47, %v9312_v24  ;;  %v9237_v3 = vadd.f32 %v17185_v32, %v9208_v17  ;;  %v17232_v24 = vperm.slane %v13882_v5, 6 }
 0x9b5   :  { %9655 = vst [vmem:[#allocation25 + $0x60] sm:$0xff] %v13851_v31 }
 0x9b6   :  { %v9285_v59 = vadd.f32 %v9284_v0, %v9256_v4  ;;  %13852 = vtanh.f32 %v9341_v15  ;;  %v9287_v56 = vpop.f32.mrf.mxu0 }
 0x9b8   :  { %9489 = vmatmul.bf16.gmra.mxu3 %v16301_v9  ;;  %v9314_v57 = vadd.f32 %v9313_v10, %v9285_v59 }
 0x9b9   :  { %9518 = vmatmul.bf16.gmra.mxu0 %v16308_v35 }
 0x9bb   :  { %v9258_v26 = vpop.f32.mrf.mxu3  ;;  %v9342_v19 = vpop.f32.mrf.mxu2 }
 0x9bc   :  { %v9316_v52 = vpop.f32.mrf.mxu1  ;;  %v9259_v22 = vadd.f32 %v9258_v26, %v9230_v2  ;;  %v13853_v29 = vpop.eup %13852  ;;  %v9343_v13 = vadd.f32 %v9342_v19, %v9314_v57 }
 0x9bd   :  { %9662 = vst [vmem:[#allocation25 + $0x98] sm:$0xff] %v13853_v29 }
 0x9be   :  { %v9288_v9 = vadd.f32 %v9287_v56, %v9259_v22  ;;  %13854 = vtanh.f32 %v9343_v13  ;;  %9552 = vmatmul.bf16.gmra.mxu1 %v16341_v53  ;;  %v9289_v33 = vpop.f32.mrf.mxu0 }
 0x9c0   :  { %9576 = vmatmul.bf16.gmra.mxu2 %v16256_v40  ;;  %v9317_v35 = vadd.f32 %v9316_v52, %v9288_v9 }
 0x9c3   :  { %v9260_v63 = vpop.f32.mrf.mxu3  ;;  %v9345_v18 = vpop.f32.mrf.mxu2 }
 0x9c4   :  { %v9318_v55 = vpop.f32.mrf.mxu1  ;;  %v9261_v37 = vadd.f32 %v9260_v63, %v9232_v54  ;;  %v13855_v34 = vpop.eup %13854  ;;  %v9346_v38 = vadd.f32 %v9345_v18, %v9317_v35 }
 0x9c5   :  { %9669 = vst [vmem:[#allocation25 + $0xd0] sm:$0xff] %v13855_v34 }
 0x9c6   :  { %v9290_v53 = vadd.f32 %v9289_v33, %v9261_v37  ;;  %13856 = vtanh.f32 %v9346_v38  ;;  %v9292_v40 = vpop.f32.mrf.mxu0 }
 0x9c8   :  { %9494 = vmatmul.bf16.gmra.mxu3 %v16335_v28  ;;  %v9319_v12 = vadd.f32 %v9318_v55, %v9290_v53 }
 0x9c9   :  { %9523 = vmatmul.bf16.gmra.mxu0 %v16338_v39 }
 0x9cb   :  { %v9263_v43 = vpop.f32.mrf.mxu3  ;;  %v9347_v45 = vpop.f32.mrf.mxu2 }
 0x9cc   :  { %v9321_v23 = vpop.f32.mrf.mxu1  ;;  %v9264_v60 = vadd.f32 %v9263_v43, %v9235_v16  ;;  %v13857_v8 = vpop.eup %13856  ;;  %v9348_v27 = vadd.f32 %v9347_v45, %v9319_v12 }
 0x9cd   :  { %9676 = vst [vmem:[#allocation25 + $0x108] sm:$0xff] %v13857_v8 }
 0x9ce   :  { %v9293_v62 = vadd.f32 %v9292_v40, %v9264_v60  ;;  %13858 = vtanh.f32 %v9348_v27  ;;  %v9294_v7 = vpop.f32.mrf.mxu0 }
 0x9d0   :  { %v9322_v28 = vadd.f32 %v9321_v23, %v9293_v62 }
 0x9d3   :  { %v9265_v61 = vpop.f32.mrf.mxu3  ;;  %v9350_v14 = vpop.f32.mrf.mxu2 }
 0x9d4   :  { %v9323_v41 = vpop.f32.mrf.mxu1  ;;  %v9266_v11 = vadd.f32 %v9265_v61, %v9237_v3  ;;  %v13859_v39 = vpop.eup %13858  ;;  %v9351_v6 = vadd.f32 %v9350_v14, %v9322_v28 }
 0x9d5   :  { %9683 = vst [vmem:[#allocation25 + $0x140] sm:$0xff] %v13859_v39 }
 0x9d6   :  { %v9295_v1 = vadd.f32 %v9294_v7, %v9266_v11  ;;  %13860 = vtanh.f32 %v9351_v6  ;;  %v9393_v0 = vpop.f32.mrf.mxu0 }
 0x9d8   :  { %9581 = vmatmul.bf16.vlgmr.msrb.gmra.mxu3 %v17504_v36  ;;  %v9324_v21 = vadd.f32 %v9323_v41, %v9295_v1 }
 0x9d9   :  { %9537 = vmatmul.bf16.vlgmr.msrb.gmra.mxu0 %v17583_v51 }
 0x9db   :  { %v9364_v58 = vpop.f32.mrf.mxu3  ;;  %v9352_v32 = vpop.f32.mrf.mxu2 }
 0x9dc   :  { %v9422_v47 = vpop.f32.mrf.mxu1  ;;  %v9365_v10 = vadd.f32 %v9364_v58, %v17232_v24  ;;  %v13861_v4 = vpop.eup %13860  ;;  %v9353_v31 = vadd.f32 %v9352_v32, %v9324_v21 }
 0x9dd   :  { %9690 = vst [vmem:[#allocation25 + $0x178] sm:$0xff] %v13861_v4 }
 0x9de   :  { %v9394_v15 = vadd.f32 %v9393_v0, %v9365_v10  ;;  %13862 = vtanh.f32 %v9353_v31  ;;  %v9395_v30 = vpop.f32.mrf.mxu0 }
 0x9e0   :  { %v9423_v44 = vadd.f32 %v9422_v47, %v9394_v15 }
 0x9e3   :  { %v9366_v59 = vpop.f32.mrf.mxu3  ;;  %v9451_v36 = vpop.f32.mrf.mxu2 }
 0x9e4   :  { %v9424_v56 = vpop.f32.mrf.mxu1  ;;  %v9367_v57 = vadd.f32 %v9366_v59, %v17232_v24  ;;  %v13863_v2 = vpop.eup %13862  ;;  %v17237_v50 = vadd.f32 %v9451_v36, %v9423_v44 }
 0x9e5   :  { %9697 = vst [vmem:[#allocation25 + $0x1b0] sm:$0xff] %v13863_v2 }
 0x9e6   :  { %v9396_v26 = vadd.f32 %v9395_v30, %v9367_v57  ;;  %v9398_v19 = vpop.f32.mrf.mxu0 }
 0x9e8   :  { %v9425_v52 = vadd.f32 %v9424_v56, %v9396_v26 }
 0x9eb   :  { %v9369_v22 = vpop.f32.mrf.mxu3  ;;  %v9453_v29 = vpop.f32.mrf.mxu2 }
 0x9ec   :  { %v17239_v13 = vadd.f32 %v9453_v29, %v9425_v52  ;;  %v9427_v25 = vpop.f32.mrf.mxu1  ;;  %v9370_v62 = vadd.f32 %v9369_v22, %v17232_v24 }
 0x9ee   :  { %v9400_v49 = vpop.f32.mrf.mxu0  ;;  %v9399_v3 = vadd.f32 %v9398_v19, %v9370_v62 }
 0x9f0   :  { %v9428_v41 = vadd.f32 %v9427_v25, %v9399_v3 }
 0x9f3   :  { %v9371_v9 = vpop.f32.mrf.mxu3  ;;  %v9456_v33 = vpop.f32.mrf.mxu2 }
 0x9f4   :  { %v9429_v54 = vpop.f32.mrf.mxu1  ;;  %v9372_v11 = vadd.f32 %v9371_v9, %v17232_v24  ;;  %v9457_v6 = vadd.f32 %v9456_v33, %v9428_v41 }
 0x9f6   :  { %v9403_v35 = vpop.f32.mrf.mxu0  ;;  %v9401_v1 = vadd.f32 %v9400_v49, %v9372_v11 }
 0x9f8   :  { %v9430_v58 = vadd.f32 %v9429_v54, %v9401_v1 }
 0x9fb   :  { %v9374_v46 = vpop.f32.mrf.mxu3  ;;  %v9458_v63 = vpop.f32.mrf.mxu2 }
 0x9fc   :  { %v9432_v55 = vpop.f32.mrf.mxu1  ;;  %v9375_v32 = vadd.f32 %v9374_v46, %v17232_v24  ;;  %v9459_v31 = vadd.f32 %v9458_v63, %v9430_v58 }
 0x9fe   :  { %v9405_v18 = vpop.f32.mrf.mxu0  ;;  %v9404_v15 = vadd.f32 %v9403_v35, %v9375_v32 }
 0xa00   :  { %v9433_v57 = vadd.f32 %v9432_v55, %v9404_v15 }
 0xa03   :  { %v9376_v37 = vpop.f32.mrf.mxu3  ;;  %v9461_v34 = vpop.f32.mrf.mxu2 }
 0xa04   :  { %v9434_v42 = vpop.f32.mrf.mxu1  ;;  %v9377_v2 = vadd.f32 %v9376_v37, %v17232_v24  ;;  %v9462_v22 = vadd.f32 %v9461_v34, %v9433_v57 }
 0xa06   :  { %v9408_v38 = vpop.f32.mrf.mxu0  ;;  %v9406_v29 = vadd.f32 %v9405_v18, %v9377_v2 }
 0xa08   :  { %v9435_v35 = vadd.f32 %v9434_v42, %v9406_v29 }
 0xa0b   :  { %v9379_v20 = vpop.f32.mrf.mxu3  ;;  %v9463_v53 = vpop.f32.mrf.mxu2 }
 0xa0c   :  { %v9380_v40 = vadd.f32 %v9379_v20, %v17232_v24  ;;  %v17247_v23 = vpop.f32.mrf.mxu1  ;;  %v9464_v20 = vadd.f32 %v9463_v53, %v9435_v35 }
 0xa0e   :  { %v17242_v12 = vadd.f32 %v9408_v38, %v9380_v40  ;;  %v9410_v16 = vpop.f32.mrf.mxu0 }
 0xa10   :  { %v9438_v42 = vadd.f32 %v17247_v23, %v17242_v12 }
 0xa13   :  { %v9381_v48 = vpop.f32.mrf.mxu3  ;;  %v17244_v43 = vpop.f32.mrf.mxu2 }
 0xa14   :  { %v9382_v45 = vadd.f32 %v9381_v48, %v17232_v24  ;;  %v17260_v28 = vpop.f32.mrf.mxu1 }
 0xa16   :  { %v17249_v60 = vadd.f32 %v9410_v16, %v9382_v45  ;;  %v17251_v8 = vpop.f32.mrf.mxu0 }
 0xa1b   :  { %v17253_v27 = vpop.f32.mrf.mxu3  ;;  %v17255_v17 = vpop.f32.mrf.mxu2 }
 0xa1c   :  { %v9543_v0 = vpop.f32.mrf.mxu1  ;;  %v9481_v1 = vadd.f32 %v17253_v27, %v17237_v50 }
 0xa1e   :  { %v17258_v7 = vpop.f32.mrf.mxu0  ;;  %v9510_v12 = vadd.f32 %v17251_v8, %v9481_v1 }
 0xa23   :  { %v17262_v61 = vpop.f32.mrf.mxu3  ;;  %v17264_v14 = vpop.f32.mrf.mxu2 }
 0xa24   :  { %v9545_v44 = vpop.f32.mrf.mxu1 }
 0xa26   :  { %v9514_v39 = vpop.f32.mrf.mxu0 }
 0xa2b   :  { %v9485_v5 = vpop.f32.mrf.mxu3  ;;  %v17267_v21 = vpop.f32.mrf.mxu2 }
 0xa2c   :  { %v9486_v51 = vadd.f32 %v9485_v5, %v9457_v6  ;;  %v9548_v46 = vpop.f32.mrf.mxu1  ;;  %v9467_v6 = vadd.f32 %v17244_v43, %v9438_v42  ;;  %v9483_v43 = vadd.f32 %v17262_v61, %v17239_v13 }
 0xa2e   :  { %v9515_v47 = vadd.f32 %v9514_v39, %v9486_v51  ;;  %v9516_v10 = vpop.f32.mrf.mxu0  ;;  %v9440_v51 = vadd.f32 %v17260_v28, %v17249_v60 }
 0xa30   :  { %v9544_v4 = vadd.f32 %v9543_v0, %v9515_v47 }
 0xa33   :  { %v9487_v30 = vpop.f32.mrf.mxu3  ;;  %v9572_v59 = vpop.f32.mrf.mxu2 }
 0xa34   :  { %v9488_v36 = vadd.f32 %v9487_v30, %v9459_v31  ;;  %v9573_v56 = vadd.f32 %v9572_v59, %v9544_v4  ;;  %v9550_v45 = vpop.f32.mrf.mxu1  ;;  %v9512_v30 = vadd.f32 %v17258_v7, %v9483_v43 }
 0xa36   :  { %v9517_v26 = vadd.f32 %v9516_v10, %v9488_v36  ;;  %13864 = vtanh.f32 %v9573_v56  ;;  %v9519_v19 = vpop.f32.mrf.mxu0  ;;  %v9469_v10 = vadd.f32 %v17255_v17, %v9440_v51 }
 0xa38   :  { %v9546_v52 = vadd.f32 %v9545_v44, %v9517_v26 }
 0xa3b   :  { %v9490_v25 = vpop.f32.mrf.mxu3  ;;  %v9574_v49 = vpop.f32.mrf.mxu2 }
 0xa3c   :  { %v9491_v9 = vadd.f32 %v9490_v25, %v9462_v22  ;;  %v13865_v33 = vpop.eup %13864  ;;  %v9575_v54 = vadd.f32 %v9574_v49, %v9546_v52  ;;  %v9553_v23 = vpop.f32.mrf.mxu1 }
 0xa3d   :  { %9663 = vst [vmem:[#allocation25 + $0xa0] sm:$0xff] %v13865_v33 }
 0xa3e   :  { %v9520_v63 = vadd.f32 %v9519_v19, %v9491_v9  ;;  %13866 = vtanh.f32 %v9575_v54  ;;  %v9521_v38 = vpop.f32.mrf.mxu0 }
 0xa40   :  { %v9549_v55 = vadd.f32 %v9548_v46, %v9520_v63 }
 0xa43   :  { %v9492_v24 = vpop.f32.mrf.mxu3  ;;  %v9577_v37 = vpop.f32.mrf.mxu2 }
 0xa44   :  { %v9493_v40 = vadd.f32 %v9492_v24, %v9464_v20  ;;  %v13867_v16 = vpop.eup %13866  ;;  %v9578_v48 = vadd.f32 %v9577_v37, %v9549_v55  ;;  %v9555_v59 = vpop.f32.mrf.mxu1 }
 0xa45   :  { %9670 = vst [vmem:[#allocation25 + $0xd8] sm:$0xff] %v13867_v16 }
 0xa46   :  { %v9522_v18 = vadd.f32 %v9521_v38, %v9493_v40  ;;  %13868 = vtanh.f32 %v9578_v48  ;;  %v9524_v34 = vpop.f32.mrf.mxu0 }
 0xa48   :  { %v9551_v62 = vadd.f32 %v9550_v45, %v9522_v18 }
 0xa4b   :  { %v9495_v3 = vpop.f32.mrf.mxu3  ;;  %v9579_v41 = vpop.f32.mrf.mxu2 }
 0xa4c   :  { %v13869_v11 = vpop.eup %13868  ;;  %v9580_v39 = vadd.f32 %v9579_v41, %v9551_v62  ;;  %v9496_v0 = vadd.f32 %v9495_v3, %v9467_v6 }
 0xa4d   :  { %9677 = vst [vmem:[#allocation25 + $0x110] sm:$0xff] %v13869_v11 }
 0xa4e   :  { %13870 = vtanh.f32 %v9580_v39  ;;  %v9526_v53 = vpop.f32.mrf.mxu0  ;;  %v9525_v32 = vadd.f32 %v9524_v34, %v9496_v0 }
 0xa50   :  { %v9554_v27 = vadd.f32 %v9553_v23, %v9525_v32 }
 0xa53   :  { %v9497_v5 = vpop.f32.mrf.mxu3 }
 0xa54   :  { %v13871_v58 = vpop.eup %13870  ;;  %v9498_v31 = vadd.f32 %v9497_v5, %v9469_v10 }
 0xa55   :  { %9684 = vst [vmem:[#allocation25 + $0x148] sm:$0xff] %v13871_v58 }
 0xa56   :  { %v9538_v47 = vpop.f32.mrf.mxu0  ;;  %v9527_v28 = vadd.f32 %v9526_v53, %v9498_v31 }
 0xa57   :  { %v9539_v4 = vadd.f32 %v9538_v47, %v9510_v12 }
 0xa58   :  { %v9556_v56 = vadd.f32 %v9555_v59, %v9527_v28 }
 0xa59   :  { %v9568_v50 = vadd.f32 %v17264_v14, %v9539_v4 }
 0xa5b   :  { %v9582_v15 = vpop.f32.mrf.mxu3  ;;  %13872 = vtanh.f32 %v9568_v50 }
 0xa5c   :  { %v9583_v60 = vadd.f32 %v9582_v15, %v9554_v27 }
 0xa5e   :  { %13874 = vtanh.f32 %v9583_v60  ;;  %v9540_v8 = vpop.f32.mrf.mxu0 }
 0xa5f   :  { %v9541_v44 = vadd.f32 %v9540_v8, %v9512_v30 }
 0xa61   :  { %v13873_v36 = vpop.eup %13872  ;;  %v9570_v17 = vadd.f32 %v17267_v21, %v9541_v44 }
 0xa62   :  { %9649 = vst [vmem:[#allocation25 + $0x30] sm:$0xff] %v13873_v36 }
 0xa63   :  { %v9584_v13 = vpop.f32.mrf.mxu3  ;;  %13876 = vtanh.f32 %v9570_v17 }
 0xa64   :  { %v13875_v61 = vpop.eup %13874  ;;  %v9585_v14 = vadd.f32 %v9584_v13, %v9556_v56 }
 0xa65   :  { %9691 = vst [vmem:[#allocation25 + $0x180] sm:$0xff] %v13875_v61 }
 0xa66   :  { %13878 = vtanh.f32 %v9585_v14 }
 0xa69   :  { %v13877_v7 = vpop.eup %13876 }
 0xa6a   :  { %9656 = vst [vmem:[#allocation25 + $0x68] sm:$0xff] %v13877_v7 }
 0xa6c   :  { %v13879_v57 = vpop.eup %13878 }
 0xa6d   :  { %9698 = vst [vmem:[#allocation25 + $0x1b8] sm:$0xff] %v13879_v57 }
 0xa6e   :  { %9711 = dma.vmem_to_hbm [thread:$0]  %s9704_s13, 7168, %s9706_s25, [#allocation4], %s14287_s1, %s14287_s1, %s14288_s28  }
 0xa6f   :  { %14259 = dma.done.wait [#allocation4], 7168  }
 0xa70   :  { %14260 = vsyncadd [#allocation4], 4294960128 }
 0xa71   :  { %9716 = vsyncpa [#allocation3], 1 }
 0xa72   :  { %9717 = vsyncpa [#allocation6], 1 }
 0xa73   :  { %9718 = vsyncpa [#allocation9], 1 }
 0xa74   :  { %9719 = vsyncpa [#allocation12], 1 }
 0xa75   :  { %9720 = vsyncpa [#allocation15], 1 }
 0xa76   :  { %9721 = vsyncpa [#allocation18], 1 }
 0xa77   :  { %9722 = vsyncpa [#allocation21], 1 }
 0xa78   :  { %9723 = vsyncpa [#allocation24], 1 }
 0xa79   :  { %9724 = vsyncpa [#allocation4], 1 }

</bundles_post_ra>
